<compile_context>
chip_gen: v6e
topology: v6e:2x2x1
jax: 0.10.0
libtpu: 0.0.40
codegen_flags: <defaults>
</compile_context>

<pallas_src>
import math

import jax
import jax.numpy as jnp
from jax import lax
from jax.experimental import pallas as pl
from jax.experimental.pallas import tpu as pltpu


# ----------------------------------------------------------------------------
# In-kernel building blocks (2-D: rows = sequence positions, lanes = channels)
# ----------------------------------------------------------------------------
def _stage(buf, x, length, pad_rows):
    """Stage x into the guard-padded f32 scratch.

    Only the top/bottom guard bands over columns 0:cin are re-zeroed (taps never
    read columns >= cin nor rows beyond the guard band), instead of memsetting
    the whole buffer.  pad_rows % 8 == 0 keeps the main store tile-aligned.
    """
    cin = x.shape[1]
    guard = jnp.zeros((pad_rows, cin), jnp.float32)
    buf[0:pad_rows, 0:cin] = guard
    buf[pad_rows:pad_rows + length, 0:cin] = x
    buf[pad_rows + length:pad_rows + length + pad_rows, 0:cin] = guard


def _conv1d(buf, x, length, w, b, pad_rows, *, ktaps, padding, dilation=1,
            pre_relu=False, post_relu=False):
    """Stride-1 Conv1d as ONE fused matmul: (lout, K*Cin) x (K*Cin, Cout).

    `w` is stored pre-reshaped as (K*Cin, Cout) (tap-major rows); the K shifted
    tap views of the zero-guarded scratch are concatenated along lanes so the
    MXU sees a single wide-contraction matmul instead of K skinny dots.
    """
    cin = x.shape[1]
    lout = length + 2 * padding - dilation * (ktaps - 1)
    if pre_relu:                      # relu(0) == 0 -> relu-then-pad == pad-then-relu
        x = jnp.maximum(x, 0.0)
    _stage(buf, x, length, pad_rows)
    taps = [buf[pad_rows - padding + k * dilation:
                pad_rows - padding + k * dilation + lout, 0:cin]
            for k in range(ktaps)]
    lhs = taps[0] if ktaps == 1 else jnp.concatenate(taps, axis=1)
    out = jnp.dot(lhs.astype(w.dtype), w, preferred_element_type=jnp.float32) + b
    if post_relu:
        out = jnp.maximum(out, 0.0)
    return out, lout


def _conv1x1(x, w, b):
    """1x1 conv == dense matmul (no staging / padding needed)."""
    return jnp.dot(x.astype(w.dtype), w, preferred_element_type=jnp.float32) + b


def _down_conv1d(buf, x, length, w, b, pad_rows):
    """Conv1d(kernel=4, stride=2, padding=1): strided tap reads + one fused matmul."""
    cin = x.shape[1]
    ktaps, padding, stride = 4, 1, 2
    lout = (length + 2 * padding - ktaps) // stride + 1
    _stage(buf, x, length, pad_rows)
    taps = [buf[pl.ds(pad_rows - padding + k, lout, stride=stride), 0:cin]
            for k in range(ktaps)]
    lhs = jnp.concatenate(taps, axis=1)                          # (lout, 4*cin)
    out = jnp.dot(lhs.astype(w.dtype), w, preferred_element_type=jnp.float32) + b
    return out, lout


def _upsample2_nearest(h):
    """x2 nearest-neighbour upsample along rows: broadcast + sublane reshape."""
    lh, c = h.shape
    return jnp.broadcast_to(h[:, None, :], (lh, 2, c)).reshape(2 * lh, c)


def _res_block(buf, x, length, w1, b1, w2, b2, dilation, pad_rows):
    """ResConv1DBlock: x + conv1x1(relu(conv3_dilated(relu(x))))."""
    h, _ = _conv1d(buf, x, length, w1, b1, pad_rows, ktaps=3,
                   padding=dilation, dilation=dilation,
                   pre_relu=True, post_relu=True)
    return x + _conv1x1(h, w2, b2), length


def _vector_quantize(z, cb, cb_sq, mxu_dtype):
    """Nearest-code lookup (deterministic eval path of VectorQuantize)."""
    # argmin_c ||z - c||^2: |z|^2 is constant per row -> only -2 z.c + |c|^2 matters;
    # |c|^2 (cb_sq) is hoisted out of the kernel and passed in as a constant.
    zc = lax.dot_general(z.astype(mxu_dtype), cb.astype(mxu_dtype),
                         (((1,), (1,)), ((), ())),
                         preferred_element_type=jnp.float32)          # (N, C)
    score = cb_sq - 2.0 * zc
    smin = jnp.min(score, axis=-1, keepdims=True)
    code_iota = lax.broadcasted_iota(jnp.int32, score.shape, 1)
    big = jnp.iinfo(jnp.int32).max
    idx = jnp.min(jnp.where(score <= smin, code_iota, big),
                  axis=-1, keepdims=True)                             # first-min index
    onehot = (code_iota == idx).astype(jnp.float32)
    q = jnp.dot(onehot, cb, preferred_element_type=jnp.float32)       # exact f32 codes
    return q, idx


# ----------------------------------------------------------------------------
# Fused forward pass (one pallas_call)
# ----------------------------------------------------------------------------
def _weight_spec(shape, single_buffer):
    """Whole-array, grid-constant BlockSpec for a weight leaf.

    The index_map never changes across the batch grid, so single-buffering
    (pl.Buffered(1)) halves its VMEM footprint with zero pipelining cost.
    """
    ndim = len(shape)
    index_map = lambda b: (0,) * ndim
    if single_buffer:
        try:
            return pl.BlockSpec(shape, index_map, pipeline_mode=pl.Buffered(1))
        except Exception:          # this build has no pipeline_mode / Buffered
            pass
    return pl.BlockSpec(shape, index_map)


def conv_vq_motion_model_forward(motion, params, cfg, *, single_buffer_weights=True):
    """motion (B, L, motion_dim) -> (decoded (B, L, motion_dim), indices (B, Lenc), commit_loss)."""
    B, L, motion_dim = motion.shape
    width = cfg["width"]
    edd = cfg["enc_dec_dim"]
    depth = cfg["depth"]
    dgr = cfg["dilation_growth_rate"]
    n_down = int(round(math.log2(cfg["down_sampling_ratio"])))
    assert L % (2 ** n_down) == 0
    lenc = L // (2 ** n_down)
    dilations = [dgr ** d for d in range(depth)]
    rev_dilations = dilations[::-1]                     # reverse_dilation=True in decoder
    max_pad = max([1] + dilations)
    pad_rows = ((max_pad + 7) // 8) * 8                 # sublane-aligned guard band
    cmax = max(motion_dim, width, edd)
    lbuf = L + 2 * pad_rows
    mxu_dtype = jnp.bfloat16 if cfg.get("use_bf16", True) else jnp.float32

    # Hoist the codebook norm term ||c||^2 (constant across the grid) out of the kernel.
    cb = params["vq"]["codebook"].astype(jnp.float32)
    op = {"enc": params["enc"], "dec": params["dec"],
          "vq": dict(params["vq"], codebook_sq=jnp.sum(cb * cb, axis=1)[None, :])}
    leaves, treedef = jax.tree_util.tree_flatten(op)
    n_leaves = len(leaves)

    def kernel(*args):
        motion_ref = args[0]
        p = jax.tree_util.tree_unflatten(treedef, list(args[1:1 + n_leaves]))
        dec_ref, idx_ref, loss_ref, buf = args[1 + n_leaves:]
        enc, dec, vq = p["enc"], p["dec"], p["vq"]

        # ------------------------------ encoder ------------------------------
        h = motion_ref[0]                                  # (L, motion_dim) f32
        h, l = _conv1d(buf, h, L, enc["conv_in_w"][...], enc["conv_in_b"][...],
                       pad_rows, ktaps=3, padding=1, post_relu=True)
        for i in range(n_down):
            h, l = _down_conv1d(buf, h, l, enc["down_w"][i], enc["down_b"][i], pad_rows)
            for d in range(depth):
                h, l = _res_block(buf, h, l,
                                  enc["res_w1"][i, d], enc["res_b1"][i, d],
                                  enc["res_w2"][i, d], enc["res_b2"][i, d],
                                  dilations[d], pad_rows)
        emb, l = _conv1d(buf, h, l, enc["conv_out_w"][...], enc["conv_out_b"][...],
                         pad_rows, ktaps=3, padding=1)     # (lenc, enc_dec_dim)

        # ------ VQ: project_in -> nearest code -> project_out (fused) --------
        z = _conv1x1(emb, vq["proj_in_w"][...], vq["proj_in_b"][...])
        q, idx = _vector_quantize(z, vq["codebook"][...], vq["codebook_sq"][...],
                                  mxu_dtype)
        diff = q - z
        loss_ref[0] = jnp.mean(diff * diff, keepdims=True)  # per-batch mse (codebook space)
        idx_ref[0] = idx
        q_out = _conv1x1(q, vq["proj_out_w"][...], vq["proj_out_b"][...])
        # TODO(synk): kmeans codebook init, EMA codebook updates, affine-param batch
        # statistics and stochastic code sampling are stateful training-time behaviors
        # of vector_quantize_pytorch; this implements the deterministic eval forward.

        # ------------------------------ decoder ------------------------------
        h, l = _conv1d(buf, q_out, lenc, dec["conv_in_w"][...], dec["conv_in_b"][...],
                       pad_rows, ktaps=3, padding=1, post_relu=True)
        for i in range(n_down):
            for d in range(depth):
                h, l = _res_block(buf, h, l,
                                  dec["res_w1"][i, d], dec["res_b1"][i, d],
                                  dec["res_w2"][i, d], dec["res_b2"][i, d],
                                  rev_dilations[d], pad_rows)
            h = _upsample2_nearest(h)                       # nn.Upsample(scale=2, 'nearest')
            l = 2 * l
            h, l = _conv1d(buf, h, l, dec["up_w"][i], dec["up_b"][i],
                           pad_rows, ktaps=3, padding=1)
        h, l = _conv1d(buf, h, l, dec["conv_mid_w"][...], dec["conv_mid_b"][...],
                       pad_rows, ktaps=3, padding=1, post_relu=True)
        h, l = _conv1d(buf, h, l, dec["conv_out_w"][...], dec["conv_out_b"][...],
                       pad_rows, ktaps=3, padding=1)
        # Lane-dense writeback: store (motion_dim, L) so lanes carry the long axis.
        dec_ref[0] = jnp.transpose(h)

    in_specs = [pl.BlockSpec((1, L, motion_dim), lambda b: (b, 0, 0))]
    in_specs += [_weight_spec(tuple(leaf.shape), single_buffer_weights)
                 for leaf in leaves]

    out_shape = (
        jax.ShapeDtypeStruct((B, motion_dim, L), jnp.float32),   # decoded (transposed)
        jax.ShapeDtypeStruct((B, lenc, 1), jnp.int32),           # code indices
        jax.ShapeDtypeStruct((B, 1, 1), jnp.float32),            # per-batch commit mse
    )
    out_specs = (
        pl.BlockSpec((1, motion_dim, L), lambda b: (b, 0, 0)),
        pl.BlockSpec((1, lenc, 1), lambda b: (b, 0, 0)),
        pl.BlockSpec((1, 1, 1), lambda b: (b, 0, 0)),
    )

    dec_t, idx3, loss3 = pl.pallas_call(
        kernel,
        out_shape=out_shape,
        grid_spec=pltpu.PrefetchScalarGridSpec(
            num_scalar_prefetch=0,
            grid=(B,),
            in_specs=in_specs,
            out_specs=out_specs,
            scratch_shapes=[pltpu.VMEM((lbuf, cmax), jnp.float32)]),
        compiler_params=pltpu.CompilerParams(
            dimension_semantics=("parallel",),               # batch split across TCs on v7x
            vmem_limit_bytes=32 * 1024 * 1024),              # explicit budget (v7x: 64 MiB phys)
    )(motion.astype(jnp.float32), *leaves)

    decoded = jnp.transpose(dec_t, (0, 2, 1))                # back to (B, L, motion_dim)
    indices = idx3[:, :, 0]                                  # (B, lenc) int32
    commit_loss = jnp.mean(loss3)                            # equal-sized batches -> global mse
    return decoded, indices, commit_loss


# ----------------------------------------------------------------------------
# Deterministic parameter init (weights pre-laid-out for the kernel)
# ----------------------------------------------------------------------------
class _KeyGen:
    def __init__(self, key):
        self.key = key

    def __call__(self):
        self.key, sub = jax.random.split(self.key)
        return sub


def init_params(key, cfg):
    """Conv weights stored as fused-tap slabs (K*Cin, Cout), stacked per stage.

    Matmul weights are cast to bf16 when cfg['use_bf16'] (accumulation stays
    f32 in-kernel); biases and the codebook stay f32.
    """
    kg = _KeyGen(key)
    md, edd, width = cfg["motion_dim"], cfg["enc_dec_dim"], cfg["width"]
    depth = cfg["depth"]
    n_down = int(round(math.log2(cfg["down_sampling_ratio"])))
    wdt = jnp.bfloat16 if cfg.get("use_bf16", True) else jnp.float32

    def f32(shape, scale=0.1):
        return jax.random.normal(kg(), shape, jnp.float32) * scale

    def wgt(shape, scale=0.1):
        return f32(shape, scale).astype(wdt)

    enc = dict(
        conv_in_w=wgt((3 * md, width)),                    conv_in_b=f32((1, width)),
        down_w=wgt((n_down, 4 * width, width)),            down_b=f32((n_down, 1, width)),
        res_w1=wgt((n_down, depth, 3 * width, width)),     res_b1=f32((n_down, depth, 1, width)),
        res_w2=wgt((n_down, depth, width, width)),         res_b2=f32((n_down, depth, 1, width)),
        conv_out_w=wgt((3 * width, edd)),                  conv_out_b=f32((1, edd)),
    )
    dec = dict(
        conv_in_w=wgt((3 * edd, width)),                   conv_in_b=f32((1, width)),
        res_w1=wgt((n_down, depth, 3 * width, width)),     res_b1=f32((n_down, depth, 1, width)),
        res_w2=wgt((n_down, depth, width, width)),         res_b2=f32((n_down, depth, 1, width)),
        up_w=wgt((n_down, 3 * width, width)),              up_b=f32((n_down, 1, width)),
        conv_mid_w=wgt((3 * width, width)),                conv_mid_b=f32((1, width)),
        conv_out_w=wgt((3 * width, md)),                   conv_out_b=f32((1, md)),
    )
    vq = dict(
        proj_in_w=wgt((edd, cfg["codebook_dim"])),         proj_in_b=f32((1, cfg["codebook_dim"])),
        codebook=f32((cfg["codebook_size"], cfg["codebook_dim"]), scale=1.0),
        proj_out_w=wgt((cfg["codebook_dim"], edd)),        proj_out_b=f32((1, edd)),
    )
    return dict(enc=enc, dec=dec, vq=vq)


# ----------------------------------------------------------------------------
if __name__ == "__main__":
    # small synthetic config (args.*); use_bf16 drives bf16 MXU operands (v6e/v7x
    # native; set False for a pure-f32 path, e.g. on v5e).
    cfg = dict(motion_dim=8, enc_dec_dim=32, width=32, down_sampling_ratio=4,
               depth=2, dilation_growth_rate=3, codebook_size=64, codebook_dim=16,
               use_bf16=True)
    B, L = 2, 16

    root = jax.random.PRNGKey(0)
    pkey, xkey = jax.random.split(root)
    params = init_params(pkey, cfg)
    motion = jax.random.normal(xkey, (B, L, cfg["motion_dim"]), jnp.float32)

    def run(single_buffer):
        fwd = jax.jit(lambda m: conv_vq_motion_model_forward(
            m, params, cfg, single_buffer_weights=single_buffer))
        out = fwd(motion)
        jax.block_until_ready(out)
        return out

    try:
        decoded, indices, commit_loss = run(True)
    except Exception:
        # TODO(synk): this JAX build rejected pl.Buffered(1) single-buffering of the
        # grid-constant weight blocks; rerun with default double-buffered weights.
        decoded, indices, commit_loss = run(False)

    assert decoded.shape == (B, L, cfg["motion_dim"]), decoded.shape
    assert indices.shape == (B, L // cfg["down_sampling_ratio"]), indices.shape
    assert indices.dtype == jnp.int32
    assert commit_loss.shape == (), commit_loss.shape
    print("KERNEL_OK")
</pallas_src>

<mosaic_0001>
module attributes {stable_mosaic.version = 11 : i64} {
  func.func @kernel(%arg0: i32, %arg1: memref<1x16x8xf32, #tpu.memory_space<vmem>>, %arg2: memref<1x32xf32, #tpu.memory_space<vmem>>, %arg3: memref<96x32xbf16, #tpu.memory_space<vmem>>, %arg4: memref<1x32xf32, #tpu.memory_space<vmem>>, %arg5: memref<96x32xbf16, #tpu.memory_space<vmem>>, %arg6: memref<1x8xf32, #tpu.memory_space<vmem>>, %arg7: memref<96x8xbf16, #tpu.memory_space<vmem>>, %arg8: memref<2x2x1x32xf32, #tpu.memory_space<vmem>>, %arg9: memref<2x2x1x32xf32, #tpu.memory_space<vmem>>, %arg10: memref<2x2x96x32xbf16, #tpu.memory_space<vmem>>, %arg11: memref<2x2x32x32xbf16, #tpu.memory_space<vmem>>, %arg12: memref<2x1x32xf32, #tpu.memory_space<vmem>>, %arg13: memref<2x96x32xbf16, #tpu.memory_space<vmem>>, %arg14: memref<1x32xf32, #tpu.memory_space<vmem>>, %arg15: memref<24x32xbf16, #tpu.memory_space<vmem>>, %arg16: memref<1x32xf32, #tpu.memory_space<vmem>>, %arg17: memref<96x32xbf16, #tpu.memory_space<vmem>>, %arg18: memref<2x1x32xf32, #tpu.memory_space<vmem>>, %arg19: memref<2x128x32xbf16, #tpu.memory_space<vmem>>, %arg20: memref<2x2x1x32xf32, #tpu.memory_space<vmem>>, %arg21: memref<2x2x1x32xf32, #tpu.memory_space<vmem>>, %arg22: memref<2x2x96x32xbf16, #tpu.memory_space<vmem>>, %arg23: memref<2x2x32x32xbf16, #tpu.memory_space<vmem>>, %arg24: memref<64x16xf32, #tpu.memory_space<vmem>>, %arg25: memref<1x64xf32, #tpu.memory_space<vmem>>, %arg26: memref<1x16xf32, #tpu.memory_space<vmem>>, %arg27: memref<32x16xbf16, #tpu.memory_space<vmem>>, %arg28: memref<1x32xf32, #tpu.memory_space<vmem>>, %arg29: memref<16x32xbf16, #tpu.memory_space<vmem>>, %arg30: memref<1x8x16xf32, #tpu.memory_space<vmem>>, %arg31: memref<1x4x1xi32, #tpu.memory_space<vmem>>, %arg32: memref<1x1x1xf32, #tpu.memory_space<vmem>>, %arg33: memref<32x32xf32, #tpu.memory_space<vmem>>) attributes {dimension_semantics = [#tpu.dimension_semantics<parallel>], iteration_bounds = array<i64: 2>, scalar_prefetch = 0 : i64, scratch_operands = 1 : i64, tpu.core_type = #tpu.core_type<tc>, window_params = [{transform_indices = @transform_0, window_bounds = array<i64: 1, 16, 8>}, {pipeline_mode = #tpu.pipeline_mode<synchronous>, transform_indices = @transform_1, window_bounds = array<i64: 1, 32>}, {pipeline_mode = #tpu.pipeline_mode<synchronous>, transform_indices = @transform_2, window_bounds = array<i64: 96, 32>}, {pipeline_mode = #tpu.pipeline_mode<synchronous>, transform_indices = @transform_3, window_bounds = array<i64: 1, 32>}, {pipeline_mode = #tpu.pipeline_mode<synchronous>, transform_indices = @transform_4, window_bounds = array<i64: 96, 32>}, {pipeline_mode = #tpu.pipeline_mode<synchronous>, transform_indices = @transform_5, window_bounds = array<i64: 1, 8>}, {pipeline_mode = #tpu.pipeline_mode<synchronous>, transform_indices = @transform_6, window_bounds = array<i64: 96, 8>}, {pipeline_mode = #tpu.pipeline_mode<synchronous>, transform_indices = @transform_7, window_bounds = array<i64: 2, 2, 1, 32>}, {pipeline_mode = #tpu.pipeline_mode<synchronous>, transform_indices = @transform_8, window_bounds = array<i64: 2, 2, 1, 32>}, {pipeline_mode = #tpu.pipeline_mode<synchronous>, transform_indices = @transform_9, window_bounds = array<i64: 2, 2, 96, 32>}, {pipeline_mode = #tpu.pipeline_mode<synchronous>, transform_indices = @transform_10, window_bounds = array<i64: 2, 2, 32, 32>}, {pipeline_mode = #tpu.pipeline_mode<synchronous>, transform_indices = @transform_11, window_bounds = array<i64: 2, 1, 32>}, {pipeline_mode = #tpu.pipeline_mode<synchronous>, transform_indices = @transform_12, window_bounds = array<i64: 2, 96, 32>}, {pipeline_mode = #tpu.pipeline_mode<synchronous>, transform_indices = @transform_13, window_bounds = array<i64: 1, 32>}, {pipeline_mode = #tpu.pipeline_mode<synchronous>, transform_indices = @transform_14, window_bounds = array<i64: 24, 32>}, {pipeline_mode = #tpu.pipeline_mode<synchronous>, transform_indices = @transform_15, window_bounds = array<i64: 1, 32>}, {pipeline_mode = #tpu.pipeline_mode<synchronous>, transform_indices = @transform_16, window_bounds = array<i64: 96, 32>}, {pipeline_mode = #tpu.pipeline_mode<synchronous>, transform_indices = @transform_17, window_bounds = array<i64: 2, 1, 32>}, {pipeline_mode = #tpu.pipeline_mode<synchronous>, transform_indices = @transform_18, window_bounds = array<i64: 2, 128, 32>}, {pipeline_mode = #tpu.pipeline_mode<synchronous>, transform_indices = @transform_19, window_bounds = array<i64: 2, 2, 1, 32>}, {pipeline_mode = #tpu.pipeline_mode<synchronous>, transform_indices = @transform_20, window_bounds = array<i64: 2, 2, 1, 32>}, {pipeline_mode = #tpu.pipeline_mode<synchronous>, transform_indices = @transform_21, window_bounds = array<i64: 2, 2, 96, 32>}, {pipeline_mode = #tpu.pipeline_mode<synchronous>, transform_indices = @transform_22, window_bounds = array<i64: 2, 2, 32, 32>}, {pipeline_mode = #tpu.pipeline_mode<synchronous>, transform_indices = @transform_23, window_bounds = array<i64: 64, 16>}, {pipeline_mode = #tpu.pipeline_mode<synchronous>, transform_indices = @transform_24, window_bounds = array<i64: 1, 64>}, {pipeline_mode = #tpu.pipeline_mode<synchronous>, transform_indices = @transform_25, window_bounds = array<i64: 1, 16>}, {pipeline_mode = #tpu.pipeline_mode<synchronous>, transform_indices = @transform_26, window_bounds = array<i64: 32, 16>}, {pipeline_mode = #tpu.pipeline_mode<synchronous>, transform_indices = @transform_27, window_bounds = array<i64: 1, 32>}, {pipeline_mode = #tpu.pipeline_mode<synchronous>, transform_indices = @transform_28, window_bounds = array<i64: 16, 32>}, {transform_indices = @transform_29, window_bounds = array<i64: 1, 8, 16>}, {transform_indices = @transform_30, window_bounds = array<i64: 1, 4, 1>}, {transform_indices = @transform_31, window_bounds = array<i64: 1, 1, 1>}]} {
    %c0 = arith.constant 0 : index
    %c0_0 = arith.constant 0 : index
    %c0_1 = arith.constant 0 : index
    %0 = vector.load %arg1[%c0, %c0_0, %c0_1] : memref<1x16x8xf32, #tpu.memory_space<vmem>>, vector<1x16x8xf32>
    %1 = vector.shape_cast %0 : vector<1x16x8xf32> to vector<16x8xf32>
    %c0_2 = arith.constant 0 : index
    %c0_3 = arith.constant 0 : index
    %2 = vector.load %arg15[%c0_2, %c0_3] : memref<24x32xbf16, #tpu.memory_space<vmem>>, vector<24x32xbf16>
    %c0_4 = arith.constant 0 : index
    %c0_5 = arith.constant 0 : index
    %3 = vector.load %arg14[%c0_4, %c0_5] : memref<1x32xf32, #tpu.memory_space<vmem>>, vector<1x32xf32>
    %cst = arith.constant 0.000000e+00 : f32
    %4 = vector.broadcast %cst : f32 to vector<8x8xf32>
    %c0_6 = arith.constant 0 : index
    %c0_7 = arith.constant 0 : index
    %5 = vector.load %arg33[%c0_6, %c0_7] : memref<32x32xf32, #tpu.memory_space<vmem>>, vector<8x8xf32>
    tpu.vector_store %arg33[%c0_6, %c0_7], %4 {strides = array<i32>} : memref<32x32xf32, #tpu.memory_space<vmem>>, vector<8x8xf32>,
    %c8 = arith.constant 8 : index
    %c0_8 = arith.constant 0 : index
    %6 = vector.load %arg33[%c8, %c0_8] : memref<32x32xf32, #tpu.memory_space<vmem>>, vector<16x8xf32>
    tpu.vector_store %arg33[%c8, %c0_8], %1 {strides = array<i32>} : memref<32x32xf32, #tpu.memory_space<vmem>>, vector<16x8xf32>,
    %c24 = arith.constant 24 : index
    %c0_9 = arith.constant 0 : index
    %7 = vector.load %arg33[%c24, %c0_9] : memref<32x32xf32, #tpu.memory_space<vmem>>, vector<8x8xf32>
    tpu.vector_store %arg33[%c24, %c0_9], %4 {strides = array<i32>} : memref<32x32xf32, #tpu.memory_space<vmem>>, vector<8x8xf32>,
    %c7 = arith.constant 7 : index
    %c0_10 = arith.constant 0 : index
    %8 = vector.load %arg33[%c7, %c0_10] : memref<32x32xf32, #tpu.memory_space<vmem>>, vector<16x8xf32>
    %c8_11 = arith.constant 8 : index
    %c0_12 = arith.constant 0 : index
    %9 = vector.load %arg33[%c8_11, %c0_12] : memref<32x32xf32, #tpu.memory_space<vmem>>, vector<16x8xf32>
    %c9 = arith.constant 9 : index
    %c0_13 = arith.constant 0 : index
    %10 = vector.load %arg33[%c9, %c0_13] : memref<32x32xf32, #tpu.memory_space<vmem>>, vector<16x8xf32>
    %11 = tpu.concatenate %8, %9, %10 in 1 : vector<16x8xf32>, vector<16x8xf32>, vector<16x8xf32> -> vector<16x24xf32>
    %12 = arith.truncf %11 : vector<16x24xf32> to vector<16x24xbf16>
    %cst_14 = arith.constant dense<0.000000e+00> : vector<16x32xf32>
    %13 = tpu.matmul %12, %2, %cst_14 {dimension_numbers = #tpu.dot_dimension_numbers<[1], [0], [0], [1], [0, 0, 1, 1], [], []>} : vector<16x24xbf16>, vector<24x32xbf16>, vector<16x32xf32> -> vector<16x32xf32>
    %14 = vector.broadcast %3 : vector<1x32xf32> to vector<16x32xf32>
    %15 = arith.addf %13, %14 : vector<16x32xf32>
    %cst_15 = arith.constant 0.000000e+00 : f32
    %16 = vector.broadcast %cst_15 : f32 to vector<16x32xf32>
    %17 = arith.maximumf %15, %16 : vector<16x32xf32>
    %c0_16 = arith.constant 0 : index
    %c0_17 = arith.constant 0 : index
    %c0_18 = arith.constant 0 : index
    %18 = vector.load %arg19[%c0_16, %c0_17, %c0_18] : memref<2x128x32xbf16, #tpu.memory_space<vmem>>, vector<1x128x32xbf16>
    %19 = vector.shape_cast %18 : vector<1x128x32xbf16> to vector<128x32xbf16>
    %c0_19 = arith.constant 0 : index
    %c0_20 = arith.constant 0 : index
    %c0_21 = arith.constant 0 : index
    %20 = vector.load %arg18[%c0_19, %c0_20, %c0_21] : memref<2x1x32xf32, #tpu.memory_space<vmem>>, vector<1x1x32xf32>
    %21 = vector.shape_cast %20 : vector<1x1x32xf32> to vector<1x32xf32>
    %cst_22 = arith.constant 0.000000e+00 : f32
    %22 = vector.broadcast %cst_22 : f32 to vector<8x32xf32>
    %c0_23 = arith.constant 0 : index
    %c0_24 = arith.constant 0 : index
    %23 = vector.load %arg33[%c0_23, %c0_24] : memref<32x32xf32, #tpu.memory_space<vmem>>, vector<8x32xf32>
    tpu.vector_store %arg33[%c0_23, %c0_24], %22 {strides = array<i32>} : memref<32x32xf32, #tpu.memory_space<vmem>>, vector<8x32xf32>,
    %c8_25 = arith.constant 8 : index
    %c0_26 = arith.constant 0 : index
    %24 = vector.load %arg33[%c8_25, %c0_26] : memref<32x32xf32, #tpu.memory_space<vmem>>, vector<16x32xf32>
    tpu.vector_store %arg33[%c8_25, %c0_26], %17 {strides = array<i32>} : memref<32x32xf32, #tpu.memory_space<vmem>>, vector<16x32xf32>,
    %c24_27 = arith.constant 24 : index
    %c0_28 = arith.constant 0 : index
    %25 = vector.load %arg33[%c24_27, %c0_28] : memref<32x32xf32, #tpu.memory_space<vmem>>, vector<8x32xf32>
    tpu.vector_store %arg33[%c24_27, %c0_28], %22 {strides = array<i32>} : memref<32x32xf32, #tpu.memory_space<vmem>>, vector<8x32xf32>,
    %c7_29 = arith.constant 7 : index
    %c0_30 = arith.constant 0 : index
    %26 = tpu.strided_load %arg33[%c7_29, %c0_30] {strides = array<i32: 2, 1>} : memref<32x32xf32, #tpu.memory_space<vmem>>, vector<8x32xf32>
    %c8_31 = arith.constant 8 : index
    %c0_32 = arith.constant 0 : index
    %27 = tpu.strided_load %arg33[%c8_31, %c0_32] {strides = array<i32: 2, 1>} : memref<32x32xf32, #tpu.memory_space<vmem>>, vector<8x32xf32>
    %c9_33 = arith.constant 9 : index
    %c0_34 = arith.constant 0 : index
    %28 = tpu.strided_load %arg33[%c9_33, %c0_34] {strides = array<i32: 2, 1>} : memref<32x32xf32, #tpu.memory_space<vmem>>, vector<8x32xf32>
    %c10 = arith.constant 10 : index
    %c0_35 = arith.constant 0 : index
    %29 = tpu.strided_load %arg33[%c10, %c0_35] {strides = array<i32: 2, 1>} : memref<32x32xf32, #tpu.memory_space<vmem>>, vector<8x32xf32>
    %30 = tpu.concatenate %26, %27, %28, %29 in 1 : vector<8x32xf32>, vector<8x32xf32>, vector<8x32xf32>, vector<8x32xf32> -> vector<8x128xf32>
    %31 = arith.truncf %30 : vector<8x128xf32> to vector<8x128xbf16>
    %cst_36 = arith.constant dense<0.000000e+00> : vector<8x32xf32>
    %32 = tpu.matmul %31, %19, %cst_36 {dimension_numbers = #tpu.dot_dimension_numbers<[1], [0], [0], [1], [0, 0, 1, 1], [], []>} : vector<8x128xbf16>, vector<128x32xbf16>, vector<8x32xf32> -> vector<8x32xf32>
    %33 = vector.broadcast %21 : vector<1x32xf32> to vector<8x32xf32>
    %34 = arith.addf %32, %33 : vector<8x32xf32>
    %c0_37 = arith.constant 0 : index
    %c0_38 = arith.constant 0 : index
    %c0_39 = arith.constant 0 : index
    %c0_40 = arith.constant 0 : index
    %35 = vector.load %arg22[%c0_37, %c0_38, %c0_39, %c0_40] : memref<2x2x96x32xbf16, #tpu.memory_space<vmem>>, vector<1x1x96x32xbf16>
    %36 = vector.shape_cast %35 : vector<1x1x96x32xbf16> to vector<96x32xbf16>
    %c0_41 = arith.constant 0 : index
    %c0_42 = arith.constant 0 : index
    %c0_43 = arith.constant 0 : index
    %c0_44 = arith.constant 0 : index
    %37 = vector.load %arg20[%c0_41, %c0_42, %c0_43, %c0_44] : memref<2x2x1x32xf32, #tpu.memory_space<vmem>>, vector<1x1x1x32xf32>
    %38 = vector.shape_cast %37 : vector<1x1x1x32xf32> to vector<1x32xf32>
    %c0_45 = arith.constant 0 : index
    %c0_46 = arith.constant 0 : index
    %c0_47 = arith.constant 0 : index
    %c0_48 = arith.constant 0 : index
    %39 = vector.load %arg23[%c0_45, %c0_46, %c0_47, %c0_48] : memref<2x2x32x32xbf16, #tpu.memory_space<vmem>>, vector<1x1x32x32xbf16>
    %40 = vector.shape_cast %39 : vector<1x1x32x32xbf16> to vector<32x32xbf16>
    %c0_49 = arith.constant 0 : index
    %c0_50 = arith.constant 0 : index
    %c0_51 = arith.constant 0 : index
    %c0_52 = arith.constant 0 : index
    %41 = vector.load %arg21[%c0_49, %c0_50, %c0_51, %c0_52] : memref<2x2x1x32xf32, #tpu.memory_space<vmem>>, vector<1x1x1x32xf32>
    %42 = vector.shape_cast %41 : vector<1x1x1x32xf32> to vector<1x32xf32>
    %cst_53 = arith.constant 0.000000e+00 : f32
    %43 = vector.broadcast %cst_53 : f32 to vector<8x32xf32>
    %44 = arith.maximumf %34, %43 : vector<8x32xf32>
    %cst_54 = arith.constant 0.000000e+00 : f32
    %45 = vector.broadcast %cst_54 : f32 to vector<8x32xf32>
    %c0_55 = arith.constant 0 : index
    %c0_56 = arith.constant 0 : index
    %46 = vector.load %arg33[%c0_55, %c0_56] : memref<32x32xf32, #tpu.memory_space<vmem>>, vector<8x32xf32>
    tpu.vector_store %arg33[%c0_55, %c0_56], %45 {strides = array<i32>} : memref<32x32xf32, #tpu.memory_space<vmem>>, vector<8x32xf32>,
    %c8_57 = arith.constant 8 : index
    %c0_58 = arith.constant 0 : index
    %47 = vector.load %arg33[%c8_57, %c0_58] : memref<32x32xf32, #tpu.memory_space<vmem>>, vector<8x32xf32>
    tpu.vector_store %arg33[%c8_57, %c0_58], %44 {strides = array<i32>} : memref<32x32xf32, #tpu.memory_space<vmem>>, vector<8x32xf32>,
    %c16 = arith.constant 16 : index
    %c0_59 = arith.constant 0 : index
    %48 = vector.load %arg33[%c16, %c0_59] : memref<32x32xf32, #tpu.memory_space<vmem>>, vector<8x32xf32>
    tpu.vector_store %arg33[%c16, %c0_59], %45 {strides = array<i32>} : memref<32x32xf32, #tpu.memory_space<vmem>>, vector<8x32xf32>,
    %c7_60 = arith.constant 7 : index
    %c0_61 = arith.constant 0 : index
    %49 = vector.load %arg33[%c7_60, %c0_61] : memref<32x32xf32, #tpu.memory_space<vmem>>, vector<8x32xf32>
    %c8_62 = arith.constant 8 : index
    %c0_63 = arith.constant 0 : index
    %50 = vector.load %arg33[%c8_62, %c0_63] : memref<32x32xf32, #tpu.memory_space<vmem>>, vector<8x32xf32>
    %c9_64 = arith.constant 9 : index
    %c0_65 = arith.constant 0 : index
    %51 = vector.load %arg33[%c9_64, %c0_65] : memref<32x32xf32, #tpu.memory_space<vmem>>, vector<8x32xf32>
    %52 = tpu.concatenate %49, %50, %51 in 1 : vector<8x32xf32>, vector<8x32xf32>, vector<8x32xf32> -> vector<8x96xf32>
    %53 = arith.truncf %52 : vector<8x96xf32> to vector<8x96xbf16>
    %cst_66 = arith.constant dense<0.000000e+00> : vector<8x32xf32>
    %54 = tpu.matmul %53, %36, %cst_66 {dimension_numbers = #tpu.dot_dimension_numbers<[1], [0], [0], [1], [0, 0, 1, 1], [], []>} : vector<8x96xbf16>, vector<96x32xbf16>, vector<8x32xf32> -> vector<8x32xf32>
    %55 = vector.broadcast %38 : vector<1x32xf32> to vector<8x32xf32>
    %56 = arith.addf %54, %55 : vector<8x32xf32>
    %cst_67 = arith.constant 0.000000e+00 : f32
    %57 = vector.broadcast %cst_67 : f32 to vector<8x32xf32>
    %58 = arith.maximumf %56, %57 : vector<8x32xf32>
    %59 = arith.truncf %58 : vector<8x32xf32> to vector<8x32xbf16>
    %cst_68 = arith.constant dense<0.000000e+00> : vector<8x32xf32>
    %60 = tpu.matmul %59, %40, %cst_68 {dimension_numbers = #tpu.dot_dimension_numbers<[1], [0], [0], [1], [0, 0, 1, 1], [], []>} : vector<8x32xbf16>, vector<32x32xbf16>, vector<8x32xf32> -> vector<8x32xf32>
    %61 = vector.broadcast %42 : vector<1x32xf32> to vector<8x32xf32>
    %62 = arith.addf %60, %61 : vector<8x32xf32>
    %63 = arith.addf %34, %62 : vector<8x32xf32>
    %c0_69 = arith.constant 0 : index
    %c1 = arith.constant 1 : index
    %c0_70 = arith.constant 0 : index
    %c0_71 = arith.constant 0 : index
    %64 = vector.load %arg22[%c0_69, %c1, %c0_70, %c0_71] : memref<2x2x96x32xbf16, #tpu.memory_space<vmem>>, vector<1x1x96x32xbf16>
    %65 = vector.shape_cast %64 : vector<1x1x96x32xbf16> to vector<96x32xbf16>
    %c0_72 = arith.constant 0 : index
    %c1_73 = arith.constant 1 : index
    %c0_74 = arith.constant 0 : index
    %c0_75 = arith.constant 0 : index
    %66 = vector.load %arg20[%c0_72, %c1_73, %c0_74, %c0_75] : memref<2x2x1x32xf32, #tpu.memory_space<vmem>>, vector<1x1x1x32xf32>
    %67 = vector.shape_cast %66 : vector<1x1x1x32xf32> to vector<1x32xf32>
    %c0_76 = arith.constant 0 : index
    %c1_77 = arith.constant 1 : index
    %c0_78 = arith.constant 0 : index
    %c0_79 = arith.constant 0 : index
    %68 = vector.load %arg23[%c0_76, %c1_77, %c0_78, %c0_79] : memref<2x2x32x32xbf16, #tpu.memory_space<vmem>>, vector<1x1x32x32xbf16>
    %69 = vector.shape_cast %68 : vector<1x1x32x32xbf16> to vector<32x32xbf16>
    %c0_80 = arith.constant 0 : index
    %c1_81 = arith.constant 1 : index
    %c0_82 = arith.constant 0 : index
    %c0_83 = arith.constant 0 : index
    %70 = vector.load %arg21[%c0_80, %c1_81, %c0_82, %c0_83] : memref<2x2x1x32xf32, #tpu.memory_space<vmem>>, vector<1x1x1x32xf32>
    %71 = vector.shape_cast %70 : vector<1x1x1x32xf32> to vector<1x32xf32>
    %cst_84 = arith.constant 0.000000e+00 : f32
    %72 = vector.broadcast %cst_84 : f32 to vector<8x32xf32>
    %73 = arith.maximumf %63, %72 : vector<8x32xf32>
    %cst_85 = arith.constant 0.000000e+00 : f32
    %74 = vector.broadcast %cst_85 : f32 to vector<8x32xf32>
    %c0_86 = arith.constant 0 : index
    %c0_87 = arith.constant 0 : index
    %75 = vector.load %arg33[%c0_86, %c0_87] : memref<32x32xf32, #tpu.memory_space<vmem>>, vector<8x32xf32>
    tpu.vector_store %arg33[%c0_86, %c0_87], %74 {strides = array<i32>} : memref<32x32xf32, #tpu.memory_space<vmem>>, vector<8x32xf32>,
    %c8_88 = arith.constant 8 : index
    %c0_89 = arith.constant 0 : index
    %76 = vector.load %arg33[%c8_88, %c0_89] : memref<32x32xf32, #tpu.memory_space<vmem>>, vector<8x32xf32>
    tpu.vector_store %arg33[%c8_88, %c0_89], %73 {strides = array<i32>} : memref<32x32xf32, #tpu.memory_space<vmem>>, vector<8x32xf32>,
    %c16_90 = arith.constant 16 : index
    %c0_91 = arith.constant 0 : index
    %77 = vector.load %arg33[%c16_90, %c0_91] : memref<32x32xf32, #tpu.memory_space<vmem>>, vector<8x32xf32>
    tpu.vector_store %arg33[%c16_90, %c0_91], %74 {strides = array<i32>} : memref<32x32xf32, #tpu.memory_space<vmem>>, vector<8x32xf32>,
    %c5 = arith.constant 5 : index
    %c0_92 = arith.constant 0 : index
    %78 = vector.load %arg33[%c5, %c0_92] : memref<32x32xf32, #tpu.memory_space<vmem>>, vector<8x32xf32>
    %c8_93 = arith.constant 8 : index
    %c0_94 = arith.constant 0 : index
    %79 = vector.load %arg33[%c8_93, %c0_94] : memref<32x32xf32, #tpu.memory_space<vmem>>, vector<8x32xf32>
    %c11 = arith.constant 11 : index
    %c0_95 = arith.constant 0 : index
    %80 = vector.load %arg33[%c11, %c0_95] : memref<32x32xf32, #tpu.memory_space<vmem>>, vector<8x32xf32>
    %81 = tpu.concatenate %78, %79, %80 in 1 : vector<8x32xf32>, vector<8x32xf32>, vector<8x32xf32> -> vector<8x96xf32>
    %82 = arith.truncf %81 : vector<8x96xf32> to vector<8x96xbf16>
    %cst_96 = arith.constant dense<0.000000e+00> : vector<8x32xf32>
    %83 = tpu.matmul %82, %65, %cst_96 {dimension_numbers = #tpu.dot_dimension_numbers<[1], [0], [0], [1], [0, 0, 1, 1], [], []>} : vector<8x96xbf16>, vector<96x32xbf16>, vector<8x32xf32> -> vector<8x32xf32>
    %84 = vector.broadcast %67 : vector<1x32xf32> to vector<8x32xf32>
    %85 = arith.addf %83, %84 : vector<8x32xf32>
    %cst_97 = arith.constant 0.000000e+00 : f32
    %86 = vector.broadcast %cst_97 : f32 to vector<8x32xf32>
    %87 = arith.maximumf %85, %86 : vector<8x32xf32>
    %88 = arith.truncf %87 : vector<8x32xf32> to vector<8x32xbf16>
    %cst_98 = arith.constant dense<0.000000e+00> : vector<8x32xf32>
    %89 = tpu.matmul %88, %69, %cst_98 {dimension_numbers = #tpu.dot_dimension_numbers<[1], [0], [0], [1], [0, 0, 1, 1], [], []>} : vector<8x32xbf16>, vector<32x32xbf16>, vector<8x32xf32> -> vector<8x32xf32>
    %90 = vector.broadcast %71 : vector<1x32xf32> to vector<8x32xf32>
    %91 = arith.addf %89, %90 : vector<8x32xf32>
    %92 = arith.addf %63, %91 : vector<8x32xf32>
    %c1_99 = arith.constant 1 : index
    %c0_100 = arith.constant 0 : index
    %c0_101 = arith.constant 0 : index
    %93 = vector.load %arg19[%c1_99, %c0_100, %c0_101] : memref<2x128x32xbf16, #tpu.memory_space<vmem>>, vector<1x128x32xbf16>
    %94 = vector.shape_cast %93 : vector<1x128x32xbf16> to vector<128x32xbf16>
    %c1_102 = arith.constant 1 : index
    %c0_103 = arith.constant 0 : index
    %c0_104 = arith.constant 0 : index
    %95 = vector.load %arg18[%c1_102, %c0_103, %c0_104] : memref<2x1x32xf32, #tpu.memory_space<vmem>>, vector<1x1x32xf32>
    %96 = vector.shape_cast %95 : vector<1x1x32xf32> to vector<1x32xf32>
    %cst_105 = arith.constant 0.000000e+00 : f32
    %97 = vector.broadcast %cst_105 : f32 to vector<8x32xf32>
    %c0_106 = arith.constant 0 : index
    %c0_107 = arith.constant 0 : index
    %98 = vector.load %arg33[%c0_106, %c0_107] : memref<32x32xf32, #tpu.memory_space<vmem>>, vector<8x32xf32>
    tpu.vector_store %arg33[%c0_106, %c0_107], %97 {strides = array<i32>} : memref<32x32xf32, #tpu.memory_space<vmem>>, vector<8x32xf32>,
    %c8_108 = arith.constant 8 : index
    %c0_109 = arith.constant 0 : index
    %99 = vector.load %arg33[%c8_108, %c0_109] : memref<32x32xf32, #tpu.memory_space<vmem>>, vector<8x32xf32>
    tpu.vector_store %arg33[%c8_108, %c0_109], %92 {strides = array<i32>} : memref<32x32xf32, #tpu.memory_space<vmem>>, vector<8x32xf32>,
    %c16_110 = arith.constant 16 : index
    %c0_111 = arith.constant 0 : index
    %100 = vector.load %arg33[%c16_110, %c0_111] : memref<32x32xf32, #tpu.memory_space<vmem>>, vector<8x32xf32>
    tpu.vector_store %arg33[%c16_110, %c0_111], %97 {strides = array<i32>} : memref<32x32xf32, #tpu.memory_space<vmem>>, vector<8x32xf32>,
    %c7_112 = arith.constant 7 : index
    %c0_113 = arith.constant 0 : index
    %101 = tpu.strided_load %arg33[%c7_112, %c0_113] {strides = array<i32: 2, 1>} : memref<32x32xf32, #tpu.memory_space<vmem>>, vector<4x32xf32>
    %c8_114 = arith.constant 8 : index
    %c0_115 = arith.constant 0 : index
    %102 = tpu.strided_load %arg33[%c8_114, %c0_115] {strides = array<i32: 2, 1>} : memref<32x32xf32, #tpu.memory_space<vmem>>, vector<4x32xf32>
    %c9_116 = arith.constant 9 : index
    %c0_117 = arith.constant 0 : index
    %103 = tpu.strided_load %arg33[%c9_116, %c0_117] {strides = array<i32: 2, 1>} : memref<32x32xf32, #tpu.memory_space<vmem>>, vector<4x32xf32>
    %c10_118 = arith.constant 10 : index
    %c0_119 = arith.constant 0 : index
    %104 = tpu.strided_load %arg33[%c10_118, %c0_119] {strides = array<i32: 2, 1>} : memref<32x32xf32, #tpu.memory_space<vmem>>, vector<4x32xf32>
    %105 = tpu.concatenate %101, %102, %103, %104 in 1 : vector<4x32xf32>, vector<4x32xf32>, vector<4x32xf32>, vector<4x32xf32> -> vector<4x128xf32>
    %106 = arith.truncf %105 : vector<4x128xf32> to vector<4x128xbf16>
    %cst_120 = arith.constant dense<0.000000e+00> : vector<4x32xf32>
    %107 = tpu.matmul %106, %94, %cst_120 {dimension_numbers = #tpu.dot_dimension_numbers<[1], [0], [0], [1], [0, 0, 1, 1], [], []>} : vector<4x128xbf16>, vector<128x32xbf16>, vector<4x32xf32> -> vector<4x32xf32>
    %108 = vector.broadcast %96 : vector<1x32xf32> to vector<4x32xf32>
    %109 = arith.addf %107, %108 : vector<4x32xf32>
    %c1_121 = arith.constant 1 : index
    %c0_122 = arith.constant 0 : index
    %c0_123 = arith.constant 0 : index
    %c0_124 = arith.constant 0 : index
    %110 = vector.load %arg22[%c1_121, %c0_122, %c0_123, %c0_124] : memref<2x2x96x32xbf16, #tpu.memory_space<vmem>>, vector<1x1x96x32xbf16>
    %111 = vector.shape_cast %110 : vector<1x1x96x32xbf16> to vector<96x32xbf16>
    %c1_125 = arith.constant 1 : index
    %c0_126 = arith.constant 0 : index
    %c0_127 = arith.constant 0 : index
    %c0_128 = arith.constant 0 : index
    %112 = vector.load %arg20[%c1_125, %c0_126, %c0_127, %c0_128] : memref<2x2x1x32xf32, #tpu.memory_space<vmem>>, vector<1x1x1x32xf32>
    %113 = vector.shape_cast %112 : vector<1x1x1x32xf32> to vector<1x32xf32>
    %c1_129 = arith.constant 1 : index
    %c0_130 = arith.constant 0 : index
    %c0_131 = arith.constant 0 : index
    %c0_132 = arith.constant 0 : index
    %114 = vector.load %arg23[%c1_129, %c0_130, %c0_131, %c0_132] : memref<2x2x32x32xbf16, #tpu.memory_space<vmem>>, vector<1x1x32x32xbf16>
    %115 = vector.shape_cast %114 : vector<1x1x32x32xbf16> to vector<32x32xbf16>
    %c1_133 = arith.constant 1 : index
    %c0_134 = arith.constant 0 : index
    %c0_135 = arith.constant 0 : index
    %c0_136 = arith.constant 0 : index
    %116 = vector.load %arg21[%c1_133, %c0_134, %c0_135, %c0_136] : memref<2x2x1x32xf32, #tpu.memory_space<vmem>>, vector<1x1x1x32xf32>
    %117 = vector.shape_cast %116 : vector<1x1x1x32xf32> to vector<1x32xf32>
    %cst_137 = arith.constant 0.000000e+00 : f32
    %118 = vector.broadcast %cst_137 : f32 to vector<4x32xf32>
    %119 = arith.maximumf %109, %118 : vector<4x32xf32>
    %cst_138 = arith.constant 0.000000e+00 : f32
    %120 = vector.broadcast %cst_138 : f32 to vector<8x32xf32>
    %c0_139 = arith.constant 0 : index
    %c0_140 = arith.constant 0 : index
    %121 = vector.load %arg33[%c0_139, %c0_140] : memref<32x32xf32, #tpu.memory_space<vmem>>, vector<8x32xf32>
    tpu.vector_store %arg33[%c0_139, %c0_140], %120 {strides = array<i32>} : memref<32x32xf32, #tpu.memory_space<vmem>>, vector<8x32xf32>,
    %c8_141 = arith.constant 8 : index
    %c0_142 = arith.constant 0 : index
    %122 = vector.load %arg33[%c8_141, %c0_142] : memref<32x32xf32, #tpu.memory_space<vmem>>, vector<4x32xf32>
    tpu.vector_store %arg33[%c8_141, %c0_142], %119 {strides = array<i32>} : memref<32x32xf32, #tpu.memory_space<vmem>>, vector<4x32xf32>,
    %c12 = arith.constant 12 : index
    %c0_143 = arith.constant 0 : index
    %123 = vector.load %arg33[%c12, %c0_143] : memref<32x32xf32, #tpu.memory_space<vmem>>, vector<8x32xf32>
    tpu.vector_store %arg33[%c12, %c0_143], %120 {strides = array<i32>} : memref<32x32xf32, #tpu.memory_space<vmem>>, vector<8x32xf32>,
    %c7_144 = arith.constant 7 : index
    %c0_145 = arith.constant 0 : index
    %124 = vector.load %arg33[%c7_144, %c0_145] : memref<32x32xf32, #tpu.memory_space<vmem>>, vector<4x32xf32>
    %c8_146 = arith.constant 8 : index
    %c0_147 = arith.constant 0 : index
    %125 = vector.load %arg33[%c8_146, %c0_147] : memref<32x32xf32, #tpu.memory_space<vmem>>, vector<4x32xf32>
    %c9_148 = arith.constant 9 : index
    %c0_149 = arith.constant 0 : index
    %126 = vector.load %arg33[%c9_148, %c0_149] : memref<32x32xf32, #tpu.memory_space<vmem>>, vector<4x32xf32>
    %127 = tpu.concatenate %124, %125, %126 in 1 : vector<4x32xf32>, vector<4x32xf32>, vector<4x32xf32> -> vector<4x96xf32>
    %128 = arith.truncf %127 : vector<4x96xf32> to vector<4x96xbf16>
    %cst_150 = arith.constant dense<0.000000e+00> : vector<4x32xf32>
    %129 = tpu.matmul %128, %111, %cst_150 {dimension_numbers = #tpu.dot_dimension_numbers<[1], [0], [0], [1], [0, 0, 1, 1], [], []>} : vector<4x96xbf16>, vector<96x32xbf16>, vector<4x32xf32> -> vector<4x32xf32>
    %130 = vector.broadcast %113 : vector<1x32xf32> to vector<4x32xf32>
    %131 = arith.addf %129, %130 : vector<4x32xf32>
    %cst_151 = arith.constant 0.000000e+00 : f32
    %132 = vector.broadcast %cst_151 : f32 to vector<4x32xf32>
    %133 = arith.maximumf %131, %132 : vector<4x32xf32>
    %134 = arith.truncf %133 : vector<4x32xf32> to vector<4x32xbf16>
    %cst_152 = arith.constant dense<0.000000e+00> : vector<4x32xf32>
    %135 = tpu.matmul %134, %115, %cst_152 {dimension_numbers = #tpu.dot_dimension_numbers<[1], [0], [0], [1], [0, 0, 1, 1], [], []>} : vector<4x32xbf16>, vector<32x32xbf16>, vector<4x32xf32> -> vector<4x32xf32>
    %136 = vector.broadcast %117 : vector<1x32xf32> to vector<4x32xf32>
    %137 = arith.addf %135, %136 : vector<4x32xf32>
    %138 = arith.addf %109, %137 : vector<4x32xf32>
    %c1_153 = arith.constant 1 : index
    %c1_154 = arith.constant 1 : index
    %c0_155 = arith.constant 0 : index
    %c0_156 = arith.constant 0 : index
    %139 = vector.load %arg22[%c1_153, %c1_154, %c0_155, %c0_156] : memref<2x2x96x32xbf16, #tpu.memory_space<vmem>>, vector<1x1x96x32xbf16>
    %140 = vector.shape_cast %139 : vector<1x1x96x32xbf16> to vector<96x32xbf16>
    %c1_157 = arith.constant 1 : index
    %c1_158 = arith.constant 1 : index
    %c0_159 = arith.constant 0 : index
    %c0_160 = arith.constant 0 : index
    %141 = vector.load %arg20[%c1_157, %c1_158, %c0_159, %c0_160] : memref<2x2x1x32xf32, #tpu.memory_space<vmem>>, vector<1x1x1x32xf32>
    %142 = vector.shape_cast %141 : vector<1x1x1x32xf32> to vector<1x32xf32>
    %c1_161 = arith.constant 1 : index
    %c1_162 = arith.constant 1 : index
    %c0_163 = arith.constant 0 : index
    %c0_164 = arith.constant 0 : index
    %143 = vector.load %arg23[%c1_161, %c1_162, %c0_163, %c0_164] : memref<2x2x32x32xbf16, #tpu.memory_space<vmem>>, vector<1x1x32x32xbf16>
    %144 = vector.shape_cast %143 : vector<1x1x32x32xbf16> to vector<32x32xbf16>
    %c1_165 = arith.constant 1 : index
    %c1_166 = arith.constant 1 : index
    %c0_167 = arith.constant 0 : index
    %c0_168 = arith.constant 0 : index
    %145 = vector.load %arg21[%c1_165, %c1_166, %c0_167, %c0_168] : memref<2x2x1x32xf32, #tpu.memory_space<vmem>>, vector<1x1x1x32xf32>
    %146 = vector.shape_cast %145 : vector<1x1x1x32xf32> to vector<1x32xf32>
    %cst_169 = arith.constant 0.000000e+00 : f32
    %147 = vector.broadcast %cst_169 : f32 to vector<4x32xf32>
    %148 = arith.maximumf %138, %147 : vector<4x32xf32>
    %cst_170 = arith.constant 0.000000e+00 : f32
    %149 = vector.broadcast %cst_170 : f32 to vector<8x32xf32>
    %c0_171 = arith.constant 0 : index
    %c0_172 = arith.constant 0 : index
    %150 = vector.load %arg33[%c0_171, %c0_172] : memref<32x32xf32, #tpu.memory_space<vmem>>, vector<8x32xf32>
    tpu.vector_store %arg33[%c0_171, %c0_172], %149 {strides = array<i32>} : memref<32x32xf32, #tpu.memory_space<vmem>>, vector<8x32xf32>,
    %c8_173 = arith.constant 8 : index
    %c0_174 = arith.constant 0 : index
    %151 = vector.load %arg33[%c8_173, %c0_174] : memref<32x32xf32, #tpu.memory_space<vmem>>, vector<4x32xf32>
    tpu.vector_store %arg33[%c8_173, %c0_174], %148 {strides = array<i32>} : memref<32x32xf32, #tpu.memory_space<vmem>>, vector<4x32xf32>,
    %c12_175 = arith.constant 12 : index
    %c0_176 = arith.constant 0 : index
    %152 = vector.load %arg33[%c12_175, %c0_176] : memref<32x32xf32, #tpu.memory_space<vmem>>, vector<8x32xf32>
    tpu.vector_store %arg33[%c12_175, %c0_176], %149 {strides = array<i32>} : memref<32x32xf32, #tpu.memory_space<vmem>>, vector<8x32xf32>,
    %c5_177 = arith.constant 5 : index
    %c0_178 = arith.constant 0 : index
    %153 = vector.load %arg33[%c5_177, %c0_178] : memref<32x32xf32, #tpu.memory_space<vmem>>, vector<4x32xf32>
    %c8_179 = arith.constant 8 : index
    %c0_180 = arith.constant 0 : index
    %154 = vector.load %arg33[%c8_179, %c0_180] : memref<32x32xf32, #tpu.memory_space<vmem>>, vector<4x32xf32>
    %c11_181 = arith.constant 11 : index
    %c0_182 = arith.constant 0 : index
    %155 = vector.load %arg33[%c11_181, %c0_182] : memref<32x32xf32, #tpu.memory_space<vmem>>, vector<4x32xf32>
    %156 = tpu.concatenate %153, %154, %155 in 1 : vector<4x32xf32>, vector<4x32xf32>, vector<4x32xf32> -> vector<4x96xf32>
    %157 = arith.truncf %156 : vector<4x96xf32> to vector<4x96xbf16>
    %cst_183 = arith.constant dense<0.000000e+00> : vector<4x32xf32>
    %158 = tpu.matmul %157, %140, %cst_183 {dimension_numbers = #tpu.dot_dimension_numbers<[1], [0], [0], [1], [0, 0, 1, 1], [], []>} : vector<4x96xbf16>, vector<96x32xbf16>, vector<4x32xf32> -> vector<4x32xf32>
    %159 = vector.broadcast %142 : vector<1x32xf32> to vector<4x32xf32>
    %160 = arith.addf %158, %159 : vector<4x32xf32>
    %cst_184 = arith.constant 0.000000e+00 : f32
    %161 = vector.broadcast %cst_184 : f32 to vector<4x32xf32>
    %162 = arith.maximumf %160, %161 : vector<4x32xf32>
    %163 = arith.truncf %162 : vector<4x32xf32> to vector<4x32xbf16>
    %cst_185 = arith.constant dense<0.000000e+00> : vector<4x32xf32>
    %164 = tpu.matmul %163, %144, %cst_185 {dimension_numbers = #tpu.dot_dimension_numbers<[1], [0], [0], [1], [0, 0, 1, 1], [], []>} : vector<4x32xbf16>, vector<32x32xbf16>, vector<4x32xf32> -> vector<4x32xf32>
    %165 = vector.broadcast %146 : vector<1x32xf32> to vector<4x32xf32>
    %166 = arith.addf %164, %165 : vector<4x32xf32>
    %167 = arith.addf %138, %166 : vector<4x32xf32>
    %c0_186 = arith.constant 0 : index
    %c0_187 = arith.constant 0 : index
    %168 = vector.load %arg17[%c0_186, %c0_187] : memref<96x32xbf16, #tpu.memory_space<vmem>>, vector<96x32xbf16>
    %c0_188 = arith.constant 0 : index
    %c0_189 = arith.constant 0 : index
    %169 = vector.load %arg16[%c0_188, %c0_189] : memref<1x32xf32, #tpu.memory_space<vmem>>, vector<1x32xf32>
    %cst_190 = arith.constant 0.000000e+00 : f32
    %170 = vector.broadcast %cst_190 : f32 to vector<8x32xf32>
    %c0_191 = arith.constant 0 : index
    %c0_192 = arith.constant 0 : index
    %171 = vector.load %arg33[%c0_191, %c0_192] : memref<32x32xf32, #tpu.memory_space<vmem>>, vector<8x32xf32>
    tpu.vector_store %arg33[%c0_191, %c0_192], %170 {strides = array<i32>} : memref<32x32xf32, #tpu.memory_space<vmem>>, vector<8x32xf32>,
    %c8_193 = arith.constant 8 : index
    %c0_194 = arith.constant 0 : index
    %172 = vector.load %arg33[%c8_193, %c0_194] : memref<32x32xf32, #tpu.memory_space<vmem>>, vector<4x32xf32>
    tpu.vector_store %arg33[%c8_193, %c0_194], %167 {strides = array<i32>} : memref<32x32xf32, #tpu.memory_space<vmem>>, vector<4x32xf32>,
    %c12_195 = arith.constant 12 : index
    %c0_196 = arith.constant 0 : index
    %173 = vector.load %arg33[%c12_195, %c0_196] : memref<32x32xf32, #tpu.memory_space<vmem>>, vector<8x32xf32>
    tpu.vector_store %arg33[%c12_195, %c0_196], %170 {strides = array<i32>} : memref<32x32xf32, #tpu.memory_space<vmem>>, vector<8x32xf32>,
    %c7_197 = arith.constant 7 : index
    %c0_198 = arith.constant 0 : index
    %174 = vector.load %arg33[%c7_197, %c0_198] : memref<32x32xf32, #tpu.memory_space<vmem>>, vector<4x32xf32>
    %c8_199 = arith.constant 8 : index
    %c0_200 = arith.constant 0 : index
    %175 = vector.load %arg33[%c8_199, %c0_200] : memref<32x32xf32, #tpu.memory_space<vmem>>, vector<4x32xf32>
    %c9_201 = arith.constant 9 : index
    %c0_202 = arith.constant 0 : index
    %176 = vector.load %arg33[%c9_201, %c0_202] : memref<32x32xf32, #tpu.memory_space<vmem>>, vector<4x32xf32>
    %177 = tpu.concatenate %174, %175, %176 in 1 : vector<4x32xf32>, vector<4x32xf32>, vector<4x32xf32> -> vector<4x96xf32>
    %178 = arith.truncf %177 : vector<4x96xf32> to vector<4x96xbf16>
    %cst_203 = arith.constant dense<0.000000e+00> : vector<4x32xf32>
    %179 = tpu.matmul %178, %168, %cst_203 {dimension_numbers = #tpu.dot_dimension_numbers<[1], [0], [0], [1], [0, 0, 1, 1], [], []>} : vector<4x96xbf16>, vector<96x32xbf16>, vector<4x32xf32> -> vector<4x32xf32>
    %180 = vector.broadcast %169 : vector<1x32xf32> to vector<4x32xf32>
    %181 = arith.addf %179, %180 : vector<4x32xf32>
    %c0_204 = arith.constant 0 : index
    %c0_205 = arith.constant 0 : index
    %182 = vector.load %arg27[%c0_204, %c0_205] : memref<32x16xbf16, #tpu.memory_space<vmem>>, vector<32x16xbf16>
    %c0_206 = arith.constant 0 : index
    %c0_207 = arith.constant 0 : index
    %183 = vector.load %arg26[%c0_206, %c0_207] : memref<1x16xf32, #tpu.memory_space<vmem>>, vector<1x16xf32>
    %184 = arith.truncf %181 : vector<4x32xf32> to vector<4x32xbf16>
    %cst_208 = arith.constant dense<0.000000e+00> : vector<4x16xf32>
    %185 = tpu.matmul %184, %182, %cst_208 {dimension_numbers = #tpu.dot_dimension_numbers<[1], [0], [0], [1], [0, 0, 1, 1], [], []>} : vector<4x32xbf16>, vector<32x16xbf16>, vector<4x16xf32> -> vector<4x16xf32>
    %186 = vector.broadcast %183 : vector<1x16xf32> to vector<4x16xf32>
    %187 = arith.addf %185, %186 : vector<4x16xf32>
    %c0_209 = arith.constant 0 : index
    %c0_210 = arith.constant 0 : index
    %188 = vector.load %arg24[%c0_209, %c0_210] : memref<64x16xf32, #tpu.memory_space<vmem>>, vector<64x16xf32>
    %c0_211 = arith.constant 0 : index
    %c0_212 = arith.constant 0 : index
    %189 = vector.load %arg25[%c0_211, %c0_212] : memref<1x64xf32, #tpu.memory_space<vmem>>, vector<1x64xf32>
    %190 = arith.truncf %187 : vector<4x16xf32> to vector<4x16xbf16>
    %191 = arith.truncf %188 : vector<64x16xf32> to vector<64x16xbf16>
    %cst_213 = arith.constant dense<0.000000e+00> : vector<4x64xf32>
    %192 = tpu.matmul %190, %191, %cst_213 {dimension_numbers = #tpu.dot_dimension_numbers<[1], [1], [0], [0], [0, 0, 1, 0], [], []>} : vector<4x16xbf16>, vector<64x16xbf16>, vector<4x64xf32> -> vector<4x64xf32>
    %cst_214 = arith.constant 2.000000e+00 : f32
    %193 = vector.broadcast %cst_214 : f32 to vector<4x64xf32>
    %194 = arith.mulf %193, %192 : vector<4x64xf32>
    %195 = vector.broadcast %189 : vector<1x64xf32> to vector<4x64xf32>
    %196 = arith.subf %195, %194 : vector<4x64xf32>
    %cst_215 = arith.constant dense<0x7F800000> : vector<4xf32>
    %197 = vector.multi_reduction <minimumf>, %196, %cst_215 [1] : vector<4x64xf32> to vector<4xf32>
    %198 = vector.shape_cast %197 : vector<4xf32> to vector<4x1xf32>
    %199 = tpu.iota {dimensions = array<i32: 1>} : vector<4x64xi32>
    %200 = vector.broadcast %198 : vector<4x1xf32> to vector<4x64xf32>
    %201 = arith.cmpf ole, %196, %200 : vector<4x64xf32>
    %c2147483647_i32 = arith.constant 2147483647 : i32
    %202 = vector.broadcast %c2147483647_i32 : i32 to vector<4x64xi32>
    %203 = arith.select %201, %199, %202 : vector<4x64xi1>, vector<4x64xi32>
    %cst_216 = arith.constant dense<2147483647> : vector<4xi32>
    %204 = vector.multi_reduction <minsi>, %203, %cst_216 [1] : vector<4x64xi32> to vector<4xi32>
    %205 = vector.shape_cast %204 : vector<4xi32> to vector<4x1xi32>
    %206 = vector.broadcast %205 : vector<4x1xi32> to vector<4x64xi32>
    %207 = arith.cmpi eq, %199, %206 : vector<4x64xi32>
    %208 = arith.extui %207 : vector<4x64xi1> to vector<4x64xi32>
    %209 = arith.sitofp %208 : vector<4x64xi32> to vector<4x64xf32>
    %cst_217 = arith.constant dense<0.000000e+00> : vector<4x16xf32>
    %210 = tpu.matmul %209, %188, %cst_217 {dimension_numbers = #tpu.dot_dimension_numbers<[1], [0], [0], [1], [0, 0, 1, 1], [], []>} : vector<4x64xf32>, vector<64x16xf32>, vector<4x16xf32> -> vector<4x16xf32>
    %211 = arith.subf %210, %187 : vector<4x16xf32>
    %212 = arith.mulf %211, %211 : vector<4x16xf32>
    %213 = vector.shape_cast %212 : vector<4x16xf32> to vector<1x4x16xf32>
    %cst_218 = arith.constant dense<0.000000e+00> : vector<1xf32>
    %214 = vector.multi_reduction <add>, %213, %cst_218 [1, 2] : vector<1x4x16xf32> to vector<1xf32>
    %215 = vector.shape_cast %214 : vector<1xf32> to vector<1x1x1xf32>
    %216 = vector.extract %215[0, 0, 0] : f32 from vector<1x1x1xf32>
    %217 = vector.broadcast %216 : f32 to vector<1x1xf32>
    %cst_219 = arith.constant 6.400000e+01 : f32
    %218 = vector.broadcast %cst_219 : f32 to vector<1x1xf32>
    %219 = arith.divf %217, %218 : vector<1x1xf32>
    %c0_220 = arith.constant 0 : index
    %c0_221 = arith.constant 0 : index
    %c0_222 = arith.constant 0 : index
    %220 = vector.load %arg32[%c0_220, %c0_221, %c0_222] : memref<1x1x1xf32, #tpu.memory_space<vmem>>, vector<1x1x1xf32>
    %221 = vector.shape_cast %220 : vector<1x1x1xf32> to vector<1x1xf32>
    %222 = vector.shape_cast %219 : vector<1x1xf32> to vector<1x1x1xf32>
    tpu.vector_store %arg32[%c0_220, %c0_221, %c0_222], %222 {strides = array<i32>} : memref<1x1x1xf32, #tpu.memory_space<vmem>>, vector<1x1x1xf32>,
    %c0_223 = arith.constant 0 : index
    %c0_224 = arith.constant 0 : index
    %c0_225 = arith.constant 0 : index
    %223 = vector.load %arg31[%c0_223, %c0_224, %c0_225] : memref<1x4x1xi32, #tpu.memory_space<vmem>>, vector<1x4x1xi32>
    %224 = vector.shape_cast %223 : vector<1x4x1xi32> to vector<4x1xi32>
    %225 = vector.shape_cast %205 : vector<4x1xi32> to vector<1x4x1xi32>
    tpu.vector_store %arg31[%c0_223, %c0_224, %c0_225], %225 {strides = array<i32>} : memref<1x4x1xi32, #tpu.memory_space<vmem>>, vector<1x4x1xi32>,
    %c0_226 = arith.constant 0 : index
    %c0_227 = arith.constant 0 : index
    %226 = vector.load %arg29[%c0_226, %c0_227] : memref<16x32xbf16, #tpu.memory_space<vmem>>, vector<16x32xbf16>
    %c0_228 = arith.constant 0 : index
    %c0_229 = arith.constant 0 : index
    %227 = vector.load %arg28[%c0_228, %c0_229] : memref<1x32xf32, #tpu.memory_space<vmem>>, vector<1x32xf32>
    %228 = arith.truncf %210 : vector<4x16xf32> to vector<4x16xbf16>
    %cst_230 = arith.constant dense<0.000000e+00> : vector<4x32xf32>
    %229 = tpu.matmul %228, %226, %cst_230 {dimension_numbers = #tpu.dot_dimension_numbers<[1], [0], [0], [1], [0, 0, 1, 1], [], []>} : vector<4x16xbf16>, vector<16x32xbf16>, vector<4x32xf32> -> vector<4x32xf32>
    %230 = vector.broadcast %227 : vector<1x32xf32> to vector<4x32xf32>
    %231 = arith.addf %229, %230 : vector<4x32xf32>
    %c0_231 = arith.constant 0 : index
    %c0_232 = arith.constant 0 : index
    %232 = vector.load %arg3[%c0_231, %c0_232] : memref<96x32xbf16, #tpu.memory_space<vmem>>, vector<96x32xbf16>
    %c0_233 = arith.constant 0 : index
    %c0_234 = arith.constant 0 : index
    %233 = vector.load %arg2[%c0_233, %c0_234] : memref<1x32xf32, #tpu.memory_space<vmem>>, vector<1x32xf32>
    %cst_235 = arith.constant 0.000000e+00 : f32
    %234 = vector.broadcast %cst_235 : f32 to vector<8x32xf32>
    %c0_236 = arith.constant 0 : index
    %c0_237 = arith.constant 0 : index
    %235 = vector.load %arg33[%c0_236, %c0_237] : memref<32x32xf32, #tpu.memory_space<vmem>>, vector<8x32xf32>
    tpu.vector_store %arg33[%c0_236, %c0_237], %234 {strides = array<i32>} : memref<32x32xf32, #tpu.memory_space<vmem>>, vector<8x32xf32>,
    %c8_238 = arith.constant 8 : index
    %c0_239 = arith.constant 0 : index
    %236 = vector.load %arg33[%c8_238, %c0_239] : memref<32x32xf32, #tpu.memory_space<vmem>>, vector<4x32xf32>
    tpu.vector_store %arg33[%c8_238, %c0_239], %231 {strides = array<i32>} : memref<32x32xf32, #tpu.memory_space<vmem>>, vector<4x32xf32>,
    %c12_240 = arith.constant 12 : index
    %c0_241 = arith.constant 0 : index
    %237 = vector.load %arg33[%c12_240, %c0_241] : memref<32x32xf32, #tpu.memory_space<vmem>>, vector<8x32xf32>
    tpu.vector_store %arg33[%c12_240, %c0_241], %234 {strides = array<i32>} : memref<32x32xf32, #tpu.memory_space<vmem>>, vector<8x32xf32>,
    %c7_242 = arith.constant 7 : index
    %c0_243 = arith.constant 0 : index
    %238 = vector.load %arg33[%c7_242, %c0_243] : memref<32x32xf32, #tpu.memory_space<vmem>>, vector<4x32xf32>
    %c8_244 = arith.constant 8 : index
    %c0_245 = arith.constant 0 : index
    %239 = vector.load %arg33[%c8_244, %c0_245] : memref<32x32xf32, #tpu.memory_space<vmem>>, vector<4x32xf32>
    %c9_246 = arith.constant 9 : index
    %c0_247 = arith.constant 0 : index
    %240 = vector.load %arg33[%c9_246, %c0_247] : memref<32x32xf32, #tpu.memory_space<vmem>>, vector<4x32xf32>
    %241 = tpu.concatenate %238, %239, %240 in 1 : vector<4x32xf32>, vector<4x32xf32>, vector<4x32xf32> -> vector<4x96xf32>
    %242 = arith.truncf %241 : vector<4x96xf32> to vector<4x96xbf16>
    %cst_248 = arith.constant dense<0.000000e+00> : vector<4x32xf32>
    %243 = tpu.matmul %242, %232, %cst_248 {dimension_numbers = #tpu.dot_dimension_numbers<[1], [0], [0], [1], [0, 0, 1, 1], [], []>} : vector<4x96xbf16>, vector<96x32xbf16>, vector<4x32xf32> -> vector<4x32xf32>
    %244 = vector.broadcast %233 : vector<1x32xf32> to vector<4x32xf32>
    %245 = arith.addf %243, %244 : vector<4x32xf32>
    %cst_249 = arith.constant 0.000000e+00 : f32
    %246 = vector.broadcast %cst_249 : f32 to vector<4x32xf32>
    %247 = arith.maximumf %245, %246 : vector<4x32xf32>
    %c0_250 = arith.constant 0 : index
    %c0_251 = arith.constant 0 : index
    %c0_252 = arith.constant 0 : index
    %c0_253 = arith.constant 0 : index
    %248 = vector.load %arg10[%c0_250, %c0_251, %c0_252, %c0_253] : memref<2x2x96x32xbf16, #tpu.memory_space<vmem>>, vector<1x1x96x32xbf16>
    %249 = vector.shape_cast %248 : vector<1x1x96x32xbf16> to vector<96x32xbf16>
    %c0_254 = arith.constant 0 : index
    %c0_255 = arith.constant 0 : index
    %c0_256 = arith.constant 0 : index
    %c0_257 = arith.constant 0 : index
    %250 = vector.load %arg8[%c0_254, %c0_255, %c0_256, %c0_257] : memref<2x2x1x32xf32, #tpu.memory_space<vmem>>, vector<1x1x1x32xf32>
    %251 = vector.shape_cast %250 : vector<1x1x1x32xf32> to vector<1x32xf32>
    %c0_258 = arith.constant 0 : index
    %c0_259 = arith.constant 0 : index
    %c0_260 = arith.constant 0 : index
    %c0_261 = arith.constant 0 : index
    %252 = vector.load %arg11[%c0_258, %c0_259, %c0_260, %c0_261] : memref<2x2x32x32xbf16, #tpu.memory_space<vmem>>, vector<1x1x32x32xbf16>
    %253 = vector.shape_cast %252 : vector<1x1x32x32xbf16> to vector<32x32xbf16>
    %c0_262 = arith.constant 0 : index
    %c0_263 = arith.constant 0 : index
    %c0_264 = arith.constant 0 : index
    %c0_265 = arith.constant 0 : index
    %254 = vector.load %arg9[%c0_262, %c0_263, %c0_264, %c0_265] : memref<2x2x1x32xf32, #tpu.memory_space<vmem>>, vector<1x1x1x32xf32>
    %255 = vector.shape_cast %254 : vector<1x1x1x32xf32> to vector<1x32xf32>
    %cst_266 = arith.constant 0.000000e+00 : f32
    %256 = vector.broadcast %cst_266 : f32 to vector<4x32xf32>
    %257 = arith.maximumf %247, %256 : vector<4x32xf32>
    %cst_267 = arith.constant 0.000000e+00 : f32
    %258 = vector.broadcast %cst_267 : f32 to vector<8x32xf32>
    %c0_268 = arith.constant 0 : index
    %c0_269 = arith.constant 0 : index
    %259 = vector.load %arg33[%c0_268, %c0_269] : memref<32x32xf32, #tpu.memory_space<vmem>>, vector<8x32xf32>
    tpu.vector_store %arg33[%c0_268, %c0_269], %258 {strides = array<i32>} : memref<32x32xf32, #tpu.memory_space<vmem>>, vector<8x32xf32>,
    %c8_270 = arith.constant 8 : index
    %c0_271 = arith.constant 0 : index
    %260 = vector.load %arg33[%c8_270, %c0_271] : memref<32x32xf32, #tpu.memory_space<vmem>>, vector<4x32xf32>
    tpu.vector_store %arg33[%c8_270, %c0_271], %257 {strides = array<i32>} : memref<32x32xf32, #tpu.memory_space<vmem>>, vector<4x32xf32>,
    %c12_272 = arith.constant 12 : index
    %c0_273 = arith.constant 0 : index
    %261 = vector.load %arg33[%c12_272, %c0_273] : memref<32x32xf32, #tpu.memory_space<vmem>>, vector<8x32xf32>
    tpu.vector_store %arg33[%c12_272, %c0_273], %258 {strides = array<i32>} : memref<32x32xf32, #tpu.memory_space<vmem>>, vector<8x32xf32>,
    %c5_274 = arith.constant 5 : index
    %c0_275 = arith.constant 0 : index
    %262 = vector.load %arg33[%c5_274, %c0_275] : memref<32x32xf32, #tpu.memory_space<vmem>>, vector<4x32xf32>
    %c8_276 = arith.constant 8 : index
    %c0_277 = arith.constant 0 : index
    %263 = vector.load %arg33[%c8_276, %c0_277] : memref<32x32xf32, #tpu.memory_space<vmem>>, vector<4x32xf32>
    %c11_278 = arith.constant 11 : index
    %c0_279 = arith.constant 0 : index
    %264 = vector.load %arg33[%c11_278, %c0_279] : memref<32x32xf32, #tpu.memory_space<vmem>>, vector<4x32xf32>
    %265 = tpu.concatenate %262, %263, %264 in 1 : vector<4x32xf32>, vector<4x32xf32>, vector<4x32xf32> -> vector<4x96xf32>
    %266 = arith.truncf %265 : vector<4x96xf32> to vector<4x96xbf16>
    %cst_280 = arith.constant dense<0.000000e+00> : vector<4x32xf32>
    %267 = tpu.matmul %266, %249, %cst_280 {dimension_numbers = #tpu.dot_dimension_numbers<[1], [0], [0], [1], [0, 0, 1, 1], [], []>} : vector<4x96xbf16>, vector<96x32xbf16>, vector<4x32xf32> -> vector<4x32xf32>
    %268 = vector.broadcast %251 : vector<1x32xf32> to vector<4x32xf32>
    %269 = arith.addf %267, %268 : vector<4x32xf32>
    %cst_281 = arith.constant 0.000000e+00 : f32
    %270 = vector.broadcast %cst_281 : f32 to vector<4x32xf32>
    %271 = arith.maximumf %269, %270 : vector<4x32xf32>
    %272 = arith.truncf %271 : vector<4x32xf32> to vector<4x32xbf16>
    %cst_282 = arith.constant dense<0.000000e+00> : vector<4x32xf32>
    %273 = tpu.matmul %272, %253, %cst_282 {dimension_numbers = #tpu.dot_dimension_numbers<[1], [0], [0], [1], [0, 0, 1, 1], [], []>} : vector<4x32xbf16>, vector<32x32xbf16>, vector<4x32xf32> -> vector<4x32xf32>
    %274 = vector.broadcast %255 : vector<1x32xf32> to vector<4x32xf32>
    %275 = arith.addf %273, %274 : vector<4x32xf32>
    %276 = arith.addf %247, %275 : vector<4x32xf32>
    %c0_283 = arith.constant 0 : index
    %c1_284 = arith.constant 1 : index
    %c0_285 = arith.constant 0 : index
    %c0_286 = arith.constant 0 : index
    %277 = vector.load %arg10[%c0_283, %c1_284, %c0_285, %c0_286] : memref<2x2x96x32xbf16, #tpu.memory_space<vmem>>, vector<1x1x96x32xbf16>
    %278 = vector.shape_cast %277 : vector<1x1x96x32xbf16> to vector<96x32xbf16>
    %c0_287 = arith.constant 0 : index
    %c1_288 = arith.constant 1 : index
    %c0_289 = arith.constant 0 : index
    %c0_290 = arith.constant 0 : index
    %279 = vector.load %arg8[%c0_287, %c1_288, %c0_289, %c0_290] : memref<2x2x1x32xf32, #tpu.memory_space<vmem>>, vector<1x1x1x32xf32>
    %280 = vector.shape_cast %279 : vector<1x1x1x32xf32> to vector<1x32xf32>
    %c0_291 = arith.constant 0 : index
    %c1_292 = arith.constant 1 : index
    %c0_293 = arith.constant 0 : index
    %c0_294 = arith.constant 0 : index
    %281 = vector.load %arg11[%c0_291, %c1_292, %c0_293, %c0_294] : memref<2x2x32x32xbf16, #tpu.memory_space<vmem>>, vector<1x1x32x32xbf16>
    %282 = vector.shape_cast %281 : vector<1x1x32x32xbf16> to vector<32x32xbf16>
    %c0_295 = arith.constant 0 : index
    %c1_296 = arith.constant 1 : index
    %c0_297 = arith.constant 0 : index
    %c0_298 = arith.constant 0 : index
    %283 = vector.load %arg9[%c0_295, %c1_296, %c0_297, %c0_298] : memref<2x2x1x32xf32, #tpu.memory_space<vmem>>, vector<1x1x1x32xf32>
    %284 = vector.shape_cast %283 : vector<1x1x1x32xf32> to vector<1x32xf32>
    %cst_299 = arith.constant 0.000000e+00 : f32
    %285 = vector.broadcast %cst_299 : f32 to vector<4x32xf32>
    %286 = arith.maximumf %276, %285 : vector<4x32xf32>
    %cst_300 = arith.constant 0.000000e+00 : f32
    %287 = vector.broadcast %cst_300 : f32 to vector<8x32xf32>
    %c0_301 = arith.constant 0 : index
    %c0_302 = arith.constant 0 : index
    %288 = vector.load %arg33[%c0_301, %c0_302] : memref<32x32xf32, #tpu.memory_space<vmem>>, vector<8x32xf32>
    tpu.vector_store %arg33[%c0_301, %c0_302], %287 {strides = array<i32>} : memref<32x32xf32, #tpu.memory_space<vmem>>, vector<8x32xf32>,
    %c8_303 = arith.constant 8 : index
    %c0_304 = arith.constant 0 : index
    %289 = vector.load %arg33[%c8_303, %c0_304] : memref<32x32xf32, #tpu.memory_space<vmem>>, vector<4x32xf32>
    tpu.vector_store %arg33[%c8_303, %c0_304], %286 {strides = array<i32>} : memref<32x32xf32, #tpu.memory_space<vmem>>, vector<4x32xf32>,
    %c12_305 = arith.constant 12 : index
    %c0_306 = arith.constant 0 : index
    %290 = vector.load %arg33[%c12_305, %c0_306] : memref<32x32xf32, #tpu.memory_space<vmem>>, vector<8x32xf32>
    tpu.vector_store %arg33[%c12_305, %c0_306], %287 {strides = array<i32>} : memref<32x32xf32, #tpu.memory_space<vmem>>, vector<8x32xf32>,
    %c7_307 = arith.constant 7 : index
    %c0_308 = arith.constant 0 : index
    %291 = vector.load %arg33[%c7_307, %c0_308] : memref<32x32xf32, #tpu.memory_space<vmem>>, vector<4x32xf32>
    %c8_309 = arith.constant 8 : index
    %c0_310 = arith.constant 0 : index
    %292 = vector.load %arg33[%c8_309, %c0_310] : memref<32x32xf32, #tpu.memory_space<vmem>>, vector<4x32xf32>
    %c9_311 = arith.constant 9 : index
    %c0_312 = arith.constant 0 : index
    %293 = vector.load %arg33[%c9_311, %c0_312] : memref<32x32xf32, #tpu.memory_space<vmem>>, vector<4x32xf32>
    %294 = tpu.concatenate %291, %292, %293 in 1 : vector<4x32xf32>, vector<4x32xf32>, vector<4x32xf32> -> vector<4x96xf32>
    %295 = arith.truncf %294 : vector<4x96xf32> to vector<4x96xbf16>
    %cst_313 = arith.constant dense<0.000000e+00> : vector<4x32xf32>
    %296 = tpu.matmul %295, %278, %cst_313 {dimension_numbers = #tpu.dot_dimension_numbers<[1], [0], [0], [1], [0, 0, 1, 1], [], []>} : vector<4x96xbf16>, vector<96x32xbf16>, vector<4x32xf32> -> vector<4x32xf32>
    %297 = vector.broadcast %280 : vector<1x32xf32> to vector<4x32xf32>
    %298 = arith.addf %296, %297 : vector<4x32xf32>
    %cst_314 = arith.constant 0.000000e+00 : f32
    %299 = vector.broadcast %cst_314 : f32 to vector<4x32xf32>
    %300 = arith.maximumf %298, %299 : vector<4x32xf32>
    %301 = arith.truncf %300 : vector<4x32xf32> to vector<4x32xbf16>
    %cst_315 = arith.constant dense<0.000000e+00> : vector<4x32xf32>
    %302 = tpu.matmul %301, %282, %cst_315 {dimension_numbers = #tpu.dot_dimension_numbers<[1], [0], [0], [1], [0, 0, 1, 1], [], []>} : vector<4x32xbf16>, vector<32x32xbf16>, vector<4x32xf32> -> vector<4x32xf32>
    %303 = vector.broadcast %284 : vector<1x32xf32> to vector<4x32xf32>
    %304 = arith.addf %302, %303 : vector<4x32xf32>
    %305 = arith.addf %276, %304 : vector<4x32xf32>
    %306 = vector.shape_cast %305 : vector<4x32xf32> to vector<4x1x32xf32>
    %307 = vector.shape_cast %306 : vector<4x1x32xf32> to vector<4x1x32xf32>
    %308 = vector.broadcast %307 : vector<4x1x32xf32> to vector<4x2x32xf32>
    %309 = vector.shape_cast %308 : vector<4x2x32xf32> to vector<8x32xf32>
    %c0_316 = arith.constant 0 : index
    %c0_317 = arith.constant 0 : index
    %c0_318 = arith.constant 0 : index
    %310 = vector.load %arg13[%c0_316, %c0_317, %c0_318] : memref<2x96x32xbf16, #tpu.memory_space<vmem>>, vector<1x96x32xbf16>
    %311 = vector.shape_cast %310 : vector<1x96x32xbf16> to vector<96x32xbf16>
    %c0_319 = arith.constant 0 : index
    %c0_320 = arith.constant 0 : index
    %c0_321 = arith.constant 0 : index
    %312 = vector.load %arg12[%c0_319, %c0_320, %c0_321] : memref<2x1x32xf32, #tpu.memory_space<vmem>>, vector<1x1x32xf32>
    %313 = vector.shape_cast %312 : vector<1x1x32xf32> to vector<1x32xf32>
    %cst_322 = arith.constant 0.000000e+00 : f32
    %314 = vector.broadcast %cst_322 : f32 to vector<8x32xf32>
    %c0_323 = arith.constant 0 : index
    %c0_324 = arith.constant 0 : index
    %315 = vector.load %arg33[%c0_323, %c0_324] : memref<32x32xf32, #tpu.memory_space<vmem>>, vector<8x32xf32>
    tpu.vector_store %arg33[%c0_323, %c0_324], %314 {strides = array<i32>} : memref<32x32xf32, #tpu.memory_space<vmem>>, vector<8x32xf32>,
    %c8_325 = arith.constant 8 : index
    %c0_326 = arith.constant 0 : index
    %316 = vector.load %arg33[%c8_325, %c0_326] : memref<32x32xf32, #tpu.memory_space<vmem>>, vector<8x32xf32>
    tpu.vector_store %arg33[%c8_325, %c0_326], %309 {strides = array<i32>} : memref<32x32xf32, #tpu.memory_space<vmem>>, vector<8x32xf32>,
    %c16_327 = arith.constant 16 : index
    %c0_328 = arith.constant 0 : index
    %317 = vector.load %arg33[%c16_327, %c0_328] : memref<32x32xf32, #tpu.memory_space<vmem>>, vector<8x32xf32>
    tpu.vector_store %arg33[%c16_327, %c0_328], %314 {strides = array<i32>} : memref<32x32xf32, #tpu.memory_space<vmem>>, vector<8x32xf32>,
    %c7_329 = arith.constant 7 : index
    %c0_330 = arith.constant 0 : index
    %318 = vector.load %arg33[%c7_329, %c0_330] : memref<32x32xf32, #tpu.memory_space<vmem>>, vector<8x32xf32>
    %c8_331 = arith.constant 8 : index
    %c0_332 = arith.constant 0 : index
    %319 = vector.load %arg33[%c8_331, %c0_332] : memref<32x32xf32, #tpu.memory_space<vmem>>, vector<8x32xf32>
    %c9_333 = arith.constant 9 : index
    %c0_334 = arith.constant 0 : index
    %320 = vector.load %arg33[%c9_333, %c0_334] : memref<32x32xf32, #tpu.memory_space<vmem>>, vector<8x32xf32>
    %321 = tpu.concatenate %318, %319, %320 in 1 : vector<8x32xf32>, vector<8x32xf32>, vector<8x32xf32> -> vector<8x96xf32>
    %322 = arith.truncf %321 : vector<8x96xf32> to vector<8x96xbf16>
    %cst_335 = arith.constant dense<0.000000e+00> : vector<8x32xf32>
    %323 = tpu.matmul %322, %311, %cst_335 {dimension_numbers = #tpu.dot_dimension_numbers<[1], [0], [0], [1], [0, 0, 1, 1], [], []>} : vector<8x96xbf16>, vector<96x32xbf16>, vector<8x32xf32> -> vector<8x32xf32>
    %324 = vector.broadcast %313 : vector<1x32xf32> to vector<8x32xf32>
    %325 = arith.addf %323, %324 : vector<8x32xf32>
    %c1_336 = arith.constant 1 : index
    %c0_337 = arith.constant 0 : index
    %c0_338 = arith.constant 0 : index
    %c0_339 = arith.constant 0 : index
    %326 = vector.load %arg10[%c1_336, %c0_337, %c0_338, %c0_339] : memref<2x2x96x32xbf16, #tpu.memory_space<vmem>>, vector<1x1x96x32xbf16>
    %327 = vector.shape_cast %326 : vector<1x1x96x32xbf16> to vector<96x32xbf16>
    %c1_340 = arith.constant 1 : index
    %c0_341 = arith.constant 0 : index
    %c0_342 = arith.constant 0 : index
    %c0_343 = arith.constant 0 : index
    %328 = vector.load %arg8[%c1_340, %c0_341, %c0_342, %c0_343] : memref<2x2x1x32xf32, #tpu.memory_space<vmem>>, vector<1x1x1x32xf32>
    %329 = vector.shape_cast %328 : vector<1x1x1x32xf32> to vector<1x32xf32>
    %c1_344 = arith.constant 1 : index
    %c0_345 = arith.constant 0 : index
    %c0_346 = arith.constant 0 : index
    %c0_347 = arith.constant 0 : index
    %330 = vector.load %arg11[%c1_344, %c0_345, %c0_346, %c0_347] : memref<2x2x32x32xbf16, #tpu.memory_space<vmem>>, vector<1x1x32x32xbf16>
    %331 = vector.shape_cast %330 : vector<1x1x32x32xbf16> to vector<32x32xbf16>
    %c1_348 = arith.constant 1 : index
    %c0_349 = arith.constant 0 : index
    %c0_350 = arith.constant 0 : index
    %c0_351 = arith.constant 0 : index
    %332 = vector.load %arg9[%c1_348, %c0_349, %c0_350, %c0_351] : memref<2x2x1x32xf32, #tpu.memory_space<vmem>>, vector<1x1x1x32xf32>
    %333 = vector.shape_cast %332 : vector<1x1x1x32xf32> to vector<1x32xf32>
    %cst_352 = arith.constant 0.000000e+00 : f32
    %334 = vector.broadcast %cst_352 : f32 to vector<8x32xf32>
    %335 = arith.maximumf %325, %334 : vector<8x32xf32>
    %cst_353 = arith.constant 0.000000e+00 : f32
    %336 = vector.broadcast %cst_353 : f32 to vector<8x32xf32>
    %c0_354 = arith.constant 0 : index
    %c0_355 = arith.constant 0 : index
    %337 = vector.load %arg33[%c0_354, %c0_355] : memref<32x32xf32, #tpu.memory_space<vmem>>, vector<8x32xf32>
    tpu.vector_store %arg33[%c0_354, %c0_355], %336 {strides = array<i32>} : memref<32x32xf32, #tpu.memory_space<vmem>>, vector<8x32xf32>,
    %c8_356 = arith.constant 8 : index
    %c0_357 = arith.constant 0 : index
    %338 = vector.load %arg33[%c8_356, %c0_357] : memref<32x32xf32, #tpu.memory_space<vmem>>, vector<8x32xf32>
    tpu.vector_store %arg33[%c8_356, %c0_357], %335 {strides = array<i32>} : memref<32x32xf32, #tpu.memory_space<vmem>>, vector<8x32xf32>,
    %c16_358 = arith.constant 16 : index
    %c0_359 = arith.constant 0 : index
    %339 = vector.load %arg33[%c16_358, %c0_359] : memref<32x32xf32, #tpu.memory_space<vmem>>, vector<8x32xf32>
    tpu.vector_store %arg33[%c16_358, %c0_359], %336 {strides = array<i32>} : memref<32x32xf32, #tpu.memory_space<vmem>>, vector<8x32xf32>,
    %c5_360 = arith.constant 5 : index
    %c0_361 = arith.constant 0 : index
    %340 = vector.load %arg33[%c5_360, %c0_361] : memref<32x32xf32, #tpu.memory_space<vmem>>, vector<8x32xf32>
    %c8_362 = arith.constant 8 : index
    %c0_363 = arith.constant 0 : index
    %341 = vector.load %arg33[%c8_362, %c0_363] : memref<32x32xf32, #tpu.memory_space<vmem>>, vector<8x32xf32>
    %c11_364 = arith.constant 11 : index
    %c0_365 = arith.constant 0 : index
    %342 = vector.load %arg33[%c11_364, %c0_365] : memref<32x32xf32, #tpu.memory_space<vmem>>, vector<8x32xf32>
    %343 = tpu.concatenate %340, %341, %342 in 1 : vector<8x32xf32>, vector<8x32xf32>, vector<8x32xf32> -> vector<8x96xf32>
    %344 = arith.truncf %343 : vector<8x96xf32> to vector<8x96xbf16>
    %cst_366 = arith.constant dense<0.000000e+00> : vector<8x32xf32>
    %345 = tpu.matmul %344, %327, %cst_366 {dimension_numbers = #tpu.dot_dimension_numbers<[1], [0], [0], [1], [0, 0, 1, 1], [], []>} : vector<8x96xbf16>, vector<96x32xbf16>, vector<8x32xf32> -> vector<8x32xf32>
    %346 = vector.broadcast %329 : vector<1x32xf32> to vector<8x32xf32>
    %347 = arith.addf %345, %346 : vector<8x32xf32>
    %cst_367 = arith.constant 0.000000e+00 : f32
    %348 = vector.broadcast %cst_367 : f32 to vector<8x32xf32>
    %349 = arith.maximumf %347, %348 : vector<8x32xf32>
    %350 = arith.truncf %349 : vector<8x32xf32> to vector<8x32xbf16>
    %cst_368 = arith.constant dense<0.000000e+00> : vector<8x32xf32>
    %351 = tpu.matmul %350, %331, %cst_368 {dimension_numbers = #tpu.dot_dimension_numbers<[1], [0], [0], [1], [0, 0, 1, 1], [], []>} : vector<8x32xbf16>, vector<32x32xbf16>, vector<8x32xf32> -> vector<8x32xf32>
    %352 = vector.broadcast %333 : vector<1x32xf32> to vector<8x32xf32>
    %353 = arith.addf %351, %352 : vector<8x32xf32>
    %354 = arith.addf %325, %353 : vector<8x32xf32>
    %c1_369 = arith.constant 1 : index
    %c1_370 = arith.constant 1 : index
    %c0_371 = arith.constant 0 : index
    %c0_372 = arith.constant 0 : index
    %355 = vector.load %arg10[%c1_369, %c1_370, %c0_371, %c0_372] : memref<2x2x96x32xbf16, #tpu.memory_space<vmem>>, vector<1x1x96x32xbf16>
    %356 = vector.shape_cast %355 : vector<1x1x96x32xbf16> to vector<96x32xbf16>
    %c1_373 = arith.constant 1 : index
    %c1_374 = arith.constant 1 : index
    %c0_375 = arith.constant 0 : index
    %c0_376 = arith.constant 0 : index
    %357 = vector.load %arg8[%c1_373, %c1_374, %c0_375, %c0_376] : memref<2x2x1x32xf32, #tpu.memory_space<vmem>>, vector<1x1x1x32xf32>
    %358 = vector.shape_cast %357 : vector<1x1x1x32xf32> to vector<1x32xf32>
    %c1_377 = arith.constant 1 : index
    %c1_378 = arith.constant 1 : index
    %c0_379 = arith.constant 0 : index
    %c0_380 = arith.constant 0 : index
    %359 = vector.load %arg11[%c1_377, %c1_378, %c0_379, %c0_380] : memref<2x2x32x32xbf16, #tpu.memory_space<vmem>>, vector<1x1x32x32xbf16>
    %360 = vector.shape_cast %359 : vector<1x1x32x32xbf16> to vector<32x32xbf16>
    %c1_381 = arith.constant 1 : index
    %c1_382 = arith.constant 1 : index
    %c0_383 = arith.constant 0 : index
    %c0_384 = arith.constant 0 : index
    %361 = vector.load %arg9[%c1_381, %c1_382, %c0_383, %c0_384] : memref<2x2x1x32xf32, #tpu.memory_space<vmem>>, vector<1x1x1x32xf32>
    %362 = vector.shape_cast %361 : vector<1x1x1x32xf32> to vector<1x32xf32>
    %cst_385 = arith.constant 0.000000e+00 : f32
    %363 = vector.broadcast %cst_385 : f32 to vector<8x32xf32>
    %364 = arith.maximumf %354, %363 : vector<8x32xf32>
    %cst_386 = arith.constant 0.000000e+00 : f32
    %365 = vector.broadcast %cst_386 : f32 to vector<8x32xf32>
    %c0_387 = arith.constant 0 : index
    %c0_388 = arith.constant 0 : index
    %366 = vector.load %arg33[%c0_387, %c0_388] : memref<32x32xf32, #tpu.memory_space<vmem>>, vector<8x32xf32>
    tpu.vector_store %arg33[%c0_387, %c0_388], %365 {strides = array<i32>} : memref<32x32xf32, #tpu.memory_space<vmem>>, vector<8x32xf32>,
    %c8_389 = arith.constant 8 : index
    %c0_390 = arith.constant 0 : index
    %367 = vector.load %arg33[%c8_389, %c0_390] : memref<32x32xf32, #tpu.memory_space<vmem>>, vector<8x32xf32>
    tpu.vector_store %arg33[%c8_389, %c0_390], %364 {strides = array<i32>} : memref<32x32xf32, #tpu.memory_space<vmem>>, vector<8x32xf32>,
    %c16_391 = arith.constant 16 : index
    %c0_392 = arith.constant 0 : index
    %368 = vector.load %arg33[%c16_391, %c0_392] : memref<32x32xf32, #tpu.memory_space<vmem>>, vector<8x32xf32>
    tpu.vector_store %arg33[%c16_391, %c0_392], %365 {strides = array<i32>} : memref<32x32xf32, #tpu.memory_space<vmem>>, vector<8x32xf32>,
    %c7_393 = arith.constant 7 : index
    %c0_394 = arith.constant 0 : index
    %369 = vector.load %arg33[%c7_393, %c0_394] : memref<32x32xf32, #tpu.memory_space<vmem>>, vector<8x32xf32>
    %c8_395 = arith.constant 8 : index
    %c0_396 = arith.constant 0 : index
    %370 = vector.load %arg33[%c8_395, %c0_396] : memref<32x32xf32, #tpu.memory_space<vmem>>, vector<8x32xf32>
    %c9_397 = arith.constant 9 : index
    %c0_398 = arith.constant 0 : index
    %371 = vector.load %arg33[%c9_397, %c0_398] : memref<32x32xf32, #tpu.memory_space<vmem>>, vector<8x32xf32>
    %372 = tpu.concatenate %369, %370, %371 in 1 : vector<8x32xf32>, vector<8x32xf32>, vector<8x32xf32> -> vector<8x96xf32>
    %373 = arith.truncf %372 : vector<8x96xf32> to vector<8x96xbf16>
    %cst_399 = arith.constant dense<0.000000e+00> : vector<8x32xf32>
    %374 = tpu.matmul %373, %356, %cst_399 {dimension_numbers = #tpu.dot_dimension_numbers<[1], [0], [0], [1], [0, 0, 1, 1], [], []>} : vector<8x96xbf16>, vector<96x32xbf16>, vector<8x32xf32> -> vector<8x32xf32>
    %375 = vector.broadcast %358 : vector<1x32xf32> to vector<8x32xf32>
    %376 = arith.addf %374, %375 : vector<8x32xf32>
    %cst_400 = arith.constant 0.000000e+00 : f32
    %377 = vector.broadcast %cst_400 : f32 to vector<8x32xf32>
    %378 = arith.maximumf %376, %377 : vector<8x32xf32>
    %379 = arith.truncf %378 : vector<8x32xf32> to vector<8x32xbf16>
    %cst_401 = arith.constant dense<0.000000e+00> : vector<8x32xf32>
    %380 = tpu.matmul %379, %360, %cst_401 {dimension_numbers = #tpu.dot_dimension_numbers<[1], [0], [0], [1], [0, 0, 1, 1], [], []>} : vector<8x32xbf16>, vector<32x32xbf16>, vector<8x32xf32> -> vector<8x32xf32>
    %381 = vector.broadcast %362 : vector<1x32xf32> to vector<8x32xf32>
    %382 = arith.addf %380, %381 : vector<8x32xf32>
    %383 = arith.addf %354, %382 : vector<8x32xf32>
    %384 = vector.shape_cast %383 : vector<8x32xf32> to vector<8x1x32xf32>
    %385 = vector.shape_cast %384 : vector<8x1x32xf32> to vector<8x1x32xf32>
    %386 = vector.broadcast %385 : vector<8x1x32xf32> to vector<8x2x32xf32>
    %387 = vector.shape_cast %386 : vector<8x2x32xf32> to vector<16x32xf32>
    %c1_402 = arith.constant 1 : index
    %c0_403 = arith.constant 0 : index
    %c0_404 = arith.constant 0 : index
    %388 = vector.load %arg13[%c1_402, %c0_403, %c0_404] : memref<2x96x32xbf16, #tpu.memory_space<vmem>>, vector<1x96x32xbf16>
    %389 = vector.shape_cast %388 : vector<1x96x32xbf16> to vector<96x32xbf16>
    %c1_405 = arith.constant 1 : index
    %c0_406 = arith.constant 0 : index
    %c0_407 = arith.constant 0 : index
    %390 = vector.load %arg12[%c1_405, %c0_406, %c0_407] : memref<2x1x32xf32, #tpu.memory_space<vmem>>, vector<1x1x32xf32>
    %391 = vector.shape_cast %390 : vector<1x1x32xf32> to vector<1x32xf32>
    %cst_408 = arith.constant 0.000000e+00 : f32
    %392 = vector.broadcast %cst_408 : f32 to vector<8x32xf32>
    %c0_409 = arith.constant 0 : index
    %c0_410 = arith.constant 0 : index
    %393 = vector.load %arg33[%c0_409, %c0_410] : memref<32x32xf32, #tpu.memory_space<vmem>>, vector<8x32xf32>
    tpu.vector_store %arg33[%c0_409, %c0_410], %392 {strides = array<i32>} : memref<32x32xf32, #tpu.memory_space<vmem>>, vector<8x32xf32>,
    %c8_411 = arith.constant 8 : index
    %c0_412 = arith.constant 0 : index
    %394 = vector.load %arg33[%c8_411, %c0_412] : memref<32x32xf32, #tpu.memory_space<vmem>>, vector<16x32xf32>
    tpu.vector_store %arg33[%c8_411, %c0_412], %387 {strides = array<i32>} : memref<32x32xf32, #tpu.memory_space<vmem>>, vector<16x32xf32>,
    %c24_413 = arith.constant 24 : index
    %c0_414 = arith.constant 0 : index
    %395 = vector.load %arg33[%c24_413, %c0_414] : memref<32x32xf32, #tpu.memory_space<vmem>>, vector<8x32xf32>
    tpu.vector_store %arg33[%c24_413, %c0_414], %392 {strides = array<i32>} : memref<32x32xf32, #tpu.memory_space<vmem>>, vector<8x32xf32>,
    %c7_415 = arith.constant 7 : index
    %c0_416 = arith.constant 0 : index
    %396 = vector.load %arg33[%c7_415, %c0_416] : memref<32x32xf32, #tpu.memory_space<vmem>>, vector<16x32xf32>
    %c8_417 = arith.constant 8 : index
    %c0_418 = arith.constant 0 : index
    %397 = vector.load %arg33[%c8_417, %c0_418] : memref<32x32xf32, #tpu.memory_space<vmem>>, vector<16x32xf32>
    %c9_419 = arith.constant 9 : index
    %c0_420 = arith.constant 0 : index
    %398 = vector.load %arg33[%c9_419, %c0_420] : memref<32x32xf32, #tpu.memory_space<vmem>>, vector<16x32xf32>
    %399 = tpu.concatenate %396, %397, %398 in 1 : vector<16x32xf32>, vector<16x32xf32>, vector<16x32xf32> -> vector<16x96xf32>
    %400 = arith.truncf %399 : vector<16x96xf32> to vector<16x96xbf16>
    %cst_421 = arith.constant dense<0.000000e+00> : vector<16x32xf32>
    %401 = tpu.matmul %400, %389, %cst_421 {dimension_numbers = #tpu.dot_dimension_numbers<[1], [0], [0], [1], [0, 0, 1, 1], [], []>} : vector<16x96xbf16>, vector<96x32xbf16>, vector<16x32xf32> -> vector<16x32xf32>
    %402 = vector.broadcast %391 : vector<1x32xf32> to vector<16x32xf32>
    %403 = arith.addf %401, %402 : vector<16x32xf32>
    %c0_422 = arith.constant 0 : index
    %c0_423 = arith.constant 0 : index
    %404 = vector.load %arg5[%c0_422, %c0_423] : memref<96x32xbf16, #tpu.memory_space<vmem>>, vector<96x32xbf16>
    %c0_424 = arith.constant 0 : index
    %c0_425 = arith.constant 0 : index
    %405 = vector.load %arg4[%c0_424, %c0_425] : memref<1x32xf32, #tpu.memory_space<vmem>>, vector<1x32xf32>
    %cst_426 = arith.constant 0.000000e+00 : f32
    %406 = vector.broadcast %cst_426 : f32 to vector<8x32xf32>
    %c0_427 = arith.constant 0 : index
    %c0_428 = arith.constant 0 : index
    %407 = vector.load %arg33[%c0_427, %c0_428] : memref<32x32xf32, #tpu.memory_space<vmem>>, vector<8x32xf32>
    tpu.vector_store %arg33[%c0_427, %c0_428], %406 {strides = array<i32>} : memref<32x32xf32, #tpu.memory_space<vmem>>, vector<8x32xf32>,
    %c8_429 = arith.constant 8 : index
    %c0_430 = arith.constant 0 : index
    %408 = vector.load %arg33[%c8_429, %c0_430] : memref<32x32xf32, #tpu.memory_space<vmem>>, vector<16x32xf32>
    tpu.vector_store %arg33[%c8_429, %c0_430], %403 {strides = array<i32>} : memref<32x32xf32, #tpu.memory_space<vmem>>, vector<16x32xf32>,
    %c24_431 = arith.constant 24 : index
    %c0_432 = arith.constant 0 : index
    %409 = vector.load %arg33[%c24_431, %c0_432] : memref<32x32xf32, #tpu.memory_space<vmem>>, vector<8x32xf32>
    tpu.vector_store %arg33[%c24_431, %c0_432], %406 {strides = array<i32>} : memref<32x32xf32, #tpu.memory_space<vmem>>, vector<8x32xf32>,
    %c7_433 = arith.constant 7 : index
    %c0_434 = arith.constant 0 : index
    %410 = vector.load %arg33[%c7_433, %c0_434] : memref<32x32xf32, #tpu.memory_space<vmem>>, vector<16x32xf32>
    %c8_435 = arith.constant 8 : index
    %c0_436 = arith.constant 0 : index
    %411 = vector.load %arg33[%c8_435, %c0_436] : memref<32x32xf32, #tpu.memory_space<vmem>>, vector<16x32xf32>
    %c9_437 = arith.constant 9 : index
    %c0_438 = arith.constant 0 : index
    %412 = vector.load %arg33[%c9_437, %c0_438] : memref<32x32xf32, #tpu.memory_space<vmem>>, vector<16x32xf32>
    %413 = tpu.concatenate %410, %411, %412 in 1 : vector<16x32xf32>, vector<16x32xf32>, vector<16x32xf32> -> vector<16x96xf32>
    %414 = arith.truncf %413 : vector<16x96xf32> to vector<16x96xbf16>
    %cst_439 = arith.constant dense<0.000000e+00> : vector<16x32xf32>
    %415 = tpu.matmul %414, %404, %cst_439 {dimension_numbers = #tpu.dot_dimension_numbers<[1], [0], [0], [1], [0, 0, 1, 1], [], []>} : vector<16x96xbf16>, vector<96x32xbf16>, vector<16x32xf32> -> vector<16x32xf32>
    %416 = vector.broadcast %405 : vector<1x32xf32> to vector<16x32xf32>
    %417 = arith.addf %415, %416 : vector<16x32xf32>
    %cst_440 = arith.constant 0.000000e+00 : f32
    %418 = vector.broadcast %cst_440 : f32 to vector<16x32xf32>
    %419 = arith.maximumf %417, %418 : vector<16x32xf32>
    %c0_441 = arith.constant 0 : index
    %c0_442 = arith.constant 0 : index
    %420 = vector.load %arg7[%c0_441, %c0_442] : memref<96x8xbf16, #tpu.memory_space<vmem>>, vector<96x8xbf16>
    %c0_443 = arith.constant 0 : index
    %c0_444 = arith.constant 0 : index
    %421 = vector.load %arg6[%c0_443, %c0_444] : memref<1x8xf32, #tpu.memory_space<vmem>>, vector<1x8xf32>
    %cst_445 = arith.constant 0.000000e+00 : f32
    %422 = vector.broadcast %cst_445 : f32 to vector<8x32xf32>
    %c0_446 = arith.constant 0 : index
    %c0_447 = arith.constant 0 : index
    %423 = vector.load %arg33[%c0_446, %c0_447] : memref<32x32xf32, #tpu.memory_space<vmem>>, vector<8x32xf32>
    tpu.vector_store %arg33[%c0_446, %c0_447], %422 {strides = array<i32>} : memref<32x32xf32, #tpu.memory_space<vmem>>, vector<8x32xf32>,
    %c8_448 = arith.constant 8 : index
    %c0_449 = arith.constant 0 : index
    %424 = vector.load %arg33[%c8_448, %c0_449] : memref<32x32xf32, #tpu.memory_space<vmem>>, vector<16x32xf32>
    tpu.vector_store %arg33[%c8_448, %c0_449], %419 {strides = array<i32>} : memref<32x32xf32, #tpu.memory_space<vmem>>, vector<16x32xf32>,
    %c24_450 = arith.constant 24 : index
    %c0_451 = arith.constant 0 : index
    %425 = vector.load %arg33[%c24_450, %c0_451] : memref<32x32xf32, #tpu.memory_space<vmem>>, vector<8x32xf32>
    tpu.vector_store %arg33[%c24_450, %c0_451], %422 {strides = array<i32>} : memref<32x32xf32, #tpu.memory_space<vmem>>, vector<8x32xf32>,
    %c7_452 = arith.constant 7 : index
    %c0_453 = arith.constant 0 : index
    %426 = vector.load %arg33[%c7_452, %c0_453] : memref<32x32xf32, #tpu.memory_space<vmem>>, vector<16x32xf32>
    %c8_454 = arith.constant 8 : index
    %c0_455 = arith.constant 0 : index
    %427 = vector.load %arg33[%c8_454, %c0_455] : memref<32x32xf32, #tpu.memory_space<vmem>>, vector<16x32xf32>
    %c9_456 = arith.constant 9 : index
    %c0_457 = arith.constant 0 : index
    %428 = vector.load %arg33[%c9_456, %c0_457] : memref<32x32xf32, #tpu.memory_space<vmem>>, vector<16x32xf32>
    %429 = tpu.concatenate %426, %427, %428 in 1 : vector<16x32xf32>, vector<16x32xf32>, vector<16x32xf32> -> vector<16x96xf32>
    %430 = arith.truncf %429 : vector<16x96xf32> to vector<16x96xbf16>
    %cst_458 = arith.constant dense<0.000000e+00> : vector<16x8xf32>
    %431 = tpu.matmul %430, %420, %cst_458 {dimension_numbers = #tpu.dot_dimension_numbers<[1], [0], [0], [1], [0, 0, 1, 1], [], []>} : vector<16x96xbf16>, vector<96x8xbf16>, vector<16x8xf32> -> vector<16x8xf32>
    %432 = vector.broadcast %421 : vector<1x8xf32> to vector<16x8xf32>
    %433 = arith.addf %431, %432 : vector<16x8xf32>
    %434 = tpu.transpose %433, [1, 0] : vector<16x8xf32> -> vector<8x16xf32>
    %c0_459 = arith.constant 0 : index
    %c0_460 = arith.constant 0 : index
    %c0_461 = arith.constant 0 : index
    %435 = vector.load %arg30[%c0_459, %c0_460, %c0_461] : memref<1x8x16xf32, #tpu.memory_space<vmem>>, vector<1x8x16xf32>
    %436 = vector.shape_cast %435 : vector<1x8x16xf32> to vector<8x16xf32>
    %437 = vector.shape_cast %434 : vector<8x16xf32> to vector<1x8x16xf32>
    tpu.vector_store %arg30[%c0_459, %c0_460, %c0_461], %437 {strides = array<i32>} : memref<1x8x16xf32, #tpu.memory_space<vmem>>, vector<1x8x16xf32>,
    return
  }
  func.func @transform_0(%arg0: i32) -> (i32, i32, i32) {
    %c0_i32 = arith.constant 0 : i32
    %c0_i32_0 = arith.constant 0 : i32
    %c0_i32_1 = arith.constant 0 : i32
    return %arg0, %c0_i32, %c0_i32_0 : i32, i32, i32
  }
  func.func @transform_1(%arg0: i32) -> (i32, i32) {
    %c0_i32 = arith.constant 0 : i32
    %c0_i32_0 = arith.constant 0 : i32
    %c0_i32_1 = arith.constant 0 : i32
    return %c0_i32, %c0_i32_0 : i32, i32
  }
  func.func @transform_2(%arg0: i32) -> (i32, i32) {
    %c0_i32 = arith.constant 0 : i32
    %c0_i32_0 = arith.constant 0 : i32
    %c0_i32_1 = arith.constant 0 : i32
    return %c0_i32, %c0_i32_0 : i32, i32
  }
  func.func @transform_3(%arg0: i32) -> (i32, i32) {
    %c0_i32 = arith.constant 0 : i32
    %c0_i32_0 = arith.constant 0 : i32
    %c0_i32_1 = arith.constant 0 : i32
    return %c0_i32, %c0_i32_0 : i32, i32
  }
  func.func @transform_4(%arg0: i32) -> (i32, i32) {
    %c0_i32 = arith.constant 0 : i32
    %c0_i32_0 = arith.constant 0 : i32
    %c0_i32_1 = arith.constant 0 : i32
    return %c0_i32, %c0_i32_0 : i32, i32
  }
  func.func @transform_5(%arg0: i32) -> (i32, i32) {
    %c0_i32 = arith.constant 0 : i32
    %c0_i32_0 = arith.constant 0 : i32
    %c0_i32_1 = arith.constant 0 : i32
    return %c0_i32, %c0_i32_0 : i32, i32
  }
  func.func @transform_6(%arg0: i32) -> (i32, i32) {
    %c0_i32 = arith.constant 0 : i32
    %c0_i32_0 = arith.constant 0 : i32
    %c0_i32_1 = arith.constant 0 : i32
    return %c0_i32, %c0_i32_0 : i32, i32
  }
  func.func @transform_7(%arg0: i32) -> (i32, i32, i32, i32) {
    %c0_i32 = arith.constant 0 : i32
    %c0_i32_0 = arith.constant 0 : i32
    %c0_i32_1 = arith.constant 0 : i32
    %c0_i32_2 = arith.constant 0 : i32
    %c0_i32_3 = arith.constant 0 : i32
    return %c0_i32, %c0_i32_0, %c0_i32_1, %c0_i32_2 : i32, i32, i32, i32
  }
  func.func @transform_8(%arg0: i32) -> (i32, i32, i32, i32) {
    %c0_i32 = arith.constant 0 : i32
    %c0_i32_0 = arith.constant 0 : i32
    %c0_i32_1 = arith.constant 0 : i32
    %c0_i32_2 = arith.constant 0 : i32
    %c0_i32_3 = arith.constant 0 : i32
    return %c0_i32, %c0_i32_0, %c0_i32_1, %c0_i32_2 : i32, i32, i32, i32
  }
  func.func @transform_9(%arg0: i32) -> (i32, i32, i32, i32) {
    %c0_i32 = arith.constant 0 : i32
    %c0_i32_0 = arith.constant 0 : i32
    %c0_i32_1 = arith.constant 0 : i32
    %c0_i32_2 = arith.constant 0 : i32
    %c0_i32_3 = arith.constant 0 : i32
    return %c0_i32, %c0_i32_0, %c0_i32_1, %c0_i32_2 : i32, i32, i32, i32
  }
  func.func @transform_10(%arg0: i32) -> (i32, i32, i32, i32) {
    %c0_i32 = arith.constant 0 : i32
    %c0_i32_0 = arith.constant 0 : i32
    %c0_i32_1 = arith.constant 0 : i32
    %c0_i32_2 = arith.constant 0 : i32
    %c0_i32_3 = arith.constant 0 : i32
    return %c0_i32, %c0_i32_0, %c0_i32_1, %c0_i32_2 : i32, i32, i32, i32
  }
  func.func @transform_11(%arg0: i32) -> (i32, i32, i32) {
    %c0_i32 = arith.constant 0 : i32
    %c0_i32_0 = arith.constant 0 : i32
    %c0_i32_1 = arith.constant 0 : i32
    %c0_i32_2 = arith.constant 0 : i32
    return %c0_i32, %c0_i32_0, %c0_i32_1 : i32, i32, i32
  }
  func.func @transform_12(%arg0: i32) -> (i32, i32, i32) {
    %c0_i32 = arith.constant 0 : i32
    %c0_i32_0 = arith.constant 0 : i32
    %c0_i32_1 = arith.constant 0 : i32
    %c0_i32_2 = arith.constant 0 : i32
    return %c0_i32, %c0_i32_0, %c0_i32_1 : i32, i32, i32
  }
  func.func @transform_13(%arg0: i32) -> (i32, i32) {
    %c0_i32 = arith.constant 0 : i32
    %c0_i32_0 = arith.constant 0 : i32
    %c0_i32_1 = arith.constant 0 : i32
    return %c0_i32, %c0_i32_0 : i32, i32
  }
  func.func @transform_14(%arg0: i32) -> (i32, i32) {
    %c0_i32 = arith.constant 0 : i32
    %c0_i32_0 = arith.constant 0 : i32
    %c0_i32_1 = arith.constant 0 : i32
    return %c0_i32, %c0_i32_0 : i32, i32
  }
  func.func @transform_15(%arg0: i32) -> (i32, i32) {
    %c0_i32 = arith.constant 0 : i32
    %c0_i32_0 = arith.constant 0 : i32
    %c0_i32_1 = arith.constant 0 : i32
    return %c0_i32, %c0_i32_0 : i32, i32
  }
  func.func @transform_16(%arg0: i32) -> (i32, i32) {
    %c0_i32 = arith.constant 0 : i32
    %c0_i32_0 = arith.constant 0 : i32
    %c0_i32_1 = arith.constant 0 : i32
    return %c0_i32, %c0_i32_0 : i32, i32
  }
  func.func @transform_17(%arg0: i32) -> (i32, i32, i32) {
    %c0_i32 = arith.constant 0 : i32
    %c0_i32_0 = arith.constant 0 : i32
    %c0_i32_1 = arith.constant 0 : i32
    %c0_i32_2 = arith.constant 0 : i32
    return %c0_i32, %c0_i32_0, %c0_i32_1 : i32, i32, i32
  }
  func.func @transform_18(%arg0: i32) -> (i32, i32, i32) {
    %c0_i32 = arith.constant 0 : i32
    %c0_i32_0 = arith.constant 0 : i32
    %c0_i32_1 = arith.constant 0 : i32
    %c0_i32_2 = arith.constant 0 : i32
    return %c0_i32, %c0_i32_0, %c0_i32_1 : i32, i32, i32
  }
  func.func @transform_19(%arg0: i32) -> (i32, i32, i32, i32) {
    %c0_i32 = arith.constant 0 : i32
    %c0_i32_0 = arith.constant 0 : i32
    %c0_i32_1 = arith.constant 0 : i32
    %c0_i32_2 = arith.constant 0 : i32
    %c0_i32_3 = arith.constant 0 : i32
    return %c0_i32, %c0_i32_0, %c0_i32_1, %c0_i32_2 : i32, i32, i32, i32
  }
  func.func @transform_20(%arg0: i32) -> (i32, i32, i32, i32) {
    %c0_i32 = arith.constant 0 : i32
    %c0_i32_0 = arith.constant 0 : i32
    %c0_i32_1 = arith.constant 0 : i32
    %c0_i32_2 = arith.constant 0 : i32
    %c0_i32_3 = arith.constant 0 : i32
    return %c0_i32, %c0_i32_0, %c0_i32_1, %c0_i32_2 : i32, i32, i32, i32
  }
  func.func @transform_21(%arg0: i32) -> (i32, i32, i32, i32) {
    %c0_i32 = arith.constant 0 : i32
    %c0_i32_0 = arith.constant 0 : i32
    %c0_i32_1 = arith.constant 0 : i32
    %c0_i32_2 = arith.constant 0 : i32
    %c0_i32_3 = arith.constant 0 : i32
    return %c0_i32, %c0_i32_0, %c0_i32_1, %c0_i32_2 : i32, i32, i32, i32
  }
  func.func @transform_22(%arg0: i32) -> (i32, i32, i32, i32) {
    %c0_i32 = arith.constant 0 : i32
    %c0_i32_0 = arith.constant 0 : i32
    %c0_i32_1 = arith.constant 0 : i32
    %c0_i32_2 = arith.constant 0 : i32
    %c0_i32_3 = arith.constant 0 : i32
    return %c0_i32, %c0_i32_0, %c0_i32_1, %c0_i32_2 : i32, i32, i32, i32
  }
  func.func @transform_23(%arg0: i32) -> (i32, i32) {
    %c0_i32 = arith.constant 0 : i32
    %c0_i32_0 = arith.constant 0 : i32
    %c0_i32_1 = arith.constant 0 : i32
    return %c0_i32, %c0_i32_0 : i32, i32
  }
  func.func @transform_24(%arg0: i32) -> (i32, i32) {
    %c0_i32 = arith.constant 0 : i32
    %c0_i32_0 = arith.constant 0 : i32
    %c0_i32_1 = arith.constant 0 : i32
    return %c0_i32, %c0_i32_0 : i32, i32
  }
  func.func @transform_25(%arg0: i32) -> (i32, i32) {
    %c0_i32 = arith.constant 0 : i32
    %c0_i32_0 = arith.constant 0 : i32
    %c0_i32_1 = arith.constant 0 : i32
    return %c0_i32, %c0_i32_0 : i32, i32
  }
  func.func @transform_26(%arg0: i32) -> (i32, i32) {
    %c0_i32 = arith.constant 0 : i32
    %c0_i32_0 = arith.constant 0 : i32
    %c0_i32_1 = arith.constant 0 : i32
    return %c0_i32, %c0_i32_0 : i32, i32
  }
  func.func @transform_27(%arg0: i32) -> (i32, i32) {
    %c0_i32 = arith.constant 0 : i32
    %c0_i32_0 = arith.constant 0 : i32
    %c0_i32_1 = arith.constant 0 : i32
    return %c0_i32, %c0_i32_0 : i32, i32
  }
  func.func @transform_28(%arg0: i32) -> (i32, i32) {
    %c0_i32 = arith.constant 0 : i32
    %c0_i32_0 = arith.constant 0 : i32
    %c0_i32_1 = arith.constant 0 : i32
    return %c0_i32, %c0_i32_0 : i32, i32
  }
  func.func @transform_29(%arg0: i32) -> (i32, i32, i32) {
    %c0_i32 = arith.constant 0 : i32
    %c0_i32_0 = arith.constant 0 : i32
    %c0_i32_1 = arith.constant 0 : i32
    return %arg0, %c0_i32, %c0_i32_0 : i32, i32, i32
  }
  func.func @transform_30(%arg0: i32) -> (i32, i32, i32) {
    %c0_i32 = arith.constant 0 : i32
    %c0_i32_0 = arith.constant 0 : i32
    %c0_i32_1 = arith.constant 0 : i32
    return %arg0, %c0_i32, %c0_i32_0 : i32, i32, i32
  }
  func.func @transform_31(%arg0: i32) -> (i32, i32, i32) {
    %c0_i32 = arith.constant 0 : i32
    %c0_i32_0 = arith.constant 0 : i32
    %c0_i32_1 = arith.constant 0 : i32
    return %arg0, %c0_i32, %c0_i32_0 : i32, i32, i32
  }
}

module attributes {stable_mosaic.version = 11 : i64} {
  func.func @kernel(%arg0: i32, %arg1: memref<1x16x8xf32, #tpu.memory_space<vmem>>, %arg2: memref<1x32xf32, #tpu.memory_space<vmem>>, %arg3: memref<96x32xbf16, #tpu.memory_space<vmem>>, %arg4: memref<1x32xf32, #tpu.memory_space<vmem>>, %arg5: memref<96x32xbf16, #tpu.memory_space<vmem>>, %arg6: memref<1x8xf32, #tpu.memory_space<vmem>>, %arg7: memref<96x8xbf16, #tpu.memory_space<vmem>>, %arg8: memref<2x2x1x32xf32, #tpu.memory_space<vmem>>, %arg9: memref<2x2x1x32xf32, #tpu.memory_space<vmem>>, %arg10: memref<2x2x96x32xbf16, #tpu.memory_space<vmem>>, %arg11: memref<2x2x32x32xbf16, #tpu.memory_space<vmem>>, %arg12: memref<2x1x32xf32, #tpu.memory_space<vmem>>, %arg13: memref<2x96x32xbf16, #tpu.memory_space<vmem>>, %arg14: memref<1x32xf32, #tpu.memory_space<vmem>>, %arg15: memref<24x32xbf16, #tpu.memory_space<vmem>>, %arg16: memref<1x32xf32, #tpu.memory_space<vmem>>, %arg17: memref<96x32xbf16, #tpu.memory_space<vmem>>, %arg18: memref<2x1x32xf32, #tpu.memory_space<vmem>>, %arg19: memref<2x128x32xbf16, #tpu.memory_space<vmem>>, %arg20: memref<2x2x1x32xf32, #tpu.memory_space<vmem>>, %arg21: memref<2x2x1x32xf32, #tpu.memory_space<vmem>>, %arg22: memref<2x2x96x32xbf16, #tpu.memory_space<vmem>>, %arg23: memref<2x2x32x32xbf16, #tpu.memory_space<vmem>>, %arg24: memref<64x16xf32, #tpu.memory_space<vmem>>, %arg25: memref<1x64xf32, #tpu.memory_space<vmem>>, %arg26: memref<1x16xf32, #tpu.memory_space<vmem>>, %arg27: memref<32x16xbf16, #tpu.memory_space<vmem>>, %arg28: memref<1x32xf32, #tpu.memory_space<vmem>>, %arg29: memref<16x32xbf16, #tpu.memory_space<vmem>>, %arg30: memref<1x8x16xf32, #tpu.memory_space<vmem>>, %arg31: memref<1x4x1xi32, #tpu.memory_space<vmem>>, %arg32: memref<1x1x1xf32, #tpu.memory_space<vmem>>, %arg33: memref<32x32xf32, #tpu.memory_space<vmem>>) attributes {dimension_semantics = [#tpu.dimension_semantics<parallel>], iteration_bounds = array<i64: 2>, scalar_prefetch = 0 : i64, scratch_operands = 1 : i64, tpu.core_type = #tpu.core_type<tc>, window_params = [{transform_indices = @transform_0, window_bounds = array<i64: 1, 16, 8>}, {pipeline_mode = #tpu.pipeline_mode<synchronous>, transform_indices = @transform_1, window_bounds = array<i64: 1, 32>}, {pipeline_mode = #tpu.pipeline_mode<synchronous>, transform_indices = @transform_2, window_bounds = array<i64: 96, 32>}, {pipeline_mode = #tpu.pipeline_mode<synchronous>, transform_indices = @transform_3, window_bounds = array<i64: 1, 32>}, {pipeline_mode = #tpu.pipeline_mode<synchronous>, transform_indices = @transform_4, window_bounds = array<i64: 96, 32>}, {pipeline_mode = #tpu.pipeline_mode<synchronous>, transform_indices = @transform_5, window_bounds = array<i64: 1, 8>}, {pipeline_mode = #tpu.pipeline_mode<synchronous>, transform_indices = @transform_6, window_bounds = array<i64: 96, 8>}, {pipeline_mode = #tpu.pipeline_mode<synchronous>, transform_indices = @transform_7, window_bounds = array<i64: 2, 2, 1, 32>}, {pipeline_mode = #tpu.pipeline_mode<synchronous>, transform_indices = @transform_8, window_bounds = array<i64: 2, 2, 1, 32>}, {pipeline_mode = #tpu.pipeline_mode<synchronous>, transform_indices = @transform_9, window_bounds = array<i64: 2, 2, 96, 32>}, {pipeline_mode = #tpu.pipeline_mode<synchronous>, transform_indices = @transform_10, window_bounds = array<i64: 2, 2, 32, 32>}, {pipeline_mode = #tpu.pipeline_mode<synchronous>, transform_indices = @transform_11, window_bounds = array<i64: 2, 1, 32>}, {pipeline_mode = #tpu.pipeline_mode<synchronous>, transform_indices = @transform_12, window_bounds = array<i64: 2, 96, 32>}, {pipeline_mode = #tpu.pipeline_mode<synchronous>, transform_indices = @transform_13, window_bounds = array<i64: 1, 32>}, {pipeline_mode = #tpu.pipeline_mode<synchronous>, transform_indices = @transform_14, window_bounds = array<i64: 24, 32>}, {pipeline_mode = #tpu.pipeline_mode<synchronous>, transform_indices = @transform_15, window_bounds = array<i64: 1, 32>}, {pipeline_mode = #tpu.pipeline_mode<synchronous>, transform_indices = @transform_16, window_bounds = array<i64: 96, 32>}, {pipeline_mode = #tpu.pipeline_mode<synchronous>, transform_indices = @transform_17, window_bounds = array<i64: 2, 1, 32>}, {pipeline_mode = #tpu.pipeline_mode<synchronous>, transform_indices = @transform_18, window_bounds = array<i64: 2, 128, 32>}, {pipeline_mode = #tpu.pipeline_mode<synchronous>, transform_indices = @transform_19, window_bounds = array<i64: 2, 2, 1, 32>}, {pipeline_mode = #tpu.pipeline_mode<synchronous>, transform_indices = @transform_20, window_bounds = array<i64: 2, 2, 1, 32>}, {pipeline_mode = #tpu.pipeline_mode<synchronous>, transform_indices = @transform_21, window_bounds = array<i64: 2, 2, 96, 32>}, {pipeline_mode = #tpu.pipeline_mode<synchronous>, transform_indices = @transform_22, window_bounds = array<i64: 2, 2, 32, 32>}, {pipeline_mode = #tpu.pipeline_mode<synchronous>, transform_indices = @transform_23, window_bounds = array<i64: 64, 16>}, {pipeline_mode = #tpu.pipeline_mode<synchronous>, transform_indices = @transform_24, window_bounds = array<i64: 1, 64>}, {pipeline_mode = #tpu.pipeline_mode<synchronous>, transform_indices = @transform_25, window_bounds = array<i64: 1, 16>}, {pipeline_mode = #tpu.pipeline_mode<synchronous>, transform_indices = @transform_26, window_bounds = array<i64: 32, 16>}, {pipeline_mode = #tpu.pipeline_mode<synchronous>, transform_indices = @transform_27, window_bounds = array<i64: 1, 32>}, {pipeline_mode = #tpu.pipeline_mode<synchronous>, transform_indices = @transform_28, window_bounds = array<i64: 16, 32>}, {transform_indices = @transform_29, window_bounds = array<i64: 1, 8, 16>}, {transform_indices = @transform_30, window_bounds = array<i64: 1, 4, 1>}, {transform_indices = @transform_31, window_bounds = array<i64: 1, 1, 1>}]} {
    %c0 = arith.constant 0 : index
    %c0_0 = arith.constant 0 : index
    %c0_1 = arith.constant 0 : index
    %0 = vector.load %arg1[%c0, %c0_0, %c0_1] : memref<1x16x8xf32, #tpu.memory_space<vmem>>, vector<1x16x8xf32>
    %1 = vector.shape_cast %0 : vector<1x16x8xf32> to vector<16x8xf32>
    %c0_2 = arith.constant 0 : index
    %c0_3 = arith.constant 0 : index
    %2 = vector.load %arg15[%c0_2, %c0_3] : memref<24x32xbf16, #tpu.memory_space<vmem>>, vector<24x32xbf16>
    %c0_4 = arith.constant 0 : index
    %c0_5 = arith.constant 0 : index
    %3 = vector.load %arg14[%c0_4, %c0_5] : memref<1x32xf32, #tpu.memory_space<vmem>>, vector<1x32xf32>
    %cst = arith.constant 0.000000e+00 : f32
    %4 = vector.broadcast %cst : f32 to vector<8x8xf32>
    %c0_6 = arith.constant 0 : index
    %c0_7 = arith.constant 0 : index
    %5 = vector.load %arg33[%c0_6, %c0_7] : memref<32x32xf32, #tpu.memory_space<vmem>>, vector<8x8xf32>
    tpu.vector_store %arg33[%c0_6, %c0_7], %4 {strides = array<i32>} : memref<32x32xf32, #tpu.memory_space<vmem>>, vector<8x8xf32>,
    %c8 = arith.constant 8 : index
    %c0_8 = arith.constant 0 : index
    %6 = vector.load %arg33[%c8, %c0_8] : memref<32x32xf32, #tpu.memory_space<vmem>>, vector<16x8xf32>
    tpu.vector_store %arg33[%c8, %c0_8], %1 {strides = array<i32>} : memref<32x32xf32, #tpu.memory_space<vmem>>, vector<16x8xf32>,
    %c24 = arith.constant 24 : index
    %c0_9 = arith.constant 0 : index
    %7 = vector.load %arg33[%c24, %c0_9] : memref<32x32xf32, #tpu.memory_space<vmem>>, vector<8x8xf32>
    tpu.vector_store %arg33[%c24, %c0_9], %4 {strides = array<i32>} : memref<32x32xf32, #tpu.memory_space<vmem>>, vector<8x8xf32>,
    %c7 = arith.constant 7 : index
    %c0_10 = arith.constant 0 : index
    %8 = vector.load %arg33[%c7, %c0_10] : memref<32x32xf32, #tpu.memory_space<vmem>>, vector<16x8xf32>
    %c8_11 = arith.constant 8 : index
    %c0_12 = arith.constant 0 : index
    %9 = vector.load %arg33[%c8_11, %c0_12] : memref<32x32xf32, #tpu.memory_space<vmem>>, vector<16x8xf32>
    %c9 = arith.constant 9 : index
    %c0_13 = arith.constant 0 : index
    %10 = vector.load %arg33[%c9, %c0_13] : memref<32x32xf32, #tpu.memory_space<vmem>>, vector<16x8xf32>
    %11 = tpu.concatenate %8, %9, %10 in 1 : vector<16x8xf32>, vector<16x8xf32>, vector<16x8xf32> -> vector<16x24xf32>
    %12 = arith.truncf %11 : vector<16x24xf32> to vector<16x24xbf16>
    %cst_14 = arith.constant dense<0.000000e+00> : vector<16x32xf32>
    %13 = tpu.matmul %12, %2, %cst_14 {dimension_numbers = #tpu.dot_dimension_numbers<[1], [0], [0], [1], [0, 0, 1, 1], [], []>} : vector<16x24xbf16>, vector<24x32xbf16>, vector<16x32xf32> -> vector<16x32xf32>
    %14 = vector.broadcast %3 : vector<1x32xf32> to vector<16x32xf32>
    %15 = arith.addf %13, %14 : vector<16x32xf32>
    %cst_15 = arith.constant 0.000000e+00 : f32
    %16 = vector.broadcast %cst_15 : f32 to vector<16x32xf32>
    %17 = arith.maximumf %15, %16 : vector<16x32xf32>
    %c0_16 = arith.constant 0 : index
    %c0_17 = arith.constant 0 : index
    %c0_18 = arith.constant 0 : index
    %18 = vector.load %arg19[%c0_16, %c0_17, %c0_18] : memref<2x128x32xbf16, #tpu.memory_space<vmem>>, vector<1x128x32xbf16>
    %19 = vector.shape_cast %18 : vector<1x128x32xbf16> to vector<128x32xbf16>
    %c0_19 = arith.constant 0 : index
    %c0_20 = arith.constant 0 : index
    %c0_21 = arith.constant 0 : index
    %20 = vector.load %arg18[%c0_19, %c0_20, %c0_21] : memref<2x1x32xf32, #tpu.memory_space<vmem>>, vector<1x1x32xf32>
    %21 = vector.shape_cast %20 : vector<1x1x32xf32> to vector<1x32xf32>
    %cst_22 = arith.constant 0.000000e+00 : f32
    %22 = vector.broadcast %cst_22 : f32 to vector<8x32xf32>
    %c0_23 = arith.constant 0 : index
    %c0_24 = arith.constant 0 : index
    %23 = vector.load %arg33[%c0_23, %c0_24] : memref<32x32xf32, #tpu.memory_space<vmem>>, vector<8x32xf32>
    tpu.vector_store %arg33[%c0_23, %c0_24], %22 {strides = array<i32>} : memref<32x32xf32, #tpu.memory_space<vmem>>, vector<8x32xf32>,
    %c8_25 = arith.constant 8 : index
    %c0_26 = arith.constant 0 : index
    %24 = vector.load %arg33[%c8_25, %c0_26] : memref<32x32xf32, #tpu.memory_space<vmem>>, vector<16x32xf32>
    tpu.vector_store %arg33[%c8_25, %c0_26], %17 {strides = array<i32>} : memref<32x32xf32, #tpu.memory_space<vmem>>, vector<16x32xf32>,
    %c24_27 = arith.constant 24 : index
    %c0_28 = arith.constant 0 : index
    %25 = vector.load %arg33[%c24_27, %c0_28] : memref<32x32xf32, #tpu.memory_space<vmem>>, vector<8x32xf32>
    tpu.vector_store %arg33[%c24_27, %c0_28], %22 {strides = array<i32>} : memref<32x32xf32, #tpu.memory_space<vmem>>, vector<8x32xf32>,
    %c7_29 = arith.constant 7 : index
    %c0_30 = arith.constant 0 : index
    %26 = tpu.strided_load %arg33[%c7_29, %c0_30] {strides = array<i32: 2, 1>} : memref<32x32xf32, #tpu.memory_space<vmem>>, vector<8x32xf32>
    %c8_31 = arith.constant 8 : index
    %c0_32 = arith.constant 0 : index
    %27 = tpu.strided_load %arg33[%c8_31, %c0_32] {strides = array<i32: 2, 1>} : memref<32x32xf32, #tpu.memory_space<vmem>>, vector<8x32xf32>
    %c9_33 = arith.constant 9 : index
    %c0_34 = arith.constant 0 : index
    %28 = tpu.strided_load %arg33[%c9_33, %c0_34] {strides = array<i32: 2, 1>} : memref<32x32xf32, #tpu.memory_space<vmem>>, vector<8x32xf32>
    %c10 = arith.constant 10 : index
    %c0_35 = arith.constant 0 : index
    %29 = tpu.strided_load %arg33[%c10, %c0_35] {strides = array<i32: 2, 1>} : memref<32x32xf32, #tpu.memory_space<vmem>>, vector<8x32xf32>
    %30 = tpu.concatenate %26, %27, %28, %29 in 1 : vector<8x32xf32>, vector<8x32xf32>, vector<8x32xf32>, vector<8x32xf32> -> vector<8x128xf32>
    %31 = arith.truncf %30 : vector<8x128xf32> to vector<8x128xbf16>
    %cst_36 = arith.constant dense<0.000000e+00> : vector<8x32xf32>
    %32 = tpu.matmul %31, %19, %cst_36 {dimension_numbers = #tpu.dot_dimension_numbers<[1], [0], [0], [1], [0, 0, 1, 1], [], []>} : vector<8x128xbf16>, vector<128x32xbf16>, vector<8x32xf32> -> vector<8x32xf32>
    %33 = vector.broadcast %21 : vector<1x32xf32> to vector<8x32xf32>
    %34 = arith.addf %32, %33 : vector<8x32xf32>
    %c0_37 = arith.constant 0 : index
    %c0_38 = arith.constant 0 : index
    %c0_39 = arith.constant 0 : index
    %c0_40 = arith.constant 0 : index
    %35 = vector.load %arg22[%c0_37, %c0_38, %c0_39, %c0_40] : memref<2x2x96x32xbf16, #tpu.memory_space<vmem>>, vector<1x1x96x32xbf16>
    %36 = vector.shape_cast %35 : vector<1x1x96x32xbf16> to vector<96x32xbf16>
    %c0_41 = arith.constant 0 : index
    %c0_42 = arith.constant 0 : index
    %c0_43 = arith.constant 0 : index
    %c0_44 = arith.constant 0 : index
    %37 = vector.load %arg20[%c0_41, %c0_42, %c0_43, %c0_44] : memref<2x2x1x32xf32, #tpu.memory_space<vmem>>, vector<1x1x1x32xf32>
    %38 = vector.shape_cast %37 : vector<1x1x1x32xf32> to vector<1x32xf32>
    %c0_45 = arith.constant 0 : index
    %c0_46 = arith.constant 0 : index
    %c0_47 = arith.constant 0 : index
    %c0_48 = arith.constant 0 : index
    %39 = vector.load %arg23[%c0_45, %c0_46, %c0_47, %c0_48] : memref<2x2x32x32xbf16, #tpu.memory_space<vmem>>, vector<1x1x32x32xbf16>
    %40 = vector.shape_cast %39 : vector<1x1x32x32xbf16> to vector<32x32xbf16>
    %c0_49 = arith.constant 0 : index
    %c0_50 = arith.constant 0 : index
    %c0_51 = arith.constant 0 : index
    %c0_52 = arith.constant 0 : index
    %41 = vector.load %arg21[%c0_49, %c0_50, %c0_51, %c0_52] : memref<2x2x1x32xf32, #tpu.memory_space<vmem>>, vector<1x1x1x32xf32>
    %42 = vector.shape_cast %41 : vector<1x1x1x32xf32> to vector<1x32xf32>
    %cst_53 = arith.constant 0.000000e+00 : f32
    %43 = vector.broadcast %cst_53 : f32 to vector<8x32xf32>
    %44 = arith.maximumf %34, %43 : vector<8x32xf32>
    %cst_54 = arith.constant 0.000000e+00 : f32
    %45 = vector.broadcast %cst_54 : f32 to vector<8x32xf32>
    %c0_55 = arith.constant 0 : index
    %c0_56 = arith.constant 0 : index
    %46 = vector.load %arg33[%c0_55, %c0_56] : memref<32x32xf32, #tpu.memory_space<vmem>>, vector<8x32xf32>
    tpu.vector_store %arg33[%c0_55, %c0_56], %45 {strides = array<i32>} : memref<32x32xf32, #tpu.memory_space<vmem>>, vector<8x32xf32>,
    %c8_57 = arith.constant 8 : index
    %c0_58 = arith.constant 0 : index
    %47 = vector.load %arg33[%c8_57, %c0_58] : memref<32x32xf32, #tpu.memory_space<vmem>>, vector<8x32xf32>
    tpu.vector_store %arg33[%c8_57, %c0_58], %44 {strides = array<i32>} : memref<32x32xf32, #tpu.memory_space<vmem>>, vector<8x32xf32>,
    %c16 = arith.constant 16 : index
    %c0_59 = arith.constant 0 : index
    %48 = vector.load %arg33[%c16, %c0_59] : memref<32x32xf32, #tpu.memory_space<vmem>>, vector<8x32xf32>
    tpu.vector_store %arg33[%c16, %c0_59], %45 {strides = array<i32>} : memref<32x32xf32, #tpu.memory_space<vmem>>, vector<8x32xf32>,
    %c7_60 = arith.constant 7 : index
    %c0_61 = arith.constant 0 : index
    %49 = vector.load %arg33[%c7_60, %c0_61] : memref<32x32xf32, #tpu.memory_space<vmem>>, vector<8x32xf32>
    %c8_62 = arith.constant 8 : index
    %c0_63 = arith.constant 0 : index
    %50 = vector.load %arg33[%c8_62, %c0_63] : memref<32x32xf32, #tpu.memory_space<vmem>>, vector<8x32xf32>
    %c9_64 = arith.constant 9 : index
    %c0_65 = arith.constant 0 : index
    %51 = vector.load %arg33[%c9_64, %c0_65] : memref<32x32xf32, #tpu.memory_space<vmem>>, vector<8x32xf32>
    %52 = tpu.concatenate %49, %50, %51 in 1 : vector<8x32xf32>, vector<8x32xf32>, vector<8x32xf32> -> vector<8x96xf32>
    %53 = arith.truncf %52 : vector<8x96xf32> to vector<8x96xbf16>
    %cst_66 = arith.constant dense<0.000000e+00> : vector<8x32xf32>
    %54 = tpu.matmul %53, %36, %cst_66 {dimension_numbers = #tpu.dot_dimension_numbers<[1], [0], [0], [1], [0, 0, 1, 1], [], []>} : vector<8x96xbf16>, vector<96x32xbf16>, vector<8x32xf32> -> vector<8x32xf32>
    %55 = vector.broadcast %38 : vector<1x32xf32> to vector<8x32xf32>
    %56 = arith.addf %54, %55 : vector<8x32xf32>
    %cst_67 = arith.constant 0.000000e+00 : f32
    %57 = vector.broadcast %cst_67 : f32 to vector<8x32xf32>
    %58 = arith.maximumf %56, %57 : vector<8x32xf32>
    %59 = arith.truncf %58 : vector<8x32xf32> to vector<8x32xbf16>
    %cst_68 = arith.constant dense<0.000000e+00> : vector<8x32xf32>
    %60 = tpu.matmul %59, %40, %cst_68 {dimension_numbers = #tpu.dot_dimension_numbers<[1], [0], [0], [1], [0, 0, 1, 1], [], []>} : vector<8x32xbf16>, vector<32x32xbf16>, vector<8x32xf32> -> vector<8x32xf32>
    %61 = vector.broadcast %42 : vector<1x32xf32> to vector<8x32xf32>
    %62 = arith.addf %60, %61 : vector<8x32xf32>
    %63 = arith.addf %34, %62 : vector<8x32xf32>
    %c0_69 = arith.constant 0 : index
    %c1 = arith.constant 1 : index
    %c0_70 = arith.constant 0 : index
    %c0_71 = arith.constant 0 : index
    %64 = vector.load %arg22[%c0_69, %c1, %c0_70, %c0_71] : memref<2x2x96x32xbf16, #tpu.memory_space<vmem>>, vector<1x1x96x32xbf16>
    %65 = vector.shape_cast %64 : vector<1x1x96x32xbf16> to vector<96x32xbf16>
    %c0_72 = arith.constant 0 : index
    %c1_73 = arith.constant 1 : index
    %c0_74 = arith.constant 0 : index
    %c0_75 = arith.constant 0 : index
    %66 = vector.load %arg20[%c0_72, %c1_73, %c0_74, %c0_75] : memref<2x2x1x32xf32, #tpu.memory_space<vmem>>, vector<1x1x1x32xf32>
    %67 = vector.shape_cast %66 : vector<1x1x1x32xf32> to vector<1x32xf32>
    %c0_76 = arith.constant 0 : index
    %c1_77 = arith.constant 1 : index
    %c0_78 = arith.constant 0 : index
    %c0_79 = arith.constant 0 : index
    %68 = vector.load %arg23[%c0_76, %c1_77, %c0_78, %c0_79] : memref<2x2x32x32xbf16, #tpu.memory_space<vmem>>, vector<1x1x32x32xbf16>
    %69 = vector.shape_cast %68 : vector<1x1x32x32xbf16> to vector<32x32xbf16>
    %c0_80 = arith.constant 0 : index
    %c1_81 = arith.constant 1 : index
    %c0_82 = arith.constant 0 : index
    %c0_83 = arith.constant 0 : index
    %70 = vector.load %arg21[%c0_80, %c1_81, %c0_82, %c0_83] : memref<2x2x1x32xf32, #tpu.memory_space<vmem>>, vector<1x1x1x32xf32>
    %71 = vector.shape_cast %70 : vector<1x1x1x32xf32> to vector<1x32xf32>
    %cst_84 = arith.constant 0.000000e+00 : f32
    %72 = vector.broadcast %cst_84 : f32 to vector<8x32xf32>
    %73 = arith.maximumf %63, %72 : vector<8x32xf32>
    %cst_85 = arith.constant 0.000000e+00 : f32
    %74 = vector.broadcast %cst_85 : f32 to vector<8x32xf32>
    %c0_86 = arith.constant 0 : index
    %c0_87 = arith.constant 0 : index
    %75 = vector.load %arg33[%c0_86, %c0_87] : memref<32x32xf32, #tpu.memory_space<vmem>>, vector<8x32xf32>
    tpu.vector_store %arg33[%c0_86, %c0_87], %74 {strides = array<i32>} : memref<32x32xf32, #tpu.memory_space<vmem>>, vector<8x32xf32>,
    %c8_88 = arith.constant 8 : index
    %c0_89 = arith.constant 0 : index
    %76 = vector.load %arg33[%c8_88, %c0_89] : memref<32x32xf32, #tpu.memory_space<vmem>>, vector<8x32xf32>
    tpu.vector_store %arg33[%c8_88, %c0_89], %73 {strides = array<i32>} : memref<32x32xf32, #tpu.memory_space<vmem>>, vector<8x32xf32>,
    %c16_90 = arith.constant 16 : index
    %c0_91 = arith.constant 0 : index
    %77 = vector.load %arg33[%c16_90, %c0_91] : memref<32x32xf32, #tpu.memory_space<vmem>>, vector<8x32xf32>
    tpu.vector_store %arg33[%c16_90, %c0_91], %74 {strides = array<i32>} : memref<32x32xf32, #tpu.memory_space<vmem>>, vector<8x32xf32>,
    %c5 = arith.constant 5 : index
    %c0_92 = arith.constant 0 : index
    %78 = vector.load %arg33[%c5, %c0_92] : memref<32x32xf32, #tpu.memory_space<vmem>>, vector<8x32xf32>
    %c8_93 = arith.constant 8 : index
    %c0_94 = arith.constant 0 : index
    %79 = vector.load %arg33[%c8_93, %c0_94] : memref<32x32xf32, #tpu.memory_space<vmem>>, vector<8x32xf32>
    %c11 = arith.constant 11 : index
    %c0_95 = arith.constant 0 : index
    %80 = vector.load %arg33[%c11, %c0_95] : memref<32x32xf32, #tpu.memory_space<vmem>>, vector<8x32xf32>
    %81 = tpu.concatenate %78, %79, %80 in 1 : vector<8x32xf32>, vector<8x32xf32>, vector<8x32xf32> -> vector<8x96xf32>
    %82 = arith.truncf %81 : vector<8x96xf32> to vector<8x96xbf16>
    %cst_96 = arith.constant dense<0.000000e+00> : vector<8x32xf32>
    %83 = tpu.matmul %82, %65, %cst_96 {dimension_numbers = #tpu.dot_dimension_numbers<[1], [0], [0], [1], [0, 0, 1, 1], [], []>} : vector<8x96xbf16>, vector<96x32xbf16>, vector<8x32xf32> -> vector<8x32xf32>
    %84 = vector.broadcast %67 : vector<1x32xf32> to vector<8x32xf32>
    %85 = arith.addf %83, %84 : vector<8x32xf32>
    %cst_97 = arith.constant 0.000000e+00 : f32
    %86 = vector.broadcast %cst_97 : f32 to vector<8x32xf32>
    %87 = arith.maximumf %85, %86 : vector<8x32xf32>
    %88 = arith.truncf %87 : vector<8x32xf32> to vector<8x32xbf16>
    %cst_98 = arith.constant dense<0.000000e+00> : vector<8x32xf32>
    %89 = tpu.matmul %88, %69, %cst_98 {dimension_numbers = #tpu.dot_dimension_numbers<[1], [0], [0], [1], [0, 0, 1, 1], [], []>} : vector<8x32xbf16>, vector<32x32xbf16>, vector<8x32xf32> -> vector<8x32xf32>
    %90 = vector.broadcast %71 : vector<1x32xf32> to vector<8x32xf32>
    %91 = arith.addf %89, %90 : vector<8x32xf32>
    %92 = arith.addf %63, %91 : vector<8x32xf32>
    %c1_99 = arith.constant 1 : index
    %c0_100 = arith.constant 0 : index
    %c0_101 = arith.constant 0 : index
    %93 = vector.load %arg19[%c1_99, %c0_100, %c0_101] : memref<2x128x32xbf16, #tpu.memory_space<vmem>>, vector<1x128x32xbf16>
    %94 = vector.shape_cast %93 : vector<1x128x32xbf16> to vector<128x32xbf16>
    %c1_102 = arith.constant 1 : index
    %c0_103 = arith.constant 0 : index
    %c0_104 = arith.constant 0 : index
    %95 = vector.load %arg18[%c1_102, %c0_103, %c0_104] : memref<2x1x32xf32, #tpu.memory_space<vmem>>, vector<1x1x32xf32>
    %96 = vector.shape_cast %95 : vector<1x1x32xf32> to vector<1x32xf32>
    %cst_105 = arith.constant 0.000000e+00 : f32
    %97 = vector.broadcast %cst_105 : f32 to vector<8x32xf32>
    %c0_106 = arith.constant 0 : index
    %c0_107 = arith.constant 0 : index
    %98 = vector.load %arg33[%c0_106, %c0_107] : memref<32x32xf32, #tpu.memory_space<vmem>>, vector<8x32xf32>
    tpu.vector_store %arg33[%c0_106, %c0_107], %97 {strides = array<i32>} : memref<32x32xf32, #tpu.memory_space<vmem>>, vector<8x32xf32>,
    %c8_108 = arith.constant 8 : index
    %c0_109 = arith.constant 0 : index
    %99 = vector.load %arg33[%c8_108, %c0_109] : memref<32x32xf32, #tpu.memory_space<vmem>>, vector<8x32xf32>
    tpu.vector_store %arg33[%c8_108, %c0_109], %92 {strides = array<i32>} : memref<32x32xf32, #tpu.memory_space<vmem>>, vector<8x32xf32>,
    %c16_110 = arith.constant 16 : index
    %c0_111 = arith.constant 0 : index
    %100 = vector.load %arg33[%c16_110, %c0_111] : memref<32x32xf32, #tpu.memory_space<vmem>>, vector<8x32xf32>
    tpu.vector_store %arg33[%c16_110, %c0_111], %97 {strides = array<i32>} : memref<32x32xf32, #tpu.memory_space<vmem>>, vector<8x32xf32>,
    %c7_112 = arith.constant 7 : index
    %c0_113 = arith.constant 0 : index
    %101 = tpu.strided_load %arg33[%c7_112, %c0_113] {strides = array<i32: 2, 1>} : memref<32x32xf32, #tpu.memory_space<vmem>>, vector<4x32xf32>
    %c8_114 = arith.constant 8 : index
    %c0_115 = arith.constant 0 : index
    %102 = tpu.strided_load %arg33[%c8_114, %c0_115] {strides = array<i32: 2, 1>} : memref<32x32xf32, #tpu.memory_space<vmem>>, vector<4x32xf32>
    %c9_116 = arith.constant 9 : index
    %c0_117 = arith.constant 0 : index
    %103 = tpu.strided_load %arg33[%c9_116, %c0_117] {strides = array<i32: 2, 1>} : memref<32x32xf32, #tpu.memory_space<vmem>>, vector<4x32xf32>
    %c10_118 = arith.constant 10 : index
    %c0_119 = arith.constant 0 : index
    %104 = tpu.strided_load %arg33[%c10_118, %c0_119] {strides = array<i32: 2, 1>} : memref<32x32xf32, #tpu.memory_space<vmem>>, vector<4x32xf32>
    %105 = tpu.concatenate %101, %102, %103, %104 in 1 : vector<4x32xf32>, vector<4x32xf32>, vector<4x32xf32>, vector<4x32xf32> -> vector<4x128xf32>
    %106 = arith.truncf %105 : vector<4x128xf32> to vector<4x128xbf16>
    %cst_120 = arith.constant dense<0.000000e+00> : vector<4x32xf32>
    %107 = tpu.matmul %106, %94, %cst_120 {dimension_numbers = #tpu.dot_dimension_numbers<[1], [0], [0], [1], [0, 0, 1, 1], [], []>} : vector<4x128xbf16>, vector<128x32xbf16>, vector<4x32xf32> -> vector<4x32xf32>
    %108 = vector.broadcast %96 : vector<1x32xf32> to vector<4x32xf32>
    %109 = arith.addf %107, %108 : vector<4x32xf32>
    %c1_121 = arith.constant 1 : index
    %c0_122 = arith.constant 0 : index
    %c0_123 = arith.constant 0 : index
    %c0_124 = arith.constant 0 : index
    %110 = vector.load %arg22[%c1_121, %c0_122, %c0_123, %c0_124] : memref<2x2x96x32xbf16, #tpu.memory_space<vmem>>, vector<1x1x96x32xbf16>
    %111 = vector.shape_cast %110 : vector<1x1x96x32xbf16> to vector<96x32xbf16>
    %c1_125 = arith.constant 1 : index
    %c0_126 = arith.constant 0 : index
    %c0_127 = arith.constant 0 : index
    %c0_128 = arith.constant 0 : index
    %112 = vector.load %arg20[%c1_125, %c0_126, %c0_127, %c0_128] : memref<2x2x1x32xf32, #tpu.memory_space<vmem>>, vector<1x1x1x32xf32>
    %113 = vector.shape_cast %112 : vector<1x1x1x32xf32> to vector<1x32xf32>
    %c1_129 = arith.constant 1 : index
    %c0_130 = arith.constant 0 : index
    %c0_131 = arith.constant 0 : index
    %c0_132 = arith.constant 0 : index
    %114 = vector.load %arg23[%c1_129, %c0_130, %c0_131, %c0_132] : memref<2x2x32x32xbf16, #tpu.memory_space<vmem>>, vector<1x1x32x32xbf16>
    %115 = vector.shape_cast %114 : vector<1x1x32x32xbf16> to vector<32x32xbf16>
    %c1_133 = arith.constant 1 : index
    %c0_134 = arith.constant 0 : index
    %c0_135 = arith.constant 0 : index
    %c0_136 = arith.constant 0 : index
    %116 = vector.load %arg21[%c1_133, %c0_134, %c0_135, %c0_136] : memref<2x2x1x32xf32, #tpu.memory_space<vmem>>, vector<1x1x1x32xf32>
    %117 = vector.shape_cast %116 : vector<1x1x1x32xf32> to vector<1x32xf32>
    %cst_137 = arith.constant 0.000000e+00 : f32
    %118 = vector.broadcast %cst_137 : f32 to vector<4x32xf32>
    %119 = arith.maximumf %109, %118 : vector<4x32xf32>
    %cst_138 = arith.constant 0.000000e+00 : f32
    %120 = vector.broadcast %cst_138 : f32 to vector<8x32xf32>
    %c0_139 = arith.constant 0 : index
    %c0_140 = arith.constant 0 : index
    %121 = vector.load %arg33[%c0_139, %c0_140] : memref<32x32xf32, #tpu.memory_space<vmem>>, vector<8x32xf32>
    tpu.vector_store %arg33[%c0_139, %c0_140], %120 {strides = array<i32>} : memref<32x32xf32, #tpu.memory_space<vmem>>, vector<8x32xf32>,
    %c8_141 = arith.constant 8 : index
    %c0_142 = arith.constant 0 : index
    %122 = vector.load %arg33[%c8_141, %c0_142] : memref<32x32xf32, #tpu.memory_space<vmem>>, vector<4x32xf32>
    tpu.vector_store %arg33[%c8_141, %c0_142], %119 {strides = array<i32>} : memref<32x32xf32, #tpu.memory_space<vmem>>, vector<4x32xf32>,
    %c12 = arith.constant 12 : index
    %c0_143 = arith.constant 0 : index
    %123 = vector.load %arg33[%c12, %c0_143] : memref<32x32xf32, #tpu.memory_space<vmem>>, vector<8x32xf32>
    tpu.vector_store %arg33[%c12, %c0_143], %120 {strides = array<i32>} : memref<32x32xf32, #tpu.memory_space<vmem>>, vector<8x32xf32>,
    %c7_144 = arith.constant 7 : index
    %c0_145 = arith.constant 0 : index
    %124 = vector.load %arg33[%c7_144, %c0_145] : memref<32x32xf32, #tpu.memory_space<vmem>>, vector<4x32xf32>
    %c8_146 = arith.constant 8 : index
    %c0_147 = arith.constant 0 : index
    %125 = vector.load %arg33[%c8_146, %c0_147] : memref<32x32xf32, #tpu.memory_space<vmem>>, vector<4x32xf32>
    %c9_148 = arith.constant 9 : index
    %c0_149 = arith.constant 0 : index
    %126 = vector.load %arg33[%c9_148, %c0_149] : memref<32x32xf32, #tpu.memory_space<vmem>>, vector<4x32xf32>
    %127 = tpu.concatenate %124, %125, %126 in 1 : vector<4x32xf32>, vector<4x32xf32>, vector<4x32xf32> -> vector<4x96xf32>
    %128 = arith.truncf %127 : vector<4x96xf32> to vector<4x96xbf16>
    %cst_150 = arith.constant dense<0.000000e+00> : vector<4x32xf32>
    %129 = tpu.matmul %128, %111, %cst_150 {dimension_numbers = #tpu.dot_dimension_numbers<[1], [0], [0], [1], [0, 0, 1, 1], [], []>} : vector<4x96xbf16>, vector<96x32xbf16>, vector<4x32xf32> -> vector<4x32xf32>
    %130 = vector.broadcast %113 : vector<1x32xf32> to vector<4x32xf32>
    %131 = arith.addf %129, %130 : vector<4x32xf32>
    %cst_151 = arith.constant 0.000000e+00 : f32
    %132 = vector.broadcast %cst_151 : f32 to vector<4x32xf32>
    %133 = arith.maximumf %131, %132 : vector<4x32xf32>
    %134 = arith.truncf %133 : vector<4x32xf32> to vector<4x32xbf16>
    %cst_152 = arith.constant dense<0.000000e+00> : vector<4x32xf32>
    %135 = tpu.matmul %134, %115, %cst_152 {dimension_numbers = #tpu.dot_dimension_numbers<[1], [0], [0], [1], [0, 0, 1, 1], [], []>} : vector<4x32xbf16>, vector<32x32xbf16>, vector<4x32xf32> -> vector<4x32xf32>
    %136 = vector.broadcast %117 : vector<1x32xf32> to vector<4x32xf32>
    %137 = arith.addf %135, %136 : vector<4x32xf32>
    %138 = arith.addf %109, %137 : vector<4x32xf32>
    %c1_153 = arith.constant 1 : index
    %c1_154 = arith.constant 1 : index
    %c0_155 = arith.constant 0 : index
    %c0_156 = arith.constant 0 : index
    %139 = vector.load %arg22[%c1_153, %c1_154, %c0_155, %c0_156] : memref<2x2x96x32xbf16, #tpu.memory_space<vmem>>, vector<1x1x96x32xbf16>
    %140 = vector.shape_cast %139 : vector<1x1x96x32xbf16> to vector<96x32xbf16>
    %c1_157 = arith.constant 1 : index
    %c1_158 = arith.constant 1 : index
    %c0_159 = arith.constant 0 : index
    %c0_160 = arith.constant 0 : index
    %141 = vector.load %arg20[%c1_157, %c1_158, %c0_159, %c0_160] : memref<2x2x1x32xf32, #tpu.memory_space<vmem>>, vector<1x1x1x32xf32>
    %142 = vector.shape_cast %141 : vector<1x1x1x32xf32> to vector<1x32xf32>
    %c1_161 = arith.constant 1 : index
    %c1_162 = arith.constant 1 : index
    %c0_163 = arith.constant 0 : index
    %c0_164 = arith.constant 0 : index
    %143 = vector.load %arg23[%c1_161, %c1_162, %c0_163, %c0_164] : memref<2x2x32x32xbf16, #tpu.memory_space<vmem>>, vector<1x1x32x32xbf16>
    %144 = vector.shape_cast %143 : vector<1x1x32x32xbf16> to vector<32x32xbf16>
    %c1_165 = arith.constant 1 : index
    %c1_166 = arith.constant 1 : index
    %c0_167 = arith.constant 0 : index
    %c0_168 = arith.constant 0 : index
    %145 = vector.load %arg21[%c1_165, %c1_166, %c0_167, %c0_168] : memref<2x2x1x32xf32, #tpu.memory_space<vmem>>, vector<1x1x1x32xf32>
    %146 = vector.shape_cast %145 : vector<1x1x1x32xf32> to vector<1x32xf32>
    %cst_169 = arith.constant 0.000000e+00 : f32
    %147 = vector.broadcast %cst_169 : f32 to vector<4x32xf32>
    %148 = arith.maximumf %138, %147 : vector<4x32xf32>
    %cst_170 = arith.constant 0.000000e+00 : f32
    %149 = vector.broadcast %cst_170 : f32 to vector<8x32xf32>
    %c0_171 = arith.constant 0 : index
    %c0_172 = arith.constant 0 : index
    %150 = vector.load %arg33[%c0_171, %c0_172] : memref<32x32xf32, #tpu.memory_space<vmem>>, vector<8x32xf32>
    tpu.vector_store %arg33[%c0_171, %c0_172], %149 {strides = array<i32>} : memref<32x32xf32, #tpu.memory_space<vmem>>, vector<8x32xf32>,
    %c8_173 = arith.constant 8 : index
    %c0_174 = arith.constant 0 : index
    %151 = vector.load %arg33[%c8_173, %c0_174] : memref<32x32xf32, #tpu.memory_space<vmem>>, vector<4x32xf32>
    tpu.vector_store %arg33[%c8_173, %c0_174], %148 {strides = array<i32>} : memref<32x32xf32, #tpu.memory_space<vmem>>, vector<4x32xf32>,
    %c12_175 = arith.constant 12 : index
    %c0_176 = arith.constant 0 : index
    %152 = vector.load %arg33[%c12_175, %c0_176] : memref<32x32xf32, #tpu.memory_space<vmem>>, vector<8x32xf32>
    tpu.vector_store %arg33[%c12_175, %c0_176], %149 {strides = array<i32>} : memref<32x32xf32, #tpu.memory_space<vmem>>, vector<8x32xf32>,
    %c5_177 = arith.constant 5 : index
    %c0_178 = arith.constant 0 : index
    %153 = vector.load %arg33[%c5_177, %c0_178] : memref<32x32xf32, #tpu.memory_space<vmem>>, vector<4x32xf32>
    %c8_179 = arith.constant 8 : index
    %c0_180 = arith.constant 0 : index
    %154 = vector.load %arg33[%c8_179, %c0_180] : memref<32x32xf32, #tpu.memory_space<vmem>>, vector<4x32xf32>
    %c11_181 = arith.constant 11 : index
    %c0_182 = arith.constant 0 : index
    %155 = vector.load %arg33[%c11_181, %c0_182] : memref<32x32xf32, #tpu.memory_space<vmem>>, vector<4x32xf32>
    %156 = tpu.concatenate %153, %154, %155 in 1 : vector<4x32xf32>, vector<4x32xf32>, vector<4x32xf32> -> vector<4x96xf32>
    %157 = arith.truncf %156 : vector<4x96xf32> to vector<4x96xbf16>
    %cst_183 = arith.constant dense<0.000000e+00> : vector<4x32xf32>
    %158 = tpu.matmul %157, %140, %cst_183 {dimension_numbers = #tpu.dot_dimension_numbers<[1], [0], [0], [1], [0, 0, 1, 1], [], []>} : vector<4x96xbf16>, vector<96x32xbf16>, vector<4x32xf32> -> vector<4x32xf32>
    %159 = vector.broadcast %142 : vector<1x32xf32> to vector<4x32xf32>
    %160 = arith.addf %158, %159 : vector<4x32xf32>
    %cst_184 = arith.constant 0.000000e+00 : f32
    %161 = vector.broadcast %cst_184 : f32 to vector<4x32xf32>
    %162 = arith.maximumf %160, %161 : vector<4x32xf32>
    %163 = arith.truncf %162 : vector<4x32xf32> to vector<4x32xbf16>
    %cst_185 = arith.constant dense<0.000000e+00> : vector<4x32xf32>
    %164 = tpu.matmul %163, %144, %cst_185 {dimension_numbers = #tpu.dot_dimension_numbers<[1], [0], [0], [1], [0, 0, 1, 1], [], []>} : vector<4x32xbf16>, vector<32x32xbf16>, vector<4x32xf32> -> vector<4x32xf32>
    %165 = vector.broadcast %146 : vector<1x32xf32> to vector<4x32xf32>
    %166 = arith.addf %164, %165 : vector<4x32xf32>
    %167 = arith.addf %138, %166 : vector<4x32xf32>
    %c0_186 = arith.constant 0 : index
    %c0_187 = arith.constant 0 : index
    %168 = vector.load %arg17[%c0_186, %c0_187] : memref<96x32xbf16, #tpu.memory_space<vmem>>, vector<96x32xbf16>
    %c0_188 = arith.constant 0 : index
    %c0_189 = arith.constant 0 : index
    %169 = vector.load %arg16[%c0_188, %c0_189] : memref<1x32xf32, #tpu.memory_space<vmem>>, vector<1x32xf32>
    %cst_190 = arith.constant 0.000000e+00 : f32
    %170 = vector.broadcast %cst_190 : f32 to vector<8x32xf32>
    %c0_191 = arith.constant 0 : index
    %c0_192 = arith.constant 0 : index
    %171 = vector.load %arg33[%c0_191, %c0_192] : memref<32x32xf32, #tpu.memory_space<vmem>>, vector<8x32xf32>
    tpu.vector_store %arg33[%c0_191, %c0_192], %170 {strides = array<i32>} : memref<32x32xf32, #tpu.memory_space<vmem>>, vector<8x32xf32>,
    %c8_193 = arith.constant 8 : index
    %c0_194 = arith.constant 0 : index
    %172 = vector.load %arg33[%c8_193, %c0_194] : memref<32x32xf32, #tpu.memory_space<vmem>>, vector<4x32xf32>
    tpu.vector_store %arg33[%c8_193, %c0_194], %167 {strides = array<i32>} : memref<32x32xf32, #tpu.memory_space<vmem>>, vector<4x32xf32>,
    %c12_195 = arith.constant 12 : index
    %c0_196 = arith.constant 0 : index
    %173 = vector.load %arg33[%c12_195, %c0_196] : memref<32x32xf32, #tpu.memory_space<vmem>>, vector<8x32xf32>
    tpu.vector_store %arg33[%c12_195, %c0_196], %170 {strides = array<i32>} : memref<32x32xf32, #tpu.memory_space<vmem>>, vector<8x32xf32>,
    %c7_197 = arith.constant 7 : index
    %c0_198 = arith.constant 0 : index
    %174 = vector.load %arg33[%c7_197, %c0_198] : memref<32x32xf32, #tpu.memory_space<vmem>>, vector<4x32xf32>
    %c8_199 = arith.constant 8 : index
    %c0_200 = arith.constant 0 : index
    %175 = vector.load %arg33[%c8_199, %c0_200] : memref<32x32xf32, #tpu.memory_space<vmem>>, vector<4x32xf32>
    %c9_201 = arith.constant 9 : index
    %c0_202 = arith.constant 0 : index
    %176 = vector.load %arg33[%c9_201, %c0_202] : memref<32x32xf32, #tpu.memory_space<vmem>>, vector<4x32xf32>
    %177 = tpu.concatenate %174, %175, %176 in 1 : vector<4x32xf32>, vector<4x32xf32>, vector<4x32xf32> -> vector<4x96xf32>
    %178 = arith.truncf %177 : vector<4x96xf32> to vector<4x96xbf16>
    %cst_203 = arith.constant dense<0.000000e+00> : vector<4x32xf32>
    %179 = tpu.matmul %178, %168, %cst_203 {dimension_numbers = #tpu.dot_dimension_numbers<[1], [0], [0], [1], [0, 0, 1, 1], [], []>} : vector<4x96xbf16>, vector<96x32xbf16>, vector<4x32xf32> -> vector<4x32xf32>
    %180 = vector.broadcast %169 : vector<1x32xf32> to vector<4x32xf32>
    %181 = arith.addf %179, %180 : vector<4x32xf32>
    %c0_204 = arith.constant 0 : index
    %c0_205 = arith.constant 0 : index
    %182 = vector.load %arg27[%c0_204, %c0_205] : memref<32x16xbf16, #tpu.memory_space<vmem>>, vector<32x16xbf16>
    %c0_206 = arith.constant 0 : index
    %c0_207 = arith.constant 0 : index
    %183 = vector.load %arg26[%c0_206, %c0_207] : memref<1x16xf32, #tpu.memory_space<vmem>>, vector<1x16xf32>
    %184 = arith.truncf %181 : vector<4x32xf32> to vector<4x32xbf16>
    %cst_208 = arith.constant dense<0.000000e+00> : vector<4x16xf32>
    %185 = tpu.matmul %184, %182, %cst_208 {dimension_numbers = #tpu.dot_dimension_numbers<[1], [0], [0], [1], [0, 0, 1, 1], [], []>} : vector<4x32xbf16>, vector<32x16xbf16>, vector<4x16xf32> -> vector<4x16xf32>
    %186 = vector.broadcast %183 : vector<1x16xf32> to vector<4x16xf32>
    %187 = arith.addf %185, %186 : vector<4x16xf32>
    %c0_209 = arith.constant 0 : index
    %c0_210 = arith.constant 0 : index
    %188 = vector.load %arg24[%c0_209, %c0_210] : memref<64x16xf32, #tpu.memory_space<vmem>>, vector<64x16xf32>
    %c0_211 = arith.constant 0 : index
    %c0_212 = arith.constant 0 : index
    %189 = vector.load %arg25[%c0_211, %c0_212] : memref<1x64xf32, #tpu.memory_space<vmem>>, vector<1x64xf32>
    %190 = arith.truncf %187 : vector<4x16xf32> to vector<4x16xbf16>
    %191 = arith.truncf %188 : vector<64x16xf32> to vector<64x16xbf16>
    %cst_213 = arith.constant dense<0.000000e+00> : vector<4x64xf32>
    %192 = tpu.matmul %190, %191, %cst_213 {dimension_numbers = #tpu.dot_dimension_numbers<[1], [1], [0], [0], [0, 0, 1, 0], [], []>} : vector<4x16xbf16>, vector<64x16xbf16>, vector<4x64xf32> -> vector<4x64xf32>
    %cst_214 = arith.constant 2.000000e+00 : f32
    %193 = vector.broadcast %cst_214 : f32 to vector<4x64xf32>
    %194 = arith.mulf %193, %192 : vector<4x64xf32>
    %195 = vector.broadcast %189 : vector<1x64xf32> to vector<4x64xf32>
    %196 = arith.subf %195, %194 : vector<4x64xf32>
    %cst_215 = arith.constant dense<0x7F800000> : vector<4xf32>
    %197 = vector.multi_reduction <minimumf>, %196, %cst_215 [1] : vector<4x64xf32> to vector<4xf32>
    %198 = vector.shape_cast %197 : vector<4xf32> to vector<4x1xf32>
    %199 = tpu.iota {dimensions = array<i32: 1>} : vector<4x64xi32>
    %200 = vector.broadcast %198 : vector<4x1xf32> to vector<4x64xf32>
    %201 = arith.cmpf ole, %196, %200 : vector<4x64xf32>
    %c2147483647_i32 = arith.constant 2147483647 : i32
    %202 = vector.broadcast %c2147483647_i32 : i32 to vector<4x64xi32>
    %203 = arith.select %201, %199, %202 : vector<4x64xi1>, vector<4x64xi32>
    %cst_216 = arith.constant dense<2147483647> : vector<4xi32>
    %204 = vector.multi_reduction <minsi>, %203, %cst_216 [1] : vector<4x64xi32> to vector<4xi32>
    %205 = vector.shape_cast %204 : vector<4xi32> to vector<4x1xi32>
    %206 = vector.broadcast %205 : vector<4x1xi32> to vector<4x64xi32>
    %207 = arith.cmpi eq, %199, %206 : vector<4x64xi32>
    %208 = arith.extui %207 : vector<4x64xi1> to vector<4x64xi32>
    %209 = arith.sitofp %208 : vector<4x64xi32> to vector<4x64xf32>
    %cst_217 = arith.constant dense<0.000000e+00> : vector<4x16xf32>
    %210 = tpu.matmul %209, %188, %cst_217 {dimension_numbers = #tpu.dot_dimension_numbers<[1], [0], [0], [1], [0, 0, 1, 1], [], []>} : vector<4x64xf32>, vector<64x16xf32>, vector<4x16xf32> -> vector<4x16xf32>
    %211 = arith.subf %210, %187 : vector<4x16xf32>
    %212 = arith.mulf %211, %211 : vector<4x16xf32>
    %213 = vector.shape_cast %212 : vector<4x16xf32> to vector<1x4x16xf32>
    %cst_218 = arith.constant dense<0.000000e+00> : vector<1xf32>
    %214 = vector.multi_reduction <add>, %213, %cst_218 [1, 2] : vector<1x4x16xf32> to vector<1xf32>
    %215 = vector.shape_cast %214 : vector<1xf32> to vector<1x1x1xf32>
    %216 = vector.extract %215[0, 0, 0] : f32 from vector<1x1x1xf32>
    %217 = vector.broadcast %216 : f32 to vector<1x1xf32>
    %cst_219 = arith.constant 6.400000e+01 : f32
    %218 = vector.broadcast %cst_219 : f32 to vector<1x1xf32>
    %219 = arith.divf %217, %218 : vector<1x1xf32>
    %c0_220 = arith.constant 0 : index
    %c0_221 = arith.constant 0 : index
    %c0_222 = arith.constant 0 : index
    %220 = vector.load %arg32[%c0_220, %c0_221, %c0_222] : memref<1x1x1xf32, #tpu.memory_space<vmem>>, vector<1x1x1xf32>
    %221 = vector.shape_cast %220 : vector<1x1x1xf32> to vector<1x1xf32>
    %222 = vector.shape_cast %219 : vector<1x1xf32> to vector<1x1x1xf32>
    tpu.vector_store %arg32[%c0_220, %c0_221, %c0_222], %222 {strides = array<i32>} : memref<1x1x1xf32, #tpu.memory_space<vmem>>, vector<1x1x1xf32>,
    %c0_223 = arith.constant 0 : index
    %c0_224 = arith.constant 0 : index
    %c0_225 = arith.constant 0 : index
    %223 = vector.load %arg31[%c0_223, %c0_224, %c0_225] : memref<1x4x1xi32, #tpu.memory_space<vmem>>, vector<1x4x1xi32>
    %224 = vector.shape_cast %223 : vector<1x4x1xi32> to vector<4x1xi32>
    %225 = vector.shape_cast %205 : vector<4x1xi32> to vector<1x4x1xi32>
    tpu.vector_store %arg31[%c0_223, %c0_224, %c0_225], %225 {strides = array<i32>} : memref<1x4x1xi32, #tpu.memory_space<vmem>>, vector<1x4x1xi32>,
    %c0_226 = arith.constant 0 : index
    %c0_227 = arith.constant 0 : index
    %226 = vector.load %arg29[%c0_226, %c0_227] : memref<16x32xbf16, #tpu.memory_space<vmem>>, vector<16x32xbf16>
    %c0_228 = arith.constant 0 : index
    %c0_229 = arith.constant 0 : index
    %227 = vector.load %arg28[%c0_228, %c0_229] : memref<1x32xf32, #tpu.memory_space<vmem>>, vector<1x32xf32>
    %228 = arith.truncf %210 : vector<4x16xf32> to vector<4x16xbf16>
    %cst_230 = arith.constant dense<0.000000e+00> : vector<4x32xf32>
    %229 = tpu.matmul %228, %226, %cst_230 {dimension_numbers = #tpu.dot_dimension_numbers<[1], [0], [0], [1], [0, 0, 1, 1], [], []>} : vector<4x16xbf16>, vector<16x32xbf16>, vector<4x32xf32> -> vector<4x32xf32>
    %230 = vector.broadcast %227 : vector<1x32xf32> to vector<4x32xf32>
    %231 = arith.addf %229, %230 : vector<4x32xf32>
    %c0_231 = arith.constant 0 : index
    %c0_232 = arith.constant 0 : index
    %232 = vector.load %arg3[%c0_231, %c0_232] : memref<96x32xbf16, #tpu.memory_space<vmem>>, vector<96x32xbf16>
    %c0_233 = arith.constant 0 : index
    %c0_234 = arith.constant 0 : index
    %233 = vector.load %arg2[%c0_233, %c0_234] : memref<1x32xf32, #tpu.memory_space<vmem>>, vector<1x32xf32>
    %cst_235 = arith.constant 0.000000e+00 : f32
    %234 = vector.broadcast %cst_235 : f32 to vector<8x32xf32>
    %c0_236 = arith.constant 0 : index
    %c0_237 = arith.constant 0 : index
    %235 = vector.load %arg33[%c0_236, %c0_237] : memref<32x32xf32, #tpu.memory_space<vmem>>, vector<8x32xf32>
    tpu.vector_store %arg33[%c0_236, %c0_237], %234 {strides = array<i32>} : memref<32x32xf32, #tpu.memory_space<vmem>>, vector<8x32xf32>,
    %c8_238 = arith.constant 8 : index
    %c0_239 = arith.constant 0 : index
    %236 = vector.load %arg33[%c8_238, %c0_239] : memref<32x32xf32, #tpu.memory_space<vmem>>, vector<4x32xf32>
    tpu.vector_store %arg33[%c8_238, %c0_239], %231 {strides = array<i32>} : memref<32x32xf32, #tpu.memory_space<vmem>>, vector<4x32xf32>,
    %c12_240 = arith.constant 12 : index
    %c0_241 = arith.constant 0 : index
    %237 = vector.load %arg33[%c12_240, %c0_241] : memref<32x32xf32, #tpu.memory_space<vmem>>, vector<8x32xf32>
    tpu.vector_store %arg33[%c12_240, %c0_241], %234 {strides = array<i32>} : memref<32x32xf32, #tpu.memory_space<vmem>>, vector<8x32xf32>,
    %c7_242 = arith.constant 7 : index
    %c0_243 = arith.constant 0 : index
    %238 = vector.load %arg33[%c7_242, %c0_243] : memref<32x32xf32, #tpu.memory_space<vmem>>, vector<4x32xf32>
    %c8_244 = arith.constant 8 : index
    %c0_245 = arith.constant 0 : index
    %239 = vector.load %arg33[%c8_244, %c0_245] : memref<32x32xf32, #tpu.memory_space<vmem>>, vector<4x32xf32>
    %c9_246 = arith.constant 9 : index
    %c0_247 = arith.constant 0 : index
    %240 = vector.load %arg33[%c9_246, %c0_247] : memref<32x32xf32, #tpu.memory_space<vmem>>, vector<4x32xf32>
    %241 = tpu.concatenate %238, %239, %240 in 1 : vector<4x32xf32>, vector<4x32xf32>, vector<4x32xf32> -> vector<4x96xf32>
    %242 = arith.truncf %241 : vector<4x96xf32> to vector<4x96xbf16>
    %cst_248 = arith.constant dense<0.000000e+00> : vector<4x32xf32>
    %243 = tpu.matmul %242, %232, %cst_248 {dimension_numbers = #tpu.dot_dimension_numbers<[1], [0], [0], [1], [0, 0, 1, 1], [], []>} : vector<4x96xbf16>, vector<96x32xbf16>, vector<4x32xf32> -> vector<4x32xf32>
    %244 = vector.broadcast %233 : vector<1x32xf32> to vector<4x32xf32>
    %245 = arith.addf %243, %244 : vector<4x32xf32>
    %cst_249 = arith.constant 0.000000e+00 : f32
    %246 = vector.broadcast %cst_249 : f32 to vector<4x32xf32>
    %247 = arith.maximumf %245, %246 : vector<4x32xf32>
    %c0_250 = arith.constant 0 : index
    %c0_251 = arith.constant 0 : index
    %c0_252 = arith.constant 0 : index
    %c0_253 = arith.constant 0 : index
    %248 = vector.load %arg10[%c0_250, %c0_251, %c0_252, %c0_253] : memref<2x2x96x32xbf16, #tpu.memory_space<vmem>>, vector<1x1x96x32xbf16>
    %249 = vector.shape_cast %248 : vector<1x1x96x32xbf16> to vector<96x32xbf16>
    %c0_254 = arith.constant 0 : index
    %c0_255 = arith.constant 0 : index
    %c0_256 = arith.constant 0 : index
    %c0_257 = arith.constant 0 : index
    %250 = vector.load %arg8[%c0_254, %c0_255, %c0_256, %c0_257] : memref<2x2x1x32xf32, #tpu.memory_space<vmem>>, vector<1x1x1x32xf32>
    %251 = vector.shape_cast %250 : vector<1x1x1x32xf32> to vector<1x32xf32>
    %c0_258 = arith.constant 0 : index
    %c0_259 = arith.constant 0 : index
    %c0_260 = arith.constant 0 : index
    %c0_261 = arith.constant 0 : index
    %252 = vector.load %arg11[%c0_258, %c0_259, %c0_260, %c0_261] : memref<2x2x32x32xbf16, #tpu.memory_space<vmem>>, vector<1x1x32x32xbf16>
    %253 = vector.shape_cast %252 : vector<1x1x32x32xbf16> to vector<32x32xbf16>
    %c0_262 = arith.constant 0 : index
    %c0_263 = arith.constant 0 : index
    %c0_264 = arith.constant 0 : index
    %c0_265 = arith.constant 0 : index
    %254 = vector.load %arg9[%c0_262, %c0_263, %c0_264, %c0_265] : memref<2x2x1x32xf32, #tpu.memory_space<vmem>>, vector<1x1x1x32xf32>
    %255 = vector.shape_cast %254 : vector<1x1x1x32xf32> to vector<1x32xf32>
    %cst_266 = arith.constant 0.000000e+00 : f32
    %256 = vector.broadcast %cst_266 : f32 to vector<4x32xf32>
    %257 = arith.maximumf %247, %256 : vector<4x32xf32>
    %cst_267 = arith.constant 0.000000e+00 : f32
    %258 = vector.broadcast %cst_267 : f32 to vector<8x32xf32>
    %c0_268 = arith.constant 0 : index
    %c0_269 = arith.constant 0 : index
    %259 = vector.load %arg33[%c0_268, %c0_269] : memref<32x32xf32, #tpu.memory_space<vmem>>, vector<8x32xf32>
    tpu.vector_store %arg33[%c0_268, %c0_269], %258 {strides = array<i32>} : memref<32x32xf32, #tpu.memory_space<vmem>>, vector<8x32xf32>,
    %c8_270 = arith.constant 8 : index
    %c0_271 = arith.constant 0 : index
    %260 = vector.load %arg33[%c8_270, %c0_271] : memref<32x32xf32, #tpu.memory_space<vmem>>, vector<4x32xf32>
    tpu.vector_store %arg33[%c8_270, %c0_271], %257 {strides = array<i32>} : memref<32x32xf32, #tpu.memory_space<vmem>>, vector<4x32xf32>,
    %c12_272 = arith.constant 12 : index
    %c0_273 = arith.constant 0 : index
    %261 = vector.load %arg33[%c12_272, %c0_273] : memref<32x32xf32, #tpu.memory_space<vmem>>, vector<8x32xf32>
    tpu.vector_store %arg33[%c12_272, %c0_273], %258 {strides = array<i32>} : memref<32x32xf32, #tpu.memory_space<vmem>>, vector<8x32xf32>,
    %c5_274 = arith.constant 5 : index
    %c0_275 = arith.constant 0 : index
    %262 = vector.load %arg33[%c5_274, %c0_275] : memref<32x32xf32, #tpu.memory_space<vmem>>, vector<4x32xf32>
    %c8_276 = arith.constant 8 : index
    %c0_277 = arith.constant 0 : index
    %263 = vector.load %arg33[%c8_276, %c0_277] : memref<32x32xf32, #tpu.memory_space<vmem>>, vector<4x32xf32>
    %c11_278 = arith.constant 11 : index
    %c0_279 = arith.constant 0 : index
    %264 = vector.load %arg33[%c11_278, %c0_279] : memref<32x32xf32, #tpu.memory_space<vmem>>, vector<4x32xf32>
    %265 = tpu.concatenate %262, %263, %264 in 1 : vector<4x32xf32>, vector<4x32xf32>, vector<4x32xf32> -> vector<4x96xf32>
    %266 = arith.truncf %265 : vector<4x96xf32> to vector<4x96xbf16>
    %cst_280 = arith.constant dense<0.000000e+00> : vector<4x32xf32>
    %267 = tpu.matmul %266, %249, %cst_280 {dimension_numbers = #tpu.dot_dimension_numbers<[1], [0], [0], [1], [0, 0, 1, 1], [], []>} : vector<4x96xbf16>, vector<96x32xbf16>, vector<4x32xf32> -> vector<4x32xf32>
    %268 = vector.broadcast %251 : vector<1x32xf32> to vector<4x32xf32>
    %269 = arith.addf %267, %268 : vector<4x32xf32>
    %cst_281 = arith.constant 0.000000e+00 : f32
    %270 = vector.broadcast %cst_281 : f32 to vector<4x32xf32>
    %271 = arith.maximumf %269, %270 : vector<4x32xf32>
    %272 = arith.truncf %271 : vector<4x32xf32> to vector<4x32xbf16>
    %cst_282 = arith.constant dense<0.000000e+00> : vector<4x32xf32>
    %273 = tpu.matmul %272, %253, %cst_282 {dimension_numbers = #tpu.dot_dimension_numbers<[1], [0], [0], [1], [0, 0, 1, 1], [], []>} : vector<4x32xbf16>, vector<32x32xbf16>, vector<4x32xf32> -> vector<4x32xf32>
    %274 = vector.broadcast %255 : vector<1x32xf32> to vector<4x32xf32>
    %275 = arith.addf %273, %274 : vector<4x32xf32>
    %276 = arith.addf %247, %275 : vector<4x32xf32>
    %c0_283 = arith.constant 0 : index
    %c1_284 = arith.constant 1 : index
    %c0_285 = arith.constant 0 : index
    %c0_286 = arith.constant 0 : index
    %277 = vector.load %arg10[%c0_283, %c1_284, %c0_285, %c0_286] : memref<2x2x96x32xbf16, #tpu.memory_space<vmem>>, vector<1x1x96x32xbf16>
    %278 = vector.shape_cast %277 : vector<1x1x96x32xbf16> to vector<96x32xbf16>
    %c0_287 = arith.constant 0 : index
    %c1_288 = arith.constant 1 : index
    %c0_289 = arith.constant 0 : index
    %c0_290 = arith.constant 0 : index
    %279 = vector.load %arg8[%c0_287, %c1_288, %c0_289, %c0_290] : memref<2x2x1x32xf32, #tpu.memory_space<vmem>>, vector<1x1x1x32xf32>
    %280 = vector.shape_cast %279 : vector<1x1x1x32xf32> to vector<1x32xf32>
    %c0_291 = arith.constant 0 : index
    %c1_292 = arith.constant 1 : index
    %c0_293 = arith.constant 0 : index
    %c0_294 = arith.constant 0 : index
    %281 = vector.load %arg11[%c0_291, %c1_292, %c0_293, %c0_294] : memref<2x2x32x32xbf16, #tpu.memory_space<vmem>>, vector<1x1x32x32xbf16>
    %282 = vector.shape_cast %281 : vector<1x1x32x32xbf16> to vector<32x32xbf16>
    %c0_295 = arith.constant 0 : index
    %c1_296 = arith.constant 1 : index
    %c0_297 = arith.constant 0 : index
    %c0_298 = arith.constant 0 : index
    %283 = vector.load %arg9[%c0_295, %c1_296, %c0_297, %c0_298] : memref<2x2x1x32xf32, #tpu.memory_space<vmem>>, vector<1x1x1x32xf32>
    %284 = vector.shape_cast %283 : vector<1x1x1x32xf32> to vector<1x32xf32>
    %cst_299 = arith.constant 0.000000e+00 : f32
    %285 = vector.broadcast %cst_299 : f32 to vector<4x32xf32>
    %286 = arith.maximumf %276, %285 : vector<4x32xf32>
    %cst_300 = arith.constant 0.000000e+00 : f32
    %287 = vector.broadcast %cst_300 : f32 to vector<8x32xf32>
    %c0_301 = arith.constant 0 : index
    %c0_302 = arith.constant 0 : index
    %288 = vector.load %arg33[%c0_301, %c0_302] : memref<32x32xf32, #tpu.memory_space<vmem>>, vector<8x32xf32>
    tpu.vector_store %arg33[%c0_301, %c0_302], %287 {strides = array<i32>} : memref<32x32xf32, #tpu.memory_space<vmem>>, vector<8x32xf32>,
    %c8_303 = arith.constant 8 : index
    %c0_304 = arith.constant 0 : index
    %289 = vector.load %arg33[%c8_303, %c0_304] : memref<32x32xf32, #tpu.memory_space<vmem>>, vector<4x32xf32>
    tpu.vector_store %arg33[%c8_303, %c0_304], %286 {strides = array<i32>} : memref<32x32xf32, #tpu.memory_space<vmem>>, vector<4x32xf32>,
    %c12_305 = arith.constant 12 : index
    %c0_306 = arith.constant 0 : index
    %290 = vector.load %arg33[%c12_305, %c0_306] : memref<32x32xf32, #tpu.memory_space<vmem>>, vector<8x32xf32>
    tpu.vector_store %arg33[%c12_305, %c0_306], %287 {strides = array<i32>} : memref<32x32xf32, #tpu.memory_space<vmem>>, vector<8x32xf32>,
    %c7_307 = arith.constant 7 : index
    %c0_308 = arith.constant 0 : index
    %291 = vector.load %arg33[%c7_307, %c0_308] : memref<32x32xf32, #tpu.memory_space<vmem>>, vector<4x32xf32>
    %c8_309 = arith.constant 8 : index
    %c0_310 = arith.constant 0 : index
    %292 = vector.load %arg33[%c8_309, %c0_310] : memref<32x32xf32, #tpu.memory_space<vmem>>, vector<4x32xf32>
    %c9_311 = arith.constant 9 : index
    %c0_312 = arith.constant 0 : index
    %293 = vector.load %arg33[%c9_311, %c0_312] : memref<32x32xf32, #tpu.memory_space<vmem>>, vector<4x32xf32>
    %294 = tpu.concatenate %291, %292, %293 in 1 : vector<4x32xf32>, vector<4x32xf32>, vector<4x32xf32> -> vector<4x96xf32>
    %295 = arith.truncf %294 : vector<4x96xf32> to vector<4x96xbf16>
    %cst_313 = arith.constant dense<0.000000e+00> : vector<4x32xf32>
    %296 = tpu.matmul %295, %278, %cst_313 {dimension_numbers = #tpu.dot_dimension_numbers<[1], [0], [0], [1], [0, 0, 1, 1], [], []>} : vector<4x96xbf16>, vector<96x32xbf16>, vector<4x32xf32> -> vector<4x32xf32>
    %297 = vector.broadcast %280 : vector<1x32xf32> to vector<4x32xf32>
    %298 = arith.addf %296, %297 : vector<4x32xf32>
    %cst_314 = arith.constant 0.000000e+00 : f32
    %299 = vector.broadcast %cst_314 : f32 to vector<4x32xf32>
    %300 = arith.maximumf %298, %299 : vector<4x32xf32>
    %301 = arith.truncf %300 : vector<4x32xf32> to vector<4x32xbf16>
    %cst_315 = arith.constant dense<0.000000e+00> : vector<4x32xf32>
    %302 = tpu.matmul %301, %282, %cst_315 {dimension_numbers = #tpu.dot_dimension_numbers<[1], [0], [0], [1], [0, 0, 1, 1], [], []>} : vector<4x32xbf16>, vector<32x32xbf16>, vector<4x32xf32> -> vector<4x32xf32>
    %303 = vector.broadcast %284 : vector<1x32xf32> to vector<4x32xf32>
    %304 = arith.addf %302, %303 : vector<4x32xf32>
    %305 = arith.addf %276, %304 : vector<4x32xf32>
    %306 = vector.shape_cast %305 : vector<4x32xf32> to vector<4x1x32xf32>
    %307 = vector.shape_cast %306 : vector<4x1x32xf32> to vector<4x1x32xf32>
    %308 = vector.broadcast %307 : vector<4x1x32xf32> to vector<4x2x32xf32>
    %309 = vector.shape_cast %308 : vector<4x2x32xf32> to vector<8x32xf32>
    %c0_316 = arith.constant 0 : index
    %c0_317 = arith.constant 0 : index
    %c0_318 = arith.constant 0 : index
    %310 = vector.load %arg13[%c0_316, %c0_317, %c0_318] : memref<2x96x32xbf16, #tpu.memory_space<vmem>>, vector<1x96x32xbf16>
    %311 = vector.shape_cast %310 : vector<1x96x32xbf16> to vector<96x32xbf16>
    %c0_319 = arith.constant 0 : index
    %c0_320 = arith.constant 0 : index
    %c0_321 = arith.constant 0 : index
    %312 = vector.load %arg12[%c0_319, %c0_320, %c0_321] : memref<2x1x32xf32, #tpu.memory_space<vmem>>, vector<1x1x32xf32>
    %313 = vector.shape_cast %312 : vector<1x1x32xf32> to vector<1x32xf32>
    %cst_322 = arith.constant 0.000000e+00 : f32
    %314 = vector.broadcast %cst_322 : f32 to vector<8x32xf32>
    %c0_323 = arith.constant 0 : index
    %c0_324 = arith.constant 0 : index
    %315 = vector.load %arg33[%c0_323, %c0_324] : memref<32x32xf32, #tpu.memory_space<vmem>>, vector<8x32xf32>
    tpu.vector_store %arg33[%c0_323, %c0_324], %314 {strides = array<i32>} : memref<32x32xf32, #tpu.memory_space<vmem>>, vector<8x32xf32>,
    %c8_325 = arith.constant 8 : index
    %c0_326 = arith.constant 0 : index
    %316 = vector.load %arg33[%c8_325, %c0_326] : memref<32x32xf32, #tpu.memory_space<vmem>>, vector<8x32xf32>
    tpu.vector_store %arg33[%c8_325, %c0_326], %309 {strides = array<i32>} : memref<32x32xf32, #tpu.memory_space<vmem>>, vector<8x32xf32>,
    %c16_327 = arith.constant 16 : index
    %c0_328 = arith.constant 0 : index
    %317 = vector.load %arg33[%c16_327, %c0_328] : memref<32x32xf32, #tpu.memory_space<vmem>>, vector<8x32xf32>
    tpu.vector_store %arg33[%c16_327, %c0_328], %314 {strides = array<i32>} : memref<32x32xf32, #tpu.memory_space<vmem>>, vector<8x32xf32>,
    %c7_329 = arith.constant 7 : index
    %c0_330 = arith.constant 0 : index
    %318 = vector.load %arg33[%c7_329, %c0_330] : memref<32x32xf32, #tpu.memory_space<vmem>>, vector<8x32xf32>
    %c8_331 = arith.constant 8 : index
    %c0_332 = arith.constant 0 : index
    %319 = vector.load %arg33[%c8_331, %c0_332] : memref<32x32xf32, #tpu.memory_space<vmem>>, vector<8x32xf32>
    %c9_333 = arith.constant 9 : index
    %c0_334 = arith.constant 0 : index
    %320 = vector.load %arg33[%c9_333, %c0_334] : memref<32x32xf32, #tpu.memory_space<vmem>>, vector<8x32xf32>
    %321 = tpu.concatenate %318, %319, %320 in 1 : vector<8x32xf32>, vector<8x32xf32>, vector<8x32xf32> -> vector<8x96xf32>
    %322 = arith.truncf %321 : vector<8x96xf32> to vector<8x96xbf16>
    %cst_335 = arith.constant dense<0.000000e+00> : vector<8x32xf32>
    %323 = tpu.matmul %322, %311, %cst_335 {dimension_numbers = #tpu.dot_dimension_numbers<[1], [0], [0], [1], [0, 0, 1, 1], [], []>} : vector<8x96xbf16>, vector<96x32xbf16>, vector<8x32xf32> -> vector<8x32xf32>
    %324 = vector.broadcast %313 : vector<1x32xf32> to vector<8x32xf32>
    %325 = arith.addf %323, %324 : vector<8x32xf32>
    %c1_336 = arith.constant 1 : index
    %c0_337 = arith.constant 0 : index
    %c0_338 = arith.constant 0 : index
    %c0_339 = arith.constant 0 : index
    %326 = vector.load %arg10[%c1_336, %c0_337, %c0_338, %c0_339] : memref<2x2x96x32xbf16, #tpu.memory_space<vmem>>, vector<1x1x96x32xbf16>
    %327 = vector.shape_cast %326 : vector<1x1x96x32xbf16> to vector<96x32xbf16>
    %c1_340 = arith.constant 1 : index
    %c0_341 = arith.constant 0 : index
    %c0_342 = arith.constant 0 : index
    %c0_343 = arith.constant 0 : index
    %328 = vector.load %arg8[%c1_340, %c0_341, %c0_342, %c0_343] : memref<2x2x1x32xf32, #tpu.memory_space<vmem>>, vector<1x1x1x32xf32>
    %329 = vector.shape_cast %328 : vector<1x1x1x32xf32> to vector<1x32xf32>
    %c1_344 = arith.constant 1 : index
    %c0_345 = arith.constant 0 : index
    %c0_346 = arith.constant 0 : index
    %c0_347 = arith.constant 0 : index
    %330 = vector.load %arg11[%c1_344, %c0_345, %c0_346, %c0_347] : memref<2x2x32x32xbf16, #tpu.memory_space<vmem>>, vector<1x1x32x32xbf16>
    %331 = vector.shape_cast %330 : vector<1x1x32x32xbf16> to vector<32x32xbf16>
    %c1_348 = arith.constant 1 : index
    %c0_349 = arith.constant 0 : index
    %c0_350 = arith.constant 0 : index
    %c0_351 = arith.constant 0 : index
    %332 = vector.load %arg9[%c1_348, %c0_349, %c0_350, %c0_351] : memref<2x2x1x32xf32, #tpu.memory_space<vmem>>, vector<1x1x1x32xf32>
    %333 = vector.shape_cast %332 : vector<1x1x1x32xf32> to vector<1x32xf32>
    %cst_352 = arith.constant 0.000000e+00 : f32
    %334 = vector.broadcast %cst_352 : f32 to vector<8x32xf32>
    %335 = arith.maximumf %325, %334 : vector<8x32xf32>
    %cst_353 = arith.constant 0.000000e+00 : f32
    %336 = vector.broadcast %cst_353 : f32 to vector<8x32xf32>
    %c0_354 = arith.constant 0 : index
    %c0_355 = arith.constant 0 : index
    %337 = vector.load %arg33[%c0_354, %c0_355] : memref<32x32xf32, #tpu.memory_space<vmem>>, vector<8x32xf32>
    tpu.vector_store %arg33[%c0_354, %c0_355], %336 {strides = array<i32>} : memref<32x32xf32, #tpu.memory_space<vmem>>, vector<8x32xf32>,
    %c8_356 = arith.constant 8 : index
    %c0_357 = arith.constant 0 : index
    %338 = vector.load %arg33[%c8_356, %c0_357] : memref<32x32xf32, #tpu.memory_space<vmem>>, vector<8x32xf32>
    tpu.vector_store %arg33[%c8_356, %c0_357], %335 {strides = array<i32>} : memref<32x32xf32, #tpu.memory_space<vmem>>, vector<8x32xf32>,
    %c16_358 = arith.constant 16 : index
    %c0_359 = arith.constant 0 : index
    %339 = vector.load %arg33[%c16_358, %c0_359] : memref<32x32xf32, #tpu.memory_space<vmem>>, vector<8x32xf32>
    tpu.vector_store %arg33[%c16_358, %c0_359], %336 {strides = array<i32>} : memref<32x32xf32, #tpu.memory_space<vmem>>, vector<8x32xf32>,
    %c5_360 = arith.constant 5 : index
    %c0_361 = arith.constant 0 : index
    %340 = vector.load %arg33[%c5_360, %c0_361] : memref<32x32xf32, #tpu.memory_space<vmem>>, vector<8x32xf32>
    %c8_362 = arith.constant 8 : index
    %c0_363 = arith.constant 0 : index
    %341 = vector.load %arg33[%c8_362, %c0_363] : memref<32x32xf32, #tpu.memory_space<vmem>>, vector<8x32xf32>
    %c11_364 = arith.constant 11 : index
    %c0_365 = arith.constant 0 : index
    %342 = vector.load %arg33[%c11_364, %c0_365] : memref<32x32xf32, #tpu.memory_space<vmem>>, vector<8x32xf32>
    %343 = tpu.concatenate %340, %341, %342 in 1 : vector<8x32xf32>, vector<8x32xf32>, vector<8x32xf32> -> vector<8x96xf32>
    %344 = arith.truncf %343 : vector<8x96xf32> to vector<8x96xbf16>
    %cst_366 = arith.constant dense<0.000000e+00> : vector<8x32xf32>
    %345 = tpu.matmul %344, %327, %cst_366 {dimension_numbers = #tpu.dot_dimension_numbers<[1], [0], [0], [1], [0, 0, 1, 1], [], []>} : vector<8x96xbf16>, vector<96x32xbf16>, vector<8x32xf32> -> vector<8x32xf32>
    %346 = vector.broadcast %329 : vector<1x32xf32> to vector<8x32xf32>
    %347 = arith.addf %345, %346 : vector<8x32xf32>
    %cst_367 = arith.constant 0.000000e+00 : f32
    %348 = vector.broadcast %cst_367 : f32 to vector<8x32xf32>
    %349 = arith.maximumf %347, %348 : vector<8x32xf32>
    %350 = arith.truncf %349 : vector<8x32xf32> to vector<8x32xbf16>
    %cst_368 = arith.constant dense<0.000000e+00> : vector<8x32xf32>
    %351 = tpu.matmul %350, %331, %cst_368 {dimension_numbers = #tpu.dot_dimension_numbers<[1], [0], [0], [1], [0, 0, 1, 1], [], []>} : vector<8x32xbf16>, vector<32x32xbf16>, vector<8x32xf32> -> vector<8x32xf32>
    %352 = vector.broadcast %333 : vector<1x32xf32> to vector<8x32xf32>
    %353 = arith.addf %351, %352 : vector<8x32xf32>
    %354 = arith.addf %325, %353 : vector<8x32xf32>
    %c1_369 = arith.constant 1 : index
    %c1_370 = arith.constant 1 : index
    %c0_371 = arith.constant 0 : index
    %c0_372 = arith.constant 0 : index
    %355 = vector.load %arg10[%c1_369, %c1_370, %c0_371, %c0_372] : memref<2x2x96x32xbf16, #tpu.memory_space<vmem>>, vector<1x1x96x32xbf16>
    %356 = vector.shape_cast %355 : vector<1x1x96x32xbf16> to vector<96x32xbf16>
    %c1_373 = arith.constant 1 : index
    %c1_374 = arith.constant 1 : index
    %c0_375 = arith.constant 0 : index
    %c0_376 = arith.constant 0 : index
    %357 = vector.load %arg8[%c1_373, %c1_374, %c0_375, %c0_376] : memref<2x2x1x32xf32, #tpu.memory_space<vmem>>, vector<1x1x1x32xf32>
    %358 = vector.shape_cast %357 : vector<1x1x1x32xf32> to vector<1x32xf32>
    %c1_377 = arith.constant 1 : index
    %c1_378 = arith.constant 1 : index
    %c0_379 = arith.constant 0 : index
    %c0_380 = arith.constant 0 : index
    %359 = vector.load %arg11[%c1_377, %c1_378, %c0_379, %c0_380] : memref<2x2x32x32xbf16, #tpu.memory_space<vmem>>, vector<1x1x32x32xbf16>
    %360 = vector.shape_cast %359 : vector<1x1x32x32xbf16> to vector<32x32xbf16>
    %c1_381 = arith.constant 1 : index
    %c1_382 = arith.constant 1 : index
    %c0_383 = arith.constant 0 : index
    %c0_384 = arith.constant 0 : index
    %361 = vector.load %arg9[%c1_381, %c1_382, %c0_383, %c0_384] : memref<2x2x1x32xf32, #tpu.memory_space<vmem>>, vector<1x1x1x32xf32>
    %362 = vector.shape_cast %361 : vector<1x1x1x32xf32> to vector<1x32xf32>
    %cst_385 = arith.constant 0.000000e+00 : f32
    %363 = vector.broadcast %cst_385 : f32 to vector<8x32xf32>
    %364 = arith.maximumf %354, %363 : vector<8x32xf32>
    %cst_386 = arith.constant 0.000000e+00 : f32
    %365 = vector.broadcast %cst_386 : f32 to vector<8x32xf32>
    %c0_387 = arith.constant 0 : index
    %c0_388 = arith.constant 0 : index
    %366 = vector.load %arg33[%c0_387, %c0_388] : memref<32x32xf32, #tpu.memory_space<vmem>>, vector<8x32xf32>
    tpu.vector_store %arg33[%c0_387, %c0_388], %365 {strides = array<i32>} : memref<32x32xf32, #tpu.memory_space<vmem>>, vector<8x32xf32>,
    %c8_389 = arith.constant 8 : index
    %c0_390 = arith.constant 0 : index
    %367 = vector.load %arg33[%c8_389, %c0_390] : memref<32x32xf32, #tpu.memory_space<vmem>>, vector<8x32xf32>
    tpu.vector_store %arg33[%c8_389, %c0_390], %364 {strides = array<i32>} : memref<32x32xf32, #tpu.memory_space<vmem>>, vector<8x32xf32>,
    %c16_391 = arith.constant 16 : index
    %c0_392 = arith.constant 0 : index
    %368 = vector.load %arg33[%c16_391, %c0_392] : memref<32x32xf32, #tpu.memory_space<vmem>>, vector<8x32xf32>
    tpu.vector_store %arg33[%c16_391, %c0_392], %365 {strides = array<i32>} : memref<32x32xf32, #tpu.memory_space<vmem>>, vector<8x32xf32>,
    %c7_393 = arith.constant 7 : index
    %c0_394 = arith.constant 0 : index
    %369 = vector.load %arg33[%c7_393, %c0_394] : memref<32x32xf32, #tpu.memory_space<vmem>>, vector<8x32xf32>
    %c8_395 = arith.constant 8 : index
    %c0_396 = arith.constant 0 : index
    %370 = vector.load %arg33[%c8_395, %c0_396] : memref<32x32xf32, #tpu.memory_space<vmem>>, vector<8x32xf32>
    %c9_397 = arith.constant 9 : index
    %c0_398 = arith.constant 0 : index
    %371 = vector.load %arg33[%c9_397, %c0_398] : memref<32x32xf32, #tpu.memory_space<vmem>>, vector<8x32xf32>
    %372 = tpu.concatenate %369, %370, %371 in 1 : vector<8x32xf32>, vector<8x32xf32>, vector<8x32xf32> -> vector<8x96xf32>
    %373 = arith.truncf %372 : vector<8x96xf32> to vector<8x96xbf16>
    %cst_399 = arith.constant dense<0.000000e+00> : vector<8x32xf32>
    %374 = tpu.matmul %373, %356, %cst_399 {dimension_numbers = #tpu.dot_dimension_numbers<[1], [0], [0], [1], [0, 0, 1, 1], [], []>} : vector<8x96xbf16>, vector<96x32xbf16>, vector<8x32xf32> -> vector<8x32xf32>
    %375 = vector.broadcast %358 : vector<1x32xf32> to vector<8x32xf32>
    %376 = arith.addf %374, %375 : vector<8x32xf32>
    %cst_400 = arith.constant 0.000000e+00 : f32
    %377 = vector.broadcast %cst_400 : f32 to vector<8x32xf32>
    %378 = arith.maximumf %376, %377 : vector<8x32xf32>
    %379 = arith.truncf %378 : vector<8x32xf32> to vector<8x32xbf16>
    %cst_401 = arith.constant dense<0.000000e+00> : vector<8x32xf32>
    %380 = tpu.matmul %379, %360, %cst_401 {dimension_numbers = #tpu.dot_dimension_numbers<[1], [0], [0], [1], [0, 0, 1, 1], [], []>} : vector<8x32xbf16>, vector<32x32xbf16>, vector<8x32xf32> -> vector<8x32xf32>
    %381 = vector.broadcast %362 : vector<1x32xf32> to vector<8x32xf32>
    %382 = arith.addf %380, %381 : vector<8x32xf32>
    %383 = arith.addf %354, %382 : vector<8x32xf32>
    %384 = vector.shape_cast %383 : vector<8x32xf32> to vector<8x1x32xf32>
    %385 = vector.shape_cast %384 : vector<8x1x32xf32> to vector<8x1x32xf32>
    %386 = vector.broadcast %385 : vector<8x1x32xf32> to vector<8x2x32xf32>
    %387 = vector.shape_cast %386 : vector<8x2x32xf32> to vector<16x32xf32>
    %c1_402 = arith.constant 1 : index
    %c0_403 = arith.constant 0 : index
    %c0_404 = arith.constant 0 : index
    %388 = vector.load %arg13[%c1_402, %c0_403, %c0_404] : memref<2x96x32xbf16, #tpu.memory_space<vmem>>, vector<1x96x32xbf16>
    %389 = vector.shape_cast %388 : vector<1x96x32xbf16> to vector<96x32xbf16>
    %c1_405 = arith.constant 1 : index
    %c0_406 = arith.constant 0 : index
    %c0_407 = arith.constant 0 : index
    %390 = vector.load %arg12[%c1_405, %c0_406, %c0_407] : memref<2x1x32xf32, #tpu.memory_space<vmem>>, vector<1x1x32xf32>
    %391 = vector.shape_cast %390 : vector<1x1x32xf32> to vector<1x32xf32>
    %cst_408 = arith.constant 0.000000e+00 : f32
    %392 = vector.broadcast %cst_408 : f32 to vector<8x32xf32>
    %c0_409 = arith.constant 0 : index
    %c0_410 = arith.constant 0 : index
    %393 = vector.load %arg33[%c0_409, %c0_410] : memref<32x32xf32, #tpu.memory_space<vmem>>, vector<8x32xf32>
    tpu.vector_store %arg33[%c0_409, %c0_410], %392 {strides = array<i32>} : memref<32x32xf32, #tpu.memory_space<vmem>>, vector<8x32xf32>,
    %c8_411 = arith.constant 8 : index
    %c0_412 = arith.constant 0 : index
    %394 = vector.load %arg33[%c8_411, %c0_412] : memref<32x32xf32, #tpu.memory_space<vmem>>, vector<16x32xf32>
    tpu.vector_store %arg33[%c8_411, %c0_412], %387 {strides = array<i32>} : memref<32x32xf32, #tpu.memory_space<vmem>>, vector<16x32xf32>,
    %c24_413 = arith.constant 24 : index
    %c0_414 = arith.constant 0 : index
    %395 = vector.load %arg33[%c24_413, %c0_414] : memref<32x32xf32, #tpu.memory_space<vmem>>, vector<8x32xf32>
    tpu.vector_store %arg33[%c24_413, %c0_414], %392 {strides = array<i32>} : memref<32x32xf32, #tpu.memory_space<vmem>>, vector<8x32xf32>,
    %c7_415 = arith.constant 7 : index
    %c0_416 = arith.constant 0 : index
    %396 = vector.load %arg33[%c7_415, %c0_416] : memref<32x32xf32, #tpu.memory_space<vmem>>, vector<16x32xf32>
    %c8_417 = arith.constant 8 : index
    %c0_418 = arith.constant 0 : index
    %397 = vector.load %arg33[%c8_417, %c0_418] : memref<32x32xf32, #tpu.memory_space<vmem>>, vector<16x32xf32>
    %c9_419 = arith.constant 9 : index
    %c0_420 = arith.constant 0 : index
    %398 = vector.load %arg33[%c9_419, %c0_420] : memref<32x32xf32, #tpu.memory_space<vmem>>, vector<16x32xf32>
    %399 = tpu.concatenate %396, %397, %398 in 1 : vector<16x32xf32>, vector<16x32xf32>, vector<16x32xf32> -> vector<16x96xf32>
    %400 = arith.truncf %399 : vector<16x96xf32> to vector<16x96xbf16>
    %cst_421 = arith.constant dense<0.000000e+00> : vector<16x32xf32>
    %401 = tpu.matmul %400, %389, %cst_421 {dimension_numbers = #tpu.dot_dimension_numbers<[1], [0], [0], [1], [0, 0, 1, 1], [], []>} : vector<16x96xbf16>, vector<96x32xbf16>, vector<16x32xf32> -> vector<16x32xf32>
    %402 = vector.broadcast %391 : vector<1x32xf32> to vector<16x32xf32>
    %403 = arith.addf %401, %402 : vector<16x32xf32>
    %c0_422 = arith.constant 0 : index
    %c0_423 = arith.constant 0 : index
    %404 = vector.load %arg5[%c0_422, %c0_423] : memref<96x32xbf16, #tpu.memory_space<vmem>>, vector<96x32xbf16>
    %c0_424 = arith.constant 0 : index
    %c0_425 = arith.constant 0 : index
    %405 = vector.load %arg4[%c0_424, %c0_425] : memref<1x32xf32, #tpu.memory_space<vmem>>, vector<1x32xf32>
    %cst_426 = arith.constant 0.000000e+00 : f32
    %406 = vector.broadcast %cst_426 : f32 to vector<8x32xf32>
    %c0_427 = arith.constant 0 : index
    %c0_428 = arith.constant 0 : index
    %407 = vector.load %arg33[%c0_427, %c0_428] : memref<32x32xf32, #tpu.memory_space<vmem>>, vector<8x32xf32>
    tpu.vector_store %arg33[%c0_427, %c0_428], %406 {strides = array<i32>} : memref<32x32xf32, #tpu.memory_space<vmem>>, vector<8x32xf32>,
    %c8_429 = arith.constant 8 : index
    %c0_430 = arith.constant 0 : index
    %408 = vector.load %arg33[%c8_429, %c0_430] : memref<32x32xf32, #tpu.memory_space<vmem>>, vector<16x32xf32>
    tpu.vector_store %arg33[%c8_429, %c0_430], %403 {strides = array<i32>} : memref<32x32xf32, #tpu.memory_space<vmem>>, vector<16x32xf32>,
    %c24_431 = arith.constant 24 : index
    %c0_432 = arith.constant 0 : index
    %409 = vector.load %arg33[%c24_431, %c0_432] : memref<32x32xf32, #tpu.memory_space<vmem>>, vector<8x32xf32>
    tpu.vector_store %arg33[%c24_431, %c0_432], %406 {strides = array<i32>} : memref<32x32xf32, #tpu.memory_space<vmem>>, vector<8x32xf32>,
    %c7_433 = arith.constant 7 : index
    %c0_434 = arith.constant 0 : index
    %410 = vector.load %arg33[%c7_433, %c0_434] : memref<32x32xf32, #tpu.memory_space<vmem>>, vector<16x32xf32>
    %c8_435 = arith.constant 8 : index
    %c0_436 = arith.constant 0 : index
    %411 = vector.load %arg33[%c8_435, %c0_436] : memref<32x32xf32, #tpu.memory_space<vmem>>, vector<16x32xf32>
    %c9_437 = arith.constant 9 : index
    %c0_438 = arith.constant 0 : index
    %412 = vector.load %arg33[%c9_437, %c0_438] : memref<32x32xf32, #tpu.memory_space<vmem>>, vector<16x32xf32>
    %413 = tpu.concatenate %410, %411, %412 in 1 : vector<16x32xf32>, vector<16x32xf32>, vector<16x32xf32> -> vector<16x96xf32>
    %414 = arith.truncf %413 : vector<16x96xf32> to vector<16x96xbf16>
    %cst_439 = arith.constant dense<0.000000e+00> : vector<16x32xf32>
    %415 = tpu.matmul %414, %404, %cst_439 {dimension_numbers = #tpu.dot_dimension_numbers<[1], [0], [0], [1], [0, 0, 1, 1], [], []>} : vector<16x96xbf16>, vector<96x32xbf16>, vector<16x32xf32> -> vector<16x32xf32>
    %416 = vector.broadcast %405 : vector<1x32xf32> to vector<16x32xf32>
    %417 = arith.addf %415, %416 : vector<16x32xf32>
    %cst_440 = arith.constant 0.000000e+00 : f32
    %418 = vector.broadcast %cst_440 : f32 to vector<16x32xf32>
    %419 = arith.maximumf %417, %418 : vector<16x32xf32>
    %c0_441 = arith.constant 0 : index
    %c0_442 = arith.constant 0 : index
    %420 = vector.load %arg7[%c0_441, %c0_442] : memref<96x8xbf16, #tpu.memory_space<vmem>>, vector<96x8xbf16>
    %c0_443 = arith.constant 0 : index
    %c0_444 = arith.constant 0 : index
    %421 = vector.load %arg6[%c0_443, %c0_444] : memref<1x8xf32, #tpu.memory_space<vmem>>, vector<1x8xf32>
    %cst_445 = arith.constant 0.000000e+00 : f32
    %422 = vector.broadcast %cst_445 : f32 to vector<8x32xf32>
    %c0_446 = arith.constant 0 : index
    %c0_447 = arith.constant 0 : index
    %423 = vector.load %arg33[%c0_446, %c0_447] : memref<32x32xf32, #tpu.memory_space<vmem>>, vector<8x32xf32>
    tpu.vector_store %arg33[%c0_446, %c0_447], %422 {strides = array<i32>} : memref<32x32xf32, #tpu.memory_space<vmem>>, vector<8x32xf32>,
    %c8_448 = arith.constant 8 : index
    %c0_449 = arith.constant 0 : index
    %424 = vector.load %arg33[%c8_448, %c0_449] : memref<32x32xf32, #tpu.memory_space<vmem>>, vector<16x32xf32>
    tpu.vector_store %arg33[%c8_448, %c0_449], %419 {strides = array<i32>} : memref<32x32xf32, #tpu.memory_space<vmem>>, vector<16x32xf32>,
    %c24_450 = arith.constant 24 : index
    %c0_451 = arith.constant 0 : index
    %425 = vector.load %arg33[%c24_450, %c0_451] : memref<32x32xf32, #tpu.memory_space<vmem>>, vector<8x32xf32>
    tpu.vector_store %arg33[%c24_450, %c0_451], %422 {strides = array<i32>} : memref<32x32xf32, #tpu.memory_space<vmem>>, vector<8x32xf32>,
    %c7_452 = arith.constant 7 : index
    %c0_453 = arith.constant 0 : index
    %426 = vector.load %arg33[%c7_452, %c0_453] : memref<32x32xf32, #tpu.memory_space<vmem>>, vector<16x32xf32>
    %c8_454 = arith.constant 8 : index
    %c0_455 = arith.constant 0 : index
    %427 = vector.load %arg33[%c8_454, %c0_455] : memref<32x32xf32, #tpu.memory_space<vmem>>, vector<16x32xf32>
    %c9_456 = arith.constant 9 : index
    %c0_457 = arith.constant 0 : index
    %428 = vector.load %arg33[%c9_456, %c0_457] : memref<32x32xf32, #tpu.memory_space<vmem>>, vector<16x32xf32>
    %429 = tpu.concatenate %426, %427, %428 in 1 : vector<16x32xf32>, vector<16x32xf32>, vector<16x32xf32> -> vector<16x96xf32>
    %430 = arith.truncf %429 : vector<16x96xf32> to vector<16x96xbf16>
    %cst_458 = arith.constant dense<0.000000e+00> : vector<16x8xf32>
    %431 = tpu.matmul %430, %420, %cst_458 {dimension_numbers = #tpu.dot_dimension_numbers<[1], [0], [0], [1], [0, 0, 1, 1], [], []>} : vector<16x96xbf16>, vector<96x8xbf16>, vector<16x8xf32> -> vector<16x8xf32>
    %432 = vector.broadcast %421 : vector<1x8xf32> to vector<16x8xf32>
    %433 = arith.addf %431, %432 : vector<16x8xf32>
    %434 = tpu.transpose %433, [1, 0] : vector<16x8xf32> -> vector<8x16xf32>
    %c0_459 = arith.constant 0 : index
    %c0_460 = arith.constant 0 : index
    %c0_461 = arith.constant 0 : index
    %435 = vector.load %arg30[%c0_459, %c0_460, %c0_461] : memref<1x8x16xf32, #tpu.memory_space<vmem>>, vector<1x8x16xf32>
    %436 = vector.shape_cast %435 : vector<1x8x16xf32> to vector<8x16xf32>
    %437 = vector.shape_cast %434 : vector<8x16xf32> to vector<1x8x16xf32>
    tpu.vector_store %arg30[%c0_459, %c0_460, %c0_461], %437 {strides = array<i32>} : memref<1x8x16xf32, #tpu.memory_space<vmem>>, vector<1x8x16xf32>,
    return
  }
  func.func @transform_0(%arg0: i32) -> (i32, i32, i32) {
    %c0_i32 = arith.constant 0 : i32
    %c0_i32_0 = arith.constant 0 : i32
    %c0_i32_1 = arith.constant 0 : i32
    return %arg0, %c0_i32, %c0_i32_0 : i32, i32, i32
  }
  func.func @transform_1(%arg0: i32) -> (i32, i32) {
    %c0_i32 = arith.constant 0 : i32
    %c0_i32_0 = arith.constant 0 : i32
    %c0_i32_1 = arith.constant 0 : i32
    return %c0_i32, %c0_i32_0 : i32, i32
  }
  func.func @transform_2(%arg0: i32) -> (i32, i32) {
    %c0_i32 = arith.constant 0 : i32
    %c0_i32_0 = arith.constant 0 : i32
    %c0_i32_1 = arith.constant 0 : i32
    return %c0_i32, %c0_i32_0 : i32, i32
  }
  func.func @transform_3(%arg0: i32) -> (i32, i32) {
    %c0_i32 = arith.constant 0 : i32
    %c0_i32_0 = arith.constant 0 : i32
    %c0_i32_1 = arith.constant 0 : i32
    return %c0_i32, %c0_i32_0 : i32, i32
  }
  func.func @transform_4(%arg0: i32) -> (i32, i32) {
    %c0_i32 = arith.constant 0 : i32
    %c0_i32_0 = arith.constant 0 : i32
    %c0_i32_1 = arith.constant 0 : i32
    return %c0_i32, %c0_i32_0 : i32, i32
  }
  func.func @transform_5(%arg0: i32) -> (i32, i32) {
    %c0_i32 = arith.constant 0 : i32
    %c0_i32_0 = arith.constant 0 : i32
    %c0_i32_1 = arith.constant 0 : i32
    return %c0_i32, %c0_i32_0 : i32, i32
  }
  func.func @transform_6(%arg0: i32) -> (i32, i32) {
    %c0_i32 = arith.constant 0 : i32
    %c0_i32_0 = arith.constant 0 : i32
    %c0_i32_1 = arith.constant 0 : i32
    return %c0_i32, %c0_i32_0 : i32, i32
  }
  func.func @transform_7(%arg0: i32) -> (i32, i32, i32, i32) {
    %c0_i32 = arith.constant 0 : i32
    %c0_i32_0 = arith.constant 0 : i32
    %c0_i32_1 = arith.constant 0 : i32
    %c0_i32_2 = arith.constant 0 : i32
    %c0_i32_3 = arith.constant 0 : i32
    return %c0_i32, %c0_i32_0, %c0_i32_1, %c0_i32_2 : i32, i32, i32, i32
  }
  func.func @transform_8(%arg0: i32) -> (i32, i32, i32, i32) {
    %c0_i32 = arith.constant 0 : i32
    %c0_i32_0 = arith.constant 0 : i32
    %c0_i32_1 = arith.constant 0 : i32
    %c0_i32_2 = arith.constant 0 : i32
    %c0_i32_3 = arith.constant 0 : i32
    return %c0_i32, %c0_i32_0, %c0_i32_1, %c0_i32_2 : i32, i32, i32, i32
  }
  func.func @transform_9(%arg0: i32) -> (i32, i32, i32, i32) {
    %c0_i32 = arith.constant 0 : i32
    %c0_i32_0 = arith.constant 0 : i32
    %c0_i32_1 = arith.constant 0 : i32
    %c0_i32_2 = arith.constant 0 : i32
    %c0_i32_3 = arith.constant 0 : i32
    return %c0_i32, %c0_i32_0, %c0_i32_1, %c0_i32_2 : i32, i32, i32, i32
  }
  func.func @transform_10(%arg0: i32) -> (i32, i32, i32, i32) {
    %c0_i32 = arith.constant 0 : i32
    %c0_i32_0 = arith.constant 0 : i32
    %c0_i32_1 = arith.constant 0 : i32
    %c0_i32_2 = arith.constant 0 : i32
    %c0_i32_3 = arith.constant 0 : i32
    return %c0_i32, %c0_i32_0, %c0_i32_1, %c0_i32_2 : i32, i32, i32, i32
  }
  func.func @transform_11(%arg0: i32) -> (i32, i32, i32) {
    %c0_i32 = arith.constant 0 : i32
    %c0_i32_0 = arith.constant 0 : i32
    %c0_i32_1 = arith.constant 0 : i32
    %c0_i32_2 = arith.constant 0 : i32
    return %c0_i32, %c0_i32_0, %c0_i32_1 : i32, i32, i32
  }
  func.func @transform_12(%arg0: i32) -> (i32, i32, i32) {
    %c0_i32 = arith.constant 0 : i32
    %c0_i32_0 = arith.constant 0 : i32
    %c0_i32_1 = arith.constant 0 : i32
    %c0_i32_2 = arith.constant 0 : i32
    return %c0_i32, %c0_i32_0, %c0_i32_1 : i32, i32, i32
  }
  func.func @transform_13(%arg0: i32) -> (i32, i32) {
    %c0_i32 = arith.constant 0 : i32
    %c0_i32_0 = arith.constant 0 : i32
    %c0_i32_1 = arith.constant 0 : i32
    return %c0_i32, %c0_i32_0 : i32, i32
  }
  func.func @transform_14(%arg0: i32) -> (i32, i32) {
    %c0_i32 = arith.constant 0 : i32
    %c0_i32_0 = arith.constant 0 : i32
    %c0_i32_1 = arith.constant 0 : i32
    return %c0_i32, %c0_i32_0 : i32, i32
  }
  func.func @transform_15(%arg0: i32) -> (i32, i32) {
    %c0_i32 = arith.constant 0 : i32
    %c0_i32_0 = arith.constant 0 : i32
    %c0_i32_1 = arith.constant 0 : i32
    return %c0_i32, %c0_i32_0 : i32, i32
  }
  func.func @transform_16(%arg0: i32) -> (i32, i32) {
    %c0_i32 = arith.constant 0 : i32
    %c0_i32_0 = arith.constant 0 : i32
    %c0_i32_1 = arith.constant 0 : i32
    return %c0_i32, %c0_i32_0 : i32, i32
  }
  func.func @transform_17(%arg0: i32) -> (i32, i32, i32) {
    %c0_i32 = arith.constant 0 : i32
    %c0_i32_0 = arith.constant 0 : i32
    %c0_i32_1 = arith.constant 0 : i32
    %c0_i32_2 = arith.constant 0 : i32
    return %c0_i32, %c0_i32_0, %c0_i32_1 : i32, i32, i32
  }
  func.func @transform_18(%arg0: i32) -> (i32, i32, i32) {
    %c0_i32 = arith.constant 0 : i32
    %c0_i32_0 = arith.constant 0 : i32
    %c0_i32_1 = arith.constant 0 : i32
    %c0_i32_2 = arith.constant 0 : i32
    return %c0_i32, %c0_i32_0, %c0_i32_1 : i32, i32, i32
  }
  func.func @transform_19(%arg0: i32) -> (i32, i32, i32, i32) {
    %c0_i32 = arith.constant 0 : i32
    %c0_i32_0 = arith.constant 0 : i32
    %c0_i32_1 = arith.constant 0 : i32
    %c0_i32_2 = arith.constant 0 : i32
    %c0_i32_3 = arith.constant 0 : i32
    return %c0_i32, %c0_i32_0, %c0_i32_1, %c0_i32_2 : i32, i32, i32, i32
  }
  func.func @transform_20(%arg0: i32) -> (i32, i32, i32, i32) {
    %c0_i32 = arith.constant 0 : i32
    %c0_i32_0 = arith.constant 0 : i32
    %c0_i32_1 = arith.constant 0 : i32
    %c0_i32_2 = arith.constant 0 : i32
    %c0_i32_3 = arith.constant 0 : i32
    return %c0_i32, %c0_i32_0, %c0_i32_1, %c0_i32_2 : i32, i32, i32, i32
  }
  func.func @transform_21(%arg0: i32) -> (i32, i32, i32, i32) {
    %c0_i32 = arith.constant 0 : i32
    %c0_i32_0 = arith.constant 0 : i32
    %c0_i32_1 = arith.constant 0 : i32
    %c0_i32_2 = arith.constant 0 : i32
    %c0_i32_3 = arith.constant 0 : i32
    return %c0_i32, %c0_i32_0, %c0_i32_1, %c0_i32_2 : i32, i32, i32, i32
  }
  func.func @transform_22(%arg0: i32) -> (i32, i32, i32, i32) {
    %c0_i32 = arith.constant 0 : i32
    %c0_i32_0 = arith.constant 0 : i32
    %c0_i32_1 = arith.constant 0 : i32
    %c0_i32_2 = arith.constant 0 : i32
    %c0_i32_3 = arith.constant 0 : i32
    return %c0_i32, %c0_i32_0, %c0_i32_1, %c0_i32_2 : i32, i32, i32, i32
  }
  func.func @transform_23(%arg0: i32) -> (i32, i32) {
    %c0_i32 = arith.constant 0 : i32
    %c0_i32_0 = arith.constant 0 : i32
    %c0_i32_1 = arith.constant 0 : i32
    return %c0_i32, %c0_i32_0 : i32, i32
  }
  func.func @transform_24(%arg0: i32) -> (i32, i32) {
    %c0_i32 = arith.constant 0 : i32
    %c0_i32_0 = arith.constant 0 : i32
    %c0_i32_1 = arith.constant 0 : i32
    return %c0_i32, %c0_i32_0 : i32, i32
  }
  func.func @transform_25(%arg0: i32) -> (i32, i32) {
    %c0_i32 = arith.constant 0 : i32
    %c0_i32_0 = arith.constant 0 : i32
    %c0_i32_1 = arith.constant 0 : i32
    return %c0_i32, %c0_i32_0 : i32, i32
  }
  func.func @transform_26(%arg0: i32) -> (i32, i32) {
    %c0_i32 = arith.constant 0 : i32
    %c0_i32_0 = arith.constant 0 : i32
    %c0_i32_1 = arith.constant 0 : i32
    return %c0_i32, %c0_i32_0 : i32, i32
  }
  func.func @transform_27(%arg0: i32) -> (i32, i32) {
    %c0_i32 = arith.constant 0 : i32
    %c0_i32_0 = arith.constant 0 : i32
    %c0_i32_1 = arith.constant 0 : i32
    return %c0_i32, %c0_i32_0 : i32, i32
  }
  func.func @transform_28(%arg0: i32) -> (i32, i32) {
    %c0_i32 = arith.constant 0 : i32
    %c0_i32_0 = arith.constant 0 : i32
    %c0_i32_1 = arith.constant 0 : i32
    return %c0_i32, %c0_i32_0 : i32, i32
  }
  func.func @transform_29(%arg0: i32) -> (i32, i32, i32) {
    %c0_i32 = arith.constant 0 : i32
    %c0_i32_0 = arith.constant 0 : i32
    %c0_i32_1 = arith.constant 0 : i32
    return %arg0, %c0_i32, %c0_i32_0 : i32, i32, i32
  }
  func.func @transform_30(%arg0: i32) -> (i32, i32, i32) {
    %c0_i32 = arith.constant 0 : i32
    %c0_i32_0 = arith.constant 0 : i32
    %c0_i32_1 = arith.constant 0 : i32
    return %arg0, %c0_i32, %c0_i32_0 : i32, i32, i32
  }
  func.func @transform_31(%arg0: i32) -> (i32, i32, i32) {
    %c0_i32 = arith.constant 0 : i32
    %c0_i32_0 = arith.constant 0 : i32
    %c0_i32_1 = arith.constant 0 : i32
    return %arg0, %c0_i32, %c0_i32_0 : i32, i32, i32
  }
}

</mosaic_0001>

<bundles_post_ra>
// kernel: _lambda_.1
= control target key start
LH: loop header
LB: loop body
LE: loop exit
PB: predicated region body
PF: predicated region fallthrough
CT: control target
= control target key end

     0   :  { %s6816_s6 = smov 1   ;;  %s6817_s10 = smov 2   ;;  %s7822_s0 = inlined_call_operand.smem [shape: u32[32], index: -1, kind: input, shape index: {}] }
   0x1   :  { %s6894_s5 = sld [smem:[%s7822_s0]]   ;;  %s6818_s14 = smov 3  }
   0x2   :  { %s6899_s9 = sld [smem:[%s7822_s0 + %s6816_s6]]   ;;  %s6819_s18 = smov 4  }
   0x3   :  { %s6904_s13 = sld [smem:[%s7822_s0 + %s6817_s10]]   ;;  %s6820_s22 = smov 5  }
   0x4   :  { %s6909_s17 = sld [smem:[%s7822_s0 + %s6818_s14]]   ;;  %s6821_s26 = smov 6  }
   0x5   :  { %s6914_s21 = sld [smem:[%s7822_s0 + %s6819_s18]]   ;;  %s6822_s30 = smov 7  }
   0x6   :  { %s6919_s25 = sld [smem:[%s7822_s0 + %s6820_s22]]   ;;  %s6823_s4 = smov 8  }
   0x7   :  { %7843 = sst [smem:[#allocation53_spill]] %s6894_s5  ;;  %s6824_s10 = smov 9  }
   0x8   :  { %s6924_s29 = sld [smem:[%s7822_s0 + %s6821_s26]]   ;;  %s6825_s15 = smov 10  }
   0x9   :  { %7844 = sst [smem:[#allocation54_spill]] %s6904_s13  ;;  %s6826_s20 = smov 11  }
   0xa   :  { %s6929_s3 = sld [smem:[%s7822_s0 + %s6822_s30]]   ;;  %s6827_s26 = smov 12  }
   0xb   :  { %7845 = sst [smem:[#allocation55_spill]] %s6914_s21  ;;  %s6828_s1 = smov 13  }
   0xc   :  { %s6934_s8 = sld [smem:[%s7822_s0 + %s6823_s4]]   ;;  %s6829_s7 = smov 14  }
   0xd   :  { %s6939_s14 = sld [smem:[%s7822_s0 + %s6824_s10]]   ;;  %s6831_s22 = smov 16  }
   0xe   :  { %s6944_s19 = sld [smem:[%s7822_s0 + %s6825_s15]]   ;;  %s6830_s15 = smov 15  }
   0xf   :  { %s6949_s24 = sld [smem:[%s7822_s0 + %s6826_s20]]   ;;  %s6832_s28 = smov 17  }
  0x10   :  { %7846 = sst [smem:[#allocation56_spill]] %s6929_s3 }
  0x11   :  { %s6954_s30 = sld [smem:[%s7822_s0 + %s6827_s26]]  }
  0x12   :  { %7847 = sst [smem:[#allocation57_spill]] %s6934_s8 }
  0x13   :  { %7848 = sst [smem:[#allocation58_spill]] %s6939_s14 }
  0x14   :  { %s6959_s6 = sld [smem:[%s7822_s0 + %s6828_s1]]  }
  0x15   :  { %7849 = sst [smem:[#allocation59_spill]] %s6949_s24 }
  0x16   :  { %s6964_s12 = sld [smem:[%s7822_s0 + %s6829_s7]]   ;;  %s6833_s7 = smov 18  }
  0x17   :  { %s6969_s20 = sld [smem:[%s7822_s0 + %s6830_s15]]   ;;  %s6834_s15 = smov 19  }
  0x18   :  { %s6974_s27 = sld [smem:[%s7822_s0 + %s6831_s22]]   ;;  %s6835_s22 = smov 20  }
  0x19   :  { %s6979_s4 = sld [smem:[%s7822_s0 + %s6832_s28]]   ;;  %s6836_s28 = smov 21  }
  0x1a   :  { %7850 = sst [smem:[#allocation60_spill]] %s6959_s6 }
  0x1b   :  { %s6989_s5 = sld [smem:[%s7822_s0 + %s6834_s15]]   ;;  %s6838_s15 = smov 23  }
  0x1c   :  { %7851 = sst [smem:[#allocation61_spill]] %s6964_s12 }
  0x1d   :  { %s6984_s12 = sld [smem:[%s7822_s0 + %s6833_s7]]   ;;  %s6837_s7 = smov 22  }
  0x1e   :  { %7852 = sst [smem:[#allocation62_spill]] %s6974_s27 }
  0x1f   :  { %7853 = sst [smem:[#allocation63_spill]] %s6979_s4 }
  0x20   :  { %s6994_s27 = sld [smem:[%s7822_s0 + %s6835_s22]]   ;;  %s6839_s22 = smov 24  }
  0x21   :  { %7855 = sst [smem:[#allocation65_spill]] %s6989_s5 }
  0x22   :  { %s6999_s6 = sld [smem:[%s7822_s0 + %s6836_s28]]   ;;  %s6840_s28 = smov 25  }
  0x23   :  { %7854 = sst [smem:[#allocation64_spill]] %s6984_s12 }
  0x24   :  { %s7004_s12 = sld [smem:[%s7822_s0 + %s6837_s7]]   ;;  %s6841_s7 = smov 26  }
  0x25   :  { %s7009_s24 = sld [smem:[%s7822_s0 + %s6838_s15]]   ;;  %s6842_s15 = smov 27  }
  0x26   :  { %7856 = sst [smem:[#allocation66_spill]] %s6994_s27 }
  0x27   :  { %s7014_s27 = sld [smem:[%s7822_s0 + %s6839_s22]]   ;;  %s6843_s22 = smov 28  }
  0x28   :  { %7857 = sst [smem:[#allocation67_spill]] %s6999_s6 }
  0x29   :  { %s7019_s14 = sld [smem:[%s7822_s0 + %s6840_s28]]   ;;  %s6844_s28 = smov 29  }
  0x2a   :  { %7858 = sst [smem:[#allocation68_spill]] %s7004_s12 }
  0x2b   :  { %7859 = sst [smem:[#allocation69_spill]] %s7009_s24 }
  0x2c   :  { %s7024_s12 = sld [smem:[%s7822_s0 + %s6841_s7]]   ;;  %s6845_s7 = smov 30  }
  0x2d   :  { %7860 = sst [smem:[#allocation70_spill]] %s7014_s27 }
  0x2e   :  { %s7029_s24 = sld [smem:[%s7822_s0 + %s6842_s15]]   ;;  %s6846_s15 = smov 31  }
  0x2f   :  { %s7034_s27 = sld [smem:[%s7822_s0 + %s6843_s22]]  }
  0x30   :  { %s7039_s3 = sld [smem:[%s7822_s0 + %s6844_s28]]  }
  0x32   :  { %7861 = sst [smem:[#allocation71_spill]] %s7024_s12 }
  0x33   :  { %s7044_s12 = sld [smem:[%s7822_s0 + %s6845_s7]]  }
  0x34   :  { %7862 = sst [smem:[#allocation72_spill]] %s7029_s24 }
  0x35   :  { %s7049_s24 = sld [smem:[%s7822_s0 + %s6846_s15]]  }
  0x36   :  { %69 = vsyncpa [#allocation4], 0 }
  0x37   :  { %70 = vsyncpa [#allocation7], 0 }
  0x38   :  { %71 = vsyncpa [#allocation10], 0 }
  0x39   :  { %72 = vsyncpa [#allocation13], 0 }
  0x3a   :  { %73 = vsyncpa [#allocation16], 0 }
  0x3b   :  { %74 = vsyncpa [#allocation19], 0 }
  0x3c   :  { %75 = vsyncpa [#allocation22], 0 }
  0x3d   :  { %76 = vsyncpa [#allocation25], 0 }
  0x3e   :  { %77 = vsyncpa [#allocation28], 0 }
  0x3f   :  { %78 = vsyncpa [#allocation31], 0 }
  0x40   :  { %79 = vsyncpa [#allocation34], 0 }
  0x41   :  { %80 = vsyncpa [#allocation37], 0 }
  0x42   :  { %81 = vsyncpa [#allocation5], 0 }
  0x43   :  { %83 = vsyncpa [#allocation5 + $0x1], 0  ;;  %s7051_s22 = smov 0   ;;  %s7053_s23 = smov 0  }
  0x44   :  { %s7055_s0 = smov 0   ;;  %s7057_s26 = smov 0  }
  0x45 LB: > { %7863 = sst [smem:[#allocation73_spill]] %s6802_s22  ;;  %s7072_s28 = sadd.s32 4294967295, %s6814_s26   ;;  %s6814_s26 = sphi %s7057_s26, %s7927_s26   ;;  %s6810_s0 = sphi %s7055_s0, %s7929_s0   ;;  %s6806_s23 = sphi %s7053_s23, %s7931_s23   ;;  %s6802_s22 = sphi %s7051_s22, %s7930_s22  }
  0x46   : > { %7864 = sst [smem:[#allocation74_spill]] %s6810_s0  ;;  %s4838_s1 = sadd.s32 4294967294, %s6814_s26  }
  0x47   : > { %7865 = sst [smem:[#allocation75_spill]] %s6814_s26  ;;  %s7076_s2 = sadd.s32 1, %s6814_s26  }
  0x48   : > { %7866 = sst [smem:[#allocation76_spill]] %s7076_s2  ;;  %s710_s7 = sadd.s32 1, %s6810_s0 }
  0x49   : > { %s707_s10 = ssub.s32 %s6814_s26, %s7076_s2  ;;  %p720_p0 = scmp.ne.s32.totalorder %s6810_s0, %s6806_s23 }
  0x4a   : > { %p708_p1 = scmp.eq.s32.totalorder %s707_s10, 0  ;;  %p721_p2 = scmp.eq.s32.totalorder %s7072_s28, 1 }
  0x4b   : > { %p726_p3 = scmp.ne.s32.totalorder %s6806_s23, %s6802_s22  ;;  %p727_p4 = scmp.eq.s32.totalorder %s4838_s1, 1 }
  0x4c   : > { %s7087_s11 = scalar_select %p708_p1, %s6810_s0, %s710_s7  }
  0x4d   : > { %p7089_p5 = por %p721_p2, %p720_p0  ;;  %p7093_p6 = por %p727_p4, %p726_p3 }
  0x4e   : > { %7867 = sst [smem:[#allocation77_spill]] %s7087_s11  ;;  %p4839_p7 = scmp.ge.s32.totalorder %s6814_s26, 1 }
  0x4f   : > { %s7868_s15 = scalar_select %p7089_p5, 1, 0 }
  0x50   : > { %s7869_s16 = scalar_select %p7093_p6, 1, 0 }
  0x51   : > { %p786_p8 = scmp.lt.s32.totalorder %s6814_s26, 3  ;;  %p7832_p9 = scmp.eq.s32.totalorder %s7072_s28, 0 }
  0x52   : > { %7870 = sst [smem:[#allocation78_spill]] %s7869_s16  ;;  %s6847_s10 = smov [#allocation6]  }
  0x53   : > { %p7100_p10 = pnand %p4839_p7, %p786_p8  ;;  %s809_s1 = sshll.u32 %s6847_s10, 4  ;;  %s810_s1 = int_to_ptr.vmem [resolvable:$true] %s809_s1 }
  0x54   : > { %s6848_s11 = smov [#allocation9]   ;;  %s6849_s2 = smov [#allocation12]  }
  0x55   : > { %s7871_s18 = scalar_select %p7100_p10, 1, 0 }
  0x56   : > { %p5725_p11 = pneg %p7100_p10  ;;  %s833_s0 = sshll.u32 %s6848_s11, 4  ;;  %s834_s0 = int_to_ptr.vmem [resolvable:$true] %s833_s0 }
  0x57   : > { %s857_s16 = sshll.u32 %s6849_s2, 4  ;;  %s6119_s10 = scalar_lea.vmem %s810_s1, 768  ;;  %s858_s16 = int_to_ptr.vmem [resolvable:$true] %s857_s16 }
  0x58   : > { %p7108_p12 = pnand %p7832_p9, %p5725_p11  ;;  %p6120_p0 = scmp.ne.s32.totalorder %s810_s1, %s6119_s10 }
  0x59   : > { %p6127_p3 = scmp.lt.s32.totalorder %s810_s1, %s810_s1  ;;  %p6128_p4 = scmp.lt.s32.totalorder %s6119_s10, %s6119_s10 }
  0x5a   : > { %p7114_p13 = pneg %p7108_p12 }
  0x5b   : > { %p6129_p7 = por %p6128_p4, %p6127_p3 }
  0x5c   : > { %p6122_p1 = pnand %p6120_p0, %p7114_p13 }
  0x5e   : > { %p6123_p2 = pneg %p6122_p1 }
  0x60   : > { %p6130_p8 = pnand %p6129_p7, %p6123_p2 }
  0x62   : > { %6133 = shalt.err (!%p6130_p8)
}
  0x63   : > { %s7838_s11 = smov 64   ;;  %s7874_s13 = sld [smem:[#allocation54_spill]] }
  0x64   : > { %s7840_s2 = smov 4   ;;  %s6145_s26 = scalar_lea.vmem %s834_s0, 768 }
  0x65   : > { %p6146_p11 = scmp.ne.s32.totalorder %s834_s0, %s6145_s26  ;;  %p6153_p9 = scmp.lt.s32.totalorder %s834_s0, %s834_s0 }
  0x66   : > { %p6154_p6 = scmp.lt.s32.totalorder %s6145_s26, %s6145_s26 }
  0x67   : > { %p6148_p0 = pnand %p6146_p11, %p7114_p13 }
  0x68   : > { %p6155_p3 = por %p6154_p6, %p6153_p9 }
  0x69   : > { %5731 = dma.hbm_to_vmem [thread:$0]  (!%p7108_p12), %s7874_s13, 768, %s810_s1, [#allocation7], %s7838_s11, %s7838_s11, %s7840_s2  }
  0x6a   : > { %p6149_p1 = pneg %p6148_p0 }
  0x6c   : > { %p6156_p2 = pnand %p6155_p3, %p6149_p1 }
  0x6e   : > { %6159 = shalt.err (!%p6156_p2)
}
  0x6f   : > { %s7875_s21 = sld [smem:[#allocation55_spill]]  ;;  %s6171_s1 = scalar_lea.vmem %s858_s16, 768 }
  0x70   : > { %p6172_p4 = scmp.ne.s32.totalorder %s858_s16, %s6171_s1  ;;  %p6179_p11 = scmp.lt.s32.totalorder %s858_s16, %s858_s16 }
  0x71   : > { %p6180_p0 = scmp.lt.s32.totalorder %s6171_s1, %s6171_s1 }
  0x72   : > { %p6174_p7 = pnand %p6172_p4, %p7114_p13 }
  0x73   : > { %p6181_p5 = por %p6180_p0, %p6179_p11 }
  0x74   : > { %p6175_p8 = pneg %p6174_p7 }
  0x75   : > { %5737 = dma.hbm_to_vmem [thread:$0]  (!%p7108_p12), %s7875_s21, 768, %s834_s0, [#allocation10], %s7838_s11, %s7838_s11, %s7840_s2  }
  0x76   : > { %p6182_p6 = pnand %p6181_p5, %p6175_p8 }
  0x78   : > { %6185 = shalt.err (!%p6182_p6)
}
  0x79   : > { %5743 = dma.hbm_to_vmem [thread:$0]  (!%p7108_p12), %s6924_s29, 768, %s858_s16, [#allocation13], %s7838_s11, %s7838_s11, %s7840_s2  }
  0x7a   : > { %s6852_s0 = smov [#allocation15]   ;;  %s6853_s10 = smov [#allocation18]  }
  0x7b   : > { %s883_s26 = sshll.u32 %s6852_s0, 4  ;;  %s909_s13 = sshll.u32 %s6853_s10, 4  ;;  %s884_s26 = int_to_ptr.vmem [resolvable:$true] %s883_s26  ;;  %s910_s13 = int_to_ptr.vmem [resolvable:$true] %s909_s13 }
  0x7c   : > { %s6197_s21 = scalar_lea.vmem %s884_s26, 64  ;;  %p6205_p5 = scmp.lt.s32.totalorder %s884_s26, %s884_s26 }
  0x7d   : > { %p6198_p9 = scmp.ne.s32.totalorder %s884_s26, %s6197_s21  ;;  %p6206_p2 = scmp.lt.s32.totalorder %s6197_s21, %s6197_s21 }
  0x7f   : > { %p6200_p1 = pnand %p6198_p9, %p7114_p13  ;;  %p6207_p4 = por %p6206_p2, %p6205_p5 }
  0x81   : > { %p6201_p3 = pneg %p6200_p1 }
  0x83   : > { %p6208_p7 = pnand %p6207_p4, %p6201_p3 }
  0x85   : > { %6211 = shalt.err (!%p6208_p7)
}
  0x86   : > { %s7834_s1 = smov 16   ;;  %s7876_s8 = sld [smem:[#allocation57_spill]] }
  0x87   : > { %s7836_s16 = smov 1   ;;  %s6223_s0 = scalar_lea.vmem %s910_s13, 1024 }
  0x88   : > { %p6224_p8 = scmp.ne.s32.totalorder %s910_s13, %s6223_s0  ;;  %p6231_p6 = scmp.lt.s32.totalorder %s910_s13, %s910_s13 }
  0x89   : > { %p6232_p9 = scmp.lt.s32.totalorder %s6223_s0, %s6223_s0 }
  0x8a   : > { %p6226_p11 = pnand %p6224_p8, %p7114_p13 }
  0x8b   : > { %p6233_p1 = por %p6232_p9, %p6231_p6 }
  0x8c   : > { %5749 = dma.hbm_to_vmem [thread:$0]  (!%p7108_p12), %s7876_s8, 64, %s884_s26, [#allocation16], %s7834_s1, %s7834_s1, %s7836_s16  }
  0x8d   : > { %p6227_p0 = pneg %p6226_p11 }
  0x8f   : > { %p6234_p3 = pnand %p6233_p1, %p6227_p0 }
  0x91   : > { %6237 = shalt.err (!%p6234_p3)
}
  0x92   : > { %5755 = dma.hbm_to_vmem [thread:$0]  (!%p7108_p12), %s6944_s19, 1024, %s910_s13, [#allocation19], %s7838_s11, %s7838_s11, %s7840_s2  }
  0x93   : > { %s6856_s21 = smov [#allocation21]   ;;  %s6857_s10 = smov [#allocation24]  }
  0x94   : > { %s935_s26 = sshll.u32 %s6856_s21, 4  ;;  %s963_s1 = sshll.u32 %s6857_s10, 4  ;;  %s936_s26 = int_to_ptr.vmem [resolvable:$true] %s935_s26  ;;  %s964_s1 = int_to_ptr.vmem [resolvable:$true] %s963_s1 }
  0x95   : > { %s6249_s16 = scalar_lea.vmem %s936_s26, 1536  ;;  %p6257_p7 = scmp.lt.s32.totalorder %s936_s26, %s936_s26 }
  0x96   : > { %p6250_p5 = scmp.ne.s32.totalorder %s936_s26, %s6249_s16  ;;  %p6258_p8 = scmp.lt.s32.totalorder %s6249_s16, %s6249_s16 }
  0x98   : > { %p6252_p2 = pnand %p6250_p5, %p7114_p13  ;;  %p6259_p11 = por %p6258_p8, %p6257_p7 }
  0x9a   : > { %p6253_p4 = pneg %p6252_p2 }
  0x9c   : > { %p6260_p0 = pnand %p6259_p11, %p6253_p4 }
  0x9e   : > { %6263 = shalt.err (!%p6260_p0)
}
  0x9f   : > { %5761 = dma.hbm_to_vmem [thread:$0]  (!%p7108_p12), %s6954_s30, 1536, %s936_s26, [#allocation22], %s7838_s11, %s7838_s11, %s7840_s2  }
  0xa0   : > { %s6275_s13 = scalar_lea.vmem %s964_s1, 16  ;;  %s6282_s0 = scalar_lea.vmem %s964_s1, 32 }
  0xa1   : > { %p6276_p6 = scmp.ne.s32.totalorder %s964_s1, %s6275_s13  ;;  %p6283_p3 = scmp.lt.s32.totalorder %s964_s1, %s964_s1 }
  0xa2   : > { %p6284_p5 = scmp.lt.s32.totalorder %s6282_s0, %s6275_s13 }
  0xa3   : > { %p6278_p9 = pnand %p6276_p6, %p7114_p13 }
  0xa4   : > { %p6285_p2 = por %p6284_p5, %p6283_p3 }
  0xa5   : > { %p6279_p1 = pneg %p6278_p9 }
  0xa7   : > { %p6286_p4 = pnand %p6285_p2, %p6279_p1 }
  0xa9   : > { %6289 = shalt.err (!%p6286_p4)
}
  0xaa   : > { %5767 = dma.hbm_to_vmem [thread:$0]  (!%p7108_p12), %s6969_s20, 16, %s964_s1, [#allocation25]  }
  0xab   : > { %s6858_s16 = smov [#allocation27]   ;;  %s6859_s26 = smov [#allocation30]  }
  0xac   : > { %s986_s21 = sshll.u32 %s6858_s16, 4  ;;  %s1012_s10 = sshll.u32 %s6859_s26, 4  ;;  %s987_s21 = int_to_ptr.vmem [resolvable:$true] %s986_s21  ;;  %s1013_s10 = int_to_ptr.vmem [resolvable:$true] %s1012_s10 }
  0xad   : > { %s6301_s11 = scalar_lea.vmem %s987_s21, 32  ;;  %p6309_p0 = scmp.lt.s32.totalorder %s987_s21, %s987_s21 }
  0xae   : > { %p6302_p7 = scmp.ne.s32.totalorder %s987_s21, %s6301_s11  ;;  %p6310_p6 = scmp.lt.s32.totalorder %s6301_s11, %s6301_s11 }
  0xb0   : > { %p6304_p8 = pnand %p6302_p7, %p7114_p13  ;;  %p6311_p9 = por %p6310_p6, %p6309_p0 }
  0xb2   : > { %p6305_p11 = pneg %p6304_p8 }
  0xb4   : > { %p6312_p1 = pnand %p6311_p9, %p6305_p11 }
  0xb6   : > { %6315 = shalt.err (!%p6312_p1)
}
  0xb7   : > { %s7877_s13 = smov 1   ;;  %s7878_s0 = smov 16  }
  0xb8   : > { %s7879_s4 = sld [smem:[#allocation63_spill]]  ;;  %s6327_s1 = scalar_lea.vmem %s1013_s10, 64 }
  0xb9   : > { %p6328_p3 = scmp.ne.s32.totalorder %s1013_s10, %s6327_s1  ;;  %p6335_p4 = scmp.lt.s32.totalorder %s1013_s10, %s1013_s10 }
  0xba   : > { %p6336_p7 = scmp.lt.s32.totalorder %s6327_s1, %s6327_s1 }
  0xbb   : > { %p6330_p5 = pnand %p6328_p3, %p7114_p13 }
  0xbc   : > { %p6337_p8 = por %p6336_p7, %p6335_p4 }
  0xbd   : > { %p6331_p2 = pneg %p6330_p5 }
  0xbe   : > { %5773 = dma.hbm_to_vmem [thread:$0]  (!%p7108_p12), %s7879_s4, 32, %s987_s21, [#allocation28], %s7878_s0, %s7878_s0, %s7877_s13  }
  0xbf   : > { %p6338_p0 = pnand %p6337_p8, %p6331_p2 }
  0xc1   : > { %6341 = shalt.err (!%p6338_p0)
}
  0xc2   : > { %s7880_s5 = sld [smem:[#allocation65_spill]]  ;;  %s6860_s11 = smov [#allocation33]  }
  0xc3   : > { %s1038_s16 = sshll.u32 %s6860_s11, 4  ;;  %s6861_s21 = smov [#allocation36]   ;;  %s1039_s16 = int_to_ptr.vmem [resolvable:$true] %s1038_s16 }
  0xc4   : > { %s1071_s26 = sshll.u32 %s6861_s21, 4  ;;  %s6353_s2 = scalar_lea.vmem %s1039_s16, 3072  ;;  %s1072_s26 = int_to_ptr.vmem [resolvable:$true] %s1071_s26 }
  0xc5   : > { %p6354_p11 = scmp.ne.s32.totalorder %s1039_s16, %s6353_s2  ;;  %p6361_p1 = scmp.lt.s32.totalorder %s1039_s16, %s1039_s16 }
  0xc6   : > { %p6362_p3 = scmp.lt.s32.totalorder %s6353_s2, %s6353_s2 }
  0xc7   : > { %p6356_p6 = pnand %p6354_p11, %p7114_p13 }
  0xc8   : > { %5779 = dma.hbm_to_vmem [thread:$0]  (!%p7108_p12), %s7880_s5, 64, %s1013_s10, [#allocation31], %s7878_s0, %s7878_s0, %s7877_s13  }
  0xc9   : > { %p6357_p9 = pneg %p6356_p6  ;;  %p6363_p5 = por %p6362_p3, %p6361_p1 }
  0xcb   : > { %p6364_p2 = pnand %p6363_p5, %p6357_p9 }
  0xcd   : > { %6367 = shalt.err (!%p6364_p2)
}
  0xce   : > { %s7881_s1 = smov 4   ;;  %s7882_s4 = smov 64  }
  0xcf   : > { %s7883_s6 = sld [smem:[#allocation67_spill]]  ;;  %s6379_s10 = scalar_lea.vmem %s1072_s26, 16 }
  0xd0   : > { %p6380_p4 = scmp.ne.s32.totalorder %s1072_s26, %s6379_s10  ;;  %s6386_s11 = scalar_lea.vmem %s1072_s26, 32 }
  0xd1   : > { %p6387_p0 = scmp.lt.s32.totalorder %s1072_s26, %s1072_s26  ;;  %p6388_p11 = scmp.lt.s32.totalorder %s6386_s11, %s6379_s10 }
  0xd2   : > { %p6382_p7 = pnand %p6380_p4, %p7114_p13 }
  0xd3   : > { %p6389_p6 = por %p6388_p11, %p6387_p0 }
  0xd4   : > { %p6383_p8 = pneg %p6382_p7 }
  0xd5   : > { %5785 = dma.hbm_to_vmem [thread:$0]  (!%p7108_p12), %s7883_s6, 3072, %s1039_s16, [#allocation34], %s7882_s4, %s7882_s4, %s7881_s1  }
  0xd6   : > { %p6390_p9 = pnand %p6389_p6, %p6383_p8 }
  0xd8   : > { %6393 = shalt.err (!%p6390_p9)
}
  0xd9   : > { %5791 = dma.hbm_to_vmem [thread:$0]  (!%p7108_p12), %s7019_s14, 16, %s1072_s26, [#allocation37]  }
  0xda   : > { %s6862_s2 = smov [#allocation3]   ;;  %s6863_s16 = smov [#allocation8]  }
  0xdb   : > { %s799_s21 = sshll.u32 %s6862_s2, 4  ;;  %s823_s5 = sshll.u32 %s6863_s16, 4  ;;  %s800_s21 = int_to_ptr.vmem [resolvable:$true] %s799_s21  ;;  %s824_s5 = int_to_ptr.vmem [resolvable:$true] %s823_s5 }
  0xdc   : > { %s6405_s6 = scalar_lea.vmem %s800_s21, 16  ;;  %s6412_s8 = scalar_lea.vmem %s800_s21, 32 }
  0xdd   : > { %p6406_p1 = scmp.ne.s32.totalorder %s800_s21, %s6405_s6  ;;  %p6413_p2 = scmp.lt.s32.totalorder %s800_s21, %s800_s21 }
  0xde   : > { %p6414_p4 = scmp.lt.s32.totalorder %s6412_s8, %s6405_s6 }
  0xdf   : > { %p6408_p3 = pnand %p6406_p1, %p7114_p13 }
  0xe0   : > { %p6415_p7 = por %p6414_p4, %p6413_p2 }
  0xe1   : > { %p6409_p5 = pneg %p6408_p3 }
  0xe3   : > { %p6416_p8 = pnand %p6415_p7, %p6409_p5 }
  0xe5   : > { %6419 = shalt.err (!%p6416_p8)
}
  0xe6   : > { %5728 = dma.hbm_to_vmem [thread:$0]  (!%p7108_p12), %s6899_s9, 16, %s800_s21, [#allocation4]  }
  0xe7   : > { %s6431_s26 = scalar_lea.vmem %s824_s5, 16  ;;  %s6438_s10 = scalar_lea.vmem %s824_s5, 32 }
  0xe8   : > { %p6432_p0 = scmp.ne.s32.totalorder %s824_s5, %s6431_s26  ;;  %p6439_p9 = scmp.lt.s32.totalorder %s824_s5, %s824_s5 }
  0xe9   : > { %p6440_p1 = scmp.lt.s32.totalorder %s6438_s10, %s6431_s26 }
  0xea   : > { %p6434_p11 = pnand %p6432_p0, %p7114_p13 }
  0xeb   : > { %p6441_p3 = por %p6440_p1, %p6439_p9 }
  0xec   : > { %p6435_p6 = pneg %p6434_p11 }
  0xee   : > { %p6442_p10 = pnand %p6441_p3, %p6435_p6 }
  0xf0   : > { %6445 = shalt.err (!%p6442_p10)
}
  0xf1   : > { %5734 = dma.hbm_to_vmem [thread:$0]  (!%p7108_p12), %s6909_s17, 16, %s824_s5, [#allocation7]  }
  0xf2   : > { %s6864_s8 = smov [#allocation11]   ;;  %s6865_s11 = smov [#allocation14]  }
  0xf3   : > { %s847_s6 = sshll.u32 %s6864_s8, 4  ;;  %s870_s2 = sshll.u32 %s6865_s11, 4  ;;  %s848_s6 = int_to_ptr.vmem [resolvable:$true] %s847_s6  ;;  %s871_s2 = int_to_ptr.vmem [resolvable:$true] %s870_s2 }
  0xf4   : > { %s6457_s21 = scalar_lea.vmem %s848_s6, 16  ;;  %s6464_s16 = scalar_lea.vmem %s848_s6, 32 }
  0xf5   : > { %p6458_p5 = scmp.ne.s32.totalorder %s848_s6, %s6457_s21  ;;  %p6465_p7 = scmp.lt.s32.totalorder %s848_s6, %s848_s6 }
  0xf6   : > { %p6466_p8 = scmp.lt.s32.totalorder %s6464_s16, %s6457_s21 }
  0xf7   : > { %p6460_p2 = pnand %p6458_p5, %p7114_p13 }
  0xf8   : > { %p6467_p0 = por %p6466_p8, %p6465_p7 }
  0xf9   : > { %p6461_p4 = pneg %p6460_p2 }
  0xfb   : > { %p6468_p10 = pnand %p6467_p0, %p6461_p4 }
  0xfd   : > { %6471 = shalt.err (!%p6468_p10)
}
  0xfe   : > { %5740 = dma.hbm_to_vmem [thread:$0]  (!%p7108_p12), %s6919_s25, 16, %s848_s6, [#allocation10]  }
  0xff   : > { %s6483_s5 = scalar_lea.vmem %s871_s2, 64  ;;  %p6491_p1 = scmp.lt.s32.totalorder %s871_s2, %s871_s2 }
 0x100   : > { %p6484_p11 = scmp.ne.s32.totalorder %s871_s2, %s6483_s5  ;;  %p6492_p3 = scmp.lt.s32.totalorder %s6483_s5, %s6483_s5 }
 0x102   : > { %p6486_p6 = pnand %p6484_p11, %p7114_p13  ;;  %p6493_p5 = por %p6492_p3, %p6491_p1 }
 0x104   : > { %p6487_p9 = pneg %p6486_p6 }
 0x106   : > { %p6494_p2 = pnand %p6493_p5, %p6487_p9 }
 0x108   : > { %6497 = shalt.err (!%p6494_p2)
}
 0x109   : > { %s7884_s26 = sld [smem:[#allocation56_spill]]  ;;  %s6866_s10 = smov [#allocation17]  }
 0x10a   : > { %s896_s8 = sshll.u32 %s6866_s10, 4  ;;  %s6867_s6 = smov [#allocation20]   ;;  %s897_s8 = int_to_ptr.vmem [resolvable:$true] %s896_s8 }
 0x10b   : > { %s922_s11 = sshll.u32 %s6867_s6, 4  ;;  %s6509_s21 = scalar_lea.vmem %s897_s8, 3072  ;;  %s923_s11 = int_to_ptr.vmem [resolvable:$true] %s922_s11 }
 0x10c   : > { %p6510_p4 = scmp.ne.s32.totalorder %s897_s8, %s6509_s21  ;;  %p6517_p0 = scmp.lt.s32.totalorder %s897_s8, %s897_s8 }
 0x10d   : > { %p6518_p10 = scmp.lt.s32.totalorder %s6509_s21, %s6509_s21 }
 0x10e   : > { %p6512_p7 = pnand %p6510_p4, %p7114_p13 }
 0x10f   : > { %5746 = dma.hbm_to_vmem [thread:$0]  (!%p7108_p12), %s7884_s26, 64, %s871_s2, [#allocation13], %s7878_s0, %s7878_s0, %s7877_s13  }
 0x110   : > { %p6513_p8 = pneg %p6512_p7  ;;  %p6519_p11 = por %p6518_p10, %p6517_p0 }
 0x112   : > { %p6520_p6 = pnand %p6519_p11, %p6513_p8 }
 0x114   : > { %6523 = shalt.err (!%p6520_p6)
}
 0x115   : > { %s7885_s2 = sld [smem:[#allocation58_spill]]  ;;  %s6535_s16 = scalar_lea.vmem %s923_s11, 32 }
 0x116   : > { %p6536_p9 = scmp.ne.s32.totalorder %s923_s11, %s6535_s16  ;;  %p6543_p5 = scmp.lt.s32.totalorder %s923_s11, %s923_s11 }
 0x117   : > { %p6544_p2 = scmp.lt.s32.totalorder %s6535_s16, %s6535_s16 }
 0x118   : > { %p6538_p1 = pnand %p6536_p9, %p7114_p13 }
 0x119   : > { %p6545_p4 = por %p6544_p2, %p6543_p5 }
 0x11a   : > { %p6539_p3 = pneg %p6538_p1 }
 0x11b   : > { %5752 = dma.hbm_to_vmem [thread:$0]  (!%p7108_p12), %s7885_s2, 3072, %s897_s8, [#allocation16], %s7882_s4, %s7882_s4, %s7881_s1  }
 0x11c   : > { %p6546_p7 = pnand %p6545_p4, %p6539_p3 }
 0x11e   : > { %6549 = shalt.err (!%p6546_p7)
}
 0x11f   : > { %s7886_s5 = sld [smem:[#allocation59_spill]]  ;;  %s6868_s26 = smov [#allocation23]  }
 0x120   : > { %s949_s10 = sshll.u32 %s6868_s26, 4  ;;  %s6869_s8 = smov [#allocation26]   ;;  %s950_s10 = int_to_ptr.vmem [resolvable:$true] %s949_s10 }
 0x121   : > { %s973_s6 = sshll.u32 %s6869_s8, 4  ;;  %s6561_s21 = scalar_lea.vmem %s950_s10, 16  ;;  %s974_s6 = int_to_ptr.vmem [resolvable:$true] %s973_s6 }
 0x122   : > { %p6562_p8 = scmp.ne.s32.totalorder %s950_s10, %s6561_s21  ;;  %s6568_s2 = scalar_lea.vmem %s950_s10, 32 }
 0x123   : > { %p6569_p11 = scmp.lt.s32.totalorder %s950_s10, %s950_s10  ;;  %p6570_p6 = scmp.lt.s32.totalorder %s6568_s2, %s6561_s21 }
 0x124   : > { %p6564_p0 = pnand %p6562_p8, %p7114_p13 }
 0x125   : > { %5758 = dma.hbm_to_vmem [thread:$0]  (!%p7108_p12), %s7886_s5, 32, %s923_s11, [#allocation19], %s7878_s0, %s7878_s0, %s7877_s13  }
 0x126   : > { %p6565_p10 = pneg %p6564_p0  ;;  %p6571_p9 = por %p6570_p6, %p6569_p11 }
 0x128   : > { %p6572_p1 = pnand %p6571_p9, %p6565_p10 }
 0x12a   : > { %6575 = shalt.err (!%p6572_p1)
}
 0x12b   : > { %s7887_s16 = sld [smem:[#allocation60_spill]]  ;;  %s6587_s11 = scalar_lea.vmem %s974_s6, 768 }
 0x12c   : > { %p6588_p3 = scmp.ne.s32.totalorder %s974_s6, %s6587_s11  ;;  %p6595_p4 = scmp.lt.s32.totalorder %s974_s6, %s974_s6 }
 0x12d   : > { %p6596_p7 = scmp.lt.s32.totalorder %s6587_s11, %s6587_s11 }
 0x12e   : > { %p6590_p5 = pnand %p6588_p3, %p7114_p13 }
 0x12f   : > { %p6597_p8 = por %p6596_p7, %p6595_p4 }
 0x130   : > { %p6591_p2 = pneg %p6590_p5 }
 0x131   : > { %5764 = dma.hbm_to_vmem [thread:$0]  (!%p7108_p12), %s7887_s16, 16, %s950_s10, [#allocation22]  }
 0x132   : > { %p6598_p0 = pnand %p6597_p8, %p6591_p2 }
 0x134   : > { %6601 = shalt.err (!%p6598_p0)
}
 0x135   : > { %s7888_s5 = sld [smem:[#allocation62_spill]]  ;;  %s6870_s26 = smov [#allocation29]  }
 0x136   : > { %s999_s10 = sshll.u32 %s6870_s26, 4  ;;  %s6871_s8 = smov [#allocation32]   ;;  %s1000_s10 = int_to_ptr.vmem [resolvable:$true] %s999_s10 }
 0x137   : > { %s1025_s21 = sshll.u32 %s6871_s8, 4  ;;  %s6613_s2 = scalar_lea.vmem %s1000_s10, 2048  ;;  %s1026_s21 = int_to_ptr.vmem [resolvable:$true] %s1025_s21 }
 0x138   : > { %p6614_p10 = scmp.ne.s32.totalorder %s1000_s10, %s6613_s2  ;;  %p6621_p9 = scmp.lt.s32.totalorder %s1000_s10, %s1000_s10 }
 0x139   : > { %p6622_p1 = scmp.lt.s32.totalorder %s6613_s2, %s6613_s2 }
 0x13a   : > { %p6616_p11 = pnand %p6614_p10, %p7114_p13 }
 0x13b   : > { %5770 = dma.hbm_to_vmem [thread:$0]  (!%p7108_p12), %s7888_s5, 768, %s974_s6, [#allocation25], %s7882_s4, %s7882_s4, %s7881_s1  }
 0x13c   : > { %p6617_p6 = pneg %p6616_p11  ;;  %p6623_p3 = por %p6622_p1, %p6621_p9 }
 0x13e   : > { %p6624_p5 = pnand %p6623_p3, %p6617_p6 }
 0x140   : > { %6627 = shalt.err (!%p6624_p5)
}
 0x141   : > { %s7889_s6 = sld [smem:[#allocation64_spill]]  ;;  %s6639_s16 = scalar_lea.vmem %s1026_s21, 64 }
 0x142   : > { %p6640_p2 = scmp.ne.s32.totalorder %s1026_s21, %s6639_s16  ;;  %p6647_p8 = scmp.lt.s32.totalorder %s1026_s21, %s1026_s21 }
 0x143   : > { %p6648_p0 = scmp.lt.s32.totalorder %s6639_s16, %s6639_s16 }
 0x144   : > { %p6642_p4 = pnand %p6640_p2, %p7114_p13 }
 0x145   : > { %p6649_p10 = por %p6648_p0, %p6647_p8 }
 0x146   : > { %p6643_p7 = pneg %p6642_p4 }
 0x147   : > { %5776 = dma.hbm_to_vmem [thread:$0]  (!%p7108_p12), %s7889_s6, 2048, %s1000_s10, [#allocation28], %s7882_s4, %s7882_s4, %s7881_s1  }
 0x148   : > { %p6650_p11 = pnand %p6649_p10, %p6643_p7 }
 0x14a   : > { %6653 = shalt.err (!%p6650_p11)
}
 0x14b   : > { %s7890_s11 = sld [smem:[#allocation66_spill]]  ;;  %s6872_s4 = smov [#allocation35]  }
 0x14c   : > { %s1054_s1 = sshll.u32 %s6872_s4, 4  ;;  %s1055_s1 = int_to_ptr.vmem [resolvable:$true] %s1054_s1 }
 0x14d   : > { %s6665_s5 = scalar_lea.vmem %s1055_s1, 1024  ;;  %p6673_p3 = scmp.lt.s32.totalorder %s1055_s1, %s1055_s1 }
 0x14e   : > { %p6666_p6 = scmp.ne.s32.totalorder %s1055_s1, %s6665_s5  ;;  %p6674_p5 = scmp.lt.s32.totalorder %s6665_s5, %s6665_s5 }
 0x150   : > { %p6668_p9 = pnand %p6666_p6, %p7114_p13  ;;  %p6675_p2 = por %p6674_p5, %p6673_p3 }
 0x151   : > { %5782 = dma.hbm_to_vmem [thread:$0]  (!%p7108_p12), %s7890_s11, 64, %s1026_s21, [#allocation31], %s7878_s0, %s7878_s0, %s7877_s13  }
 0x152   : > { %p6669_p1 = pneg %p6668_p9 }
 0x154   : > { %p6676_p4 = pnand %p6675_p2, %p6669_p1 }
 0x156   : > { %6679 = shalt.err (!%p6676_p4)
}
 0x157   : > { %s6873_s26 = smov 128   ;;  %s7891_s10 = sld [smem:[#allocation69_spill]] }
 0x158   : > { %s6874_s8 = smov 8   ;;  %s6875_s13 = smov [#allocation38]  }
 0x159   : > { %s1085_s0 = sshll.u32 %s6875_s13, 4  ;;  %s1086_s0 = int_to_ptr.vmem [resolvable:$true] %s1085_s0 }
 0x15a   : > { %s6691_s21 = scalar_lea.vmem %s1086_s0, 16  ;;  %s6698_s2 = scalar_lea.vmem %s1086_s0, 32 }
 0x15b   : > { %p6692_p7 = scmp.ne.s32.totalorder %s1086_s0, %s6691_s21  ;;  %p6699_p10 = scmp.lt.s32.totalorder %s1086_s0, %s1086_s0 }
 0x15c   : > { %p6700_p11 = scmp.lt.s32.totalorder %s6698_s2, %s6691_s21 }
 0x15d   : > { %5788 = dma.hbm_to_vmem [thread:$0]  (!%p7108_p12), %s7891_s10, 1024, %s1055_s1, [#allocation34], %s6873_s26, %s6873_s26, %s6874_s8  }
 0x15e   : > { %p6694_p8 = pnand %p6692_p7, %p7114_p13  ;;  %p6701_p6 = por %p6700_p11, %p6699_p10 }
 0x160   : > { %p6695_p0 = pneg %p6694_p8 }
 0x162   : > { %p6702_p9 = pnand %p6701_p6, %p6695_p0 }
 0x164   : > { %6705 = shalt.err (!%p6702_p9)
}
 0x165   : > { %s7892_s6 = sld [smem:[#allocation72_spill]]  ;;  %p7893_p1 = scmp.ne.s32.totalorder %s7871_s18, 0 }
 0x166   : > { %p7894_p3 = scmp.eq.s32.totalorder (!%p7893_p1), %s7072_s28, 0 }
 0x167   : > { %1109 = sbr.rel (%p7893_p1) target bundleno = 8953 (0x22f9), region = 136 }
 0x16b   : > { %5794 = dma.hbm_to_vmem [thread:$0]  (!%p7108_p12), %s7892_s6, 16, %s1086_s0, [#allocation37]  }
 0x16c   : > { %6749 = dma.done.wait (%p7894_p3), [#allocation4], 16   ;;  %p7895_p5 = pmov %p7894_p3 }
 0x16d   : > { %p7896_p13 = pmov %p7894_p3 }
 0x16e   : > { %6751 = vsyncadd (%p7895_p5), [#allocation4], 4294967280 }
 0x16f   : > { %6753 = dma.done.wait (%p7896_p13), [#allocation7], 784   ;;  %p7897_p2 = pmov %p7894_p3 }
 0x171   : > { %6755 = vsyncadd (%p7897_p2), [#allocation7], 4294966512  ;;  %p7898_p4 = pmov %p7897_p2 }
 0x172   : > { %p7899_p12 = pmov %p7897_p2 }
 0x173   : > { %6757 = dma.done.wait (%p7898_p4), [#allocation10], 784  }
 0x174   : > { %6759 = vsyncadd (%p7899_p12), [#allocation10], 4294966512  ;;  %p7900_p7 = pmov %p7897_p2 }
 0x175   : > { %p7901_p8 = pmov %p7897_p2 }
 0x176   : > { %6761 = dma.done.wait (%p7900_p7), [#allocation13], 832  }
 0x177   : > { %6763 = vsyncadd (%p7901_p8), [#allocation13], 4294966464  ;;  %p7902_p0 = pmov %p7897_p2 }
 0x179   : > { %6765 = dma.done.wait (%p7902_p0), [#allocation16], 3136   ;;  %p7903_p10 = pmov %p7902_p0 }
 0x17a   : > { %p7904_p11 = pmov %p7902_p0 }
 0x17b   : > { %6767 = vsyncadd (%p7903_p10), [#allocation16], 4294964160 }
 0x17c   : > { %6769 = dma.done.wait (%p7904_p11), [#allocation19], 1056   ;;  %p7905_p6 = pmov %p7902_p0 }
 0x17d   : > { %p7906_p9 = pmov %p7902_p0 }
 0x17e   : > { %6771 = vsyncadd (%p7905_p6), [#allocation19], 4294966240 }
 0x17f   : > { %6773 = dma.done.wait (%p7906_p9), [#allocation22], 1552   ;;  %p7907_p1 = pmov %p7902_p0 }
 0x180   : > { %p7908_p3 = pmov %p7902_p0 }
 0x181   : > { %6775 = vsyncadd (%p7907_p1), [#allocation22], 4294965744 }
 0x182   : > { %6777 = dma.done.wait (%p7908_p3), [#allocation25], 784   ;;  %p7909_p5 = pmov %p7902_p0 }
 0x183   : > { %p7910_p13 = pmov %p7902_p0 }
 0x184   : > { %6779 = vsyncadd (%p7909_p5), [#allocation25], 4294966512 }
 0x185   : > { %6781 = dma.done.wait (%p7910_p13), [#allocation28], 2080   ;;  %p7911_p2 = pmov %p7902_p0 }
 0x186   : > { %p7912_p4 = pmov %p7902_p0 }
 0x187   : > { %6783 = vsyncadd (%p7911_p2), [#allocation28], 4294965216 }
 0x188   : > { %6785 = dma.done.wait (%p7912_p4), [#allocation31], 128   ;;  %p7913_p12 = pmov %p7902_p0 }
 0x189   : > { %p7914_p7 = pmov %p7902_p0 }
 0x18a   : > { %6787 = vsyncadd (%p7913_p12), [#allocation31], 4294967168 }
 0x18b   : > { %6789 = dma.done.wait (%p7914_p7), [#allocation34], 4096   ;;  %p7915_p8 = pmov %p7902_p0 }
 0x18d   : > { %6791 = vsyncadd (%p7915_p8), [#allocation34], 4294963200 }
 0x18e   : > { %6793 = dma.done.wait (%p7902_p0), [#allocation37], 32   ;;  %p7916_p10 = pmov %p7902_p0 }
 0x18f   : > { %s7917_s22 = sld [smem:[#allocation53_spill]]  ;;  %p1284_p11 = scmp.lt.s32.totalorder %s7072_s28, 1  ;;  %vm1303_vm0 = vcmask 64512   ;;  %v6876_v0 = vmov 0.0   ;;  %vm1355_vm1 = vcmask 1043456   ;;  %vm6877_vm2 = vmmov 0  }
 0x190   : > { %6795 = vsyncadd (%p7916_p10), [#allocation37], 4294967264  ;;  %s7918_s18 = sld [smem:[#allocation61_spill]]  ;;  %1304 = vst.msk [vmem:[#allocation2] sm:$0xff] %vm1303_vm0, %v6876_v0  ;;  %5248 = vmatprep.subr.bf16.mxu0 %v6876_v0  ;;  %5256 = vmatprep.subr.bf16.mxu1 %v6876_v0  ;;  %vm1419_vm3 = vcmask 261120   ;;  %s6878_s4 = smov 8  }
 0x191   : > { %1307 = vst.msk [vmem:[#allocation2 + $0x18] sm:$0xff] %vm1303_vm0, %v6876_v0  ;;  %s7336_s7 = scalar_select %p1284_p11, %s7072_s28, 1  ;;  %5252 = vmatprep.mubr.msk.bf16.mxu0 %vm6877_vm2, %v6876_v0  ;;  %5272 = vmatprep.mubr.msk.bf16.mxu1 %vm6877_vm2, %v6876_v0  ;;  %vm1332_vm4 = vcmask 130048   ;;  %vm1351_vm5 = vcmask 195584   ;;  %v5989_v25 = vld [vmem:[#allocation29 + $0x38] sm:$0xff]   ;;  %v5990_v26 = vld [vmem:[#allocation29 + $0x30] sm:$0xff]  }
 0x192   : > { %s6879_s1 = smov 16   ;;  %5257 = vmatpush3.bf16.msra.mxu1 %v5989_v25  ;;  %v5991_v27 = vld [vmem:[#allocation29 + $0x28] sm:$0xff]   ;;  %v5992_v28 = vld [vmem:[#allocation29 + $0x20] sm:$0xff]   ;;  %v5993_v29 = vld [vmem:[#allocation29 + $0x18] sm:$0xff]   ;;  %s6880_s5 = smov 32   ;;  %vm1445_vm6 = vcmask 523264  }
 0x193   : > { %s5085_s16 = sshll.u32 %s7336_s7, 4  ;;  %5258 = vmatprep.subr.bf16.mxu1 %v6876_v0  ;;  %v5994_v30 = vld [vmem:[#allocation29 + $0x10] sm:$0xff]   ;;  %v4892_v31 = vld [vmem:[#allocation23] ss:$0 sm:$0xff]  ;;  %v5996_v41 = vld [vmem:[#allocation29] sm:$0xff]   ;;  %s6881_s26 = smov 96  }
 0x194   : > { %v5995_v37 = vld [vmem:[#allocation29 + $0x8] sm:$0xff]   ;;  %s6882_s10 = smov 64   ;;  %vm1447_vm7 = vcmask 785408   ;;  %v5997_v53 = vld [vmem:[#allocation33 + $0x28] sm:$0xff]   ;;  %v5999_v55 = vld [vmem:[#allocation33 + $0x18] sm:$0xff]   ;;  %s7919_s8 = sld [smem:[#allocation68_spill]] }
 0x195   : > { %s1288_s11 = scalar_lea.vmem %s7917_s22, %s5085_s16  ;;  %v5998_v54 = vld [vmem:[#allocation33 + $0x20] sm:$0xff]   ;;  %v6000_v56 = vld [vmem:[#allocation33 + $0x10] sm:$0xff]   ;;  %v6001_v57 = vld [vmem:[#allocation33 + $0x8] sm:$0xff]   ;;  %vm2078_vm8 = vcmask 257024   ;;  %s7920_s13 = sld [smem:[#allocation71_spill]]  ;;  %vm2692_vm9 = vcmask 519168  }
 0x196   : > { %v1297_v1 = vld [vmem:[%s1288_s11] sm:$0xff]  ;;  %v1298_v2 = vld [vmem:[%s1288_s11 + $0x8] sm:$0xff]  ;;  %5259 = vmatpush3.bf16.msra.mxu1 %v5990_v26  ;;  %v4896_v58 = vld [vmem:[#allocation27] ss:$0 sm:$0xff]  ;;  %s7921_s0 = sld [smem:[#allocation70_spill]]  ;;  %s4891_s21 = sshll.u32 %s7336_s7, 2 }
 0x197   : > { %1305 = vst.msk [vmem:[#allocation2 + $0x8] sm:$0xff] %vm1303_vm0, %v1297_v1  ;;  %1306 = vst.msk [vmem:[#allocation2 + $0x10] sm:$0xff] %vm1303_vm0, %v1298_v2  ;;  %v5987_v3 = vld [vmem:[%s7918_s18 + $0x8] ss:$0 sps:$4 sm:$0xff]   ;;  %v5988_v5 = vld [vmem:[%s7918_s18] sm:$0xff]   ;;  %5260 = vmatprep.subr.bf16.mxu1 %v6876_v0  ;;  %s1292_s2 = scalar_lea.vmem %s7044_s12, %s4891_s21  ;;  %vm2809_vm12 = vcmask 3072   ;;  %s1295_s22 = scalar_lea.vmem %s7049_s24, %s7336_s7 }
 0x198   : > { %v1357_v4 = vsel %vm1355_vm1, %v5987_v3, 0  ;;  %v6002_v60 = vld [vmem:[#allocation33] sm:$0xff]   ;;  %v6009_v25 = vld [vmem:[#allocation33 + $0x38] sm:$0xff]   ;;  %vm2793_vm14 = vcmask 125952   ;;  %vm2807_vm15 = vcmask 0   ;;  %s1270_s16 = sand.u32 1, %s6806_s23  }
 0x199   : > { %5249 = vmatpush3.bf16.msra.mxu0 %v1357_v4  ;;  %v4913_v26 = vld [vmem:[#allocation32] ss:$0 sm:$0xff]  ;;  %s4888_s11 = sshll.u32 %s1270_s16, 3  ;;  %p7922_p9 = scmp.ne.s32.totalorder %s7868_s15, 0 }
 0x19a   : > { %5250 = vmatprep.subr.bf16.mxu0 %v6876_v0  ;;  %5261 = vmatpush3.bf16.msra.mxu1 %v5991_v27  ;;  %s1272_s7 = scalar_lea.vmem [#allocation39], %s4888_s11 }
 0x19b   : > { %5262 = vmatprep.subr.bf16.mxu1 %v6876_v0 }
 0x19d   : > { %5251 = vmatpush3.bf16.msra.mxu0 %v5988_v5 }
 0x19e   : > { %v1310_v6 = vld [vmem:[#allocation2 + $0x8] sm:$0xff]  ;;  %v1311_v7 = vld [vmem:[#allocation2 + $0x10] sm:$0xff]  ;;  %5276 = vmatprep.subr.bf16.mxu0 %v6876_v0  ;;  %5263 = vmatpush3.bf16.msra.mxu1 %v5992_v28 }
 0x19f   : > { %v1312_v8 = vld [vmem:[#allocation2 + $0x9] sm:$0xff]  ;;  %v1313_v9 = vld [vmem:[#allocation2 + $0x11] sm:$0xff]  ;;  %v5947_v10 = vpack.i.bf16 %v1311_v7, %v1310_v6  ;;  %5264 = vmatprep.subr.bf16.mxu1 %v6876_v0 }
 0x1a0   : > { %v1308_v11 = vld [vmem:[#allocation2 + $0x7] sm:$0xff]  ;;  %1423 = vst.msk [vmem:[#allocation2 + $0x18] sm:$0xff] %vm1419_vm3, %v6876_v0  ;;  %v5952_v12 = vpack.i.bf16 %v1313_v9, %v1312_v8  ;;  %v1309_v16 = vld [vmem:[#allocation2 + $0xf] sm:$0xff] }
 0x1a1   : > { %1420 = vst.msk [vmem:[#allocation2] sm:$0xff] %vm1419_vm3, %v6876_v0  ;;  %5948 = vrot.lane.b32.xlu0 %v5947_v10, %s6878_s4  ;;  %v6003_v10 = vld [vmem:[%s7919_s8 + $0x8] sm:$0xff]   ;;  %s5082_s4 = sshll.u32 %s7072_s28, 7 }
 0x1a2   : > { %5265 = vmatpush3.bf16.msra.mxu1 %v5993_v29 }
 0x1a3   : > { %5266 = vmatprep.subr.bf16.mxu1 %v6876_v0 }
 0x1a5   : > { %5953 = vrot.lane.b32.xlu0 %v5952_v12, %s6879_s1  ;;  %v6004_v12 = vld [vmem:[%s7919_s8] sm:$0xff]   ;;  %s4478_s1 = sshll.u32 %s1272_s7, 4  ;;  %s4479_s1 = int_to_ptr.vmem [resolvable:$true] %s4478_s1 }
 0x1a6   : > { %5267 = vmatpush3.bf16.msra.mxu1 %v5994_v30  ;;  %v6010_v30 = vld [vmem:[#allocation33 + $0x30] sm:$0xff]  }
 0x1a7   : > { %5268 = vmatprep.subr.bf16.mxu1 %v6876_v0 }
 0x1aa   : > { %5269 = vmatpush3.bf16.msra.mxu1 %v5995_v37 }
 0x1ab   : > { %5270 = vmatprep.subr.bf16.mxu1 %v6876_v0 }
 0x1ae   : > { %5271 = vmatpush3.bf16.msra.mxu1 %v5996_v41 }
 0x1af   : > { %5300 = vmatprep.subr.bf16.mxu1 %v6876_v0 }
 0x213   : > { %v5949_v13 = vpop.permute.xlu0 %5948 }
 0x214   : > { %v5951_v14 = vunpack.i.h.bf16 %v5949_v13  ;;  %v5950_v15 = vunpack.i.l.bf16 %v5949_v13  ;;  %v4905_v13 = vld [vmem:[#allocation30] ss:$0 sm:$0xff] }
 0x216   : > { %v1330_v20 = vsel %vm1303_vm0, %v1308_v11, %v5950_v15  ;;  %v1331_v21 = vsel %vm1303_vm0, %v1309_v16, %v5951_v14 }
 0x217   : > { %v5954_v17 = vpop.permute.xlu0 %5953 }
 0x218   : > { %v5956_v18 = vunpack.i.h.bf16 %v5954_v17  ;;  %v5955_v19 = vunpack.i.l.bf16 %v5954_v17 }
 0x21a   : > { %v1333_v22 = vsel %vm1332_vm4, %v1330_v20, %v5955_v19  ;;  %v1334_v23 = vsel %vm1332_vm4, %v1331_v21, %v5956_v18  ;;  %v6005_v21 = vld [vmem:[#allocation33 + $0x58] sm:$0xff]  }
 0x21b   : > { %v1335_v24 = vpack.c.bf16 %v1334_v23, %v1333_v22  ;;  %v6006_v22 = vld [vmem:[#allocation33 + $0x50] sm:$0xff]   ;;  %v6007_v23 = vld [vmem:[#allocation33 + $0x48] sm:$0xff]  }
 0x21d   : > { %5253 = vmatmul.mubr.msk.bf16.vlgmr.msra.gmra.mxu0 %vm1351_vm5, %v1335_v24  ;;  %v6008_v24 = vld [vmem:[#allocation33 + $0x40] sm:$0xff]  }
 0x21e   : > { %5288 = vmatprep.mubr.msk.bf16.mxu0 %vm6877_vm2, %v6876_v0  ;;  %5277 = vmatpush3.bf16.msra.mxu0 %v5997_v53  ;;  %v6013_v53 = vld [vmem:[#allocation29 + $0x78] sm:$0xff]  }
 0x21f   : > { %5278 = vmatprep.subr.bf16.mxu0 %v6876_v0 }
 0x222   : > { %5279 = vmatpush3.bf16.msra.mxu0 %v5998_v54  ;;  %v6014_v54 = vld [vmem:[#allocation29 + $0x70] sm:$0xff]  }
 0x223   : > { %5280 = vmatprep.subr.bf16.mxu0 %v6876_v0 }
 0x226   : > { %5281 = vmatpush3.bf16.msra.mxu0 %v5999_v55  ;;  %v6015_v55 = vld [vmem:[#allocation29 + $0x68] sm:$0xff]  }
 0x227   : > { %5282 = vmatprep.subr.bf16.mxu0 %v6876_v0 }
 0x22a   : > { %5283 = vmatpush3.bf16.msra.mxu0 %v6000_v56  ;;  %v6016_v56 = vld [vmem:[#allocation29 + $0x60] sm:$0xff]  }
 0x22b   : > { %5284 = vmatprep.subr.bf16.mxu0 %v6876_v0 }
 0x22e   : > { %5285 = vmatpush3.bf16.msra.mxu0 %v6001_v57  ;;  %v6017_v57 = vld [vmem:[#allocation29 + $0x58] sm:$0xff]  }
 0x22f   : > { %5286 = vmatprep.subr.bf16.mxu0 %v6876_v0 }
 0x232   : > { %5287 = vmatpush3.bf16.msra.mxu0 %v6002_v60  ;;  %v6019_v60 = vld [vmem:[#allocation29 + $0x48] sm:$0xff]  }
 0x233   : > { %5292 = vmatprep.subr.bf16.mxu0 %v6876_v0 }
 0x2dd   : > { %v1393_v32 = vpop.f32.mrf.mxu0 }
 0x2de   : > { %v1394_v33 = vadd.f32 %v4892_v31, %v1393_v32 }
 0x2df   : > { %v5254_v34 = vpop.f32.mrf.mxu0 }
 0x2e0   : > { %v1400_v35 = vmax.f32 %v1394_v33, 0.0 }
 0x2e1   : > { %v1396_v36 = vpop.f32.mrf.mxu0 }
 0x2e2   : > { %1421 = vst.msk [vmem:[#allocation2 + $0x8] sm:$0xff] %vm1419_vm3, %v1400_v35  ;;  %v1397_v38 = vadd.f32 %v4892_v31, %v1396_v36  ;;  %v6011_v35 = vld [vmem:[%s7919_s8 + $0x18] sm:$0xff]  }
 0x2e3   : > { %v5255_v39 = vpop.f32.mrf.mxu0 }
 0x2e4   : > { %v1401_v40 = vmax.f32 %v1397_v38, 0.0 }
 0x2e6   : > { %1422 = vst.msk [vmem:[#allocation2 + $0x10] sm:$0xff] %vm1419_vm3, %v1401_v40 }
 0x2ed   : > { %v1425_v42 = vld [vmem:[#allocation2 + $0x7] ss:$2 sm:$0xff]  ;;  %v1427_v43 = vld [vmem:[#allocation2 + $0x8] ss:$2 sm:$0xff] }
 0x2ee   : > { %v1429_v44 = vld [vmem:[#allocation2 + $0x9] ss:$2 sm:$0xff]  ;;  %v1431_v45 = vld [vmem:[#allocation2 + $0xa] ss:$2 sm:$0xff]  ;;  %1563 = vst.msk [vmem:[#allocation2] sm:$0xff] %vm1419_vm3, %v6876_v0  ;;  %1433 = vrot.lane.b32.xlu1 %v1427_v43, %s6880_s5 }
 0x2ef   : > { %1565 = vst.msk [vmem:[#allocation2 + $0x10] sm:$0xff] %vm1419_vm3, %v6876_v0  ;;  %4048 = vst.msk [vmem:[#allocation2 + $0x18] sm:$0xff] %vm1419_vm3, %v6876_v0  ;;  %1441 = vrot.lane.b32.xlu0 %v1431_v45, %s6881_s26  ;;  %v4921_v45 = vld [vmem:[#allocation30 + $0x1] ss:$0 sm:$0xff] }
 0x2f2   : > { %1437 = vrot.lane.b32.xlu1 %v1429_v44, %s6882_s10  ;;  %v6012_v44 = vld [vmem:[%s7919_s8 + $0x10] sm:$0xff]  }
 0x360   : > { %v1434_v46 = vpop.permute.xlu1 %1433 }
 0x361   : > { %v1444_v47 = vsel %vm1419_vm3, %v1425_v42, %v1434_v46  ;;  %v1442_v49 = vpop.permute.xlu0 %1441 }
 0x364   : > { %v1438_v48 = vpop.permute.xlu1 %1437 }
 0x365   : > { %v1446_v50 = vsel %vm1445_vm6, %v1444_v47, %v1438_v48 }
 0x366   : > { %v1448_v51 = vsel %vm1447_vm7, %v1446_v50, %v1442_v49 }
 0x367   : > { %v1449_v52 = vpack.c.bf16 %v1448_v51, %v1448_v51 }
 0x369   : > { %5273 = vmatmul.mubr.bf16.vlgmr.msra.gmra.mxu1 %v1449_v52 }
 0x36a   : > { %5312 = vmatprep.mubr.msk.bf16.mxu1 %vm6877_vm2, %v6876_v0  ;;  %5301 = vmatpush3.bf16.msra.mxu1 %v6005_v21  ;;  %v4933_v21 = vld [vmem:[#allocation27 + $0x1] ss:$0 sm:$0xff] }
 0x36b   : > { %5302 = vmatprep.subr.bf16.mxu1 %v6876_v0 }
 0x36e   : > { %5303 = vmatpush3.bf16.msra.mxu1 %v6006_v22  ;;  %v6026_v22 = vld [vmem:[#allocation33 + $0x60] sm:$0xff]  }
 0x36f   : > { %5304 = vmatprep.subr.bf16.mxu1 %v6876_v0 }
 0x372   : > { %5305 = vmatpush3.bf16.msra.mxu1 %v6007_v23 }
 0x373   : > { %5306 = vmatprep.subr.bf16.mxu1 %v6876_v0 }
 0x376   : > { %5307 = vmatpush3.bf16.msra.mxu1 %v6008_v24 }
 0x377   : > { %5308 = vmatprep.subr.bf16.mxu1 %v6876_v0 }
 0x37a   : > { %5309 = vmatpush3.bf16.msra.mxu1 %v6009_v25 }
 0x37b   : > { %5310 = vmatprep.subr.bf16.mxu1 %v6876_v0 }
 0x37e   : > { %5311 = vmatpush3.bf16.msra.mxu1 %v6010_v30 }
 0x37f   : > { %5344 = vmatprep.subr.bf16.mxu1 %v6876_v0 }
 0x429   : > { %v1538_v59 = vpop.f32.mrf.mxu1 }
 0x42a   : > { %v1539_v61 = vadd.f32 %v4896_v58, %v1538_v59  ;;  %v6018_v58 = vld [vmem:[#allocation29 + $0x50] sm:$0xff]   ;;  %v4929_v59 = vld [vmem:[#allocation32 + $0x1] ss:$0 sm:$0xff] }
 0x42b   : > { %v5274_v62 = vpop.f32.mrf.mxu1 }
 0x42c   : > { %v1562_v63 = vmax.f32 %v1539_v61, 0.0 }
 0x42d   : > { %v1541_v1 = vpop.f32.mrf.mxu1 }
 0x42e   : > { %1564 = vst.msk [vmem:[#allocation2 + $0x8] sm:$0xff] %vm1419_vm3, %v1562_v63 }
 0x42f   : > { %v5275_v2 = vpop.f32.mrf.mxu1 }
 0x430   : > { %v6020_v2 = vld [vmem:[#allocation29 + $0x40] sm:$0xff]  }
 0x435   : > { %v1566_v3 = vld [vmem:[#allocation2 + $0x7] sm:$0xff] }
 0x436   : > { %v1568_v4 = vld [vmem:[#allocation2 + $0x9] sm:$0xff]  ;;  %1752 = vst.msk [vmem:[#allocation2] sm:$0xff] %vm1419_vm3, %v6876_v0 }
 0x437   : > { %v1567_v5 = vld [vmem:[#allocation2 + $0x8] sm:$0xff]  ;;  %1754 = vst.msk [vmem:[#allocation2 + $0x10] sm:$0xff] %vm1419_vm3, %v6876_v0  ;;  %1574 = vrot.lane.b32.xlu0 %v1568_v4, %s6882_s10 }
 0x438   : > { %1570 = vrot.lane.b32.xlu1 %v1567_v5, %s6880_s5 }
 0x4a9   : > { %v1575_v6 = vpop.permute.xlu0 %1574 }
 0x4aa   : > { %v1571_v7 = vpop.permute.xlu1 %1570 }
 0x4ab   : > { %v1577_v8 = vsel %vm1419_vm3, %v1566_v3, %v1571_v7 }
 0x4ac   : > { %v1578_v9 = vsel %vm1445_vm6, %v1577_v8, %v1575_v6 }
 0x4ad   : > { %v1579_v11 = vpack.c.bf16 %v1578_v9, %v1578_v9 }
 0x4af   : > { %5289 = vmatmul.mubr.msk.bf16.vlgmr.msra.gmra.mxu0 %vm1447_vm7, %v1579_v11 }
 0x4b0   : > { %5293 = vmatpush3.bf16.msra.mxu0 %v6003_v10  ;;  %5296 = vmatprep.mubr.msk.bf16.mxu0 %vm6877_vm2, %v6876_v0 }
 0x4b1   : > { %5294 = vmatprep.subr.bf16.mxu0 %v6876_v0 }
 0x4b4   : > { %5295 = vmatpush3.bf16.msra.mxu0 %v6004_v12 }
 0x4b5   : > { %5316 = vmatprep.subr.bf16.mxu0 %v6876_v0 }
 0x56f   : > { %v1659_v14 = vpop.f32.mrf.mxu0 }
 0x570   : > { %v1660_v15 = vadd.f32 %v4905_v13, %v1659_v14 }
 0x571   : > { %v5290_v16 = vpop.f32.mrf.mxu0 }
 0x572   : > { %v1665_v17 = vmax.f32 %v1660_v15, 0.0  ;;  %v6021_v16 = vld [vmem:[#allocation33 + $0x88] sm:$0xff]  }
 0x573   : > { %v1662_v18 = vpop.f32.mrf.mxu0 }
 0x574   : > { %v1666_v19 = vpack.c.bf16 %v1665_v17, %v1665_v17  ;;  %v6022_v17 = vld [vmem:[#allocation33 + $0x80] sm:$0xff]   ;;  %v6023_v18 = vld [vmem:[#allocation33 + $0x78] sm:$0xff]  }
 0x575   : > { %v5291_v20 = vpop.f32.mrf.mxu0 }
 0x576   : > { %5297 = vmatmul.mubr.msk.bf16.vlgmr.msra.gmra.mxu0 %vm1419_vm3, %v1666_v19  ;;  %v6024_v19 = vld [vmem:[#allocation33 + $0x70] sm:$0xff]   ;;  %v6025_v20 = vld [vmem:[#allocation33 + $0x68] sm:$0xff]  }
 0x577   : > { %5320 = vmatprep.mubr.msk.bf16.mxu0 %vm6877_vm2, %v6876_v0  ;;  %5317 = vmatpush3.bf16.msra.mxu0 %v6011_v35 }
 0x578   : > { %5318 = vmatprep.subr.bf16.mxu0 %v6876_v0 }
 0x57b   : > { %5319 = vmatpush3.bf16.msra.mxu0 %v6012_v44 }
 0x57c   : > { %5324 = vmatprep.subr.bf16.mxu0 %v6876_v0 }
 0x636   : > { %v1722_v27 = vpop.f32.mrf.mxu0 }
 0x637   : > { %v1723_v28 = vadd.f32 %v4913_v26, %v1722_v27 }
 0x638   : > { %v5298_v29 = vpop.f32.mrf.mxu0 }
 0x639   : > { %v1728_v31 = vadd.f32 %v1723_v28, %v1539_v61  ;;  %v6027_v28 = vld [vmem:[%s7919_s8 + $0x28] sm:$0xff]  }
 0x63a   : > { %v1725_v32 = vpop.f32.mrf.mxu0 }
 0x63b   : > { %v1751_v33 = vmax.f32 %v1728_v31, 0.0 }
 0x63c   : > { %v5299_v34 = vpop.f32.mrf.mxu0 }
 0x63d   : > { %1753 = vst.msk [vmem:[#allocation2 + $0x8] sm:$0xff] %vm1419_vm3, %v1751_v33 }
 0x644   : > { %v1755_v36 = vld [vmem:[#allocation2 + $0x5] sm:$0xff] }
 0x645   : > { %v1757_v37 = vld [vmem:[#allocation2 + $0xb] sm:$0xff]  ;;  %1937 = vst.msk [vmem:[#allocation2] sm:$0xff] %vm1419_vm3, %v6876_v0 }
 0x646   : > { %v1756_v38 = vld [vmem:[#allocation2 + $0x8] sm:$0xff]  ;;  %1939 = vst.msk [vmem:[#allocation2 + $0x10] sm:$0xff] %vm1419_vm3, %v6876_v0  ;;  %1763 = vrot.lane.b32.xlu0 %v1757_v37, %s6882_s10 }
 0x647   : > { %1759 = vrot.lane.b32.xlu1 %v1756_v38, %s6880_s5  ;;  %v6028_v38 = vld [vmem:[%s7919_s8 + $0x20] sm:$0xff]  }
 0x6b8   : > { %v1764_v39 = vpop.permute.xlu0 %1763 }
 0x6b9   : > { %v1760_v40 = vpop.permute.xlu1 %1759 }
 0x6ba   : > { %v1766_v41 = vsel %vm1419_vm3, %v1755_v36, %v1760_v40 }
 0x6bb   : > { %v1767_v42 = vsel %vm1445_vm6, %v1766_v41, %v1764_v39  ;;  %v4946_v39 = vld [vmem:[#allocation30 + $0x2] ss:$0 sm:$0xff] }
 0x6bc   : > { %v1768_v43 = vpack.c.bf16 %v1767_v42, %v1767_v42 }
 0x6be   : > { %5313 = vmatmul.mubr.msk.bf16.vlgmr.msra.gmra.mxu1 %vm1447_vm7, %v1768_v43 }
 0x6bf   : > { %5356 = vmatprep.mubr.msk.bf16.mxu1 %vm6877_vm2, %v6876_v0  ;;  %5345 = vmatpush3.bf16.msra.mxu1 %v6021_v16  ;;  %v6037_v16 = vld [vmem:[#allocation26 + $0x28] sm:$0xff]  }
 0x6c0   : > { %5346 = vmatprep.subr.bf16.mxu1 %v6876_v0 }
 0x6c3   : > { %5347 = vmatpush3.bf16.msra.mxu1 %v6022_v17  ;;  %v6038_v17 = vld [vmem:[#allocation26 + $0x20] sm:$0xff]  }
 0x6c4   : > { %5348 = vmatprep.subr.bf16.mxu1 %v6876_v0 }
 0x6c7   : > { %5349 = vmatpush3.bf16.msra.mxu1 %v6023_v18  ;;  %v6039_v18 = vld [vmem:[#allocation26 + $0x18] sm:$0xff]  }
 0x6c8   : > { %5350 = vmatprep.subr.bf16.mxu1 %v6876_v0 }
 0x6cb   : > { %5351 = vmatpush3.bf16.msra.mxu1 %v6024_v19  ;;  %v6040_v19 = vld [vmem:[#allocation26 + $0x10] sm:$0xff]  }
 0x6cc   : > { %5352 = vmatprep.subr.bf16.mxu1 %v6876_v0 }
 0x6cf   : > { %5353 = vmatpush3.bf16.msra.mxu1 %v6025_v20  ;;  %v6041_v20 = vld [vmem:[#allocation26 + $0x8] sm:$0xff]  }
 0x6d0   : > { %5354 = vmatprep.subr.bf16.mxu1 %v6876_v0 }
 0x6d3   : > { %5355 = vmatpush3.bf16.msra.mxu1 %v6026_v22  ;;  %v6042_v22 = vld [vmem:[#allocation26] sm:$0xff]  }
 0x6d4   : > { %5368 = vmatprep.subr.bf16.mxu1 %v6876_v0 }
 0x77e   : > { %v1848_v46 = vpop.f32.mrf.mxu1 }
 0x77f   : > { %v1849_v47 = vadd.f32 %v4921_v45, %v1848_v46 }
 0x780   : > { %v5314_v48 = vpop.f32.mrf.mxu1 }
 0x781   : > { %v1854_v49 = vmax.f32 %v1849_v47, 0.0  ;;  %v6029_v47 = vld [vmem:[#allocation33 + $0xb8] sm:$0xff]   ;;  %v6030_v48 = vld [vmem:[#allocation33 + $0xb0] sm:$0xff]  }
 0x782   : > { %v1851_v50 = vpop.f32.mrf.mxu1 }
 0x783   : > { %v1855_v51 = vpack.c.bf16 %v1854_v49, %v1854_v49  ;;  %v6031_v49 = vld [vmem:[#allocation33 + $0xa8] sm:$0xff]   ;;  %v6032_v50 = vld [vmem:[#allocation33 + $0xa0] sm:$0xff]  }
 0x784   : > { %v5315_v52 = vpop.f32.mrf.mxu1 }
 0x785   : > { %5321 = vmatmul.mubr.msk.bf16.vlgmr.msra.gmra.mxu0 %vm1419_vm3, %v1855_v51  ;;  %v6033_v51 = vld [vmem:[#allocation33 + $0x98] sm:$0xff]  }
 0x786   : > { %5340 = vmatprep.mubr.msk.bf16.mxu0 %vm6877_vm2, %v6876_v0  ;;  %5325 = vmatpush3.bf16.msra.mxu0 %v6013_v53  ;;  %v4954_v52 = vld [vmem:[#allocation32 + $0x2] ss:$0 sm:$0xff] }
 0x787   : > { %5326 = vmatprep.subr.bf16.mxu0 %v6876_v0 }
 0x78a   : > { %5327 = vmatpush3.bf16.msra.mxu0 %v6014_v54 }
 0x78b   : > { %5328 = vmatprep.subr.bf16.mxu0 %v6876_v0 }
 0x78e   : > { %5329 = vmatpush3.bf16.msra.mxu0 %v6015_v55  ;;  %v6034_v55 = vld [vmem:[#allocation33 + $0x90] sm:$0xff]  }
 0x78f   : > { %5330 = vmatprep.subr.bf16.mxu0 %v6876_v0 }
 0x792   : > { %5331 = vmatpush3.bf16.msra.mxu0 %v6016_v56 }
 0x793   : > { %5332 = vmatprep.subr.bf16.mxu0 %v6876_v0 }
 0x796   : > { %5333 = vmatpush3.bf16.msra.mxu0 %v6017_v57 }
 0x797   : > { %5334 = vmatprep.subr.bf16.mxu0 %v6876_v0 }
 0x79a   : > { %5335 = vmatpush3.bf16.msra.mxu0 %v6018_v58 }
 0x79b   : > { %5336 = vmatprep.subr.bf16.mxu0 %v6876_v0 }
 0x79e   : > { %5337 = vmatpush3.bf16.msra.mxu0 %v6019_v60 }
 0x79f   : > { %5338 = vmatprep.subr.bf16.mxu0 %v6876_v0 }
 0x7a2   : > { %5339 = vmatpush3.bf16.msra.mxu0 %v6020_v2 }
 0x7a3   : > { %5360 = vmatprep.subr.bf16.mxu0 %v6876_v0 }
 0x845   : > { %v1911_v61 = vpop.f32.mrf.mxu0 }
 0x846   : > { %v1912_v62 = vadd.f32 %v4929_v59, %v1911_v61  ;;  %v6035_v61 = vld [vmem:[%s7919_s8 + $0x38] sm:$0xff]  }
 0x847   : > { %v5322_v63 = vpop.f32.mrf.mxu0 }
 0x848   : > { %v1917_v1 = vadd.f32 %v1912_v62, %v1728_v31 }
 0x849   : > { %v1914_v3 = vpop.f32.mrf.mxu0 }
 0x84a   : > { %1938 = vst.msk [vmem:[#allocation2 + $0x8] sm:$0xff] %vm1419_vm3, %v1917_v1 }
 0x84b   : > { %v5323_v4 = vpop.f32.mrf.mxu0 }
 0x851   : > { %v1942_v5 = vld [vmem:[#allocation2 + $0x9] ss:$2 sm:$0xf]  ;;  %v1941_v7 = vld [vmem:[#allocation2 + $0x8] ss:$2 sm:$0xf] }
 0x852   : > { %v1940_v6 = vld [vmem:[#allocation2 + $0x7] ss:$2 sm:$0xf]  ;;  %1949 = vrot.lane.b32.xlu0 %v1942_v5, %s6882_s10  ;;  %v1943_v8 = vld [vmem:[#allocation2 + $0xa] ss:$2 sm:$0xf]  ;;  %1945 = vrot.lane.b32.xlu1 %v1941_v7, %s6880_s5 }
 0x853   : > { %2077 = vst.msk [vmem:[#allocation2] sm:$0xff] %vm1419_vm3, %v6876_v0  ;;  %2080 = vst.msk [vmem:[#allocation2 + $0xc] sm:$0xff] %vm1419_vm3, %v6876_v0  ;;  %v6036_v7 = vld [vmem:[%s7919_s8 + $0x30] sm:$0xff]  }
 0x856   : > { %1953 = vrot.lane.b32.xlu1 %v1943_v8, %s6881_s26  ;;  %v4962_v8 = vld [vmem:[#allocation30 + $0x3] ss:$0 sm:$0xff]  ;;  %s4458_s26 = scalar_lea.sflag [#allocation5], %s1270_s16 }
 0x8c4   : > { %v1946_v9 = vpop.permute.xlu1 %1945  ;;  %v1950_v10 = vpop.permute.xlu0 %1949 }
 0x8c5   : > { %v1956_v11 = vsel %vm1419_vm3, %v1940_v6, %v1946_v9 }
 0x8c6   : > { %v1957_v13 = vsel %vm1445_vm6, %v1956_v11, %v1950_v10 }
 0x8c8   : > { %v1954_v12 = vpop.permute.xlu1 %1953 }
 0x8c9   : > { %v1958_v14 = vsel %vm1447_vm7, %v1957_v13, %v1954_v12 }
 0x8ca   : > { %v1959_v15 = vpack.c.bf16 %v1958_v14, %v1958_v14 }
 0x8cc   : > { %5341 = vmatmul.mubr.bf16.vlgmr.msra.gmra.mxu0 %v1959_v15 }
 0x8cd   : > { %5364 = vmatprep.mubr.msk.bf16.mxu0 %vm6877_vm2, %v6876_v0  ;;  %5361 = vmatpush3.bf16.msra.mxu0 %v6027_v28 }
 0x8ce   : > { %5362 = vmatprep.subr.bf16.mxu0 %v6876_v0 }
 0x8d1   : > { %5363 = vmatpush3.bf16.msra.mxu0 %v6028_v38  ;;  %v6044_v38 = vld [vmem:[%s7920_s13] sm:$0xff]  }
 0x8d2   : > { %5384 = vmatprep.subr.bf16.mxu0 %v6876_v0 }
 0x98c   : > { %v2048_v23 = vpop.f32.mrf.mxu0 }
 0x98d   : > { %v2049_v24 = vadd.f32 %v4933_v21, %v2048_v23  ;;  %v4970_v21 = vld [vmem:[#allocation32 + $0x3] ss:$0 sm:$0xff] }
 0x98e   : > { %v5342_v25 = vpop.f32.mrf.mxu0 }
 0x98f   : > { %v2076_v26 = vmax.f32 %v2049_v24, 0.0 }
 0x990   : > { %v2051_v27 = vpop.f32.mrf.mxu0 }
 0x991   : > { %2079 = vst.msk [vmem:[#allocation2 + $0x8] sm:$0xf] %vm2078_vm8, %v2076_v26 }
 0x992   : > { %v5343_v29 = vpop.f32.mrf.mxu0 }
 0x998   : > { %v2083_v30 = vld [vmem:[#allocation2 + $0x9] sm:$0xf] }
 0x999   : > { %v2082_v31 = vld [vmem:[#allocation2 + $0x8] sm:$0xf]  ;;  %2089 = vrot.lane.b32.xlu1 %v2083_v30, %s6882_s10  ;;  %2269 = vst.msk [vmem:[#allocation2 + $0xc] sm:$0xff] %vm1419_vm3, %v6876_v0 }
 0x99a   : > { %v2081_v32 = vld [vmem:[#allocation2 + $0x7] sm:$0xf]  ;;  %2085 = vrot.lane.b32.xlu0 %v2082_v31, %s6880_s5 }
 0x99b   : > { %2267 = vst.msk [vmem:[#allocation2] sm:$0xff] %vm1419_vm3, %v6876_v0 }
 0xa0b   : > { %v2090_v33 = vpop.permute.xlu1 %2089 }
 0xa0c   : > { %v2086_v34 = vpop.permute.xlu0 %2085 }
 0xa0d   : > { %v2092_v35 = vsel %vm1419_vm3, %v2081_v32, %v2086_v34 }
 0xa0e   : > { %v2093_v36 = vsel %vm1445_vm6, %v2092_v35, %v2090_v33 }
 0xa0f   : > { %v2094_v37 = vpack.c.bf16 %v2093_v36, %v2093_v36  ;;  %v6043_v36 = vld [vmem:[%s7920_s13 + $0x8] sm:$0xff]  }
 0xa11   : > { %5357 = vmatmul.mubr.msk.bf16.vlgmr.msra.gmra.mxu1 %vm1447_vm7, %v2094_v37 }
 0xa12   : > { %5380 = vmatprep.mubr.msk.bf16.mxu1 %vm6877_vm2, %v6876_v0  ;;  %5369 = vmatpush3.bf16.msra.mxu1 %v6029_v47  ;;  %v2617_v47 = vld [vmem:[#allocation35 + $0x10] sm:$0xff] }
 0xa13   : > { %5370 = vmatprep.subr.bf16.mxu1 %v6876_v0 }
 0xa16   : > { %5371 = vmatpush3.bf16.msra.mxu1 %v6030_v48  ;;  %v2618_v48 = vld [vmem:[#allocation35 + $0x18] sm:$0xff] }
 0xa17   : > { %5372 = vmatprep.subr.bf16.mxu1 %v6876_v0 }
 0xa1a   : > { %5373 = vmatpush3.bf16.msra.mxu1 %v6031_v49  ;;  %v2626_v49 = vpack.c.bf16 %v2618_v48, %v2617_v47 }
 0xa1b   : > { %5374 = vmatprep.subr.bf16.mxu1 %v6876_v0 }
 0xa1e   : > { %5375 = vmatpush3.bf16.msra.mxu1 %v6032_v50  ;;  %v2636_v50 = vsel %vm1332_vm4, %v2626_v49, 0 }
 0xa1f   : > { %5376 = vmatprep.subr.bf16.mxu1 %v6876_v0 }
 0xa22   : > { %5377 = vmatpush3.bf16.msra.mxu1 %v6033_v51  ;;  %v2615_v51 = vld [vmem:[#allocation35] sm:$0xff] }
 0xa23   : > { %5378 = vmatprep.subr.bf16.mxu1 %v6876_v0 }
 0xa26   : > { %5379 = vmatpush3.bf16.msra.mxu1 %v6034_v55  ;;  %v4974_v55 = vld [vmem:[#allocation24] ss:$0 sm:$0xff] }
 0xa27   : > { %5416 = vmatprep.subr.bf16.mxu1 %v6876_v0 }
 0xad1   : > { %v2174_v40 = vpop.f32.mrf.mxu1 }
 0xad2   : > { %v2175_v41 = vadd.f32 %v4946_v39, %v2174_v40  ;;  %v2621_v39 = vld [vmem:[#allocation35 + $0x30] sm:$0xff]  ;;  %v2622_v40 = vld [vmem:[#allocation35 + $0x38] sm:$0xff] }
 0xad3   : > { %v5358_v42 = vpop.f32.mrf.mxu1 }
 0xad4   : > { %v2180_v43 = vmax.f32 %v2175_v41, 0.0  ;;  %v2628_v41 = vpack.c.bf16 %v2622_v40, %v2621_v39  ;;  %v2619_v42 = vld [vmem:[#allocation35 + $0x20] sm:$0xff] }
 0xad5   : > { %v2177_v44 = vpop.f32.mrf.mxu1 }
 0xad6   : > { %v2181_v45 = vpack.c.bf16 %v2180_v43, %v2180_v43  ;;  %v2620_v43 = vld [vmem:[#allocation35 + $0x28] sm:$0xff]  ;;  %v2642_v44 = vsel %vm1332_vm4, %v2628_v41, 0  ;;  %v4990_v41 = vld [vmem:[#allocation38] ss:$0 sm:$0xff] }
 0xad7   : > { %v5359_v46 = vpop.f32.mrf.mxu1 }
 0xad8   : > { %5365 = vmatmul.mubr.msk.bf16.vlgmr.msra.gmra.mxu0 %vm1419_vm3, %v2181_v45  ;;  %v2627_v45 = vpack.c.bf16 %v2620_v43, %v2619_v42 }
 0xad9   : > { %5388 = vmatprep.mubr.msk.bf16.mxu0 %vm6877_vm2, %v6876_v0  ;;  %5385 = vmatpush3.bf16.msra.mxu0 %v6035_v61 }
 0xada   : > { %5386 = vmatprep.subr.bf16.mxu0 %v6876_v0  ;;  %v2639_v46 = vsel %vm1332_vm4, %v2627_v45, 0 }
 0xadd   : > { %5387 = vmatpush3.bf16.msra.mxu0 %v6036_v7  ;;  %v4987_v7 = vld [vmem:[%s7921_s0] ss:$0 sm:$0xff]  ;;  %s6885_s0 = smov [#allocation39]  }
 0xade   : > { %5392 = vmatprep.subr.bf16.mxu0 %v6876_v0  ;;  %s6710_s21 = sshll.u32 %s6885_s0, 4  ;;  %s6711_s21 = int_to_ptr.vmem [resolvable:$false] %s6710_s21 }
 0xadf   : > { %p6713_p5 = scmp.lt.s32.totalorder %s4479_s1, %s6711_s21 }
 0xb98   : > { %v2237_v53 = vpop.f32.mrf.mxu0 }
 0xb99   : > { %v2238_v54 = vadd.f32 %v4954_v52, %v2237_v53  ;;  %v2616_v52 = vld [vmem:[#allocation35 + $0x8] sm:$0xff] }
 0xb9a   : > { %v5366_v56 = vpop.f32.mrf.mxu0  ;;  %v2625_v53 = vpack.c.bf16 %v2616_v52, %v2615_v51 }
 0xb9b   : > { %v2243_v57 = vadd.f32 %v2238_v54, %v2049_v24 }
 0xb9c   : > { %v2240_v58 = vpop.f32.mrf.mxu0  ;;  %v2633_v54 = vsel %vm1332_vm4, %v2625_v53, 0 }
 0xb9d   : > { %v2266_v59 = vmax.f32 %v2243_v57, 0.0 }
 0xb9e   : > { %v5367_v60 = vpop.f32.mrf.mxu0 }
 0xb9f   : > { %2268 = vst.msk [vmem:[#allocation2 + $0x8] sm:$0xf] %vm2078_vm8, %v2266_v59 }
 0xba6   : > { %v2272_v62 = vld [vmem:[#allocation2 + $0xb] sm:$0xf]  ;;  %v2270_v1 = vld [vmem:[#allocation2 + $0x5] sm:$0xf] }
 0xba7   : > { %v2271_v63 = vld [vmem:[#allocation2 + $0x8] sm:$0xf]  ;;  %2278 = vrot.lane.b32.xlu1 %v2272_v62, %s6882_s10  ;;  %2448 = vst.msk [vmem:[#allocation2 + $0xc] sm:$0xff] %vm1419_vm3, %v6876_v0  ;;  %2446 = vst.msk [vmem:[#allocation2] sm:$0xff] %vm1419_vm3, %v6876_v0  ;;  %v4982_v62 = vld [vmem:[#allocation36] ss:$0 sm:$0xff] }
 0xba8   : > { %2274 = vrot.lane.b32.xlu0 %v2271_v63, %s6880_s5 }
 0xc19   : > { %v2279_v2 = vpop.permute.xlu1 %2278 }
 0xc1a   : > { %v2275_v3 = vpop.permute.xlu0 %2274 }
 0xc1b   : > { %v2281_v4 = vsel %vm1419_vm3, %v2270_v1, %v2275_v3 }
 0xc1c   : > { %v2282_v5 = vsel %vm1445_vm6, %v2281_v4, %v2279_v2 }
 0xc1d   : > { %v2283_v6 = vpack.c.bf16 %v2282_v5, %v2282_v5 }
 0xc1f   : > { %5381 = vmatmul.mubr.msk.bf16.vlgmr.msra.gmra.mxu1 %vm1447_vm7, %v2283_v6 }
 0xc20   : > { %5424 = vmatprep.mubr.msk.bf16.mxu1 %vm6877_vm2, %v6876_v0  ;;  %5417 = vmatpush3.bf16.xpose.msra.mxu1 %v2642_v44 }
 0xc21   : > { %5418 = vmatprep.subr.bf16.mxu1 %v6876_v0 }
 0xc28   : > { %5419 = vmatpush3.bf16.xpose.msra.mxu1 %v2639_v46 }
 0xc29   : > { %5420 = vmatprep.subr.bf16.mxu1 %v6876_v0 }
 0xc30   : > { %5421 = vmatpush3.bf16.xpose.msra.mxu1 %v2636_v50 }
 0xc31   : > { %5422 = vmatprep.subr.bf16.mxu1 %v6876_v0 }
 0xc38   : > { %5423 = vmatpush3.bf16.xpose.msra.mxu1 %v2633_v54 }
 0xc39   : > { %5469 = vmatprep.subr.bf16.mxu1 %v6876_v0 }
 0xcdf   : > { %v2363_v9 = vpop.f32.mrf.mxu1 }
 0xce0   : > { %v2364_v10 = vadd.f32 %v4962_v8, %v2363_v9 }
 0xce1   : > { %v5382_v11 = vpop.f32.mrf.mxu1 }
 0xce2   : > { %v2369_v12 = vmax.f32 %v2364_v10, 0.0 }
 0xce3   : > { %v2366_v13 = vpop.f32.mrf.mxu1 }
 0xce4   : > { %v2370_v14 = vpack.c.bf16 %v2369_v12, %v2369_v12 }
 0xce5   : > { %v5383_v15 = vpop.f32.mrf.mxu1 }
 0xce6   : > { %5389 = vmatmul.mubr.msk.bf16.vlgmr.msra.gmra.mxu0 %vm1419_vm3, %v2370_v14  ;;  %v2696_v14 = vlaneseq }
 0xce7   : > { %5404 = vmatprep.mubr.msk.bf16.mxu0 %vm6877_vm2, %v6876_v0  ;;  %5393 = vmatpush3.bf16.msra.mxu0 %v6037_v16 }
 0xce8   : > { %5394 = vmatprep.subr.bf16.mxu0 %v6876_v0  ;;  %v2697_v15 = vand.u32 127, %v2696_v14 }
 0xceb   : > { %5395 = vmatpush3.bf16.msra.mxu0 %v6038_v17 }
 0xcec   : > { %5396 = vmatprep.subr.bf16.mxu0 %v6876_v0 }
 0xcef   : > { %5397 = vmatpush3.bf16.msra.mxu0 %v6039_v18 }
 0xcf0   : > { %5398 = vmatprep.subr.bf16.mxu0 %v6876_v0 }
 0xcf3   : > { %5399 = vmatpush3.bf16.msra.mxu0 %v6040_v19 }
 0xcf4   : > { %5400 = vmatprep.subr.bf16.mxu0 %v6876_v0 }
 0xcf7   : > { %5401 = vmatpush3.bf16.msra.mxu0 %v6041_v20 }
 0xcf8   : > { %5402 = vmatprep.subr.bf16.mxu0 %v6876_v0 }
 0xcfb   : > { %5403 = vmatpush3.bf16.msra.mxu0 %v6042_v22 }
 0xcfc   : > { %5408 = vmatprep.subr.bf16.mxu0 %v6876_v0 }
 0xda6   : > { %v2426_v23 = vpop.f32.mrf.mxu0 }
 0xda7   : > { %v2427_v24 = vadd.f32 %v4970_v21, %v2426_v23 }
 0xda8   : > { %v5390_v25 = vpop.f32.mrf.mxu0 }
 0xda9   : > { %v2432_v26 = vadd.f32 %v2427_v24, %v2243_v57 }
 0xdaa   : > { %v2429_v27 = vpop.f32.mrf.mxu0 }
 0xdab   : > { %2447 = vst.msk [vmem:[#allocation2 + $0x8] sm:$0xf] %vm2078_vm8, %v2432_v26 }
 0xdac   : > { %v5391_v28 = vpop.f32.mrf.mxu0 }
 0xdb2   : > { %v2451_v29 = vld [vmem:[#allocation2 + $0x9] sm:$0xf] }
 0xdb3   : > { %v2450_v30 = vld [vmem:[#allocation2 + $0x8] sm:$0xf]  ;;  %2457 = vrot.lane.b32.xlu1 %v2451_v29, %s6882_s10  ;;  %2885 = vst.msk [vmem:[#allocation2 + $0xc] sm:$0xff] %vm1419_vm3, %v6876_v0 }
 0xdb4   : > { %v2449_v31 = vld [vmem:[#allocation2 + $0x7] sm:$0xf]  ;;  %2453 = vrot.lane.b32.xlu0 %v2450_v30, %s6880_s5 }
 0xdb5   : > { %2883 = vst.msk [vmem:[#allocation2] sm:$0xff] %vm1419_vm3, %v6876_v0  ;;  %v6045_v30 = vld [vmem:[%s7034_s27] sm:$0xff]  }
 0xe25   : > { %v2458_v32 = vpop.permute.xlu1 %2457 }
 0xe26   : > { %v2454_v33 = vpop.permute.xlu0 %2453 }
 0xe27   : > { %v2460_v34 = vsel %vm1419_vm3, %v2449_v31, %v2454_v33 }
 0xe28   : > { %v2461_v35 = vsel %vm1445_vm6, %v2460_v34, %v2458_v32 }
 0xe29   : > { %v2462_v37 = vpack.c.bf16 %v2461_v35, %v2461_v35  ;;  %v6046_v35 = vld [vmem:[#allocation6 + $0x28] sm:$0xff]  }
 0xe2b   : > { %5405 = vmatmul.mubr.msk.bf16.vlgmr.msra.gmra.mxu0 %vm1447_vm7, %v2462_v37  ;;  %v6048_v37 = vld [vmem:[#allocation6 + $0x18] sm:$0xff]  }
 0xe2c   : > { %5409 = vmatpush3.bf16.msra.mxu0 %v6043_v36  ;;  %5412 = vmatprep.mubr.msk.bf16.mxu0 %vm6877_vm2, %v6876_v0  ;;  %v6047_v36 = vld [vmem:[#allocation6 + $0x20] sm:$0xff]  }
 0xe2d   : > { %5410 = vmatprep.subr.bf16.mxu0 %v6876_v0 }
 0xe30   : > { %5411 = vmatpush3.bf16.msra.mxu0 %v6044_v38  ;;  %v6049_v38 = vld [vmem:[#allocation6 + $0x10] sm:$0xff]  }
 0xe31   : > { %5428 = vmatprep.subr.mxu0 %v6876_v0 }
 0xeeb   : > { %v2542_v56 = vpop.f32.mrf.mxu0 }
 0xeec   : > { %v2543_v57 = vadd.f32 %v4974_v55, %v2542_v56  ;;  %v6052_v55 = vld [vmem:[#allocation17 + $0x28] sm:$0xff]   ;;  %v6053_v56 = vld [vmem:[#allocation17 + $0x20] sm:$0xff]  }
 0xeed   : > { %v5406_v58 = vpop.f32.mrf.mxu0 }
 0xeee   : > { %v2553_v59 = vpack.c.bf16 %v2543_v57, %v2543_v57  ;;  %v6054_v57 = vld [vmem:[#allocation17 + $0x18] sm:$0xff]   ;;  %v6055_v58 = vld [vmem:[#allocation17 + $0x10] sm:$0xff]  }
 0xeef   : > { %v2545_v60 = vpop.f32.mrf.mxu0 }
 0xef0   : > { %5413 = vmatmul.mubr.msk.bf16.vlgmr.msra.gmra.mxu0 %vm1419_vm3, %v2553_v59  ;;  %v6056_v59 = vld [vmem:[#allocation17 + $0x8] sm:$0xff]   ;;  %v4993_v60 = vld [vmem:[#allocation3] ss:$0 sm:$0xff] }
 0xef1   : > { %v5407_v61 = vpop.f32.mrf.mxu0  ;;  %5429 = vmatpush3.msra.mxu0 %v2622_v40  ;;  %5444 = vmatprep.mubr.msk.f32.mxu0 %vm6877_vm2, %v6876_v0  ;;  %v6051_v40 = vld [vmem:[#allocation6] sm:$0xff]  }
 0xef2   : > { %5430 = vmatprep.subr.mxu0 %v6876_v0 }
 0xef3   : > { %5431 = vmatpush3.msra.mxu0 %v2621_v39  ;;  %v6050_v39 = vld [vmem:[#allocation6 + $0x8] sm:$0xff]  }
 0xef4   : > { %5432 = vmatprep.subr.mxu0 %v6876_v0 }
 0xef5   : > { %5433 = vmatpush3.msra.mxu0 %v2620_v43 }
 0xef6   : > { %5434 = vmatprep.subr.mxu0 %v6876_v0 }
 0xef7   : > { %5435 = vmatpush3.msra.mxu0 %v2619_v42 }
 0xef8   : > { %5436 = vmatprep.subr.mxu0 %v6876_v0 }
 0xef9   : > { %5437 = vmatpush3.msra.mxu0 %v2618_v48 }
 0xefa   : > { %5438 = vmatprep.subr.mxu0 %v6876_v0 }
 0xefb   : > { %5439 = vmatpush3.msra.mxu0 %v2617_v47 }
 0xefc   : > { %5440 = vmatprep.subr.mxu0 %v6876_v0 }
 0xefd   : > { %5441 = vmatpush3.msra.mxu0 %v2616_v52 }
 0xefe   : > { %5442 = vmatprep.subr.mxu0 %v6876_v0 }
 0xeff   : > { %5443 = vmatpush3.msra.mxu0 %v2615_v51 }
 0xf00   : > { %5447 = vmatprep.subr.bf16.mxu0 %v6876_v0 }
 0xfb0   : > { %v2609_v63 = vpop.f32.mrf.mxu0 }
 0xfb1   : > { %v7546_v1 = vadd.f32 %v4982_v62, %v2609_v63  ;;  %v6057_v63 = vld [vmem:[#allocation17] sm:$0xff]  }
 0xfb2   : > { %v5414_v2 = vpop.f32.mrf.mxu0 }
 0xfb3   : > { %v2624_v3 = vpack.c.bf16 %v7546_v1, %v7546_v1 }
 0xfb4   : > { %v2612_v4 = vpop.f32.mrf.mxu0 }
 0xfb5   : > { %5425 = vmatmul.mubr.msk.bf16.vlgmr.msra.gmra.mxu1 %vm1332_vm4, %v2624_v3 }
 0xfb6   : > { %v5415_v5 = vpop.f32.mrf.mxu0  ;;  %5481 = vmatprep.mubr.msk.bf16.mxu1 %vm6877_vm2, %v6876_v0  ;;  %5470 = vmatpush3.bf16.msra.mxu1 %v6052_v55 }
 0xfb7   : > { %5471 = vmatprep.subr.bf16.mxu1 %v6876_v0 }
 0xfba   : > { %5472 = vmatpush3.bf16.msra.mxu1 %v6053_v56 }
 0xfbb   : > { %5473 = vmatprep.subr.bf16.mxu1 %v6876_v0 }
 0xfbe   : > { %5474 = vmatpush3.bf16.msra.mxu1 %v6054_v57 }
 0xfbf   : > { %5475 = vmatprep.subr.bf16.mxu1 %v6876_v0 }
 0xfc2   : > { %5476 = vmatpush3.bf16.msra.mxu1 %v6055_v58 }
 0xfc3   : > { %5477 = vmatprep.subr.bf16.mxu1 %v6876_v0 }
 0xfc6   : > { %5478 = vmatpush3.bf16.msra.mxu1 %v6056_v59  ;;  %v6068_v59 = vld [vmem:[#allocation21 + $0x28] sm:$0xff]  }
 0xfc7   : > { %5479 = vmatprep.subr.bf16.mxu1 %v6876_v0 }
 0xfca   : > { %5480 = vmatpush3.bf16.msra.mxu1 %v6057_v63  ;;  %v6072_v63 = vld [vmem:[#allocation21 + $0x8] sm:$0xff]  }
 0xfcb   : > { %5493 = vmatprep.subr.bf16.mxu1 %v6876_v0 }
0x1075   : > { %v2678_v6 = vpop.f32.mrf.mxu1 }
0x1076   : > { %v2684_v8 = vmul.f32 2.0, %v2678_v6 }
0x1077   : > { %v5426_v9 = vpop.f32.mrf.mxu1 }
0x1078   : > { %v2691_v10 = vsub.f32 %v4987_v7, %v2684_v8  ;;  %v6058_v7 = vld [vmem:[#allocation18 + $0x8] sm:$0xff]  }
0x1079   : > { %v2681_v11 = vpop.f32.mrf.mxu1 }
0x107a   : > { %v2693_v12 = vsel %vm2692_vm9, %v2691_v10, inf }
0x107b   : > { %2694 = vmin.xlane.f32.xlu0 %v2693_v12  ;;  %v5427_v13 = vpop.f32.mrf.mxu1 }
0x1104   : > { %v2695_v16 = vpop.xlane.xlu0 %2694 }
0x1105   : > { %vm2698_vm10 = vcmp.le.f32.partialorder %v2691_v10, %v2695_v16 }
0x1106   : > { %v2699_v17 = vsel %vm2698_vm10, %v2697_v15, 2147483647 }
0x1107   : > { %v2700_v18 = vsel %vm2692_vm9, %v2699_v17, 2147483647  ;;  %v6059_v17 = vld [vmem:[#allocation18] sm:$0xff]  }
0x1108   : > { %v2702_v19 = vshra.s32 %v2700_v18, 16  ;;  %v2701_v21 = vand.u32 65535, %v2700_v18  ;;  %v5001_v18 = vld [vmem:[#allocation14] ss:$0 sm:$0xff] }
0x110a   : > { %v2704_v20 = vcvt.s32.f32 %v2702_v19  ;;  %v2703_v23 = vcvt.s32.f32 %v2701_v21 }
0x110c   : > { %2705 = vmin.xlane.f32.xlu1 %v2704_v20 }
0x1195   : > { %v2706_v22 = vpop.xlane.xlu1 %2705 }
0x1196   : > { %vm2707_vm11 = vcmp.eq.f32.partialorder %v2704_v20, %v2706_v22  ;;  %v2712_v25 = vcvt.f32.s32 %v2706_v22 }
0x1197   : > { %v2708_v24 = vsel %vm2707_vm11, %v2703_v23, inf }
0x1198   : > { %2709 = vmin.xlane.f32.xlu0 %v2708_v24  ;;  %v2713_v27 = vshll.u32 %v2712_v25, 16 }
0x1221   : > { %v2710_v26 = vpop.xlane.xlu0 %2709 }
0x1222   : > { %v2711_v28 = vcvt.f32.s32 %v2710_v26  ;;  %v6060_v26 = vld [vmem:[#allocation17 + $0x58] sm:$0xff]  }
0x1224   : > { %v2714_v29 = vadd.s32 %v2713_v27, %v2711_v28  ;;  %v6061_v27 = vld [vmem:[#allocation17 + $0x50] sm:$0xff]   ;;  %v6062_v28 = vld [vmem:[#allocation17 + $0x48] sm:$0xff]  }
0x1226   : > { %vm2715_vm13 = vcmp.eq.s32.totalorder %v2697_v15, %v2714_v29  ;;  %2810 = vst.msk [vmem:[%s1292_s2] sm:$0xf] %vm2809_vm12, %v2714_v29  ;;  %v6063_v29 = vld [vmem:[#allocation17 + $0x40] sm:$0xff]   ;;  %s6712_s2 = scalar_lea.vmem %s6711_s21, 256 }
0x1227   : > { %v4988_v31 = vsel %vm2715_vm13, 1.0, %v6876_v0 }
0x1228   : > { %5445 = vmatmul.mubr.msk.f32.vlgmr.msra.gmra.mxu0 %vm1445_vm6, %v4988_v31  ;;  %v5009_v31 = vld [vmem:[#allocation15] ss:$0 sm:$0xff] }
0x1229   : > { %5448 = vmatpush3.bf16.msra.mxu0 %v6045_v30  ;;  %5449 = vmatprep.mubr.msk.bf16.mxu0 %vm6877_vm2, %v6876_v0  ;;  %v6064_v30 = vld [vmem:[#allocation17 + $0x38] sm:$0xff]  }
0x122a   : > { %5453 = vmatprep.subr.bf16.mxu0 %v6876_v0 }
0x12e8   : > { %v7563_v32 = vpop.f32.mrf.mxu0 }
0x12e9   : > { %v2814_v33 = vpack.c.bf16 %v7563_v32, %v7563_v32 }
0x12ea   : > { %v5446_v34 = vpop.f32.mrf.mxu0 }
0x12eb   : > { %5450 = vmatmul.mubr.msk.bf16.vlgmr.msra.gmra.mxu0 %vm1332_vm4, %v2814_v33 }
0x12ec   : > { %5465 = vmatprep.mubr.msk.bf16.mxu0 %vm6877_vm2, %v6876_v0  ;;  %5454 = vmatpush3.bf16.msra.mxu0 %v6046_v35  ;;  %v6065_v35 = vld [vmem:[#allocation17 + $0x30] sm:$0xff]  }
0x12ed   : > { %5455 = vmatprep.subr.bf16.mxu0 %v6876_v0 }
0x12f0   : > { %5456 = vmatpush3.bf16.msra.mxu0 %v6047_v36 }
0x12f1   : > { %5457 = vmatprep.subr.bf16.mxu0 %v6876_v0 }
0x12f4   : > { %5458 = vmatpush3.bf16.msra.mxu0 %v6048_v37 }
0x12f5   : > { %5459 = vmatprep.subr.bf16.mxu0 %v6876_v0 }
0x12f8   : > { %5460 = vmatpush3.bf16.msra.mxu0 %v6049_v38 }
0x12f9   : > { %5461 = vmatprep.subr.bf16.mxu0 %v6876_v0 }
0x12fc   : > { %5462 = vmatpush3.bf16.msra.mxu0 %v6050_v39 }
0x12fd   : > { %5463 = vmatprep.subr.bf16.mxu0 %v6876_v0 }
0x1300   : > { %5464 = vmatpush3.bf16.msra.mxu0 %v6051_v40 }
0x1301   : > { %5485 = vmatprep.subr.bf16.mxu0 %v6876_v0 }
0x13ab   : > { %v2864_v42 = vpop.f32.mrf.mxu0 }
0x13ac   : > { %v2865_v43 = vadd.f32 %v4990_v41, %v2864_v42  ;;  %v6066_v41 = vld [vmem:[#allocation18 + $0x18] sm:$0xff]  }
0x13ad   : > { %v5451_v44 = vpop.f32.mrf.mxu0 }
0x13ae   : > { %2884 = vst.msk [vmem:[#allocation2 + $0x8] sm:$0xf] %vm2078_vm8, %v2865_v43 }
0x13af   : > { %v2867_v45 = vpop.f32.mrf.mxu0 }
0x13b1   : > { %v5452_v46 = vpop.f32.mrf.mxu0 }
0x13b5   : > { %v2888_v47 = vld [vmem:[#allocation2 + $0x9] sm:$0xf] }
0x13b6   : > { %v2887_v48 = vld [vmem:[#allocation2 + $0x8] sm:$0xf]  ;;  %2894 = vrot.lane.b32.xlu1 %v2888_v47, %s6882_s10  ;;  %3007 = vst.msk [vmem:[#allocation2 + $0xc] sm:$0xff] %vm1419_vm3, %v6876_v0 }
0x13b7   : > { %v2886_v49 = vld [vmem:[#allocation2 + $0x7] sm:$0xf]  ;;  %2890 = vrot.lane.b32.xlu0 %v2887_v48, %s6880_s5 }
0x13b8   : > { %3005 = vst.msk [vmem:[#allocation2] sm:$0xff] %vm1419_vm3, %v6876_v0 }
0x1428   : > { %v2895_v50 = vpop.permute.xlu1 %2894 }
0x1429   : > { %v2891_v51 = vpop.permute.xlu0 %2890 }
0x142a   : > { %v2897_v52 = vsel %vm1419_vm3, %v2886_v49, %v2891_v51  ;;  %v5013_v51 = vld [vmem:[#allocation14 + $0x1] ss:$0 sm:$0xff] }
0x142b   : > { %v2898_v53 = vsel %vm1445_vm6, %v2897_v52, %v2895_v50  ;;  %v6067_v50 = vld [vmem:[#allocation18 + $0x10] sm:$0xff]  }
0x142c   : > { %v2899_v54 = vpack.c.bf16 %v2898_v53, %v2898_v53 }
0x142e   : > { %5466 = vmatmul.mubr.msk.bf16.vlgmr.msra.gmra.mxu0 %vm1447_vm7, %v2899_v54 }
0x142f   : > { %5489 = vmatprep.mubr.msk.bf16.mxu0 %vm6877_vm2, %v6876_v0  ;;  %5486 = vmatpush3.bf16.msra.mxu0 %v6058_v7 }
0x1430   : > { %5487 = vmatprep.subr.bf16.mxu0 %v6876_v0 }
0x1433   : > { %5488 = vmatpush3.bf16.msra.mxu0 %v6059_v17 }
0x1434   : > { %5509 = vmatprep.subr.bf16.mxu0 %v6876_v0 }
0x14ee   : > { %v2979_v61 = vpop.f32.mrf.mxu0 }
0x14ef   : > { %v2980_v62 = vadd.f32 %v4993_v60, %v2979_v61  ;;  %v6069_v60 = vld [vmem:[#allocation21 + $0x20] sm:$0xff]   ;;  %v6070_v61 = vld [vmem:[#allocation21 + $0x18] sm:$0xff]  }
0x14f0   : > { %v5467_v2 = vpop.f32.mrf.mxu0 }
0x14f1   : > { %v2985_v3 = vmax.f32 %v2980_v62, 0.0  ;;  %v6071_v62 = vld [vmem:[#allocation21 + $0x10] sm:$0xff]   ;;  %v6883_v2 = vmov 1966171168  }
0x14f2   : > { %v2982_v4 = vpop.f32.mrf.mxu0 }
0x14f3   : > { %v3004_v5 = vmax.f32 %v2985_v3, 0.0 }
0x14f4   : > { %v5468_v6 = vpop.f32.mrf.mxu0 }
0x14f5   : > { %3006 = vst.msk [vmem:[#allocation2 + $0x8] sm:$0xf] %vm2078_vm8, %v3004_v5  ;;  %v3365_v5 = vshrl.u32 %v2696_v14, 7  ;;  %v5021_v6 = vld [vmem:[#allocation15 + $0x1] ss:$0 sm:$0xff] }
0x14fc   : > { %v3010_v8 = vld [vmem:[#allocation2 + $0xb] sm:$0xf]  ;;  %v3008_v10 = vld [vmem:[#allocation2 + $0x5] sm:$0xf] }
0x14fd   : > { %v3009_v9 = vld [vmem:[#allocation2 + $0x8] sm:$0xf]  ;;  %3016 = vrot.lane.b32.xlu0 %v3010_v8, %s6882_s10  ;;  %3196 = vst.msk [vmem:[#allocation2 + $0xc] sm:$0xff] %vm1419_vm3, %v6876_v0  ;;  %3194 = vst.msk [vmem:[#allocation2] sm:$0xff] %vm1419_vm3, %v6876_v0 }
0x14fe   : > { %3012 = vrot.lane.b32.xlu1 %v3009_v9, %s6880_s5  ;;  %3434 = vst.msk [vmem:[#allocation2 + $0x10] sm:$0xff] %vm1419_vm3, %v6876_v0 }
0x156f   : > { %v3017_v11 = vpop.permute.xlu0 %3016 }
0x1570   : > { %v3013_v12 = vpop.permute.xlu1 %3012 }
0x1571   : > { %v3019_v13 = vsel %vm1419_vm3, %v3008_v10, %v3013_v12 }
0x1572   : > { %v3020_v15 = vsel %vm1445_vm6, %v3019_v13, %v3017_v11  ;;  %v6884_v13 = vmov 1983009808  }
0x1573   : > { %v3021_v16 = vpack.c.bf16 %v3020_v15, %v3020_v15  ;;  %v3418_v15 = vunpack.c.l.s4 %v6884_v13 }
0x1575   : > { %5482 = vmatmul.mubr.msk.bf16.vlgmr.msra.gmra.mxu1 %vm1447_vm7, %v3021_v16 }
0x1576   : > { %5505 = vmatprep.mubr.msk.bf16.mxu1 %vm6877_vm2, %v6876_v0  ;;  %5494 = vmatpush3.bf16.msra.mxu1 %v6060_v26 }
0x1577   : > { %5495 = vmatprep.subr.bf16.mxu1 %v6876_v0 }
0x157a   : > { %5496 = vmatpush3.bf16.msra.mxu1 %v6061_v27 }
0x157b   : > { %5497 = vmatprep.subr.bf16.mxu1 %v6876_v0 }
0x157e   : > { %5498 = vmatpush3.bf16.msra.mxu1 %v6062_v28 }
0x157f   : > { %5499 = vmatprep.subr.bf16.mxu1 %v6876_v0 }
0x1582   : > { %5500 = vmatpush3.bf16.msra.mxu1 %v6063_v29 }
0x1583   : > { %5501 = vmatprep.subr.bf16.mxu1 %v6876_v0 }
0x1586   : > { %5502 = vmatpush3.bf16.msra.mxu1 %v6064_v30 }
0x1587   : > { %5503 = vmatprep.subr.bf16.mxu1 %v6876_v0 }
0x158a   : > { %5504 = vmatpush3.bf16.msra.mxu1 %v6065_v35 }
0x158b   : > { %5533 = vmatprep.subr.bf16.mxu1 %v6876_v0 }
0x1635   : > { %v3101_v19 = vpop.f32.mrf.mxu1 }
0x1636   : > { %v3102_v20 = vadd.f32 %v5001_v18, %v3101_v19  ;;  %v7643_v18 = vsub.s32 0, %v3365_v5 }
0x1637   : > { %v5483_v21 = vpop.f32.mrf.mxu1 }
0x1638   : > { %v3107_v22 = vmax.f32 %v3102_v20, 0.0  ;;  %v3419_v21 = vunpack.c.0.s8 %v3418_v15  ;;  %v6082_v15 = vld [vmem:[#allocation17 + $0xb8] sm:$0xff]  }
0x1639   : > { %v3104_v23 = vpop.f32.mrf.mxu1 }
0x163a   : > { %v3108_v24 = vpack.c.bf16 %v3107_v22, %v3107_v22  ;;  %v7649_v26 = vsub.s32 %v3419_v21, %v3365_v5  ;;  %v5041_v21 = vld [vmem:[#allocation15 + $0x2] ss:$0 sm:$0xff] }
0x163b   : > { %v5484_v25 = vpop.f32.mrf.mxu1 }
0x163c   : > { %5490 = vmatmul.mubr.msk.bf16.vlgmr.msra.gmra.mxu0 %vm1419_vm3, %v3108_v24 }
0x163d   : > { %5513 = vmatprep.mubr.msk.bf16.mxu0 %vm6877_vm2, %v6876_v0  ;;  %5510 = vmatpush3.bf16.msra.mxu0 %v6066_v41 }
0x163e   : > { %5511 = vmatprep.subr.bf16.mxu0 %v6876_v0 }
0x1641   : > { %5512 = vmatpush3.bf16.msra.mxu0 %v6067_v50  ;;  %v6079_v50 = vld [vmem:[#allocation17 + $0x60] sm:$0xff]  }
0x1642   : > { %5517 = vmatprep.subr.bf16.mxu0 %v6876_v0 }
0x16fc   : > { %v3164_v33 = vpop.f32.mrf.mxu0 }
0x16fd   : > { %v3165_v34 = vadd.f32 %v5009_v31, %v3164_v33  ;;  %v6073_v31 = vld [vmem:[#allocation21] sm:$0xff]  }
0x16fe   : > { %v5491_v36 = vpop.f32.mrf.mxu0 }
0x16ff   : > { %v3170_v37 = vadd.f32 %v3165_v34, %v2985_v3  ;;  %v3362_v3 = vunpack.c.l.s4 %v6883_v2 }
0x1700   : > { %v3167_v38 = vpop.f32.mrf.mxu0 }
0x1701   : > { %v3193_v39 = vmax.f32 %v3170_v37, 0.0  ;;  %v3363_v4 = vunpack.c.0.s8 %v3362_v3 }
0x1702   : > { %v5492_v40 = vpop.f32.mrf.mxu0 }
0x1703   : > { %3195 = vst.msk [vmem:[#allocation2 + $0x8] sm:$0xf] %vm2078_vm8, %v3193_v39  ;;  %v7640_v8 = vsub.s32 %v3363_v4, %v3365_v5  ;;  %v6081_v4 = vld [vmem:[#allocation18 + $0x20] sm:$0xff]   ;;  %v5033_v5 = vld [vmem:[#allocation14 + $0x2] ss:$0 sm:$0xff] }
0x170a   : > { %v3199_v42 = vld [vmem:[#allocation2 + $0x9] sm:$0xf] }
0x170b   : > { %v3198_v43 = vld [vmem:[#allocation2 + $0x8] sm:$0xf]  ;;  %3205 = vrot.lane.b32.xlu0 %v3199_v42, %s6882_s10 }
0x170c   : > { %v3197_v44 = vld [vmem:[#allocation2 + $0x7] sm:$0xf]  ;;  %3201 = vrot.lane.b32.xlu1 %v3198_v43, %s6880_s5 }
0x170d   : > { %3414 = vst.msk [vmem:[#allocation2] sm:$0xff] %vm1419_vm3, %v6876_v0 }
0x177d   : > { %v3206_v45 = vpop.permute.xlu0 %3205 }
0x177e   : > { %v3202_v46 = vpop.permute.xlu1 %3201 }
0x177f   : > { %v3208_v47 = vsel %vm1419_vm3, %v3197_v44, %v3202_v46  ;;  %v6074_v44 = vld [vmem:[#allocation17 + $0x88] sm:$0xff]   ;;  %v6076_v46 = vld [vmem:[#allocation17 + $0x78] sm:$0xff]  }
0x1780   : > { %v3209_v48 = vsel %vm1445_vm6, %v3208_v47, %v3206_v45  ;;  %v6075_v45 = vld [vmem:[#allocation17 + $0x80] sm:$0xff]   ;;  %v6077_v47 = vld [vmem:[#allocation17 + $0x70] sm:$0xff]  }
0x1781   : > { %v3210_v49 = vpack.c.bf16 %v3209_v48, %v3209_v48  ;;  %v6078_v48 = vld [vmem:[#allocation17 + $0x68] sm:$0xff]  }
0x1783   : > { %5506 = vmatmul.mubr.msk.bf16.vlgmr.msra.gmra.mxu1 %vm1447_vm7, %v3210_v49  ;;  %v5025_v49 = vld [vmem:[#allocation20] ss:$0 sm:$0xff] }
0x1784   : > { %5545 = vmatprep.mubr.msk.bf16.mxu1 %vm6877_vm2, %v6876_v0  ;;  %5534 = vmatpush3.bf16.msra.mxu1 %v6074_v44 }
0x1785   : > { %5535 = vmatprep.subr.bf16.mxu1 %v6876_v0 }
0x1788   : > { %5536 = vmatpush3.bf16.msra.mxu1 %v6075_v45 }
0x1789   : > { %5537 = vmatprep.subr.bf16.mxu1 %v6876_v0 }
0x178c   : > { %5538 = vmatpush3.bf16.msra.mxu1 %v6076_v46 }
0x178d   : > { %5539 = vmatprep.subr.bf16.mxu1 %v6876_v0 }
0x1790   : > { %5540 = vmatpush3.bf16.msra.mxu1 %v6077_v47 }
0x1791   : > { %5541 = vmatprep.subr.bf16.mxu1 %v6876_v0 }
0x1794   : > { %5542 = vmatpush3.bf16.msra.mxu1 %v6078_v48 }
0x1795   : > { %5543 = vmatprep.subr.bf16.mxu1 %v6876_v0 }
0x1798   : > { %5544 = vmatpush3.bf16.msra.mxu1 %v6079_v50  ;;  %v6091_v50 = vld [vmem:[#allocation21 + $0x50] sm:$0xff]  }
0x1799   : > { %5573 = vmatprep.subr.bf16.mxu1 %v6876_v0 }
0x1843   : > { %v3290_v52 = vpop.f32.mrf.mxu1 }
0x1844   : > { %v3291_v53 = vadd.f32 %v5013_v51, %v3290_v52 }
0x1845   : > { %v5507_v54 = vpop.f32.mrf.mxu1 }
0x1846   : > { %v3296_v55 = vmax.f32 %v3291_v53, 0.0 }
0x1847   : > { %v3293_v56 = vpop.f32.mrf.mxu1 }
0x1848   : > { %v3297_v57 = vpack.c.bf16 %v3296_v55, %v3296_v55  ;;  %v6080_v56 = vld [vmem:[#allocation18 + $0x28] sm:$0xff]  }
0x1849   : > { %v5508_v58 = vpop.f32.mrf.mxu1 }
0x184a   : > { %5514 = vmatmul.mubr.msk.bf16.vlgmr.msra.gmra.mxu0 %vm1419_vm3, %v3297_v57 }
0x184b   : > { %5529 = vmatprep.mubr.msk.bf16.mxu0 %vm6877_vm2, %v6876_v0  ;;  %5518 = vmatpush3.bf16.msra.mxu0 %v6068_v59 }
0x184c   : > { %5519 = vmatprep.subr.bf16.mxu0 %v6876_v0 }
0x184f   : > { %5520 = vmatpush3.bf16.msra.mxu0 %v6069_v60 }
0x1850   : > { %5521 = vmatprep.subr.bf16.mxu0 %v6876_v0 }
0x1853   : > { %5522 = vmatpush3.bf16.msra.mxu0 %v6070_v61 }
0x1854   : > { %5523 = vmatprep.subr.bf16.mxu0 %v6876_v0 }
0x1857   : > { %5524 = vmatpush3.bf16.msra.mxu0 %v6071_v62 }
0x1858   : > { %5525 = vmatprep.subr.bf16.mxu0 %v6876_v0 }
0x185b   : > { %5526 = vmatpush3.bf16.msra.mxu0 %v6072_v63 }
0x185c   : > { %5527 = vmatprep.subr.bf16.mxu0 %v6876_v0 }
0x185f   : > { %5528 = vmatpush3.bf16.msra.mxu0 %v6073_v31 }
0x1860   : > { %5549 = vmatprep.subr.bf16.mxu0 %v6876_v0 }
0x190a   : > { %v3353_v7 = vpop.f32.mrf.mxu0 }
0x190b   : > { %v3354_v9 = vadd.f32 %v5021_v6, %v3353_v7 }
0x190c   : > { %v5515_v10 = vpop.f32.mrf.mxu0 }
0x190d   : > { %v3359_v11 = vadd.f32 %v3354_v9, %v3170_v37 }
0x190e   : > { %v3356_v12 = vpop.f32.mrf.mxu0 }
0x190f   : > { %v3367_v16 = vrot.slane %v3359_v11, %v7640_v8 }
0x1910   : > { %v5516_v17 = vpop.f32.mrf.mxu0 }
0x1911   : > { %v3368_v19 = vcombine.high %v3367_v16, %v3367_v16  ;;  %v3375_v20 = vrot.slane %v3367_v16, %v7640_v8  ;;  %v6083_v16 = vld [vmem:[#allocation17 + $0xb0] sm:$0xff]   ;;  %v6084_v17 = vld [vmem:[#allocation17 + $0xa8] sm:$0xff]  }
0x1913   : > { %v3382_v14 = vrot.slane %v3368_v19, %v7640_v8  ;;  %v3383_v22 = vcombine.high %v3375_v20, %v3375_v20  ;;  %v3388_v24 = vrot.slane %v3375_v20, %v7643_v18  ;;  %v6085_v19 = vld [vmem:[#allocation17 + $0xa0] sm:$0xff]   ;;  %v6086_v20 = vld [vmem:[#allocation17 + $0x98] sm:$0xff]  }
0x1915   : > { %v3384_v23 = vcombine.high %v3382_v14, %v3382_v14  ;;  %v3392_v25 = vrot.slane %v3382_v14, %v7643_v18  ;;  %v3396_v27 = vrot.slane %v3383_v22, %v7643_v18 }
0x1917   : > { %v3400_v28 = vrot.slane %v3384_v23, %v7643_v18  ;;  %v3415_v29 = vcombine.low %v3388_v24, %v3392_v25  ;;  %v6087_v23 = vld [vmem:[#allocation17 + $0x90] sm:$0xff]  }
0x1919   : > { %v3416_v30 = vcombine.low %v3396_v27, %v3400_v28  ;;  %v3423_v33 = vrot.slane %v3415_v29, %v7649_v26 }
0x191b   : > { %v3430_v34 = vrot.slane %v3416_v30, %v7649_v26  ;;  %v6088_v30 = vld [vmem:[#allocation18 + $0x38] sm:$0xff]  }
0x191d   : > { %v3431_v35 = vcombine.low %v3423_v33, %v3430_v34 }
0x191f   : > { %3433 = vst.msk [vmem:[#allocation2 + $0x8] sm:$0xff] %vm1419_vm3, %v3431_v35 }
0x1926   : > { %v3437_v36 = vld [vmem:[#allocation2 + $0x9] sm:$0xff] }
0x1927   : > { %v3436_v37 = vld [vmem:[#allocation2 + $0x8] sm:$0xff]  ;;  %3443 = vrot.lane.b32.xlu0 %v3437_v36, %s6882_s10  ;;  %3559 = vst.msk [vmem:[#allocation2 + $0x10] sm:$0xff] %vm1419_vm3, %v6876_v0 }
0x1928   : > { %v3435_v38 = vld [vmem:[#allocation2 + $0x7] sm:$0xff]  ;;  %3439 = vrot.lane.b32.xlu1 %v3436_v37, %s6880_s5 }
0x1929   : > { %3557 = vst.msk [vmem:[#allocation2] sm:$0xff] %vm1419_vm3, %v6876_v0 }
0x1999   : > { %v3444_v39 = vpop.permute.xlu0 %3443 }
0x199a   : > { %v3440_v40 = vpop.permute.xlu1 %3439 }
0x199b   : > { %v3446_v41 = vsel %vm1419_vm3, %v3435_v38, %v3440_v40  ;;  %v6089_v40 = vld [vmem:[#allocation18 + $0x30] sm:$0xff]  }
0x199c   : > { %v3447_v42 = vsel %vm1445_vm6, %v3446_v41, %v3444_v39  ;;  %v5045_v41 = vld [vmem:[#allocation14 + $0x3] ss:$0 sm:$0xff] }
0x199d   : > { %v3448_v43 = vpack.c.bf16 %v3447_v42, %v3447_v42 }
0x199f   : > { %5530 = vmatmul.mubr.msk.bf16.vlgmr.msra.gmra.mxu0 %vm1447_vm7, %v3448_v43 }
0x19a0   : > { %5553 = vmatprep.mubr.msk.bf16.mxu0 %vm6877_vm2, %v6876_v0  ;;  %5550 = vmatpush3.bf16.msra.mxu0 %v6080_v56 }
0x19a1   : > { %5551 = vmatprep.subr.bf16.mxu0 %v6876_v0 }
0x19a4   : > { %5552 = vmatpush3.bf16.msra.mxu0 %v6081_v4 }
0x19a5   : > { %5557 = vmatprep.subr.bf16.mxu0 %v6876_v0 }
0x1a5f   : > { %v3528_v51 = vpop.f32.mrf.mxu0 }
0x1a60   : > { %v3529_v52 = vadd.f32 %v5025_v49, %v3528_v51  ;;  %v6090_v49 = vld [vmem:[#allocation21 + $0x58] sm:$0xff]   ;;  %v6092_v51 = vld [vmem:[#allocation21 + $0x48] sm:$0xff]  }
0x1a61   : > { %v5531_v53 = vpop.f32.mrf.mxu0 }
0x1a62   : > { %v3556_v54 = vmax.f32 %v3529_v52, 0.0  ;;  %v6094_v53 = vld [vmem:[#allocation21 + $0x38] sm:$0xff]  }
0x1a63   : > { %v3531_v55 = vpop.f32.mrf.mxu0 }
0x1a64   : > { %3558 = vst.msk [vmem:[#allocation2 + $0x8] sm:$0xff] %vm1419_vm3, %v3556_v54  ;;  %v5053_v54 = vld [vmem:[#allocation15 + $0x3] ss:$0 sm:$0xff] }
0x1a65   : > { %v5532_v57 = vpop.f32.mrf.mxu0 }
0x1a6b   : > { %v3562_v58 = vld [vmem:[#allocation2 + $0xb] sm:$0xff] }
0x1a6c   : > { %v3561_v59 = vld [vmem:[#allocation2 + $0x8] sm:$0xff]  ;;  %3568 = vrot.lane.b32.xlu0 %v3562_v58, %s6882_s10  ;;  %3748 = vst.msk [vmem:[#allocation2 + $0x10] sm:$0xff] %vm1419_vm3, %v6876_v0 }
0x1a6d   : > { %v3560_v60 = vld [vmem:[#allocation2 + $0x5] sm:$0xff]  ;;  %3564 = vrot.lane.b32.xlu1 %v3561_v59, %s6880_s5 }
0x1a6e   : > { %3746 = vst.msk [vmem:[#allocation2] sm:$0xff] %vm1419_vm3, %v6876_v0 }
0x1ade   : > { %v3569_v61 = vpop.permute.xlu0 %3568 }
0x1adf   : > { %v3565_v62 = vpop.permute.xlu1 %3564 }
0x1ae0   : > { %v3571_v63 = vsel %vm1419_vm3, %v3560_v60, %v3565_v62 }
0x1ae1   : > { %v3572_v2 = vsel %vm1445_vm6, %v3571_v63, %v3569_v61 }
0x1ae2   : > { %v3573_v3 = vpack.c.bf16 %v3572_v2, %v3572_v2 }
0x1ae4   : > { %5546 = vmatmul.mubr.msk.bf16.vlgmr.msra.gmra.mxu1 %vm1447_vm7, %v3573_v3 }
0x1ae5   : > { %5577 = vmatprep.mubr.msk.bf16.mxu1 %vm6877_vm2, %v6876_v0  ;;  %5574 = vmatpush3.bf16.msra.mxu1 %v6088_v30 }
0x1ae6   : > { %5575 = vmatprep.subr.bf16.mxu1 %v6876_v0 }
0x1ae9   : > { %5576 = vmatpush3.bf16.msra.mxu1 %v6089_v40 }
0x1aea   : > { %5581 = vmatprep.subr.bf16.mxu1 %v6876_v0 }
0x1ba4   : > { %v3653_v6 = vpop.f32.mrf.mxu1 }
0x1ba5   : > { %v3654_v7 = vadd.f32 %v5033_v5, %v3653_v6 }
0x1ba6   : > { %v5547_v9 = vpop.f32.mrf.mxu1 }
0x1ba7   : > { %v3659_v10 = vmax.f32 %v3654_v7, 0.0 }
0x1ba8   : > { %v3656_v11 = vpop.f32.mrf.mxu1 }
0x1ba9   : > { %v3660_v12 = vpack.c.bf16 %v3659_v10, %v3659_v10 }
0x1baa   : > { %v5548_v13 = vpop.f32.mrf.mxu1 }
0x1bab   : > { %5554 = vmatmul.mubr.msk.bf16.vlgmr.msra.gmra.mxu0 %vm1419_vm3, %v3660_v12 }
0x1bac   : > { %5569 = vmatprep.mubr.msk.bf16.mxu0 %vm6877_vm2, %v6876_v0  ;;  %5558 = vmatpush3.bf16.msra.mxu0 %v6082_v15 }
0x1bad   : > { %5559 = vmatprep.subr.bf16.mxu0 %v6876_v0 }
0x1bb0   : > { %5560 = vmatpush3.bf16.msra.mxu0 %v6083_v16 }
0x1bb1   : > { %5561 = vmatprep.subr.bf16.mxu0 %v6876_v0 }
0x1bb4   : > { %5562 = vmatpush3.bf16.msra.mxu0 %v6084_v17 }
0x1bb5   : > { %5563 = vmatprep.subr.bf16.mxu0 %v6876_v0 }
0x1bb8   : > { %5564 = vmatpush3.bf16.msra.mxu0 %v6085_v19 }
0x1bb9   : > { %5565 = vmatprep.subr.bf16.mxu0 %v6876_v0 }
0x1bbc   : > { %5566 = vmatpush3.bf16.msra.mxu0 %v6086_v20 }
0x1bbd   : > { %5567 = vmatprep.subr.bf16.mxu0 %v6876_v0 }
0x1bc0   : > { %5568 = vmatpush3.bf16.msra.mxu0 %v6087_v23 }
0x1bc1   : > { %5597 = vmatprep.subr.bf16.mxu0 %v6876_v0 }
0x1c6b   : > { %v3716_v14 = vpop.f32.mrf.mxu0 }
0x1c6c   : > { %v3717_v22 = vadd.f32 %v5041_v21, %v3716_v14 }
0x1c6d   : > { %v5555_v24 = vpop.f32.mrf.mxu0 }
0x1c6e   : > { %v3722_v25 = vadd.f32 %v3717_v22, %v3529_v52  ;;  %v6093_v52 = vld [vmem:[#allocation21 + $0x40] sm:$0xff]  }
0x1c6f   : > { %v3719_v27 = vpop.f32.mrf.mxu0 }
0x1c70   : > { %v3745_v28 = vmax.f32 %v3722_v25, 0.0 }
0x1c71   : > { %v5556_v29 = vpop.f32.mrf.mxu0 }
0x1c72   : > { %3747 = vst.msk [vmem:[#allocation2 + $0x8] sm:$0xff] %vm1419_vm3, %v3745_v28 }
0x1c79   : > { %v3751_v31 = vld [vmem:[#allocation2 + $0x9] sm:$0xff] }
0x1c7a   : > { %v3750_v33 = vld [vmem:[#allocation2 + $0x8] sm:$0xff]  ;;  %3757 = vrot.lane.b32.xlu0 %v3751_v31, %s6882_s10 }
0x1c7b   : > { %v3749_v34 = vld [vmem:[#allocation2 + $0x7] sm:$0xff]  ;;  %3753 = vrot.lane.b32.xlu1 %v3750_v33, %s6880_s5  ;;  %v6095_v33 = vld [vmem:[#allocation21 + $0x30] sm:$0xff]  }
0x1c7c   : > { %4009 = vst.msk [vmem:[#allocation2] sm:$0xff] %vm1419_vm3, %v6876_v0 }
0x1cec   : > { %v3758_v35 = vpop.permute.xlu0 %3757 }
0x1ced   : > { %v3754_v36 = vpop.permute.xlu1 %3753 }
0x1cee   : > { %v3760_v37 = vsel %vm1419_vm3, %v3749_v34, %v3754_v36 }
0x1cef   : > { %v3761_v38 = vsel %vm1445_vm6, %v3760_v37, %v3758_v35 }
0x1cf0   : > { %v3762_v39 = vpack.c.bf16 %v3761_v38, %v3761_v38 }
0x1cf2   : > { %5570 = vmatmul.mubr.msk.bf16.vlgmr.msra.gmra.mxu0 %vm1447_vm7, %v3762_v39 }
0x1cf3   : > { %5609 = vmatprep.mubr.msk.bf16.mxu0 %vm6877_vm2, %v6876_v0 }
0x1db2   : > { %v3842_v42 = vpop.f32.mrf.mxu0 }
0x1db3   : > { %v3843_v43 = vadd.f32 %v5045_v41, %v3842_v42 }
0x1db4   : > { %v5571_v44 = vpop.f32.mrf.mxu0 }
0x1db5   : > { %v3848_v45 = vmax.f32 %v3843_v43, 0.0 }
0x1db6   : > { %v3845_v46 = vpop.f32.mrf.mxu0 }
0x1db7   : > { %v3849_v47 = vpack.c.bf16 %v3848_v45, %v3848_v45 }
0x1db8   : > { %v5572_v48 = vpop.f32.mrf.mxu0 }
0x1db9   : > { %5578 = vmatmul.mubr.msk.bf16.vlgmr.msra.gmra.mxu1 %vm1419_vm3, %v3849_v47 }
0x1dba   : > { %5593 = vmatprep.mubr.msk.bf16.mxu1 %vm6877_vm2, %v6876_v0  ;;  %5582 = vmatpush3.bf16.msra.mxu1 %v6090_v49 }
0x1dbb   : > { %5583 = vmatprep.subr.bf16.mxu1 %v6876_v0 }
0x1dbe   : > { %5584 = vmatpush3.bf16.msra.mxu1 %v6091_v50 }
0x1dbf   : > { %5585 = vmatprep.subr.bf16.mxu1 %v6876_v0 }
0x1dc2   : > { %5586 = vmatpush3.bf16.msra.mxu1 %v6092_v51  ;;  %v6096_v51 = vld [vmem:[#allocation9 + $0x28] sm:$0xff]  }
0x1dc3   : > { %5587 = vmatprep.subr.bf16.mxu1 %v6876_v0  ;;  %5598 = vmatpush3.bf16.msra.mxu0 %v6096_v51 }
0x1dc4   : > { %5599 = vmatprep.subr.bf16.mxu0 %v6876_v0 }
0x1dc6   : > { %5588 = vmatpush3.bf16.msra.mxu1 %v6093_v52  ;;  %v6097_v52 = vld [vmem:[#allocation9 + $0x20] sm:$0xff]  }
0x1dc7   : > { %5589 = vmatprep.subr.bf16.mxu1 %v6876_v0  ;;  %5600 = vmatpush3.bf16.msra.mxu0 %v6097_v52 }
0x1dc8   : > { %5601 = vmatprep.subr.bf16.mxu0 %v6876_v0 }
0x1dca   : > { %5590 = vmatpush3.bf16.msra.mxu1 %v6094_v53  ;;  %v6098_v53 = vld [vmem:[#allocation9 + $0x18] sm:$0xff]  }
0x1dcb   : > { %5591 = vmatprep.subr.bf16.mxu1 %v6876_v0  ;;  %5602 = vmatpush3.bf16.msra.mxu0 %v6098_v53 }
0x1dcc   : > { %5603 = vmatprep.subr.bf16.mxu0 %v6876_v0 }
0x1dce   : > { %5592 = vmatpush3.bf16.msra.mxu1 %v6095_v33 }
0x1dcf   : > { %5613 = vmatprep.subr.bf16.mxu1 %v6876_v0 }
0x1e79   : > { %v3905_v55 = vpop.f32.mrf.mxu1 }
0x1e7a   : > { %v3906_v56 = vadd.f32 %v5053_v54, %v3905_v55  ;;  %v6099_v54 = vld [vmem:[#allocation9 + $0x10] sm:$0xff]   ;;  %v6100_v55 = vld [vmem:[#allocation9 + $0x8] sm:$0xff]  }
0x1e7b   : > { %v5579_v57 = vpop.f32.mrf.mxu1  ;;  %5604 = vmatpush3.bf16.msra.mxu0 %v6099_v54 }
0x1e7c   : > { %v3911_v58 = vadd.f32 %v3906_v56, %v3722_v25  ;;  %5605 = vmatprep.subr.bf16.mxu0 %v6876_v0  ;;  %v5057_v56 = vld [vmem:[#allocation20 + $0x1] ss:$0 sm:$0xff] }
0x1e7d   : > { %v3908_v59 = vpop.f32.mrf.mxu1 }
0x1e7e   : > { %v3913_v60 = vcombine.high %v3911_v58, %v3911_v58  ;;  %v3920_v61 = vrot.slane %v3911_v58, %v7640_v8 }
0x1e7f   : > { %v5580_v62 = vpop.f32.mrf.mxu1  ;;  %5606 = vmatpush3.bf16.msra.mxu0 %v6100_v55 }
0x1e80   : > { %v3927_v63 = vrot.slane %v3913_v60, %v7640_v8  ;;  %v3928_v2 = vcombine.high %v3920_v61, %v3920_v61  ;;  %v3936_v3 = vrot.slane %v3920_v61, %v7640_v8  ;;  %5607 = vmatprep.subr.bf16.mxu0 %v6876_v0 }
0x1e82   : > { %v3929_v4 = vcombine.high %v3927_v63, %v3927_v63  ;;  %v3943_v5 = vrot.slane %v3927_v63, %v7640_v8  ;;  %v3950_v6 = vrot.slane %v3928_v2, %v7640_v8  ;;  %v3958_v7 = vcombine.high %v3936_v3, %v3936_v3  ;;  %v6101_v63 = vld [vmem:[#allocation9] sm:$0xff]  }
0x1e83   : > { %v3965_v13 = vrot.slane %v3936_v3, %v7643_v18  ;;  %5608 = vmatpush3.bf16.msra.mxu0 %v6101_v63 }
0x1e84   : > { %v3957_v9 = vrot.slane %v3929_v4, %v7640_v8  ;;  %v3959_v10 = vcombine.high %v3943_v5, %v3943_v5  ;;  %v3960_v11 = vcombine.high %v3950_v6, %v3950_v6  ;;  %v3969_v12 = vrot.slane %v3950_v6, %v7643_v18 }
0x1e85   : > { %v3973_v15 = vrot.slane %v3958_v7, %v7643_v18  ;;  %v3981_v19 = vrot.slane %v3943_v5, %v7643_v18 }
0x1e86   : > { %v3961_v16 = vcombine.high %v3957_v9, %v3957_v9  ;;  %v3977_v17 = vrot.slane %v3960_v11, %v7643_v18  ;;  %v3985_v20 = vrot.slane %v3957_v9, %v7643_v18  ;;  %v4010_v21 = vcombine.low %v3965_v13, %v3969_v12 }
0x1e87   : > { %v3989_v14 = vrot.slane %v3959_v10, %v7643_v18 }
0x1e88   : > { %v3993_v8 = vrot.slane %v3961_v16, %v7643_v18  ;;  %v4011_v22 = vcombine.low %v3973_v15, %v3977_v17  ;;  %v4027_v23 = vcombine.low %v3981_v19, %v3985_v20  ;;  %v4018_v24 = vrot.slane %v4010_v21, %v7649_v26 }
0x1e8a   : > { %v4025_v25 = vrot.slane %v4011_v22, %v7649_v26  ;;  %v4028_v27 = vcombine.low %v3989_v14, %v3993_v8  ;;  %v4035_v29 = vrot.slane %v4027_v23, %v7649_v26  ;;  %v6102_v22 = vld [vmem:[#allocation12 + $0x28] sm:$0xff]   ;;  %v6103_v23 = vld [vmem:[#allocation12 + $0x20] sm:$0xff]  }
0x1e8c   : > { %v4026_v28 = vcombine.low %v4018_v24, %v4025_v25  ;;  %v4042_v30 = vrot.slane %v4028_v27, %v7649_v26  ;;  %v6104_v24 = vld [vmem:[#allocation12 + $0x18] sm:$0xff]   ;;  %v6105_v25 = vld [vmem:[#allocation12 + $0x10] sm:$0xff]   ;;  %v6106_v27 = vld [vmem:[#allocation12 + $0x8] sm:$0xff]  }
0x1e8e   : > { %v4043_v31 = vcombine.low %v4035_v29, %v4042_v30  ;;  %4046 = vst.msk [vmem:[#allocation2 + $0x8] sm:$0xff] %vm1419_vm3, %v4026_v28  ;;  %v5065_v28 = vld [vmem:[#allocation8] ss:$0 sm:$0xff] }
0x1e90   : > { %4047 = vst.msk [vmem:[#allocation2 + $0x10] sm:$0xff] %vm1419_vm3, %v4043_v31 }
0x1e95   : > { %v4049_v18 = vld [vmem:[#allocation2 + $0x7] sm:$0xff] }
0x1e96   : > { %v4051_v34 = vld [vmem:[#allocation2 + $0x8] sm:$0xff]  ;;  %4175 = vst.msk [vmem:[#allocation2] sm:$0xff] %vm1419_vm3, %v6876_v0 }
0x1e97   : > { %v4053_v35 = vld [vmem:[#allocation2 + $0x9] sm:$0xff]  ;;  %v4054_v36 = vld [vmem:[#allocation2 + $0x11] sm:$0xff] }
0x1e98   : > { %v4052_v37 = vld [vmem:[#allocation2 + $0x10] sm:$0xff]  ;;  %4178 = vst.msk [vmem:[#allocation2 + $0x18] sm:$0xff] %vm1419_vm3, %v6876_v0  ;;  %v5962_v26 = vpack.i.bf16 %v4054_v36, %v4053_v35 }
0x1e99   : > { %v5957_v38 = vpack.i.bf16 %v4052_v37, %v4051_v34  ;;  %v4050_v45 = vld [vmem:[#allocation2 + $0xf] sm:$0xff]  ;;  %v6107_v37 = vld [vmem:[#allocation12] sm:$0xff]  }
0x1e9a   : > { %5963 = vrot.lane.b32.xlu0 %v5962_v26, %s6882_s10 }
0x1e9b   : > { %5958 = vrot.lane.b32.xlu1 %v5957_v38, %s6880_s5 }
0x1f0c   : > { %v5964_v39 = vpop.permute.xlu0 %5963 }
0x1f0d   : > { %v5959_v40 = vpop.permute.xlu1 %5958  ;;  %v5966_v41 = vunpack.i.h.bf16 %v5964_v39  ;;  %v5965_v42 = vunpack.i.l.bf16 %v5964_v39 }
0x1f0e   : > { %v5961_v43 = vunpack.i.h.bf16 %v5959_v40  ;;  %v5960_v44 = vunpack.i.l.bf16 %v5959_v40 }
0x1f10   : > { %v4071_v46 = vsel %vm1419_vm3, %v4049_v18, %v5960_v44  ;;  %v4072_v47 = vsel %vm1419_vm3, %v4050_v45, %v5961_v43 }
0x1f11   : > { %v4073_v48 = vsel %vm1445_vm6, %v4071_v46, %v5965_v42  ;;  %v4074_v49 = vsel %vm1445_vm6, %v4072_v47, %v5966_v41  ;;  %v2791_v42 = vsub.f32 %v7563_v32, %v7546_v1 }
0x1f12   : > { %v4075_v50 = vpack.c.bf16 %v4074_v49, %v4073_v48 }
0x1f13   : > { %v2792_v43 = vmul.f32 %v2791_v42, %v2791_v42 }
0x1f14   : > { %5594 = vmatmul.mubr.msk.bf16.vlgmr.msra.gmra.mxu1 %vm1447_vm7, %v4075_v50 }
0x1f15   : > { %5625 = vmatprep.mubr.msk.bf16.mxu1 %vm6877_vm2, %v6876_v0  ;;  %5614 = vmatpush3.bf16.msra.mxu1 %v6102_v22  ;;  %v2794_v44 = vsel %vm2793_vm14, %v2792_v43, 0.0 }
0x1f16   : > { %5615 = vmatprep.subr.bf16.mxu1 %v6876_v0 }
0x1f19   : > { %5616 = vmatpush3.bf16.msra.mxu1 %v6103_v23 }
0x1f1a   : > { %5617 = vmatprep.subr.bf16.mxu1 %v6876_v0 }
0x1f1d   : > { %5618 = vmatpush3.bf16.msra.mxu1 %v6104_v24 }
0x1f1e   : > { %5619 = vmatprep.subr.bf16.mxu1 %v6876_v0 }
0x1f21   : > { %5620 = vmatpush3.bf16.msra.mxu1 %v6105_v25 }
0x1f22   : > { %5621 = vmatprep.subr.bf16.mxu1 %v6876_v0 }
0x1f25   : > { %5622 = vmatpush3.bf16.msra.mxu1 %v6106_v27 }
0x1f26   : > { %5623 = vmatprep.subr.bf16.mxu1 %v6876_v0 }
0x1f29   : > { %5624 = vmatpush3.bf16.msra.mxu1 %v6107_v37 }
0x1fd4   : > { %v4155_v57 = vpop.f32.mrf.mxu1 }
0x1fd5   : > { %v4156_v58 = vadd.f32 %v5057_v56, %v4155_v57 }
0x1fd6   : > { %v5595_v59 = vpop.f32.mrf.mxu1 }
0x1fd7   : > { %4176 = vst.msk [vmem:[#allocation2 + $0x8] sm:$0xff] %vm1419_vm3, %v4156_v58 }
0x1fd8   : > { %v4158_v60 = vpop.f32.mrf.mxu1 }
0x1fd9   : > { %v4159_v61 = vadd.f32 %v5057_v56, %v4158_v60 }
0x1fda   : > { %v5596_v62 = vpop.f32.mrf.mxu1 }
0x1fdb   : > { %4177 = vst.msk [vmem:[#allocation2 + $0x10] sm:$0xff] %vm1419_vm3, %v4159_v61 }
0x1fde   : > { %v4179_v2 = vld [vmem:[#allocation2 + $0x7] sm:$0xff] }
0x1fdf   : > { %4307 = vst.msk [vmem:[#allocation2] sm:$0xff] %vm1419_vm3, %v6876_v0  ;;  %v4181_v3 = vld [vmem:[#allocation2 + $0x8] sm:$0xff] }
0x1fe2   : > { %v4183_v4 = vld [vmem:[#allocation2 + $0x9] sm:$0xff]  ;;  %v4184_v5 = vld [vmem:[#allocation2 + $0x11] sm:$0xff] }
0x1fe3   : > { %v4182_v6 = vld [vmem:[#allocation2 + $0x10] sm:$0xff]  ;;  %4310 = vst.msk [vmem:[#allocation2 + $0x18] sm:$0xff] %vm1419_vm3, %v6876_v0  ;;  %v5972_v7 = vpack.i.bf16 %v4184_v5, %v4183_v4 }
0x1fe4   : > { %v5967_v9 = vpack.i.bf16 %v4182_v6, %v4181_v3  ;;  %v4180_v17 = vld [vmem:[#allocation2 + $0xf] sm:$0xff]  ;;  %v5073_v3 = vld [vmem:[#allocation11] ss:$0 sm:$0xff] }
0x1fe5   : > { %5973 = vrot.lane.b32.xlu0 %v5972_v7, %s6882_s10 }
0x1fe6   : > { %5968 = vrot.lane.b32.xlu1 %v5967_v9, %s6880_s5 }
0x2057   : > { %v5974_v10 = vpop.permute.xlu0 %5973 }
0x2058   : > { %v5969_v11 = vpop.permute.xlu1 %5968  ;;  %v5976_v12 = vunpack.i.h.bf16 %v5974_v10  ;;  %v5975_v13 = vunpack.i.l.bf16 %v5974_v10 }
0x2059   : > { %v5971_v15 = vunpack.i.h.bf16 %v5969_v11  ;;  %v5970_v16 = vunpack.i.l.bf16 %v5969_v11 }
0x205b   : > { %v4201_v19 = vsel %vm1419_vm3, %v4179_v2, %v5970_v16  ;;  %v4202_v20 = vsel %vm1419_vm3, %v4180_v17, %v5971_v15 }
0x205c   : > { %v4203_v21 = vsel %vm1445_vm6, %v4201_v19, %v5975_v13  ;;  %v4204_v14 = vsel %vm1445_vm6, %v4202_v20, %v5976_v12 }
0x205d   : > { %v4205_v8 = vpack.c.bf16 %v4204_v14, %v4203_v21 }
0x205f   : > { %5610 = vmatmul.mubr.msk.bf16.vlgmr.msra.gmra.mxu0 %vm1447_vm7, %v4205_v8 }
0x211f   : > { %v4285_v29 = vpop.f32.mrf.mxu0 }
0x2120   : > { %v4286_v30 = vadd.f32 %v5065_v28, %v4285_v29 }
0x2121   : > { %v5611_v31 = vpop.f32.mrf.mxu0 }
0x2122   : > { %v4292_v33 = vmax.f32 %v4286_v30, 0.0 }
0x2123   : > { %v4288_v18 = vpop.f32.mrf.mxu0 }
0x2124   : > { %4308 = vst.msk [vmem:[#allocation2 + $0x8] sm:$0xff] %vm1419_vm3, %v4292_v33  ;;  %v4289_v34 = vadd.f32 %v5065_v28, %v4288_v18 }
0x2125   : > { %v5612_v35 = vpop.f32.mrf.mxu0 }
0x2126   : > { %v4293_v36 = vmax.f32 %v4289_v34, 0.0 }
0x2128   : > { %4309 = vst.msk [vmem:[#allocation2 + $0x10] sm:$0xff] %vm1419_vm3, %v4293_v36 }
0x212b   : > { %v4313_v26 = vld [vmem:[#allocation2 + $0x8] sm:$0xff] }
0x212c   : > { %v4311_v51 = vld [vmem:[#allocation2 + $0x7] sm:$0xff] }
0x212f   : > { %v4315_v38 = vld [vmem:[#allocation2 + $0x9] sm:$0xff]  ;;  %v4316_v39 = vld [vmem:[#allocation2 + $0x11] sm:$0xff] }
0x2130   : > { %v4314_v40 = vld [vmem:[#allocation2 + $0x10] sm:$0xff]  ;;  %v5982_v0 = vpack.i.bf16 %v4316_v39, %v4315_v38 }
0x2131   : > { %v5977_v41 = vpack.i.bf16 %v4314_v40, %v4313_v26  ;;  %v4312_v52 = vld [vmem:[#allocation2 + $0xf] sm:$0xff] }
0x2132   : > { %5983 = vrot.lane.b32.xlu0 %v5982_v0, %s6882_s10  ;;  %s6706_s10 = scalar_lea.vmem %s4479_s1, 128 }
0x2133   : > { %5978 = vrot.lane.b32.xlu1 %v5977_v41, %s6880_s5  ;;  %s7790_s5 = scalar_lea.hbm %s7039_s3, %s5082_s4  ;;  %p6707_p6 = scmp.ne.s32.totalorder %s4479_s1, %s6706_s10 }
0x2134   : > { %p6714_p13 = scmp.lt.s32.totalorder %s6712_s2, %s6706_s10 }
0x2135   : > { %p6708_p1 = pnand %p6707_p6, %p7922_p9 }
0x2136   : > { %p6715_p2 = por %p6714_p13, %p6713_p5 }
0x2137   : > { %p6709_p3 = pneg %p6708_p1 }
0x2139   : > { %p6716_p4 = pnand %p6715_p2, %p6709_p3 }
0x2157   : > { %2795 = vadd.xlane.f32.xlu1 %v2794_v44 }
0x21a4   : > { %v5984_v45 = vpop.permute.xlu0 %5983 }
0x21a5   : > { %v5979_v46 = vpop.permute.xlu1 %5978  ;;  %v5986_v47 = vunpack.i.h.bf16 %v5984_v45  ;;  %v5985_v48 = vunpack.i.l.bf16 %v5984_v45 }
0x21a6   : > { %v5981_v49 = vunpack.i.h.bf16 %v5979_v46  ;;  %v5980_v50 = vunpack.i.l.bf16 %v5979_v46 }
0x21a8   : > { %v4333_v53 = vsel %vm1419_vm3, %v4311_v51, %v5980_v50  ;;  %v4334_v54 = vsel %vm1419_vm3, %v4312_v52, %v5981_v49 }
0x21a9   : > { %v4335_v1 = vsel %vm1445_vm6, %v4333_v53, %v5985_v48  ;;  %v4336_v32 = vsel %vm1445_vm6, %v4334_v54, %v5986_v47 }
0x21aa   : > { %v4337_v55 = vpack.c.bf16 %v4336_v32, %v4335_v1 }
0x21ac   : > { %5626 = vmatmul.mubr.msk.bf16.vlgmr.msra.gmra.mxu1 %vm1447_vm7, %v4337_v55 }
0x21e0   : > { %v2796_v56 = vpop.xlane.xlu1 %2795 }
0x21e1   : > { %v2797_v57 = vrot.slane %v2796_v56, 4 }
0x21e3   : > { %v2798_v58 = vadd.f32 %v2797_v57, %v2796_v56 }
0x21e5   : > { %v2799_v59 = vrot.slane %v2798_v58, 2 }
0x21e7   : > { %v2800_v60 = vadd.f32 %v2799_v59, %v2798_v58 }
0x21e9   : > { %v2801_v61 = vrot.slane %v2800_v60, 1 }
0x21eb   : > { %v2802_v62 = vadd.f32 %v2801_v61, %v2800_v60 }
0x21ed   : > { %5629 = vpush %v2802_v62 }
0x221e   : > { %s5630_s6 = spop %5629 }
0x221f   : > { %v2804_v63 = vstv %s5630_s6 }
0x2220   : > { %v2806_v2 = vmul.f32 0.015625, %v2804_v63 }
0x2222   : > { %2808 = vst.msk [vmem:[%s1295_s22] sm:$0x1] %vm2807_vm15, %v2806_v2 }
0x226c   : > { %v4417_v4 = vpop.f32.mrf.mxu1 }
0x226d   : > { %v4418_v5 = vadd.f32 %v5073_v3, %v4417_v4 }
0x226e   : > { %v5627_v6 = vpop.f32.mrf.mxu1 }
0x226f   : > { %4424 = vxpose.xlu0.b32.start [1/2] (short) (narrow) %v4418_v5, 8 }
0x2270   : > { %v4420_v7 = vpop.f32.mrf.mxu1 }
0x2271   : > { %v4421_v9 = vadd.f32 %v5073_v3, %v4420_v7 }
0x2272   : > { %v5628_v10 = vpop.f32.mrf.mxu1 }
0x2273   : > { %4425 = vxpose.xlu0.b32.end [2/2] (short) (narrow) %v4421_v9, 8 }
0x22eb   : > { %v4440_v11 = vpop.trf.xlu0 }
0x22ec   : > { %4456 = vst.msk [vmem:[%s1272_s7] sm:$0xff] %vm1332_vm4, %v4440_v11 }
0x22ed   : > { %6719 = shalt.err (!%p6716_p4)
}
0x22ee   : > { %s6720_s28 = scalar_lea.hbm %s7790_s5, 128  ;;  %s6724_s6 = scalar_lea.hbm %s7039_s3, 256 }
0x22ef   : > { %p6721_p12 = scmp.ne.s32.totalorder %s7790_s5, %s6720_s28  ;;  %p6725_p0 = scmp.lt.s32.totalorder %s7790_s5, %s7039_s3 }
0x22f0   : > { %p6726_p10 = scmp.lt.s32.totalorder %s6724_s6, %s6720_s28 }
0x22f1   : > { %p6722_p7 = pnand %p6721_p12, %p7922_p9 }
0x22f2   : > { %p6727_p11 = por %p6726_p10, %p6725_p0 }
0x22f3   : > { %p6723_p8 = pneg %p6722_p7 }
0x22f5   : > { %p6728_p6 = pnand %p6727_p11, %p6723_p8 }
0x22f7   : > { %6731 = shalt.err (!%p6728_p6)
}
0x22f8   : > { %5723 = dma.vmem_to_hbm [thread:$0]  (%p7922_p9), %s4479_s1, 128, %s7790_s5, %s4458_s26  }
0x22f9 PF: > { %s7923_s22 = sld [smem:[#allocation75_spill]] }
0x22fa   : > { %s7924_s16 = sld [smem:[#allocation73_spill]] }
0x22fb   : > { %s7925_s11 = sld [smem:[#allocation78_spill]] }
0x22ff   : > { %p5845_p1 = scmp.ge.s32.totalorder %s7923_s22, 2 }
0x2300   : > { %s4496_s4 = sand.u32 1, %s7924_s16  }
0x2301   : > { %p7926_p3 = scmp.ne.s32.totalorder %s7925_s11, 0  ;;  %s4497_s7 = scalar_lea.sflag [#allocation5], %s4496_s4 }
0x2303   : > { %p5796_p5 = pnand %p5845_p1, %p7926_p3 }
0x2305   : > { %p5797_p13 = pneg %p5796_p5 }
0x2307   : > { %6797 = dma.done.wait (%p5797_p13), %s4497_s7, 128  }
0x2308   : > { %6799 = vsyncadd (%p5797_p13), %s4497_s7, 4294967168  ;;  %s7927_s26 = sld [smem:[#allocation76_spill]]  ;;  %s7930_s22 = smov %s6806_s23 }
0x2309   : > { %s7928_s10 = sld [smem:[#allocation74_spill]] }
0x230a   : > { %s7929_s0 = sld [smem:[#allocation77_spill]] }
0x230e   : > { %p86_p2 = scmp.ge.s32.totalorder %s7927_s26, 4  }
0x230f   : > { %s7931_s23 = smov %s7928_s10 }
0x2310   :  { %88 = sbr.rel (!%p86_p2) target bundleno = 69 (0x45), region = 351 }
0x2315   :  { %4515 = vsyncpa [#allocation4], 1 }
0x2316   :  { %4517 = vsyncpa [#allocation4 + $0x1], 1 }
0x2317   :  { %4518 = vsyncpa [#allocation7], 1 }
0x2318   :  { %4519 = vsyncpa [#allocation10], 1 }
0x2319   :  { %4520 = vsyncpa [#allocation13], 1 }
0x231a   :  { %4521 = vsyncpa [#allocation16], 1 }
0x231b   :  { %4522 = vsyncpa [#allocation19], 1 }
0x231c   :  { %4523 = vsyncpa [#allocation22], 1 }
0x231d   :  { %4524 = vsyncpa [#allocation25], 1 }
0x231e   :  { %4525 = vsyncpa [#allocation28], 1 }
0x231f   :  { %4526 = vsyncpa [#allocation31], 1 }
0x2320   :  { %4527 = vsyncpa [#allocation34], 1 }
0x2321   :  { %4528 = vsyncpa [#allocation37], 1 }
0x2322   :  { %4529 = vsyncpa [#allocation5], 1 }
0x2323   :  { %4531 = vsyncpa [#allocation5 + $0x1], 1 }

// kernel: _lambda_.1
= control target key start
LH: loop header
LB: loop body
LE: loop exit
PB: predicated region body
PF: predicated region fallthrough
CT: control target
= control target key end

     0   :  { %s6816_s6 = smov 1   ;;  %s6817_s10 = smov 2   ;;  %s7822_s0 = inlined_call_operand.smem [shape: u32[32], index: -1, kind: input, shape index: {}] }
   0x1   :  { %s6894_s5 = sld [smem:[%s7822_s0]]   ;;  %s6818_s14 = smov 3  }
   0x2   :  { %s6899_s9 = sld [smem:[%s7822_s0 + %s6816_s6]]   ;;  %s6819_s18 = smov 4  }
   0x3   :  { %s6904_s13 = sld [smem:[%s7822_s0 + %s6817_s10]]   ;;  %s6820_s22 = smov 5  }
   0x4   :  { %s6909_s17 = sld [smem:[%s7822_s0 + %s6818_s14]]   ;;  %s6821_s26 = smov 6  }
   0x5   :  { %s6914_s21 = sld [smem:[%s7822_s0 + %s6819_s18]]   ;;  %s6822_s30 = smov 7  }
   0x6   :  { %s6919_s25 = sld [smem:[%s7822_s0 + %s6820_s22]]   ;;  %s6823_s4 = smov 8  }
   0x7   :  { %7843 = sst [smem:[#allocation53_spill]] %s6894_s5  ;;  %s6824_s10 = smov 9  }
   0x8   :  { %s6924_s29 = sld [smem:[%s7822_s0 + %s6821_s26]]   ;;  %s6825_s15 = smov 10  }
   0x9   :  { %7844 = sst [smem:[#allocation54_spill]] %s6904_s13  ;;  %s6826_s20 = smov 11  }
   0xa   :  { %s6929_s3 = sld [smem:[%s7822_s0 + %s6822_s30]]   ;;  %s6827_s26 = smov 12  }
   0xb   :  { %7845 = sst [smem:[#allocation55_spill]] %s6914_s21  ;;  %s6828_s1 = smov 13  }
   0xc   :  { %s6934_s8 = sld [smem:[%s7822_s0 + %s6823_s4]]   ;;  %s6829_s7 = smov 14  }
   0xd   :  { %s6939_s14 = sld [smem:[%s7822_s0 + %s6824_s10]]   ;;  %s6831_s22 = smov 16  }
   0xe   :  { %s6944_s19 = sld [smem:[%s7822_s0 + %s6825_s15]]   ;;  %s6830_s15 = smov 15  }
   0xf   :  { %s6949_s24 = sld [smem:[%s7822_s0 + %s6826_s20]]   ;;  %s6832_s28 = smov 17  }
  0x10   :  { %7846 = sst [smem:[#allocation56_spill]] %s6929_s3 }
  0x11   :  { %s6954_s30 = sld [smem:[%s7822_s0 + %s6827_s26]]  }
  0x12   :  { %7847 = sst [smem:[#allocation57_spill]] %s6934_s8 }
  0x13   :  { %7848 = sst [smem:[#allocation58_spill]] %s6939_s14 }
  0x14   :  { %s6959_s6 = sld [smem:[%s7822_s0 + %s6828_s1]]  }
  0x15   :  { %7849 = sst [smem:[#allocation59_spill]] %s6949_s24 }
  0x16   :  { %s6964_s12 = sld [smem:[%s7822_s0 + %s6829_s7]]   ;;  %s6833_s7 = smov 18  }
  0x17   :  { %s6969_s20 = sld [smem:[%s7822_s0 + %s6830_s15]]   ;;  %s6834_s15 = smov 19  }
  0x18   :  { %s6974_s27 = sld [smem:[%s7822_s0 + %s6831_s22]]   ;;  %s6835_s22 = smov 20  }
  0x19   :  { %s6979_s4 = sld [smem:[%s7822_s0 + %s6832_s28]]   ;;  %s6836_s28 = smov 21  }
  0x1a   :  { %7850 = sst [smem:[#allocation60_spill]] %s6959_s6 }
  0x1b   :  { %s6989_s5 = sld [smem:[%s7822_s0 + %s6834_s15]]   ;;  %s6838_s15 = smov 23  }
  0x1c   :  { %7851 = sst [smem:[#allocation61_spill]] %s6964_s12 }
  0x1d   :  { %s6984_s12 = sld [smem:[%s7822_s0 + %s6833_s7]]   ;;  %s6837_s7 = smov 22  }
  0x1e   :  { %7852 = sst [smem:[#allocation62_spill]] %s6974_s27 }
  0x1f   :  { %7853 = sst [smem:[#allocation63_spill]] %s6979_s4 }
  0x20   :  { %s6994_s27 = sld [smem:[%s7822_s0 + %s6835_s22]]   ;;  %s6839_s22 = smov 24  }
  0x21   :  { %7855 = sst [smem:[#allocation65_spill]] %s6989_s5 }
  0x22   :  { %s6999_s6 = sld [smem:[%s7822_s0 + %s6836_s28]]   ;;  %s6840_s28 = smov 25  }
  0x23   :  { %7854 = sst [smem:[#allocation64_spill]] %s6984_s12 }
  0x24   :  { %s7004_s12 = sld [smem:[%s7822_s0 + %s6837_s7]]   ;;  %s6841_s7 = smov 26  }
  0x25   :  { %s7009_s24 = sld [smem:[%s7822_s0 + %s6838_s15]]   ;;  %s6842_s15 = smov 27  }
  0x26   :  { %7856 = sst [smem:[#allocation66_spill]] %s6994_s27 }
  0x27   :  { %s7014_s27 = sld [smem:[%s7822_s0 + %s6839_s22]]   ;;  %s6843_s22 = smov 28  }
  0x28   :  { %7857 = sst [smem:[#allocation67_spill]] %s6999_s6 }
  0x29   :  { %s7019_s14 = sld [smem:[%s7822_s0 + %s6840_s28]]   ;;  %s6844_s28 = smov 29  }
  0x2a   :  { %7858 = sst [smem:[#allocation68_spill]] %s7004_s12 }
  0x2b   :  { %7859 = sst [smem:[#allocation69_spill]] %s7009_s24 }
  0x2c   :  { %s7024_s12 = sld [smem:[%s7822_s0 + %s6841_s7]]   ;;  %s6845_s7 = smov 30  }
  0x2d   :  { %7860 = sst [smem:[#allocation70_spill]] %s7014_s27 }
  0x2e   :  { %s7029_s24 = sld [smem:[%s7822_s0 + %s6842_s15]]   ;;  %s6846_s15 = smov 31  }
  0x2f   :  { %s7034_s27 = sld [smem:[%s7822_s0 + %s6843_s22]]  }
  0x30   :  { %s7039_s3 = sld [smem:[%s7822_s0 + %s6844_s28]]  }
  0x32   :  { %7861 = sst [smem:[#allocation71_spill]] %s7024_s12 }
  0x33   :  { %s7044_s12 = sld [smem:[%s7822_s0 + %s6845_s7]]  }
  0x34   :  { %7862 = sst [smem:[#allocation72_spill]] %s7029_s24 }
  0x35   :  { %s7049_s24 = sld [smem:[%s7822_s0 + %s6846_s15]]  }
  0x36   :  { %69 = vsyncpa [#allocation4], 0 }
  0x37   :  { %70 = vsyncpa [#allocation7], 0 }
  0x38   :  { %71 = vsyncpa [#allocation10], 0 }
  0x39   :  { %72 = vsyncpa [#allocation13], 0 }
  0x3a   :  { %73 = vsyncpa [#allocation16], 0 }
  0x3b   :  { %74 = vsyncpa [#allocation19], 0 }
  0x3c   :  { %75 = vsyncpa [#allocation22], 0 }
  0x3d   :  { %76 = vsyncpa [#allocation25], 0 }
  0x3e   :  { %77 = vsyncpa [#allocation28], 0 }
  0x3f   :  { %78 = vsyncpa [#allocation31], 0 }
  0x40   :  { %79 = vsyncpa [#allocation34], 0 }
  0x41   :  { %80 = vsyncpa [#allocation37], 0 }
  0x42   :  { %81 = vsyncpa [#allocation5], 0 }
  0x43   :  { %83 = vsyncpa [#allocation5 + $0x1], 0  ;;  %s7051_s22 = smov 0   ;;  %s7053_s23 = smov 0  }
  0x44   :  { %s7055_s0 = smov 0   ;;  %s7057_s26 = smov 0  }
  0x45 LB: > { %7863 = sst [smem:[#allocation73_spill]] %s6802_s22  ;;  %s7072_s28 = sadd.s32 4294967295, %s6814_s26   ;;  %s6814_s26 = sphi %s7057_s26, %s7927_s26   ;;  %s6810_s0 = sphi %s7055_s0, %s7929_s0   ;;  %s6806_s23 = sphi %s7053_s23, %s7931_s23   ;;  %s6802_s22 = sphi %s7051_s22, %s7930_s22  }
  0x46   : > { %7864 = sst [smem:[#allocation74_spill]] %s6810_s0  ;;  %s4838_s1 = sadd.s32 4294967294, %s6814_s26  }
  0x47   : > { %7865 = sst [smem:[#allocation75_spill]] %s6814_s26  ;;  %s7076_s2 = sadd.s32 1, %s6814_s26  }
  0x48   : > { %7866 = sst [smem:[#allocation76_spill]] %s7076_s2  ;;  %s710_s7 = sadd.s32 1, %s6810_s0 }
  0x49   : > { %s707_s10 = ssub.s32 %s6814_s26, %s7076_s2  ;;  %p720_p0 = scmp.ne.s32.totalorder %s6810_s0, %s6806_s23 }
  0x4a   : > { %p708_p1 = scmp.eq.s32.totalorder %s707_s10, 0  ;;  %p721_p2 = scmp.eq.s32.totalorder %s7072_s28, 1 }
  0x4b   : > { %p726_p3 = scmp.ne.s32.totalorder %s6806_s23, %s6802_s22  ;;  %p727_p4 = scmp.eq.s32.totalorder %s4838_s1, 1 }
  0x4c   : > { %s7087_s11 = scalar_select %p708_p1, %s6810_s0, %s710_s7  }
  0x4d   : > { %p7089_p5 = por %p721_p2, %p720_p0  ;;  %p7093_p6 = por %p727_p4, %p726_p3 }
  0x4e   : > { %7867 = sst [smem:[#allocation77_spill]] %s7087_s11  ;;  %p4839_p7 = scmp.ge.s32.totalorder %s6814_s26, 1 }
  0x4f   : > { %s7868_s15 = scalar_select %p7089_p5, 1, 0 }
  0x50   : > { %s7869_s16 = scalar_select %p7093_p6, 1, 0 }
  0x51   : > { %p786_p8 = scmp.lt.s32.totalorder %s6814_s26, 3  ;;  %p7832_p9 = scmp.eq.s32.totalorder %s7072_s28, 0 }
  0x52   : > { %7870 = sst [smem:[#allocation78_spill]] %s7869_s16  ;;  %s6847_s10 = smov [#allocation6]  }
  0x53   : > { %p7100_p10 = pnand %p4839_p7, %p786_p8  ;;  %s809_s1 = sshll.u32 %s6847_s10, 4  ;;  %s810_s1 = int_to_ptr.vmem [resolvable:$true] %s809_s1 }
  0x54   : > { %s6848_s11 = smov [#allocation9]   ;;  %s6849_s2 = smov [#allocation12]  }
  0x55   : > { %s7871_s18 = scalar_select %p7100_p10, 1, 0 }
  0x56   : > { %p5725_p11 = pneg %p7100_p10  ;;  %s833_s0 = sshll.u32 %s6848_s11, 4  ;;  %s834_s0 = int_to_ptr.vmem [resolvable:$true] %s833_s0 }
  0x57   : > { %s857_s16 = sshll.u32 %s6849_s2, 4  ;;  %s6119_s10 = scalar_lea.vmem %s810_s1, 768  ;;  %s858_s16 = int_to_ptr.vmem [resolvable:$true] %s857_s16 }
  0x58   : > { %p7108_p12 = pnand %p7832_p9, %p5725_p11  ;;  %p6120_p0 = scmp.ne.s32.totalorder %s810_s1, %s6119_s10 }
  0x59   : > { %p6127_p3 = scmp.lt.s32.totalorder %s810_s1, %s810_s1  ;;  %p6128_p4 = scmp.lt.s32.totalorder %s6119_s10, %s6119_s10 }
  0x5a   : > { %p7114_p13 = pneg %p7108_p12 }
  0x5b   : > { %p6129_p7 = por %p6128_p4, %p6127_p3 }
  0x5c   : > { %p6122_p1 = pnand %p6120_p0, %p7114_p13 }
  0x5e   : > { %p6123_p2 = pneg %p6122_p1 }
  0x60   : > { %p6130_p8 = pnand %p6129_p7, %p6123_p2 }
  0x62   : > { %6133 = shalt.err (!%p6130_p8)
}
  0x63   : > { %s7838_s11 = smov 64   ;;  %s7874_s13 = sld [smem:[#allocation54_spill]] }
  0x64   : > { %s7840_s2 = smov 4   ;;  %s6145_s26 = scalar_lea.vmem %s834_s0, 768 }
  0x65   : > { %p6146_p11 = scmp.ne.s32.totalorder %s834_s0, %s6145_s26  ;;  %p6153_p9 = scmp.lt.s32.totalorder %s834_s0, %s834_s0 }
  0x66   : > { %p6154_p6 = scmp.lt.s32.totalorder %s6145_s26, %s6145_s26 }
  0x67   : > { %p6148_p0 = pnand %p6146_p11, %p7114_p13 }
  0x68   : > { %p6155_p3 = por %p6154_p6, %p6153_p9 }
  0x69   : > { %5731 = dma.hbm_to_vmem [thread:$0]  (!%p7108_p12), %s7874_s13, 768, %s810_s1, [#allocation7], %s7838_s11, %s7838_s11, %s7840_s2  }
  0x6a   : > { %p6149_p1 = pneg %p6148_p0 }
  0x6c   : > { %p6156_p2 = pnand %p6155_p3, %p6149_p1 }
  0x6e   : > { %6159 = shalt.err (!%p6156_p2)
}
  0x6f   : > { %s7875_s21 = sld [smem:[#allocation55_spill]]  ;;  %s6171_s1 = scalar_lea.vmem %s858_s16, 768 }
  0x70   : > { %p6172_p4 = scmp.ne.s32.totalorder %s858_s16, %s6171_s1  ;;  %p6179_p11 = scmp.lt.s32.totalorder %s858_s16, %s858_s16 }
  0x71   : > { %p6180_p0 = scmp.lt.s32.totalorder %s6171_s1, %s6171_s1 }
  0x72   : > { %p6174_p7 = pnand %p6172_p4, %p7114_p13 }
  0x73   : > { %p6181_p5 = por %p6180_p0, %p6179_p11 }
  0x74   : > { %p6175_p8 = pneg %p6174_p7 }
  0x75   : > { %5737 = dma.hbm_to_vmem [thread:$0]  (!%p7108_p12), %s7875_s21, 768, %s834_s0, [#allocation10], %s7838_s11, %s7838_s11, %s7840_s2  }
  0x76   : > { %p6182_p6 = pnand %p6181_p5, %p6175_p8 }
  0x78   : > { %6185 = shalt.err (!%p6182_p6)
}
  0x79   : > { %5743 = dma.hbm_to_vmem [thread:$0]  (!%p7108_p12), %s6924_s29, 768, %s858_s16, [#allocation13], %s7838_s11, %s7838_s11, %s7840_s2  }
  0x7a   : > { %s6852_s0 = smov [#allocation15]   ;;  %s6853_s10 = smov [#allocation18]  }
  0x7b   : > { %s883_s26 = sshll.u32 %s6852_s0, 4  ;;  %s909_s13 = sshll.u32 %s6853_s10, 4  ;;  %s884_s26 = int_to_ptr.vmem [resolvable:$true] %s883_s26  ;;  %s910_s13 = int_to_ptr.vmem [resolvable:$true] %s909_s13 }
  0x7c   : > { %s6197_s21 = scalar_lea.vmem %s884_s26, 64  ;;  %p6205_p5 = scmp.lt.s32.totalorder %s884_s26, %s884_s26 }
  0x7d   : > { %p6198_p9 = scmp.ne.s32.totalorder %s884_s26, %s6197_s21  ;;  %p6206_p2 = scmp.lt.s32.totalorder %s6197_s21, %s6197_s21 }
  0x7f   : > { %p6200_p1 = pnand %p6198_p9, %p7114_p13  ;;  %p6207_p4 = por %p6206_p2, %p6205_p5 }
  0x81   : > { %p6201_p3 = pneg %p6200_p1 }
  0x83   : > { %p6208_p7 = pnand %p6207_p4, %p6201_p3 }
  0x85   : > { %6211 = shalt.err (!%p6208_p7)
}
  0x86   : > { %s7834_s1 = smov 16   ;;  %s7876_s8 = sld [smem:[#allocation57_spill]] }
  0x87   : > { %s7836_s16 = smov 1   ;;  %s6223_s0 = scalar_lea.vmem %s910_s13, 1024 }
  0x88   : > { %p6224_p8 = scmp.ne.s32.totalorder %s910_s13, %s6223_s0  ;;  %p6231_p6 = scmp.lt.s32.totalorder %s910_s13, %s910_s13 }
  0x89   : > { %p6232_p9 = scmp.lt.s32.totalorder %s6223_s0, %s6223_s0 }
  0x8a   : > { %p6226_p11 = pnand %p6224_p8, %p7114_p13 }
  0x8b   : > { %p6233_p1 = por %p6232_p9, %p6231_p6 }
  0x8c   : > { %5749 = dma.hbm_to_vmem [thread:$0]  (!%p7108_p12), %s7876_s8, 64, %s884_s26, [#allocation16], %s7834_s1, %s7834_s1, %s7836_s16  }
  0x8d   : > { %p6227_p0 = pneg %p6226_p11 }
  0x8f   : > { %p6234_p3 = pnand %p6233_p1, %p6227_p0 }
  0x91   : > { %6237 = shalt.err (!%p6234_p3)
}
  0x92   : > { %5755 = dma.hbm_to_vmem [thread:$0]  (!%p7108_p12), %s6944_s19, 1024, %s910_s13, [#allocation19], %s7838_s11, %s7838_s11, %s7840_s2  }
  0x93   : > { %s6856_s21 = smov [#allocation21]   ;;  %s6857_s10 = smov [#allocation24]  }
  0x94   : > { %s935_s26 = sshll.u32 %s6856_s21, 4  ;;  %s963_s1 = sshll.u32 %s6857_s10, 4  ;;  %s936_s26 = int_to_ptr.vmem [resolvable:$true] %s935_s26  ;;  %s964_s1 = int_to_ptr.vmem [resolvable:$true] %s963_s1 }
  0x95   : > { %s6249_s16 = scalar_lea.vmem %s936_s26, 1536  ;;  %p6257_p7 = scmp.lt.s32.totalorder %s936_s26, %s936_s26 }
  0x96   : > { %p6250_p5 = scmp.ne.s32.totalorder %s936_s26, %s6249_s16  ;;  %p6258_p8 = scmp.lt.s32.totalorder %s6249_s16, %s6249_s16 }
  0x98   : > { %p6252_p2 = pnand %p6250_p5, %p7114_p13  ;;  %p6259_p11 = por %p6258_p8, %p6257_p7 }
  0x9a   : > { %p6253_p4 = pneg %p6252_p2 }
  0x9c   : > { %p6260_p0 = pnand %p6259_p11, %p6253_p4 }
  0x9e   : > { %6263 = shalt.err (!%p6260_p0)
}
  0x9f   : > { %5761 = dma.hbm_to_vmem [thread:$0]  (!%p7108_p12), %s6954_s30, 1536, %s936_s26, [#allocation22], %s7838_s11, %s7838_s11, %s7840_s2  }
  0xa0   : > { %s6275_s13 = scalar_lea.vmem %s964_s1, 16  ;;  %s6282_s0 = scalar_lea.vmem %s964_s1, 32 }
  0xa1   : > { %p6276_p6 = scmp.ne.s32.totalorder %s964_s1, %s6275_s13  ;;  %p6283_p3 = scmp.lt.s32.totalorder %s964_s1, %s964_s1 }
  0xa2   : > { %p6284_p5 = scmp.lt.s32.totalorder %s6282_s0, %s6275_s13 }
  0xa3   : > { %p6278_p9 = pnand %p6276_p6, %p7114_p13 }
  0xa4   : > { %p6285_p2 = por %p6284_p5, %p6283_p3 }
  0xa5   : > { %p6279_p1 = pneg %p6278_p9 }
  0xa7   : > { %p6286_p4 = pnand %p6285_p2, %p6279_p1 }
  0xa9   : > { %6289 = shalt.err (!%p6286_p4)
}
  0xaa   : > { %5767 = dma.hbm_to_vmem [thread:$0]  (!%p7108_p12), %s6969_s20, 16, %s964_s1, [#allocation25]  }
  0xab   : > { %s6858_s16 = smov [#allocation27]   ;;  %s6859_s26 = smov [#allocation30]  }
  0xac   : > { %s986_s21 = sshll.u32 %s6858_s16, 4  ;;  %s1012_s10 = sshll.u32 %s6859_s26, 4  ;;  %s987_s21 = int_to_ptr.vmem [resolvable:$true] %s986_s21  ;;  %s1013_s10 = int_to_ptr.vmem [resolvable:$true] %s1012_s10 }
  0xad   : > { %s6301_s11 = scalar_lea.vmem %s987_s21, 32  ;;  %p6309_p0 = scmp.lt.s32.totalorder %s987_s21, %s987_s21 }
  0xae   : > { %p6302_p7 = scmp.ne.s32.totalorder %s987_s21, %s6301_s11  ;;  %p6310_p6 = scmp.lt.s32.totalorder %s6301_s11, %s6301_s11 }
  0xb0   : > { %p6304_p8 = pnand %p6302_p7, %p7114_p13  ;;  %p6311_p9 = por %p6310_p6, %p6309_p0 }
  0xb2   : > { %p6305_p11 = pneg %p6304_p8 }
  0xb4   : > { %p6312_p1 = pnand %p6311_p9, %p6305_p11 }
  0xb6   : > { %6315 = shalt.err (!%p6312_p1)
}
  0xb7   : > { %s7877_s13 = smov 1   ;;  %s7878_s0 = smov 16  }
  0xb8   : > { %s7879_s4 = sld [smem:[#allocation63_spill]]  ;;  %s6327_s1 = scalar_lea.vmem %s1013_s10, 64 }
  0xb9   : > { %p6328_p3 = scmp.ne.s32.totalorder %s1013_s10, %s6327_s1  ;;  %p6335_p4 = scmp.lt.s32.totalorder %s1013_s10, %s1013_s10 }
  0xba   : > { %p6336_p7 = scmp.lt.s32.totalorder %s6327_s1, %s6327_s1 }
  0xbb   : > { %p6330_p5 = pnand %p6328_p3, %p7114_p13 }
  0xbc   : > { %p6337_p8 = por %p6336_p7, %p6335_p4 }
  0xbd   : > { %p6331_p2 = pneg %p6330_p5 }
  0xbe   : > { %5773 = dma.hbm_to_vmem [thread:$0]  (!%p7108_p12), %s7879_s4, 32, %s987_s21, [#allocation28], %s7878_s0, %s7878_s0, %s7877_s13  }
  0xbf   : > { %p6338_p0 = pnand %p6337_p8, %p6331_p2 }
  0xc1   : > { %6341 = shalt.err (!%p6338_p0)
}
  0xc2   : > { %s7880_s5 = sld [smem:[#allocation65_spill]]  ;;  %s6860_s11 = smov [#allocation33]  }
  0xc3   : > { %s1038_s16 = sshll.u32 %s6860_s11, 4  ;;  %s6861_s21 = smov [#allocation36]   ;;  %s1039_s16 = int_to_ptr.vmem [resolvable:$true] %s1038_s16 }
  0xc4   : > { %s1071_s26 = sshll.u32 %s6861_s21, 4  ;;  %s6353_s2 = scalar_lea.vmem %s1039_s16, 3072  ;;  %s1072_s26 = int_to_ptr.vmem [resolvable:$true] %s1071_s26 }
  0xc5   : > { %p6354_p11 = scmp.ne.s32.totalorder %s1039_s16, %s6353_s2  ;;  %p6361_p1 = scmp.lt.s32.totalorder %s1039_s16, %s1039_s16 }
  0xc6   : > { %p6362_p3 = scmp.lt.s32.totalorder %s6353_s2, %s6353_s2 }
  0xc7   : > { %p6356_p6 = pnand %p6354_p11, %p7114_p13 }
  0xc8   : > { %5779 = dma.hbm_to_vmem [thread:$0]  (!%p7108_p12), %s7880_s5, 64, %s1013_s10, [#allocation31], %s7878_s0, %s7878_s0, %s7877_s13  }
  0xc9   : > { %p6357_p9 = pneg %p6356_p6  ;;  %p6363_p5 = por %p6362_p3, %p6361_p1 }
  0xcb   : > { %p6364_p2 = pnand %p6363_p5, %p6357_p9 }
  0xcd   : > { %6367 = shalt.err (!%p6364_p2)
}
  0xce   : > { %s7881_s1 = smov 4   ;;  %s7882_s4 = smov 64  }
  0xcf   : > { %s7883_s6 = sld [smem:[#allocation67_spill]]  ;;  %s6379_s10 = scalar_lea.vmem %s1072_s26, 16 }
  0xd0   : > { %p6380_p4 = scmp.ne.s32.totalorder %s1072_s26, %s6379_s10  ;;  %s6386_s11 = scalar_lea.vmem %s1072_s26, 32 }
  0xd1   : > { %p6387_p0 = scmp.lt.s32.totalorder %s1072_s26, %s1072_s26  ;;  %p6388_p11 = scmp.lt.s32.totalorder %s6386_s11, %s6379_s10 }
  0xd2   : > { %p6382_p7 = pnand %p6380_p4, %p7114_p13 }
  0xd3   : > { %p6389_p6 = por %p6388_p11, %p6387_p0 }
  0xd4   : > { %p6383_p8 = pneg %p6382_p7 }
  0xd5   : > { %5785 = dma.hbm_to_vmem [thread:$0]  (!%p7108_p12), %s7883_s6, 3072, %s1039_s16, [#allocation34], %s7882_s4, %s7882_s4, %s7881_s1  }
  0xd6   : > { %p6390_p9 = pnand %p6389_p6, %p6383_p8 }
  0xd8   : > { %6393 = shalt.err (!%p6390_p9)
}
  0xd9   : > { %5791 = dma.hbm_to_vmem [thread:$0]  (!%p7108_p12), %s7019_s14, 16, %s1072_s26, [#allocation37]  }
  0xda   : > { %s6862_s2 = smov [#allocation3]   ;;  %s6863_s16 = smov [#allocation8]  }
  0xdb   : > { %s799_s21 = sshll.u32 %s6862_s2, 4  ;;  %s823_s5 = sshll.u32 %s6863_s16, 4  ;;  %s800_s21 = int_to_ptr.vmem [resolvable:$true] %s799_s21  ;;  %s824_s5 = int_to_ptr.vmem [resolvable:$true] %s823_s5 }
  0xdc   : > { %s6405_s6 = scalar_lea.vmem %s800_s21, 16  ;;  %s6412_s8 = scalar_lea.vmem %s800_s21, 32 }
  0xdd   : > { %p6406_p1 = scmp.ne.s32.totalorder %s800_s21, %s6405_s6  ;;  %p6413_p2 = scmp.lt.s32.totalorder %s800_s21, %s800_s21 }
  0xde   : > { %p6414_p4 = scmp.lt.s32.totalorder %s6412_s8, %s6405_s6 }
  0xdf   : > { %p6408_p3 = pnand %p6406_p1, %p7114_p13 }
  0xe0   : > { %p6415_p7 = por %p6414_p4, %p6413_p2 }
  0xe1   : > { %p6409_p5 = pneg %p6408_p3 }
  0xe3   : > { %p6416_p8 = pnand %p6415_p7, %p6409_p5 }
  0xe5   : > { %6419 = shalt.err (!%p6416_p8)
}
  0xe6   : > { %5728 = dma.hbm_to_vmem [thread:$0]  (!%p7108_p12), %s6899_s9, 16, %s800_s21, [#allocation4]  }
  0xe7   : > { %s6431_s26 = scalar_lea.vmem %s824_s5, 16  ;;  %s6438_s10 = scalar_lea.vmem %s824_s5, 32 }
  0xe8   : > { %p6432_p0 = scmp.ne.s32.totalorder %s824_s5, %s6431_s26  ;;  %p6439_p9 = scmp.lt.s32.totalorder %s824_s5, %s824_s5 }
  0xe9   : > { %p6440_p1 = scmp.lt.s32.totalorder %s6438_s10, %s6431_s26 }
  0xea   : > { %p6434_p11 = pnand %p6432_p0, %p7114_p13 }
  0xeb   : > { %p6441_p3 = por %p6440_p1, %p6439_p9 }
  0xec   : > { %p6435_p6 = pneg %p6434_p11 }
  0xee   : > { %p6442_p10 = pnand %p6441_p3, %p6435_p6 }
  0xf0   : > { %6445 = shalt.err (!%p6442_p10)
}
  0xf1   : > { %5734 = dma.hbm_to_vmem [thread:$0]  (!%p7108_p12), %s6909_s17, 16, %s824_s5, [#allocation7]  }
  0xf2   : > { %s6864_s8 = smov [#allocation11]   ;;  %s6865_s11 = smov [#allocation14]  }
  0xf3   : > { %s847_s6 = sshll.u32 %s6864_s8, 4  ;;  %s870_s2 = sshll.u32 %s6865_s11, 4  ;;  %s848_s6 = int_to_ptr.vmem [resolvable:$true] %s847_s6  ;;  %s871_s2 = int_to_ptr.vmem [resolvable:$true] %s870_s2 }
  0xf4   : > { %s6457_s21 = scalar_lea.vmem %s848_s6, 16  ;;  %s6464_s16 = scalar_lea.vmem %s848_s6, 32 }
  0xf5   : > { %p6458_p5 = scmp.ne.s32.totalorder %s848_s6, %s6457_s21  ;;  %p6465_p7 = scmp.lt.s32.totalorder %s848_s6, %s848_s6 }
  0xf6   : > { %p6466_p8 = scmp.lt.s32.totalorder %s6464_s16, %s6457_s21 }
  0xf7   : > { %p6460_p2 = pnand %p6458_p5, %p7114_p13 }
  0xf8   : > { %p6467_p0 = por %p6466_p8, %p6465_p7 }
  0xf9   : > { %p6461_p4 = pneg %p6460_p2 }
  0xfb   : > { %p6468_p10 = pnand %p6467_p0, %p6461_p4 }
  0xfd   : > { %6471 = shalt.err (!%p6468_p10)
}
  0xfe   : > { %5740 = dma.hbm_to_vmem [thread:$0]  (!%p7108_p12), %s6919_s25, 16, %s848_s6, [#allocation10]  }
  0xff   : > { %s6483_s5 = scalar_lea.vmem %s871_s2, 64  ;;  %p6491_p1 = scmp.lt.s32.totalorder %s871_s2, %s871_s2 }
 0x100   : > { %p6484_p11 = scmp.ne.s32.totalorder %s871_s2, %s6483_s5  ;;  %p6492_p3 = scmp.lt.s32.totalorder %s6483_s5, %s6483_s5 }
 0x102   : > { %p6486_p6 = pnand %p6484_p11, %p7114_p13  ;;  %p6493_p5 = por %p6492_p3, %p6491_p1 }
 0x104   : > { %p6487_p9 = pneg %p6486_p6 }
 0x106   : > { %p6494_p2 = pnand %p6493_p5, %p6487_p9 }
 0x108   : > { %6497 = shalt.err (!%p6494_p2)
}
 0x109   : > { %s7884_s26 = sld [smem:[#allocation56_spill]]  ;;  %s6866_s10 = smov [#allocation17]  }
 0x10a   : > { %s896_s8 = sshll.u32 %s6866_s10, 4  ;;  %s6867_s6 = smov [#allocation20]   ;;  %s897_s8 = int_to_ptr.vmem [resolvable:$true] %s896_s8 }
 0x10b   : > { %s922_s11 = sshll.u32 %s6867_s6, 4  ;;  %s6509_s21 = scalar_lea.vmem %s897_s8, 3072  ;;  %s923_s11 = int_to_ptr.vmem [resolvable:$true] %s922_s11 }
 0x10c   : > { %p6510_p4 = scmp.ne.s32.totalorder %s897_s8, %s6509_s21  ;;  %p6517_p0 = scmp.lt.s32.totalorder %s897_s8, %s897_s8 }
 0x10d   : > { %p6518_p10 = scmp.lt.s32.totalorder %s6509_s21, %s6509_s21 }
 0x10e   : > { %p6512_p7 = pnand %p6510_p4, %p7114_p13 }
 0x10f   : > { %5746 = dma.hbm_to_vmem [thread:$0]  (!%p7108_p12), %s7884_s26, 64, %s871_s2, [#allocation13], %s7878_s0, %s7878_s0, %s7877_s13  }
 0x110   : > { %p6513_p8 = pneg %p6512_p7  ;;  %p6519_p11 = por %p6518_p10, %p6517_p0 }
 0x112   : > { %p6520_p6 = pnand %p6519_p11, %p6513_p8 }
 0x114   : > { %6523 = shalt.err (!%p6520_p6)
}
 0x115   : > { %s7885_s2 = sld [smem:[#allocation58_spill]]  ;;  %s6535_s16 = scalar_lea.vmem %s923_s11, 32 }
 0x116   : > { %p6536_p9 = scmp.ne.s32.totalorder %s923_s11, %s6535_s16  ;;  %p6543_p5 = scmp.lt.s32.totalorder %s923_s11, %s923_s11 }
 0x117   : > { %p6544_p2 = scmp.lt.s32.totalorder %s6535_s16, %s6535_s16 }
 0x118   : > { %p6538_p1 = pnand %p6536_p9, %p7114_p13 }
 0x119   : > { %p6545_p4 = por %p6544_p2, %p6543_p5 }
 0x11a   : > { %p6539_p3 = pneg %p6538_p1 }
 0x11b   : > { %5752 = dma.hbm_to_vmem [thread:$0]  (!%p7108_p12), %s7885_s2, 3072, %s897_s8, [#allocation16], %s7882_s4, %s7882_s4, %s7881_s1  }
 0x11c   : > { %p6546_p7 = pnand %p6545_p4, %p6539_p3 }
 0x11e   : > { %6549 = shalt.err (!%p6546_p7)
}
 0x11f   : > { %s7886_s5 = sld [smem:[#allocation59_spill]]  ;;  %s6868_s26 = smov [#allocation23]  }
 0x120   : > { %s949_s10 = sshll.u32 %s6868_s26, 4  ;;  %s6869_s8 = smov [#allocation26]   ;;  %s950_s10 = int_to_ptr.vmem [resolvable:$true] %s949_s10 }
 0x121   : > { %s973_s6 = sshll.u32 %s6869_s8, 4  ;;  %s6561_s21 = scalar_lea.vmem %s950_s10, 16  ;;  %s974_s6 = int_to_ptr.vmem [resolvable:$true] %s973_s6 }
 0x122   : > { %p6562_p8 = scmp.ne.s32.totalorder %s950_s10, %s6561_s21  ;;  %s6568_s2 = scalar_lea.vmem %s950_s10, 32 }
 0x123   : > { %p6569_p11 = scmp.lt.s32.totalorder %s950_s10, %s950_s10  ;;  %p6570_p6 = scmp.lt.s32.totalorder %s6568_s2, %s6561_s21 }
 0x124   : > { %p6564_p0 = pnand %p6562_p8, %p7114_p13 }
 0x125   : > { %5758 = dma.hbm_to_vmem [thread:$0]  (!%p7108_p12), %s7886_s5, 32, %s923_s11, [#allocation19], %s7878_s0, %s7878_s0, %s7877_s13  }
 0x126   : > { %p6565_p10 = pneg %p6564_p0  ;;  %p6571_p9 = por %p6570_p6, %p6569_p11 }
 0x128   : > { %p6572_p1 = pnand %p6571_p9, %p6565_p10 }
 0x12a   : > { %6575 = shalt.err (!%p6572_p1)
}
 0x12b   : > { %s7887_s16 = sld [smem:[#allocation60_spill]]  ;;  %s6587_s11 = scalar_lea.vmem %s974_s6, 768 }
 0x12c   : > { %p6588_p3 = scmp.ne.s32.totalorder %s974_s6, %s6587_s11  ;;  %p6595_p4 = scmp.lt.s32.totalorder %s974_s6, %s974_s6 }
 0x12d   : > { %p6596_p7 = scmp.lt.s32.totalorder %s6587_s11, %s6587_s11 }
 0x12e   : > { %p6590_p5 = pnand %p6588_p3, %p7114_p13 }
 0x12f   : > { %p6597_p8 = por %p6596_p7, %p6595_p4 }
 0x130   : > { %p6591_p2 = pneg %p6590_p5 }
 0x131   : > { %5764 = dma.hbm_to_vmem [thread:$0]  (!%p7108_p12), %s7887_s16, 16, %s950_s10, [#allocation22]  }
 0x132   : > { %p6598_p0 = pnand %p6597_p8, %p6591_p2 }
 0x134   : > { %6601 = shalt.err (!%p6598_p0)
}
 0x135   : > { %s7888_s5 = sld [smem:[#allocation62_spill]]  ;;  %s6870_s26 = smov [#allocation29]  }
 0x136   : > { %s999_s10 = sshll.u32 %s6870_s26, 4  ;;  %s6871_s8 = smov [#allocation32]   ;;  %s1000_s10 = int_to_ptr.vmem [resolvable:$true] %s999_s10 }
 0x137   : > { %s1025_s21 = sshll.u32 %s6871_s8, 4  ;;  %s6613_s2 = scalar_lea.vmem %s1000_s10, 2048  ;;  %s1026_s21 = int_to_ptr.vmem [resolvable:$true] %s1025_s21 }
 0x138   : > { %p6614_p10 = scmp.ne.s32.totalorder %s1000_s10, %s6613_s2  ;;  %p6621_p9 = scmp.lt.s32.totalorder %s1000_s10, %s1000_s10 }
 0x139   : > { %p6622_p1 = scmp.lt.s32.totalorder %s6613_s2, %s6613_s2 }
 0x13a   : > { %p6616_p11 = pnand %p6614_p10, %p7114_p13 }
 0x13b   : > { %5770 = dma.hbm_to_vmem [thread:$0]  (!%p7108_p12), %s7888_s5, 768, %s974_s6, [#allocation25], %s7882_s4, %s7882_s4, %s7881_s1  }
 0x13c   : > { %p6617_p6 = pneg %p6616_p11  ;;  %p6623_p3 = por %p6622_p1, %p6621_p9 }
 0x13e   : > { %p6624_p5 = pnand %p6623_p3, %p6617_p6 }
 0x140   : > { %6627 = shalt.err (!%p6624_p5)
}
 0x141   : > { %s7889_s6 = sld [smem:[#allocation64_spill]]  ;;  %s6639_s16 = scalar_lea.vmem %s1026_s21, 64 }
 0x142   : > { %p6640_p2 = scmp.ne.s32.totalorder %s1026_s21, %s6639_s16  ;;  %p6647_p8 = scmp.lt.s32.totalorder %s1026_s21, %s1026_s21 }
 0x143   : > { %p6648_p0 = scmp.lt.s32.totalorder %s6639_s16, %s6639_s16 }
 0x144   : > { %p6642_p4 = pnand %p6640_p2, %p7114_p13 }
 0x145   : > { %p6649_p10 = por %p6648_p0, %p6647_p8 }
 0x146   : > { %p6643_p7 = pneg %p6642_p4 }
 0x147   : > { %5776 = dma.hbm_to_vmem [thread:$0]  (!%p7108_p12), %s7889_s6, 2048, %s1000_s10, [#allocation28], %s7882_s4, %s7882_s4, %s7881_s1  }
 0x148   : > { %p6650_p11 = pnand %p6649_p10, %p6643_p7 }
 0x14a   : > { %6653 = shalt.err (!%p6650_p11)
}
 0x14b   : > { %s7890_s11 = sld [smem:[#allocation66_spill]]  ;;  %s6872_s4 = smov [#allocation35]  }
 0x14c   : > { %s1054_s1 = sshll.u32 %s6872_s4, 4  ;;  %s1055_s1 = int_to_ptr.vmem [resolvable:$true] %s1054_s1 }
 0x14d   : > { %s6665_s5 = scalar_lea.vmem %s1055_s1, 1024  ;;  %p6673_p3 = scmp.lt.s32.totalorder %s1055_s1, %s1055_s1 }
 0x14e   : > { %p6666_p6 = scmp.ne.s32.totalorder %s1055_s1, %s6665_s5  ;;  %p6674_p5 = scmp.lt.s32.totalorder %s6665_s5, %s6665_s5 }
 0x150   : > { %p6668_p9 = pnand %p6666_p6, %p7114_p13  ;;  %p6675_p2 = por %p6674_p5, %p6673_p3 }
 0x151   : > { %5782 = dma.hbm_to_vmem [thread:$0]  (!%p7108_p12), %s7890_s11, 64, %s1026_s21, [#allocation31], %s7878_s0, %s7878_s0, %s7877_s13  }
 0x152   : > { %p6669_p1 = pneg %p6668_p9 }
 0x154   : > { %p6676_p4 = pnand %p6675_p2, %p6669_p1 }
 0x156   : > { %6679 = shalt.err (!%p6676_p4)
}
 0x157   : > { %s6873_s26 = smov 128   ;;  %s7891_s10 = sld [smem:[#allocation69_spill]] }
 0x158   : > { %s6874_s8 = smov 8   ;;  %s6875_s13 = smov [#allocation38]  }
 0x159   : > { %s1085_s0 = sshll.u32 %s6875_s13, 4  ;;  %s1086_s0 = int_to_ptr.vmem [resolvable:$true] %s1085_s0 }
 0x15a   : > { %s6691_s21 = scalar_lea.vmem %s1086_s0, 16  ;;  %s6698_s2 = scalar_lea.vmem %s1086_s0, 32 }
 0x15b   : > { %p6692_p7 = scmp.ne.s32.totalorder %s1086_s0, %s6691_s21  ;;  %p6699_p10 = scmp.lt.s32.totalorder %s1086_s0, %s1086_s0 }
 0x15c   : > { %p6700_p11 = scmp.lt.s32.totalorder %s6698_s2, %s6691_s21 }
 0x15d   : > { %5788 = dma.hbm_to_vmem [thread:$0]  (!%p7108_p12), %s7891_s10, 1024, %s1055_s1, [#allocation34], %s6873_s26, %s6873_s26, %s6874_s8  }
 0x15e   : > { %p6694_p8 = pnand %p6692_p7, %p7114_p13  ;;  %p6701_p6 = por %p6700_p11, %p6699_p10 }
 0x160   : > { %p6695_p0 = pneg %p6694_p8 }
 0x162   : > { %p6702_p9 = pnand %p6701_p6, %p6695_p0 }
 0x164   : > { %6705 = shalt.err (!%p6702_p9)
}
 0x165   : > { %s7892_s6 = sld [smem:[#allocation72_spill]]  ;;  %p7893_p1 = scmp.ne.s32.totalorder %s7871_s18, 0 }
 0x166   : > { %p7894_p3 = scmp.eq.s32.totalorder (!%p7893_p1), %s7072_s28, 0 }
 0x167   : > { %1109 = sbr.rel (%p7893_p1) target bundleno = 8953 (0x22f9), region = 136 }
 0x16b   : > { %5794 = dma.hbm_to_vmem [thread:$0]  (!%p7108_p12), %s7892_s6, 16, %s1086_s0, [#allocation37]  }
 0x16c   : > { %6749 = dma.done.wait (%p7894_p3), [#allocation4], 16   ;;  %p7895_p5 = pmov %p7894_p3 }
 0x16d   : > { %p7896_p13 = pmov %p7894_p3 }
 0x16e   : > { %6751 = vsyncadd (%p7895_p5), [#allocation4], 4294967280 }
 0x16f   : > { %6753 = dma.done.wait (%p7896_p13), [#allocation7], 784   ;;  %p7897_p2 = pmov %p7894_p3 }
 0x171   : > { %6755 = vsyncadd (%p7897_p2), [#allocation7], 4294966512  ;;  %p7898_p4 = pmov %p7897_p2 }
 0x172   : > { %p7899_p12 = pmov %p7897_p2 }
 0x173   : > { %6757 = dma.done.wait (%p7898_p4), [#allocation10], 784  }
 0x174   : > { %6759 = vsyncadd (%p7899_p12), [#allocation10], 4294966512  ;;  %p7900_p7 = pmov %p7897_p2 }
 0x175   : > { %p7901_p8 = pmov %p7897_p2 }
 0x176   : > { %6761 = dma.done.wait (%p7900_p7), [#allocation13], 832  }
 0x177   : > { %6763 = vsyncadd (%p7901_p8), [#allocation13], 4294966464  ;;  %p7902_p0 = pmov %p7897_p2 }
 0x179   : > { %6765 = dma.done.wait (%p7902_p0), [#allocation16], 3136   ;;  %p7903_p10 = pmov %p7902_p0 }
 0x17a   : > { %p7904_p11 = pmov %p7902_p0 }
 0x17b   : > { %6767 = vsyncadd (%p7903_p10), [#allocation16], 4294964160 }
 0x17c   : > { %6769 = dma.done.wait (%p7904_p11), [#allocation19], 1056   ;;  %p7905_p6 = pmov %p7902_p0 }
 0x17d   : > { %p7906_p9 = pmov %p7902_p0 }
 0x17e   : > { %6771 = vsyncadd (%p7905_p6), [#allocation19], 4294966240 }
 0x17f   : > { %6773 = dma.done.wait (%p7906_p9), [#allocation22], 1552   ;;  %p7907_p1 = pmov %p7902_p0 }
 0x180   : > { %p7908_p3 = pmov %p7902_p0 }
 0x181   : > { %6775 = vsyncadd (%p7907_p1), [#allocation22], 4294965744 }
 0x182   : > { %6777 = dma.done.wait (%p7908_p3), [#allocation25], 784   ;;  %p7909_p5 = pmov %p7902_p0 }
 0x183   : > { %p7910_p13 = pmov %p7902_p0 }
 0x184   : > { %6779 = vsyncadd (%p7909_p5), [#allocation25], 4294966512 }
 0x185   : > { %6781 = dma.done.wait (%p7910_p13), [#allocation28], 2080   ;;  %p7911_p2 = pmov %p7902_p0 }
 0x186   : > { %p7912_p4 = pmov %p7902_p0 }
 0x187   : > { %6783 = vsyncadd (%p7911_p2), [#allocation28], 4294965216 }
 0x188   : > { %6785 = dma.done.wait (%p7912_p4), [#allocation31], 128   ;;  %p7913_p12 = pmov %p7902_p0 }
 0x189   : > { %p7914_p7 = pmov %p7902_p0 }
 0x18a   : > { %6787 = vsyncadd (%p7913_p12), [#allocation31], 4294967168 }
 0x18b   : > { %6789 = dma.done.wait (%p7914_p7), [#allocation34], 4096   ;;  %p7915_p8 = pmov %p7902_p0 }
 0x18d   : > { %6791 = vsyncadd (%p7915_p8), [#allocation34], 4294963200 }
 0x18e   : > { %6793 = dma.done.wait (%p7902_p0), [#allocation37], 32   ;;  %p7916_p10 = pmov %p7902_p0 }
 0x18f   : > { %s7917_s22 = sld [smem:[#allocation53_spill]]  ;;  %p1284_p11 = scmp.lt.s32.totalorder %s7072_s28, 1  ;;  %vm1303_vm0 = vcmask 64512   ;;  %v6876_v0 = vmov 0.0   ;;  %vm1355_vm1 = vcmask 1043456   ;;  %vm6877_vm2 = vmmov 0  }
 0x190   : > { %6795 = vsyncadd (%p7916_p10), [#allocation37], 4294967264  ;;  %s7918_s18 = sld [smem:[#allocation61_spill]]  ;;  %1304 = vst.msk [vmem:[#allocation2] sm:$0xff] %vm1303_vm0, %v6876_v0  ;;  %5248 = vmatprep.subr.bf16.mxu0 %v6876_v0  ;;  %5256 = vmatprep.subr.bf16.mxu1 %v6876_v0  ;;  %vm1419_vm3 = vcmask 261120   ;;  %s6878_s4 = smov 8  }
 0x191   : > { %1307 = vst.msk [vmem:[#allocation2 + $0x18] sm:$0xff] %vm1303_vm0, %v6876_v0  ;;  %s7336_s7 = scalar_select %p1284_p11, %s7072_s28, 1  ;;  %5252 = vmatprep.mubr.msk.bf16.mxu0 %vm6877_vm2, %v6876_v0  ;;  %5272 = vmatprep.mubr.msk.bf16.mxu1 %vm6877_vm2, %v6876_v0  ;;  %vm1332_vm4 = vcmask 130048   ;;  %vm1351_vm5 = vcmask 195584   ;;  %v5989_v25 = vld [vmem:[#allocation29 + $0x38] sm:$0xff]   ;;  %v5990_v26 = vld [vmem:[#allocation29 + $0x30] sm:$0xff]  }
 0x192   : > { %s6879_s1 = smov 16   ;;  %5257 = vmatpush3.bf16.msra.mxu1 %v5989_v25  ;;  %v5991_v27 = vld [vmem:[#allocation29 + $0x28] sm:$0xff]   ;;  %v5992_v28 = vld [vmem:[#allocation29 + $0x20] sm:$0xff]   ;;  %v5993_v29 = vld [vmem:[#allocation29 + $0x18] sm:$0xff]   ;;  %s6880_s5 = smov 32   ;;  %vm1445_vm6 = vcmask 523264  }
 0x193   : > { %s5085_s16 = sshll.u32 %s7336_s7, 4  ;;  %5258 = vmatprep.subr.bf16.mxu1 %v6876_v0  ;;  %v5994_v30 = vld [vmem:[#allocation29 + $0x10] sm:$0xff]   ;;  %v4892_v31 = vld [vmem:[#allocation23] ss:$0 sm:$0xff]  ;;  %v5996_v41 = vld [vmem:[#allocation29] sm:$0xff]   ;;  %s6881_s26 = smov 96  }
 0x194   : > { %v5995_v37 = vld [vmem:[#allocation29 + $0x8] sm:$0xff]   ;;  %s6882_s10 = smov 64   ;;  %vm1447_vm7 = vcmask 785408   ;;  %v5997_v53 = vld [vmem:[#allocation33 + $0x28] sm:$0xff]   ;;  %v5999_v55 = vld [vmem:[#allocation33 + $0x18] sm:$0xff]   ;;  %s7919_s8 = sld [smem:[#allocation68_spill]] }
 0x195   : > { %s1288_s11 = scalar_lea.vmem %s7917_s22, %s5085_s16  ;;  %v5998_v54 = vld [vmem:[#allocation33 + $0x20] sm:$0xff]   ;;  %v6000_v56 = vld [vmem:[#allocation33 + $0x10] sm:$0xff]   ;;  %v6001_v57 = vld [vmem:[#allocation33 + $0x8] sm:$0xff]   ;;  %vm2078_vm8 = vcmask 257024   ;;  %s7920_s13 = sld [smem:[#allocation71_spill]]  ;;  %vm2692_vm9 = vcmask 519168  }
 0x196   : > { %v1297_v1 = vld [vmem:[%s1288_s11] sm:$0xff]  ;;  %v1298_v2 = vld [vmem:[%s1288_s11 + $0x8] sm:$0xff]  ;;  %5259 = vmatpush3.bf16.msra.mxu1 %v5990_v26  ;;  %v4896_v58 = vld [vmem:[#allocation27] ss:$0 sm:$0xff]  ;;  %s7921_s0 = sld [smem:[#allocation70_spill]]  ;;  %s4891_s21 = sshll.u32 %s7336_s7, 2 }
 0x197   : > { %1305 = vst.msk [vmem:[#allocation2 + $0x8] sm:$0xff] %vm1303_vm0, %v1297_v1  ;;  %1306 = vst.msk [vmem:[#allocation2 + $0x10] sm:$0xff] %vm1303_vm0, %v1298_v2  ;;  %v5987_v3 = vld [vmem:[%s7918_s18 + $0x8] ss:$0 sps:$4 sm:$0xff]   ;;  %v5988_v5 = vld [vmem:[%s7918_s18] sm:$0xff]   ;;  %5260 = vmatprep.subr.bf16.mxu1 %v6876_v0  ;;  %s1292_s2 = scalar_lea.vmem %s7044_s12, %s4891_s21  ;;  %vm2809_vm12 = vcmask 3072   ;;  %s1295_s22 = scalar_lea.vmem %s7049_s24, %s7336_s7 }
 0x198   : > { %v1357_v4 = vsel %vm1355_vm1, %v5987_v3, 0  ;;  %v6002_v60 = vld [vmem:[#allocation33] sm:$0xff]   ;;  %v6009_v25 = vld [vmem:[#allocation33 + $0x38] sm:$0xff]   ;;  %vm2793_vm14 = vcmask 125952   ;;  %vm2807_vm15 = vcmask 0   ;;  %s1270_s16 = sand.u32 1, %s6806_s23  }
 0x199   : > { %5249 = vmatpush3.bf16.msra.mxu0 %v1357_v4  ;;  %v4913_v26 = vld [vmem:[#allocation32] ss:$0 sm:$0xff]  ;;  %s4888_s11 = sshll.u32 %s1270_s16, 3  ;;  %p7922_p9 = scmp.ne.s32.totalorder %s7868_s15, 0 }
 0x19a   : > { %5250 = vmatprep.subr.bf16.mxu0 %v6876_v0  ;;  %5261 = vmatpush3.bf16.msra.mxu1 %v5991_v27  ;;  %s1272_s7 = scalar_lea.vmem [#allocation39], %s4888_s11 }
 0x19b   : > { %5262 = vmatprep.subr.bf16.mxu1 %v6876_v0 }
 0x19d   : > { %5251 = vmatpush3.bf16.msra.mxu0 %v5988_v5 }
 0x19e   : > { %v1310_v6 = vld [vmem:[#allocation2 + $0x8] sm:$0xff]  ;;  %v1311_v7 = vld [vmem:[#allocation2 + $0x10] sm:$0xff]  ;;  %5276 = vmatprep.subr.bf16.mxu0 %v6876_v0  ;;  %5263 = vmatpush3.bf16.msra.mxu1 %v5992_v28 }
 0x19f   : > { %v1312_v8 = vld [vmem:[#allocation2 + $0x9] sm:$0xff]  ;;  %v1313_v9 = vld [vmem:[#allocation2 + $0x11] sm:$0xff]  ;;  %v5947_v10 = vpack.i.bf16 %v1311_v7, %v1310_v6  ;;  %5264 = vmatprep.subr.bf16.mxu1 %v6876_v0 }
 0x1a0   : > { %v1308_v11 = vld [vmem:[#allocation2 + $0x7] sm:$0xff]  ;;  %1423 = vst.msk [vmem:[#allocation2 + $0x18] sm:$0xff] %vm1419_vm3, %v6876_v0  ;;  %v5952_v12 = vpack.i.bf16 %v1313_v9, %v1312_v8  ;;  %v1309_v16 = vld [vmem:[#allocation2 + $0xf] sm:$0xff] }
 0x1a1   : > { %1420 = vst.msk [vmem:[#allocation2] sm:$0xff] %vm1419_vm3, %v6876_v0  ;;  %5948 = vrot.lane.b32.xlu0 %v5947_v10, %s6878_s4  ;;  %v6003_v10 = vld [vmem:[%s7919_s8 + $0x8] sm:$0xff]   ;;  %s5082_s4 = sshll.u32 %s7072_s28, 7 }
 0x1a2   : > { %5265 = vmatpush3.bf16.msra.mxu1 %v5993_v29 }
 0x1a3   : > { %5266 = vmatprep.subr.bf16.mxu1 %v6876_v0 }
 0x1a5   : > { %5953 = vrot.lane.b32.xlu0 %v5952_v12, %s6879_s1  ;;  %v6004_v12 = vld [vmem:[%s7919_s8] sm:$0xff]   ;;  %s4478_s1 = sshll.u32 %s1272_s7, 4  ;;  %s4479_s1 = int_to_ptr.vmem [resolvable:$true] %s4478_s1 }
 0x1a6   : > { %5267 = vmatpush3.bf16.msra.mxu1 %v5994_v30  ;;  %v6010_v30 = vld [vmem:[#allocation33 + $0x30] sm:$0xff]  }
 0x1a7   : > { %5268 = vmatprep.subr.bf16.mxu1 %v6876_v0 }
 0x1aa   : > { %5269 = vmatpush3.bf16.msra.mxu1 %v5995_v37 }
 0x1ab   : > { %5270 = vmatprep.subr.bf16.mxu1 %v6876_v0 }
 0x1ae   : > { %5271 = vmatpush3.bf16.msra.mxu1 %v5996_v41 }
 0x1af   : > { %5300 = vmatprep.subr.bf16.mxu1 %v6876_v0 }
 0x213   : > { %v5949_v13 = vpop.permute.xlu0 %5948 }
 0x214   : > { %v5951_v14 = vunpack.i.h.bf16 %v5949_v13  ;;  %v5950_v15 = vunpack.i.l.bf16 %v5949_v13  ;;  %v4905_v13 = vld [vmem:[#allocation30] ss:$0 sm:$0xff] }
 0x216   : > { %v1330_v20 = vsel %vm1303_vm0, %v1308_v11, %v5950_v15  ;;  %v1331_v21 = vsel %vm1303_vm0, %v1309_v16, %v5951_v14 }
 0x217   : > { %v5954_v17 = vpop.permute.xlu0 %5953 }
 0x218   : > { %v5956_v18 = vunpack.i.h.bf16 %v5954_v17  ;;  %v5955_v19 = vunpack.i.l.bf16 %v5954_v17 }
 0x21a   : > { %v1333_v22 = vsel %vm1332_vm4, %v1330_v20, %v5955_v19  ;;  %v1334_v23 = vsel %vm1332_vm4, %v1331_v21, %v5956_v18  ;;  %v6005_v21 = vld [vmem:[#allocation33 + $0x58] sm:$0xff]  }
 0x21b   : > { %v1335_v24 = vpack.c.bf16 %v1334_v23, %v1333_v22  ;;  %v6006_v22 = vld [vmem:[#allocation33 + $0x50] sm:$0xff]   ;;  %v6007_v23 = vld [vmem:[#allocation33 + $0x48] sm:$0xff]  }
 0x21d   : > { %5253 = vmatmul.mubr.msk.bf16.vlgmr.msra.gmra.mxu0 %vm1351_vm5, %v1335_v24  ;;  %v6008_v24 = vld [vmem:[#allocation33 + $0x40] sm:$0xff]  }
 0x21e   : > { %5288 = vmatprep.mubr.msk.bf16.mxu0 %vm6877_vm2, %v6876_v0  ;;  %5277 = vmatpush3.bf16.msra.mxu0 %v5997_v53  ;;  %v6013_v53 = vld [vmem:[#allocation29 + $0x78] sm:$0xff]  }
 0x21f   : > { %5278 = vmatprep.subr.bf16.mxu0 %v6876_v0 }
 0x222   : > { %5279 = vmatpush3.bf16.msra.mxu0 %v5998_v54  ;;  %v6014_v54 = vld [vmem:[#allocation29 + $0x70] sm:$0xff]  }
 0x223   : > { %5280 = vmatprep.subr.bf16.mxu0 %v6876_v0 }
 0x226   : > { %5281 = vmatpush3.bf16.msra.mxu0 %v5999_v55  ;;  %v6015_v55 = vld [vmem:[#allocation29 + $0x68] sm:$0xff]  }
 0x227   : > { %5282 = vmatprep.subr.bf16.mxu0 %v6876_v0 }
 0x22a   : > { %5283 = vmatpush3.bf16.msra.mxu0 %v6000_v56  ;;  %v6016_v56 = vld [vmem:[#allocation29 + $0x60] sm:$0xff]  }
 0x22b   : > { %5284 = vmatprep.subr.bf16.mxu0 %v6876_v0 }
 0x22e   : > { %5285 = vmatpush3.bf16.msra.mxu0 %v6001_v57  ;;  %v6017_v57 = vld [vmem:[#allocation29 + $0x58] sm:$0xff]  }
 0x22f   : > { %5286 = vmatprep.subr.bf16.mxu0 %v6876_v0 }
 0x232   : > { %5287 = vmatpush3.bf16.msra.mxu0 %v6002_v60  ;;  %v6019_v60 = vld [vmem:[#allocation29 + $0x48] sm:$0xff]  }
 0x233   : > { %5292 = vmatprep.subr.bf16.mxu0 %v6876_v0 }
 0x2dd   : > { %v1393_v32 = vpop.f32.mrf.mxu0 }
 0x2de   : > { %v1394_v33 = vadd.f32 %v4892_v31, %v1393_v32 }
 0x2df   : > { %v5254_v34 = vpop.f32.mrf.mxu0 }
 0x2e0   : > { %v1400_v35 = vmax.f32 %v1394_v33, 0.0 }
 0x2e1   : > { %v1396_v36 = vpop.f32.mrf.mxu0 }
 0x2e2   : > { %1421 = vst.msk [vmem:[#allocation2 + $0x8] sm:$0xff] %vm1419_vm3, %v1400_v35  ;;  %v1397_v38 = vadd.f32 %v4892_v31, %v1396_v36  ;;  %v6011_v35 = vld [vmem:[%s7919_s8 + $0x18] sm:$0xff]  }
 0x2e3   : > { %v5255_v39 = vpop.f32.mrf.mxu0 }
 0x2e4   : > { %v1401_v40 = vmax.f32 %v1397_v38, 0.0 }
 0x2e6   : > { %1422 = vst.msk [vmem:[#allocation2 + $0x10] sm:$0xff] %vm1419_vm3, %v1401_v40 }
 0x2ed   : > { %v1425_v42 = vld [vmem:[#allocation2 + $0x7] ss:$2 sm:$0xff]  ;;  %v1427_v43 = vld [vmem:[#allocation2 + $0x8] ss:$2 sm:$0xff] }
 0x2ee   : > { %v1429_v44 = vld [vmem:[#allocation2 + $0x9] ss:$2 sm:$0xff]  ;;  %v1431_v45 = vld [vmem:[#allocation2 + $0xa] ss:$2 sm:$0xff]  ;;  %1563 = vst.msk [vmem:[#allocation2] sm:$0xff] %vm1419_vm3, %v6876_v0  ;;  %1433 = vrot.lane.b32.xlu1 %v1427_v43, %s6880_s5 }
 0x2ef   : > { %1565 = vst.msk [vmem:[#allocation2 + $0x10] sm:$0xff] %vm1419_vm3, %v6876_v0  ;;  %4048 = vst.msk [vmem:[#allocation2 + $0x18] sm:$0xff] %vm1419_vm3, %v6876_v0  ;;  %1441 = vrot.lane.b32.xlu0 %v1431_v45, %s6881_s26  ;;  %v4921_v45 = vld [vmem:[#allocation30 + $0x1] ss:$0 sm:$0xff] }
 0x2f2   : > { %1437 = vrot.lane.b32.xlu1 %v1429_v44, %s6882_s10  ;;  %v6012_v44 = vld [vmem:[%s7919_s8 + $0x10] sm:$0xff]  }
 0x360   : > { %v1434_v46 = vpop.permute.xlu1 %1433 }
 0x361   : > { %v1444_v47 = vsel %vm1419_vm3, %v1425_v42, %v1434_v46  ;;  %v1442_v49 = vpop.permute.xlu0 %1441 }
 0x364   : > { %v1438_v48 = vpop.permute.xlu1 %1437 }
 0x365   : > { %v1446_v50 = vsel %vm1445_vm6, %v1444_v47, %v1438_v48 }
 0x366   : > { %v1448_v51 = vsel %vm1447_vm7, %v1446_v50, %v1442_v49 }
 0x367   : > { %v1449_v52 = vpack.c.bf16 %v1448_v51, %v1448_v51 }
 0x369   : > { %5273 = vmatmul.mubr.bf16.vlgmr.msra.gmra.mxu1 %v1449_v52 }
 0x36a   : > { %5312 = vmatprep.mubr.msk.bf16.mxu1 %vm6877_vm2, %v6876_v0  ;;  %5301 = vmatpush3.bf16.msra.mxu1 %v6005_v21  ;;  %v4933_v21 = vld [vmem:[#allocation27 + $0x1] ss:$0 sm:$0xff] }
 0x36b   : > { %5302 = vmatprep.subr.bf16.mxu1 %v6876_v0 }
 0x36e   : > { %5303 = vmatpush3.bf16.msra.mxu1 %v6006_v22  ;;  %v6026_v22 = vld [vmem:[#allocation33 + $0x60] sm:$0xff]  }
 0x36f   : > { %5304 = vmatprep.subr.bf16.mxu1 %v6876_v0 }
 0x372   : > { %5305 = vmatpush3.bf16.msra.mxu1 %v6007_v23 }
 0x373   : > { %5306 = vmatprep.subr.bf16.mxu1 %v6876_v0 }
 0x376   : > { %5307 = vmatpush3.bf16.msra.mxu1 %v6008_v24 }
 0x377   : > { %5308 = vmatprep.subr.bf16.mxu1 %v6876_v0 }
 0x37a   : > { %5309 = vmatpush3.bf16.msra.mxu1 %v6009_v25 }
 0x37b   : > { %5310 = vmatprep.subr.bf16.mxu1 %v6876_v0 }
 0x37e   : > { %5311 = vmatpush3.bf16.msra.mxu1 %v6010_v30 }
 0x37f   : > { %5344 = vmatprep.subr.bf16.mxu1 %v6876_v0 }
 0x429   : > { %v1538_v59 = vpop.f32.mrf.mxu1 }
 0x42a   : > { %v1539_v61 = vadd.f32 %v4896_v58, %v1538_v59  ;;  %v6018_v58 = vld [vmem:[#allocation29 + $0x50] sm:$0xff]   ;;  %v4929_v59 = vld [vmem:[#allocation32 + $0x1] ss:$0 sm:$0xff] }
 0x42b   : > { %v5274_v62 = vpop.f32.mrf.mxu1 }
 0x42c   : > { %v1562_v63 = vmax.f32 %v1539_v61, 0.0 }
 0x42d   : > { %v1541_v1 = vpop.f32.mrf.mxu1 }
 0x42e   : > { %1564 = vst.msk [vmem:[#allocation2 + $0x8] sm:$0xff] %vm1419_vm3, %v1562_v63 }
 0x42f   : > { %v5275_v2 = vpop.f32.mrf.mxu1 }
 0x430   : > { %v6020_v2 = vld [vmem:[#allocation29 + $0x40] sm:$0xff]  }
 0x435   : > { %v1566_v3 = vld [vmem:[#allocation2 + $0x7] sm:$0xff] }
 0x436   : > { %v1568_v4 = vld [vmem:[#allocation2 + $0x9] sm:$0xff]  ;;  %1752 = vst.msk [vmem:[#allocation2] sm:$0xff] %vm1419_vm3, %v6876_v0 }
 0x437   : > { %v1567_v5 = vld [vmem:[#allocation2 + $0x8] sm:$0xff]  ;;  %1754 = vst.msk [vmem:[#allocation2 + $0x10] sm:$0xff] %vm1419_vm3, %v6876_v0  ;;  %1574 = vrot.lane.b32.xlu0 %v1568_v4, %s6882_s10 }
 0x438   : > { %1570 = vrot.lane.b32.xlu1 %v1567_v5, %s6880_s5 }
 0x4a9   : > { %v1575_v6 = vpop.permute.xlu0 %1574 }
 0x4aa   : > { %v1571_v7 = vpop.permute.xlu1 %1570 }
 0x4ab   : > { %v1577_v8 = vsel %vm1419_vm3, %v1566_v3, %v1571_v7 }
 0x4ac   : > { %v1578_v9 = vsel %vm1445_vm6, %v1577_v8, %v1575_v6 }
 0x4ad   : > { %v1579_v11 = vpack.c.bf16 %v1578_v9, %v1578_v9 }
 0x4af   : > { %5289 = vmatmul.mubr.msk.bf16.vlgmr.msra.gmra.mxu0 %vm1447_vm7, %v1579_v11 }
 0x4b0   : > { %5293 = vmatpush3.bf16.msra.mxu0 %v6003_v10  ;;  %5296 = vmatprep.mubr.msk.bf16.mxu0 %vm6877_vm2, %v6876_v0 }
 0x4b1   : > { %5294 = vmatprep.subr.bf16.mxu0 %v6876_v0 }
 0x4b4   : > { %5295 = vmatpush3.bf16.msra.mxu0 %v6004_v12 }
 0x4b5   : > { %5316 = vmatprep.subr.bf16.mxu0 %v6876_v0 }
 0x56f   : > { %v1659_v14 = vpop.f32.mrf.mxu0 }
 0x570   : > { %v1660_v15 = vadd.f32 %v4905_v13, %v1659_v14 }
 0x571   : > { %v5290_v16 = vpop.f32.mrf.mxu0 }
 0x572   : > { %v1665_v17 = vmax.f32 %v1660_v15, 0.0  ;;  %v6021_v16 = vld [vmem:[#allocation33 + $0x88] sm:$0xff]  }
 0x573   : > { %v1662_v18 = vpop.f32.mrf.mxu0 }
 0x574   : > { %v1666_v19 = vpack.c.bf16 %v1665_v17, %v1665_v17  ;;  %v6022_v17 = vld [vmem:[#allocation33 + $0x80] sm:$0xff]   ;;  %v6023_v18 = vld [vmem:[#allocation33 + $0x78] sm:$0xff]  }
 0x575   : > { %v5291_v20 = vpop.f32.mrf.mxu0 }
 0x576   : > { %5297 = vmatmul.mubr.msk.bf16.vlgmr.msra.gmra.mxu0 %vm1419_vm3, %v1666_v19  ;;  %v6024_v19 = vld [vmem:[#allocation33 + $0x70] sm:$0xff]   ;;  %v6025_v20 = vld [vmem:[#allocation33 + $0x68] sm:$0xff]  }
 0x577   : > { %5320 = vmatprep.mubr.msk.bf16.mxu0 %vm6877_vm2, %v6876_v0  ;;  %5317 = vmatpush3.bf16.msra.mxu0 %v6011_v35 }
 0x578   : > { %5318 = vmatprep.subr.bf16.mxu0 %v6876_v0 }
 0x57b   : > { %5319 = vmatpush3.bf16.msra.mxu0 %v6012_v44 }
 0x57c   : > { %5324 = vmatprep.subr.bf16.mxu0 %v6876_v0 }
 0x636   : > { %v1722_v27 = vpop.f32.mrf.mxu0 }
 0x637   : > { %v1723_v28 = vadd.f32 %v4913_v26, %v1722_v27 }
 0x638   : > { %v5298_v29 = vpop.f32.mrf.mxu0 }
 0x639   : > { %v1728_v31 = vadd.f32 %v1723_v28, %v1539_v61  ;;  %v6027_v28 = vld [vmem:[%s7919_s8 + $0x28] sm:$0xff]  }
 0x63a   : > { %v1725_v32 = vpop.f32.mrf.mxu0 }
 0x63b   : > { %v1751_v33 = vmax.f32 %v1728_v31, 0.0 }
 0x63c   : > { %v5299_v34 = vpop.f32.mrf.mxu0 }
 0x63d   : > { %1753 = vst.msk [vmem:[#allocation2 + $0x8] sm:$0xff] %vm1419_vm3, %v1751_v33 }
 0x644   : > { %v1755_v36 = vld [vmem:[#allocation2 + $0x5] sm:$0xff] }
 0x645   : > { %v1757_v37 = vld [vmem:[#allocation2 + $0xb] sm:$0xff]  ;;  %1937 = vst.msk [vmem:[#allocation2] sm:$0xff] %vm1419_vm3, %v6876_v0 }
 0x646   : > { %v1756_v38 = vld [vmem:[#allocation2 + $0x8] sm:$0xff]  ;;  %1939 = vst.msk [vmem:[#allocation2 + $0x10] sm:$0xff] %vm1419_vm3, %v6876_v0  ;;  %1763 = vrot.lane.b32.xlu0 %v1757_v37, %s6882_s10 }
 0x647   : > { %1759 = vrot.lane.b32.xlu1 %v1756_v38, %s6880_s5  ;;  %v6028_v38 = vld [vmem:[%s7919_s8 + $0x20] sm:$0xff]  }
 0x6b8   : > { %v1764_v39 = vpop.permute.xlu0 %1763 }
 0x6b9   : > { %v1760_v40 = vpop.permute.xlu1 %1759 }
 0x6ba   : > { %v1766_v41 = vsel %vm1419_vm3, %v1755_v36, %v1760_v40 }
 0x6bb   : > { %v1767_v42 = vsel %vm1445_vm6, %v1766_v41, %v1764_v39  ;;  %v4946_v39 = vld [vmem:[#allocation30 + $0x2] ss:$0 sm:$0xff] }
 0x6bc   : > { %v1768_v43 = vpack.c.bf16 %v1767_v42, %v1767_v42 }
 0x6be   : > { %5313 = vmatmul.mubr.msk.bf16.vlgmr.msra.gmra.mxu1 %vm1447_vm7, %v1768_v43 }
 0x6bf   : > { %5356 = vmatprep.mubr.msk.bf16.mxu1 %vm6877_vm2, %v6876_v0  ;;  %5345 = vmatpush3.bf16.msra.mxu1 %v6021_v16  ;;  %v6037_v16 = vld [vmem:[#allocation26 + $0x28] sm:$0xff]  }
 0x6c0   : > { %5346 = vmatprep.subr.bf16.mxu1 %v6876_v0 }
 0x6c3   : > { %5347 = vmatpush3.bf16.msra.mxu1 %v6022_v17  ;;  %v6038_v17 = vld [vmem:[#allocation26 + $0x20] sm:$0xff]  }
 0x6c4   : > { %5348 = vmatprep.subr.bf16.mxu1 %v6876_v0 }
 0x6c7   : > { %5349 = vmatpush3.bf16.msra.mxu1 %v6023_v18  ;;  %v6039_v18 = vld [vmem:[#allocation26 + $0x18] sm:$0xff]  }
 0x6c8   : > { %5350 = vmatprep.subr.bf16.mxu1 %v6876_v0 }
 0x6cb   : > { %5351 = vmatpush3.bf16.msra.mxu1 %v6024_v19  ;;  %v6040_v19 = vld [vmem:[#allocation26 + $0x10] sm:$0xff]  }
 0x6cc   : > { %5352 = vmatprep.subr.bf16.mxu1 %v6876_v0 }
 0x6cf   : > { %5353 = vmatpush3.bf16.msra.mxu1 %v6025_v20  ;;  %v6041_v20 = vld [vmem:[#allocation26 + $0x8] sm:$0xff]  }
 0x6d0   : > { %5354 = vmatprep.subr.bf16.mxu1 %v6876_v0 }
 0x6d3   : > { %5355 = vmatpush3.bf16.msra.mxu1 %v6026_v22  ;;  %v6042_v22 = vld [vmem:[#allocation26] sm:$0xff]  }
 0x6d4   : > { %5368 = vmatprep.subr.bf16.mxu1 %v6876_v0 }
 0x77e   : > { %v1848_v46 = vpop.f32.mrf.mxu1 }
 0x77f   : > { %v1849_v47 = vadd.f32 %v4921_v45, %v1848_v46 }
 0x780   : > { %v5314_v48 = vpop.f32.mrf.mxu1 }
 0x781   : > { %v1854_v49 = vmax.f32 %v1849_v47, 0.0  ;;  %v6029_v47 = vld [vmem:[#allocation33 + $0xb8] sm:$0xff]   ;;  %v6030_v48 = vld [vmem:[#allocation33 + $0xb0] sm:$0xff]  }
 0x782   : > { %v1851_v50 = vpop.f32.mrf.mxu1 }
 0x783   : > { %v1855_v51 = vpack.c.bf16 %v1854_v49, %v1854_v49  ;;  %v6031_v49 = vld [vmem:[#allocation33 + $0xa8] sm:$0xff]   ;;  %v6032_v50 = vld [vmem:[#allocation33 + $0xa0] sm:$0xff]  }
 0x784   : > { %v5315_v52 = vpop.f32.mrf.mxu1 }
 0x785   : > { %5321 = vmatmul.mubr.msk.bf16.vlgmr.msra.gmra.mxu0 %vm1419_vm3, %v1855_v51  ;;  %v6033_v51 = vld [vmem:[#allocation33 + $0x98] sm:$0xff]  }
 0x786   : > { %5340 = vmatprep.mubr.msk.bf16.mxu0 %vm6877_vm2, %v6876_v0  ;;  %5325 = vmatpush3.bf16.msra.mxu0 %v6013_v53  ;;  %v4954_v52 = vld [vmem:[#allocation32 + $0x2] ss:$0 sm:$0xff] }
 0x787   : > { %5326 = vmatprep.subr.bf16.mxu0 %v6876_v0 }
 0x78a   : > { %5327 = vmatpush3.bf16.msra.mxu0 %v6014_v54 }
 0x78b   : > { %5328 = vmatprep.subr.bf16.mxu0 %v6876_v0 }
 0x78e   : > { %5329 = vmatpush3.bf16.msra.mxu0 %v6015_v55  ;;  %v6034_v55 = vld [vmem:[#allocation33 + $0x90] sm:$0xff]  }
 0x78f   : > { %5330 = vmatprep.subr.bf16.mxu0 %v6876_v0 }
 0x792   : > { %5331 = vmatpush3.bf16.msra.mxu0 %v6016_v56 }
 0x793   : > { %5332 = vmatprep.subr.bf16.mxu0 %v6876_v0 }
 0x796   : > { %5333 = vmatpush3.bf16.msra.mxu0 %v6017_v57 }
 0x797   : > { %5334 = vmatprep.subr.bf16.mxu0 %v6876_v0 }
 0x79a   : > { %5335 = vmatpush3.bf16.msra.mxu0 %v6018_v58 }
 0x79b   : > { %5336 = vmatprep.subr.bf16.mxu0 %v6876_v0 }
 0x79e   : > { %5337 = vmatpush3.bf16.msra.mxu0 %v6019_v60 }
 0x79f   : > { %5338 = vmatprep.subr.bf16.mxu0 %v6876_v0 }
 0x7a2   : > { %5339 = vmatpush3.bf16.msra.mxu0 %v6020_v2 }
 0x7a3   : > { %5360 = vmatprep.subr.bf16.mxu0 %v6876_v0 }
 0x845   : > { %v1911_v61 = vpop.f32.mrf.mxu0 }
 0x846   : > { %v1912_v62 = vadd.f32 %v4929_v59, %v1911_v61  ;;  %v6035_v61 = vld [vmem:[%s7919_s8 + $0x38] sm:$0xff]  }
 0x847   : > { %v5322_v63 = vpop.f32.mrf.mxu0 }
 0x848   : > { %v1917_v1 = vadd.f32 %v1912_v62, %v1728_v31 }
 0x849   : > { %v1914_v3 = vpop.f32.mrf.mxu0 }
 0x84a   : > { %1938 = vst.msk [vmem:[#allocation2 + $0x8] sm:$0xff] %vm1419_vm3, %v1917_v1 }
 0x84b   : > { %v5323_v4 = vpop.f32.mrf.mxu0 }
 0x851   : > { %v1942_v5 = vld [vmem:[#allocation2 + $0x9] ss:$2 sm:$0xf]  ;;  %v1941_v7 = vld [vmem:[#allocation2 + $0x8] ss:$2 sm:$0xf] }
 0x852   : > { %v1940_v6 = vld [vmem:[#allocation2 + $0x7] ss:$2 sm:$0xf]  ;;  %1949 = vrot.lane.b32.xlu0 %v1942_v5, %s6882_s10  ;;  %v1943_v8 = vld [vmem:[#allocation2 + $0xa] ss:$2 sm:$0xf]  ;;  %1945 = vrot.lane.b32.xlu1 %v1941_v7, %s6880_s5 }
 0x853   : > { %2077 = vst.msk [vmem:[#allocation2] sm:$0xff] %vm1419_vm3, %v6876_v0  ;;  %2080 = vst.msk [vmem:[#allocation2 + $0xc] sm:$0xff] %vm1419_vm3, %v6876_v0  ;;  %v6036_v7 = vld [vmem:[%s7919_s8 + $0x30] sm:$0xff]  }
 0x856   : > { %1953 = vrot.lane.b32.xlu1 %v1943_v8, %s6881_s26  ;;  %v4962_v8 = vld [vmem:[#allocation30 + $0x3] ss:$0 sm:$0xff]  ;;  %s4458_s26 = scalar_lea.sflag [#allocation5], %s1270_s16 }
 0x8c4   : > { %v1946_v9 = vpop.permute.xlu1 %1945  ;;  %v1950_v10 = vpop.permute.xlu0 %1949 }
 0x8c5   : > { %v1956_v11 = vsel %vm1419_vm3, %v1940_v6, %v1946_v9 }
 0x8c6   : > { %v1957_v13 = vsel %vm1445_vm6, %v1956_v11, %v1950_v10 }
 0x8c8   : > { %v1954_v12 = vpop.permute.xlu1 %1953 }
 0x8c9   : > { %v1958_v14 = vsel %vm1447_vm7, %v1957_v13, %v1954_v12 }
 0x8ca   : > { %v1959_v15 = vpack.c.bf16 %v1958_v14, %v1958_v14 }
 0x8cc   : > { %5341 = vmatmul.mubr.bf16.vlgmr.msra.gmra.mxu0 %v1959_v15 }
 0x8cd   : > { %5364 = vmatprep.mubr.msk.bf16.mxu0 %vm6877_vm2, %v6876_v0  ;;  %5361 = vmatpush3.bf16.msra.mxu0 %v6027_v28 }
 0x8ce   : > { %5362 = vmatprep.subr.bf16.mxu0 %v6876_v0 }
 0x8d1   : > { %5363 = vmatpush3.bf16.msra.mxu0 %v6028_v38  ;;  %v6044_v38 = vld [vmem:[%s7920_s13] sm:$0xff]  }
 0x8d2   : > { %5384 = vmatprep.subr.bf16.mxu0 %v6876_v0 }
 0x98c   : > { %v2048_v23 = vpop.f32.mrf.mxu0 }
 0x98d   : > { %v2049_v24 = vadd.f32 %v4933_v21, %v2048_v23  ;;  %v4970_v21 = vld [vmem:[#allocation32 + $0x3] ss:$0 sm:$0xff] }
 0x98e   : > { %v5342_v25 = vpop.f32.mrf.mxu0 }
 0x98f   : > { %v2076_v26 = vmax.f32 %v2049_v24, 0.0 }
 0x990   : > { %v2051_v27 = vpop.f32.mrf.mxu0 }
 0x991   : > { %2079 = vst.msk [vmem:[#allocation2 + $0x8] sm:$0xf] %vm2078_vm8, %v2076_v26 }
 0x992   : > { %v5343_v29 = vpop.f32.mrf.mxu0 }
 0x998   : > { %v2083_v30 = vld [vmem:[#allocation2 + $0x9] sm:$0xf] }
 0x999   : > { %v2082_v31 = vld [vmem:[#allocation2 + $0x8] sm:$0xf]  ;;  %2089 = vrot.lane.b32.xlu1 %v2083_v30, %s6882_s10  ;;  %2269 = vst.msk [vmem:[#allocation2 + $0xc] sm:$0xff] %vm1419_vm3, %v6876_v0 }
 0x99a   : > { %v2081_v32 = vld [vmem:[#allocation2 + $0x7] sm:$0xf]  ;;  %2085 = vrot.lane.b32.xlu0 %v2082_v31, %s6880_s5 }
 0x99b   : > { %2267 = vst.msk [vmem:[#allocation2] sm:$0xff] %vm1419_vm3, %v6876_v0 }
 0xa0b   : > { %v2090_v33 = vpop.permute.xlu1 %2089 }
 0xa0c   : > { %v2086_v34 = vpop.permute.xlu0 %2085 }
 0xa0d   : > { %v2092_v35 = vsel %vm1419_vm3, %v2081_v32, %v2086_v34 }
 0xa0e   : > { %v2093_v36 = vsel %vm1445_vm6, %v2092_v35, %v2090_v33 }
 0xa0f   : > { %v2094_v37 = vpack.c.bf16 %v2093_v36, %v2093_v36  ;;  %v6043_v36 = vld [vmem:[%s7920_s13 + $0x8] sm:$0xff]  }
 0xa11   : > { %5357 = vmatmul.mubr.msk.bf16.vlgmr.msra.gmra.mxu1 %vm1447_vm7, %v2094_v37 }
 0xa12   : > { %5380 = vmatprep.mubr.msk.bf16.mxu1 %vm6877_vm2, %v6876_v0  ;;  %5369 = vmatpush3.bf16.msra.mxu1 %v6029_v47  ;;  %v2617_v47 = vld [vmem:[#allocation35 + $0x10] sm:$0xff] }
 0xa13   : > { %5370 = vmatprep.subr.bf16.mxu1 %v6876_v0 }
 0xa16   : > { %5371 = vmatpush3.bf16.msra.mxu1 %v6030_v48  ;;  %v2618_v48 = vld [vmem:[#allocation35 + $0x18] sm:$0xff] }
 0xa17   : > { %5372 = vmatprep.subr.bf16.mxu1 %v6876_v0 }
 0xa1a   : > { %5373 = vmatpush3.bf16.msra.mxu1 %v6031_v49  ;;  %v2626_v49 = vpack.c.bf16 %v2618_v48, %v2617_v47 }
 0xa1b   : > { %5374 = vmatprep.subr.bf16.mxu1 %v6876_v0 }
 0xa1e   : > { %5375 = vmatpush3.bf16.msra.mxu1 %v6032_v50  ;;  %v2636_v50 = vsel %vm1332_vm4, %v2626_v49, 0 }
 0xa1f   : > { %5376 = vmatprep.subr.bf16.mxu1 %v6876_v0 }
 0xa22   : > { %5377 = vmatpush3.bf16.msra.mxu1 %v6033_v51  ;;  %v2615_v51 = vld [vmem:[#allocation35] sm:$0xff] }
 0xa23   : > { %5378 = vmatprep.subr.bf16.mxu1 %v6876_v0 }
 0xa26   : > { %5379 = vmatpush3.bf16.msra.mxu1 %v6034_v55  ;;  %v4974_v55 = vld [vmem:[#allocation24] ss:$0 sm:$0xff] }
 0xa27   : > { %5416 = vmatprep.subr.bf16.mxu1 %v6876_v0 }
 0xad1   : > { %v2174_v40 = vpop.f32.mrf.mxu1 }
 0xad2   : > { %v2175_v41 = vadd.f32 %v4946_v39, %v2174_v40  ;;  %v2621_v39 = vld [vmem:[#allocation35 + $0x30] sm:$0xff]  ;;  %v2622_v40 = vld [vmem:[#allocation35 + $0x38] sm:$0xff] }
 0xad3   : > { %v5358_v42 = vpop.f32.mrf.mxu1 }
 0xad4   : > { %v2180_v43 = vmax.f32 %v2175_v41, 0.0  ;;  %v2628_v41 = vpack.c.bf16 %v2622_v40, %v2621_v39  ;;  %v2619_v42 = vld [vmem:[#allocation35 + $0x20] sm:$0xff] }
 0xad5   : > { %v2177_v44 = vpop.f32.mrf.mxu1 }
 0xad6   : > { %v2181_v45 = vpack.c.bf16 %v2180_v43, %v2180_v43  ;;  %v2620_v43 = vld [vmem:[#allocation35 + $0x28] sm:$0xff]  ;;  %v2642_v44 = vsel %vm1332_vm4, %v2628_v41, 0  ;;  %v4990_v41 = vld [vmem:[#allocation38] ss:$0 sm:$0xff] }
 0xad7   : > { %v5359_v46 = vpop.f32.mrf.mxu1 }
 0xad8   : > { %5365 = vmatmul.mubr.msk.bf16.vlgmr.msra.gmra.mxu0 %vm1419_vm3, %v2181_v45  ;;  %v2627_v45 = vpack.c.bf16 %v2620_v43, %v2619_v42 }
 0xad9   : > { %5388 = vmatprep.mubr.msk.bf16.mxu0 %vm6877_vm2, %v6876_v0  ;;  %5385 = vmatpush3.bf16.msra.mxu0 %v6035_v61 }
 0xada   : > { %5386 = vmatprep.subr.bf16.mxu0 %v6876_v0  ;;  %v2639_v46 = vsel %vm1332_vm4, %v2627_v45, 0 }
 0xadd   : > { %5387 = vmatpush3.bf16.msra.mxu0 %v6036_v7  ;;  %v4987_v7 = vld [vmem:[%s7921_s0] ss:$0 sm:$0xff]  ;;  %s6885_s0 = smov [#allocation39]  }
 0xade   : > { %5392 = vmatprep.subr.bf16.mxu0 %v6876_v0  ;;  %s6710_s21 = sshll.u32 %s6885_s0, 4  ;;  %s6711_s21 = int_to_ptr.vmem [resolvable:$false] %s6710_s21 }
 0xadf   : > { %p6713_p5 = scmp.lt.s32.totalorder %s4479_s1, %s6711_s21 }
 0xb98   : > { %v2237_v53 = vpop.f32.mrf.mxu0 }
 0xb99   : > { %v2238_v54 = vadd.f32 %v4954_v52, %v2237_v53  ;;  %v2616_v52 = vld [vmem:[#allocation35 + $0x8] sm:$0xff] }
 0xb9a   : > { %v5366_v56 = vpop.f32.mrf.mxu0  ;;  %v2625_v53 = vpack.c.bf16 %v2616_v52, %v2615_v51 }
 0xb9b   : > { %v2243_v57 = vadd.f32 %v2238_v54, %v2049_v24 }
 0xb9c   : > { %v2240_v58 = vpop.f32.mrf.mxu0  ;;  %v2633_v54 = vsel %vm1332_vm4, %v2625_v53, 0 }
 0xb9d   : > { %v2266_v59 = vmax.f32 %v2243_v57, 0.0 }
 0xb9e   : > { %v5367_v60 = vpop.f32.mrf.mxu0 }
 0xb9f   : > { %2268 = vst.msk [vmem:[#allocation2 + $0x8] sm:$0xf] %vm2078_vm8, %v2266_v59 }
 0xba6   : > { %v2272_v62 = vld [vmem:[#allocation2 + $0xb] sm:$0xf]  ;;  %v2270_v1 = vld [vmem:[#allocation2 + $0x5] sm:$0xf] }
 0xba7   : > { %v2271_v63 = vld [vmem:[#allocation2 + $0x8] sm:$0xf]  ;;  %2278 = vrot.lane.b32.xlu1 %v2272_v62, %s6882_s10  ;;  %2448 = vst.msk [vmem:[#allocation2 + $0xc] sm:$0xff] %vm1419_vm3, %v6876_v0  ;;  %2446 = vst.msk [vmem:[#allocation2] sm:$0xff] %vm1419_vm3, %v6876_v0  ;;  %v4982_v62 = vld [vmem:[#allocation36] ss:$0 sm:$0xff] }
 0xba8   : > { %2274 = vrot.lane.b32.xlu0 %v2271_v63, %s6880_s5 }
 0xc19   : > { %v2279_v2 = vpop.permute.xlu1 %2278 }
 0xc1a   : > { %v2275_v3 = vpop.permute.xlu0 %2274 }
 0xc1b   : > { %v2281_v4 = vsel %vm1419_vm3, %v2270_v1, %v2275_v3 }
 0xc1c   : > { %v2282_v5 = vsel %vm1445_vm6, %v2281_v4, %v2279_v2 }
 0xc1d   : > { %v2283_v6 = vpack.c.bf16 %v2282_v5, %v2282_v5 }
 0xc1f   : > { %5381 = vmatmul.mubr.msk.bf16.vlgmr.msra.gmra.mxu1 %vm1447_vm7, %v2283_v6 }
 0xc20   : > { %5424 = vmatprep.mubr.msk.bf16.mxu1 %vm6877_vm2, %v6876_v0  ;;  %5417 = vmatpush3.bf16.xpose.msra.mxu1 %v2642_v44 }
 0xc21   : > { %5418 = vmatprep.subr.bf16.mxu1 %v6876_v0 }
 0xc28   : > { %5419 = vmatpush3.bf16.xpose.msra.mxu1 %v2639_v46 }
 0xc29   : > { %5420 = vmatprep.subr.bf16.mxu1 %v6876_v0 }
 0xc30   : > { %5421 = vmatpush3.bf16.xpose.msra.mxu1 %v2636_v50 }
 0xc31   : > { %5422 = vmatprep.subr.bf16.mxu1 %v6876_v0 }
 0xc38   : > { %5423 = vmatpush3.bf16.xpose.msra.mxu1 %v2633_v54 }
 0xc39   : > { %5469 = vmatprep.subr.bf16.mxu1 %v6876_v0 }
 0xcdf   : > { %v2363_v9 = vpop.f32.mrf.mxu1 }
 0xce0   : > { %v2364_v10 = vadd.f32 %v4962_v8, %v2363_v9 }
 0xce1   : > { %v5382_v11 = vpop.f32.mrf.mxu1 }
 0xce2   : > { %v2369_v12 = vmax.f32 %v2364_v10, 0.0 }
 0xce3   : > { %v2366_v13 = vpop.f32.mrf.mxu1 }
 0xce4   : > { %v2370_v14 = vpack.c.bf16 %v2369_v12, %v2369_v12 }
 0xce5   : > { %v5383_v15 = vpop.f32.mrf.mxu1 }
 0xce6   : > { %5389 = vmatmul.mubr.msk.bf16.vlgmr.msra.gmra.mxu0 %vm1419_vm3, %v2370_v14  ;;  %v2696_v14 = vlaneseq }
 0xce7   : > { %5404 = vmatprep.mubr.msk.bf16.mxu0 %vm6877_vm2, %v6876_v0  ;;  %5393 = vmatpush3.bf16.msra.mxu0 %v6037_v16 }
 0xce8   : > { %5394 = vmatprep.subr.bf16.mxu0 %v6876_v0  ;;  %v2697_v15 = vand.u32 127, %v2696_v14 }
 0xceb   : > { %5395 = vmatpush3.bf16.msra.mxu0 %v6038_v17 }
 0xcec   : > { %5396 = vmatprep.subr.bf16.mxu0 %v6876_v0 }
 0xcef   : > { %5397 = vmatpush3.bf16.msra.mxu0 %v6039_v18 }
 0xcf0   : > { %5398 = vmatprep.subr.bf16.mxu0 %v6876_v0 }
 0xcf3   : > { %5399 = vmatpush3.bf16.msra.mxu0 %v6040_v19 }
 0xcf4   : > { %5400 = vmatprep.subr.bf16.mxu0 %v6876_v0 }
 0xcf7   : > { %5401 = vmatpush3.bf16.msra.mxu0 %v6041_v20 }
 0xcf8   : > { %5402 = vmatprep.subr.bf16.mxu0 %v6876_v0 }
 0xcfb   : > { %5403 = vmatpush3.bf16.msra.mxu0 %v6042_v22 }
 0xcfc   : > { %5408 = vmatprep.subr.bf16.mxu0 %v6876_v0 }
 0xda6   : > { %v2426_v23 = vpop.f32.mrf.mxu0 }
 0xda7   : > { %v2427_v24 = vadd.f32 %v4970_v21, %v2426_v23 }
 0xda8   : > { %v5390_v25 = vpop.f32.mrf.mxu0 }
 0xda9   : > { %v2432_v26 = vadd.f32 %v2427_v24, %v2243_v57 }
 0xdaa   : > { %v2429_v27 = vpop.f32.mrf.mxu0 }
 0xdab   : > { %2447 = vst.msk [vmem:[#allocation2 + $0x8] sm:$0xf] %vm2078_vm8, %v2432_v26 }
 0xdac   : > { %v5391_v28 = vpop.f32.mrf.mxu0 }
 0xdb2   : > { %v2451_v29 = vld [vmem:[#allocation2 + $0x9] sm:$0xf] }
 0xdb3   : > { %v2450_v30 = vld [vmem:[#allocation2 + $0x8] sm:$0xf]  ;;  %2457 = vrot.lane.b32.xlu1 %v2451_v29, %s6882_s10  ;;  %2885 = vst.msk [vmem:[#allocation2 + $0xc] sm:$0xff] %vm1419_vm3, %v6876_v0 }
 0xdb4   : > { %v2449_v31 = vld [vmem:[#allocation2 + $0x7] sm:$0xf]  ;;  %2453 = vrot.lane.b32.xlu0 %v2450_v30, %s6880_s5 }
 0xdb5   : > { %2883 = vst.msk [vmem:[#allocation2] sm:$0xff] %vm1419_vm3, %v6876_v0  ;;  %v6045_v30 = vld [vmem:[%s7034_s27] sm:$0xff]  }
 0xe25   : > { %v2458_v32 = vpop.permute.xlu1 %2457 }
 0xe26   : > { %v2454_v33 = vpop.permute.xlu0 %2453 }
 0xe27   : > { %v2460_v34 = vsel %vm1419_vm3, %v2449_v31, %v2454_v33 }
 0xe28   : > { %v2461_v35 = vsel %vm1445_vm6, %v2460_v34, %v2458_v32 }
 0xe29   : > { %v2462_v37 = vpack.c.bf16 %v2461_v35, %v2461_v35  ;;  %v6046_v35 = vld [vmem:[#allocation6 + $0x28] sm:$0xff]  }
 0xe2b   : > { %5405 = vmatmul.mubr.msk.bf16.vlgmr.msra.gmra.mxu0 %vm1447_vm7, %v2462_v37  ;;  %v6048_v37 = vld [vmem:[#allocation6 + $0x18] sm:$0xff]  }
 0xe2c   : > { %5409 = vmatpush3.bf16.msra.mxu0 %v6043_v36  ;;  %5412 = vmatprep.mubr.msk.bf16.mxu0 %vm6877_vm2, %v6876_v0  ;;  %v6047_v36 = vld [vmem:[#allocation6 + $0x20] sm:$0xff]  }
 0xe2d   : > { %5410 = vmatprep.subr.bf16.mxu0 %v6876_v0 }
 0xe30   : > { %5411 = vmatpush3.bf16.msra.mxu0 %v6044_v38  ;;  %v6049_v38 = vld [vmem:[#allocation6 + $0x10] sm:$0xff]  }
 0xe31   : > { %5428 = vmatprep.subr.mxu0 %v6876_v0 }
 0xeeb   : > { %v2542_v56 = vpop.f32.mrf.mxu0 }
 0xeec   : > { %v2543_v57 = vadd.f32 %v4974_v55, %v2542_v56  ;;  %v6052_v55 = vld [vmem:[#allocation17 + $0x28] sm:$0xff]   ;;  %v6053_v56 = vld [vmem:[#allocation17 + $0x20] sm:$0xff]  }
 0xeed   : > { %v5406_v58 = vpop.f32.mrf.mxu0 }
 0xeee   : > { %v2553_v59 = vpack.c.bf16 %v2543_v57, %v2543_v57  ;;  %v6054_v57 = vld [vmem:[#allocation17 + $0x18] sm:$0xff]   ;;  %v6055_v58 = vld [vmem:[#allocation17 + $0x10] sm:$0xff]  }
 0xeef   : > { %v2545_v60 = vpop.f32.mrf.mxu0 }
 0xef0   : > { %5413 = vmatmul.mubr.msk.bf16.vlgmr.msra.gmra.mxu0 %vm1419_vm3, %v2553_v59  ;;  %v6056_v59 = vld [vmem:[#allocation17 + $0x8] sm:$0xff]   ;;  %v4993_v60 = vld [vmem:[#allocation3] ss:$0 sm:$0xff] }
 0xef1   : > { %v5407_v61 = vpop.f32.mrf.mxu0  ;;  %5429 = vmatpush3.msra.mxu0 %v2622_v40  ;;  %5444 = vmatprep.mubr.msk.f32.mxu0 %vm6877_vm2, %v6876_v0  ;;  %v6051_v40 = vld [vmem:[#allocation6] sm:$0xff]  }
 0xef2   : > { %5430 = vmatprep.subr.mxu0 %v6876_v0 }
 0xef3   : > { %5431 = vmatpush3.msra.mxu0 %v2621_v39  ;;  %v6050_v39 = vld [vmem:[#allocation6 + $0x8] sm:$0xff]  }
 0xef4   : > { %5432 = vmatprep.subr.mxu0 %v6876_v0 }
 0xef5   : > { %5433 = vmatpush3.msra.mxu0 %v2620_v43 }
 0xef6   : > { %5434 = vmatprep.subr.mxu0 %v6876_v0 }
 0xef7   : > { %5435 = vmatpush3.msra.mxu0 %v2619_v42 }
 0xef8   : > { %5436 = vmatprep.subr.mxu0 %v6876_v0 }
 0xef9   : > { %5437 = vmatpush3.msra.mxu0 %v2618_v48 }
 0xefa   : > { %5438 = vmatprep.subr.mxu0 %v6876_v0 }
 0xefb   : > { %5439 = vmatpush3.msra.mxu0 %v2617_v47 }
 0xefc   : > { %5440 = vmatprep.subr.mxu0 %v6876_v0 }
 0xefd   : > { %5441 = vmatpush3.msra.mxu0 %v2616_v52 }
 0xefe   : > { %5442 = vmatprep.subr.mxu0 %v6876_v0 }
 0xeff   : > { %5443 = vmatpush3.msra.mxu0 %v2615_v51 }
 0xf00   : > { %5447 = vmatprep.subr.bf16.mxu0 %v6876_v0 }
 0xfb0   : > { %v2609_v63 = vpop.f32.mrf.mxu0 }
 0xfb1   : > { %v7546_v1 = vadd.f32 %v4982_v62, %v2609_v63  ;;  %v6057_v63 = vld [vmem:[#allocation17] sm:$0xff]  }
 0xfb2   : > { %v5414_v2 = vpop.f32.mrf.mxu0 }
 0xfb3   : > { %v2624_v3 = vpack.c.bf16 %v7546_v1, %v7546_v1 }
 0xfb4   : > { %v2612_v4 = vpop.f32.mrf.mxu0 }
 0xfb5   : > { %5425 = vmatmul.mubr.msk.bf16.vlgmr.msra.gmra.mxu1 %vm1332_vm4, %v2624_v3 }
 0xfb6   : > { %v5415_v5 = vpop.f32.mrf.mxu0  ;;  %5481 = vmatprep.mubr.msk.bf16.mxu1 %vm6877_vm2, %v6876_v0  ;;  %5470 = vmatpush3.bf16.msra.mxu1 %v6052_v55 }
 0xfb7   : > { %5471 = vmatprep.subr.bf16.mxu1 %v6876_v0 }
 0xfba   : > { %5472 = vmatpush3.bf16.msra.mxu1 %v6053_v56 }
 0xfbb   : > { %5473 = vmatprep.subr.bf16.mxu1 %v6876_v0 }
 0xfbe   : > { %5474 = vmatpush3.bf16.msra.mxu1 %v6054_v57 }
 0xfbf   : > { %5475 = vmatprep.subr.bf16.mxu1 %v6876_v0 }
 0xfc2   : > { %5476 = vmatpush3.bf16.msra.mxu1 %v6055_v58 }
 0xfc3   : > { %5477 = vmatprep.subr.bf16.mxu1 %v6876_v0 }
 0xfc6   : > { %5478 = vmatpush3.bf16.msra.mxu1 %v6056_v59  ;;  %v6068_v59 = vld [vmem:[#allocation21 + $0x28] sm:$0xff]  }
 0xfc7   : > { %5479 = vmatprep.subr.bf16.mxu1 %v6876_v0 }
 0xfca   : > { %5480 = vmatpush3.bf16.msra.mxu1 %v6057_v63  ;;  %v6072_v63 = vld [vmem:[#allocation21 + $0x8] sm:$0xff]  }
 0xfcb   : > { %5493 = vmatprep.subr.bf16.mxu1 %v6876_v0 }
0x1075   : > { %v2678_v6 = vpop.f32.mrf.mxu1 }
0x1076   : > { %v2684_v8 = vmul.f32 2.0, %v2678_v6 }
0x1077   : > { %v5426_v9 = vpop.f32.mrf.mxu1 }
0x1078   : > { %v2691_v10 = vsub.f32 %v4987_v7, %v2684_v8  ;;  %v6058_v7 = vld [vmem:[#allocation18 + $0x8] sm:$0xff]  }
0x1079   : > { %v2681_v11 = vpop.f32.mrf.mxu1 }
0x107a   : > { %v2693_v12 = vsel %vm2692_vm9, %v2691_v10, inf }
0x107b   : > { %2694 = vmin.xlane.f32.xlu0 %v2693_v12  ;;  %v5427_v13 = vpop.f32.mrf.mxu1 }
0x1104   : > { %v2695_v16 = vpop.xlane.xlu0 %2694 }
0x1105   : > { %vm2698_vm10 = vcmp.le.f32.partialorder %v2691_v10, %v2695_v16 }
0x1106   : > { %v2699_v17 = vsel %vm2698_vm10, %v2697_v15, 2147483647 }
0x1107   : > { %v2700_v18 = vsel %vm2692_vm9, %v2699_v17, 2147483647  ;;  %v6059_v17 = vld [vmem:[#allocation18] sm:$0xff]  }
0x1108   : > { %v2702_v19 = vshra.s32 %v2700_v18, 16  ;;  %v2701_v21 = vand.u32 65535, %v2700_v18  ;;  %v5001_v18 = vld [vmem:[#allocation14] ss:$0 sm:$0xff] }
0x110a   : > { %v2704_v20 = vcvt.s32.f32 %v2702_v19  ;;  %v2703_v23 = vcvt.s32.f32 %v2701_v21 }
0x110c   : > { %2705 = vmin.xlane.f32.xlu1 %v2704_v20 }
0x1195   : > { %v2706_v22 = vpop.xlane.xlu1 %2705 }
0x1196   : > { %vm2707_vm11 = vcmp.eq.f32.partialorder %v2704_v20, %v2706_v22  ;;  %v2712_v25 = vcvt.f32.s32 %v2706_v22 }
0x1197   : > { %v2708_v24 = vsel %vm2707_vm11, %v2703_v23, inf }
0x1198   : > { %2709 = vmin.xlane.f32.xlu0 %v2708_v24  ;;  %v2713_v27 = vshll.u32 %v2712_v25, 16 }
0x1221   : > { %v2710_v26 = vpop.xlane.xlu0 %2709 }
0x1222   : > { %v2711_v28 = vcvt.f32.s32 %v2710_v26  ;;  %v6060_v26 = vld [vmem:[#allocation17 + $0x58] sm:$0xff]  }
0x1224   : > { %v2714_v29 = vadd.s32 %v2713_v27, %v2711_v28  ;;  %v6061_v27 = vld [vmem:[#allocation17 + $0x50] sm:$0xff]   ;;  %v6062_v28 = vld [vmem:[#allocation17 + $0x48] sm:$0xff]  }
0x1226   : > { %vm2715_vm13 = vcmp.eq.s32.totalorder %v2697_v15, %v2714_v29  ;;  %2810 = vst.msk [vmem:[%s1292_s2] sm:$0xf] %vm2809_vm12, %v2714_v29  ;;  %v6063_v29 = vld [vmem:[#allocation17 + $0x40] sm:$0xff]   ;;  %s6712_s2 = scalar_lea.vmem %s6711_s21, 256 }
0x1227   : > { %v4988_v31 = vsel %vm2715_vm13, 1.0, %v6876_v0 }
0x1228   : > { %5445 = vmatmul.mubr.msk.f32.vlgmr.msra.gmra.mxu0 %vm1445_vm6, %v4988_v31  ;;  %v5009_v31 = vld [vmem:[#allocation15] ss:$0 sm:$0xff] }
0x1229   : > { %5448 = vmatpush3.bf16.msra.mxu0 %v6045_v30  ;;  %5449 = vmatprep.mubr.msk.bf16.mxu0 %vm6877_vm2, %v6876_v0  ;;  %v6064_v30 = vld [vmem:[#allocation17 + $0x38] sm:$0xff]  }
0x122a   : > { %5453 = vmatprep.subr.bf16.mxu0 %v6876_v0 }
0x12e8   : > { %v7563_v32 = vpop.f32.mrf.mxu0 }
0x12e9   : > { %v2814_v33 = vpack.c.bf16 %v7563_v32, %v7563_v32 }
0x12ea   : > { %v5446_v34 = vpop.f32.mrf.mxu0 }
0x12eb   : > { %5450 = vmatmul.mubr.msk.bf16.vlgmr.msra.gmra.mxu0 %vm1332_vm4, %v2814_v33 }
0x12ec   : > { %5465 = vmatprep.mubr.msk.bf16.mxu0 %vm6877_vm2, %v6876_v0  ;;  %5454 = vmatpush3.bf16.msra.mxu0 %v6046_v35  ;;  %v6065_v35 = vld [vmem:[#allocation17 + $0x30] sm:$0xff]  }
0x12ed   : > { %5455 = vmatprep.subr.bf16.mxu0 %v6876_v0 }
0x12f0   : > { %5456 = vmatpush3.bf16.msra.mxu0 %v6047_v36 }
0x12f1   : > { %5457 = vmatprep.subr.bf16.mxu0 %v6876_v0 }
0x12f4   : > { %5458 = vmatpush3.bf16.msra.mxu0 %v6048_v37 }
0x12f5   : > { %5459 = vmatprep.subr.bf16.mxu0 %v6876_v0 }
0x12f8   : > { %5460 = vmatpush3.bf16.msra.mxu0 %v6049_v38 }
0x12f9   : > { %5461 = vmatprep.subr.bf16.mxu0 %v6876_v0 }
0x12fc   : > { %5462 = vmatpush3.bf16.msra.mxu0 %v6050_v39 }
0x12fd   : > { %5463 = vmatprep.subr.bf16.mxu0 %v6876_v0 }
0x1300   : > { %5464 = vmatpush3.bf16.msra.mxu0 %v6051_v40 }
0x1301   : > { %5485 = vmatprep.subr.bf16.mxu0 %v6876_v0 }
0x13ab   : > { %v2864_v42 = vpop.f32.mrf.mxu0 }
0x13ac   : > { %v2865_v43 = vadd.f32 %v4990_v41, %v2864_v42  ;;  %v6066_v41 = vld [vmem:[#allocation18 + $0x18] sm:$0xff]  }
0x13ad   : > { %v5451_v44 = vpop.f32.mrf.mxu0 }
0x13ae   : > { %2884 = vst.msk [vmem:[#allocation2 + $0x8] sm:$0xf] %vm2078_vm8, %v2865_v43 }
0x13af   : > { %v2867_v45 = vpop.f32.mrf.mxu0 }
0x13b1   : > { %v5452_v46 = vpop.f32.mrf.mxu0 }
0x13b5   : > { %v2888_v47 = vld [vmem:[#allocation2 + $0x9] sm:$0xf] }
0x13b6   : > { %v2887_v48 = vld [vmem:[#allocation2 + $0x8] sm:$0xf]  ;;  %2894 = vrot.lane.b32.xlu1 %v2888_v47, %s6882_s10  ;;  %3007 = vst.msk [vmem:[#allocation2 + $0xc] sm:$0xff] %vm1419_vm3, %v6876_v0 }
0x13b7   : > { %v2886_v49 = vld [vmem:[#allocation2 + $0x7] sm:$0xf]  ;;  %2890 = vrot.lane.b32.xlu0 %v2887_v48, %s6880_s5 }
0x13b8   : > { %3005 = vst.msk [vmem:[#allocation2] sm:$0xff] %vm1419_vm3, %v6876_v0 }
0x1428   : > { %v2895_v50 = vpop.permute.xlu1 %2894 }
0x1429   : > { %v2891_v51 = vpop.permute.xlu0 %2890 }
0x142a   : > { %v2897_v52 = vsel %vm1419_vm3, %v2886_v49, %v2891_v51  ;;  %v5013_v51 = vld [vmem:[#allocation14 + $0x1] ss:$0 sm:$0xff] }
0x142b   : > { %v2898_v53 = vsel %vm1445_vm6, %v2897_v52, %v2895_v50  ;;  %v6067_v50 = vld [vmem:[#allocation18 + $0x10] sm:$0xff]  }
0x142c   : > { %v2899_v54 = vpack.c.bf16 %v2898_v53, %v2898_v53 }
0x142e   : > { %5466 = vmatmul.mubr.msk.bf16.vlgmr.msra.gmra.mxu0 %vm1447_vm7, %v2899_v54 }
0x142f   : > { %5489 = vmatprep.mubr.msk.bf16.mxu0 %vm6877_vm2, %v6876_v0  ;;  %5486 = vmatpush3.bf16.msra.mxu0 %v6058_v7 }
0x1430   : > { %5487 = vmatprep.subr.bf16.mxu0 %v6876_v0 }
0x1433   : > { %5488 = vmatpush3.bf16.msra.mxu0 %v6059_v17 }
0x1434   : > { %5509 = vmatprep.subr.bf16.mxu0 %v6876_v0 }
0x14ee   : > { %v2979_v61 = vpop.f32.mrf.mxu0 }
0x14ef   : > { %v2980_v62 = vadd.f32 %v4993_v60, %v2979_v61  ;;  %v6069_v60 = vld [vmem:[#allocation21 + $0x20] sm:$0xff]   ;;  %v6070_v61 = vld [vmem:[#allocation21 + $0x18] sm:$0xff]  }
0x14f0   : > { %v5467_v2 = vpop.f32.mrf.mxu0 }
0x14f1   : > { %v2985_v3 = vmax.f32 %v2980_v62, 0.0  ;;  %v6071_v62 = vld [vmem:[#allocation21 + $0x10] sm:$0xff]   ;;  %v6883_v2 = vmov 1966171168  }
0x14f2   : > { %v2982_v4 = vpop.f32.mrf.mxu0 }
0x14f3   : > { %v3004_v5 = vmax.f32 %v2985_v3, 0.0 }
0x14f4   : > { %v5468_v6 = vpop.f32.mrf.mxu0 }
0x14f5   : > { %3006 = vst.msk [vmem:[#allocation2 + $0x8] sm:$0xf] %vm2078_vm8, %v3004_v5  ;;  %v3365_v5 = vshrl.u32 %v2696_v14, 7  ;;  %v5021_v6 = vld [vmem:[#allocation15 + $0x1] ss:$0 sm:$0xff] }
0x14fc   : > { %v3010_v8 = vld [vmem:[#allocation2 + $0xb] sm:$0xf]  ;;  %v3008_v10 = vld [vmem:[#allocation2 + $0x5] sm:$0xf] }
0x14fd   : > { %v3009_v9 = vld [vmem:[#allocation2 + $0x8] sm:$0xf]  ;;  %3016 = vrot.lane.b32.xlu0 %v3010_v8, %s6882_s10  ;;  %3196 = vst.msk [vmem:[#allocation2 + $0xc] sm:$0xff] %vm1419_vm3, %v6876_v0  ;;  %3194 = vst.msk [vmem:[#allocation2] sm:$0xff] %vm1419_vm3, %v6876_v0 }
0x14fe   : > { %3012 = vrot.lane.b32.xlu1 %v3009_v9, %s6880_s5  ;;  %3434 = vst.msk [vmem:[#allocation2 + $0x10] sm:$0xff] %vm1419_vm3, %v6876_v0 }
0x156f   : > { %v3017_v11 = vpop.permute.xlu0 %3016 }
0x1570   : > { %v3013_v12 = vpop.permute.xlu1 %3012 }
0x1571   : > { %v3019_v13 = vsel %vm1419_vm3, %v3008_v10, %v3013_v12 }
0x1572   : > { %v3020_v15 = vsel %vm1445_vm6, %v3019_v13, %v3017_v11  ;;  %v6884_v13 = vmov 1983009808  }
0x1573   : > { %v3021_v16 = vpack.c.bf16 %v3020_v15, %v3020_v15  ;;  %v3418_v15 = vunpack.c.l.s4 %v6884_v13 }
0x1575   : > { %5482 = vmatmul.mubr.msk.bf16.vlgmr.msra.gmra.mxu1 %vm1447_vm7, %v3021_v16 }
0x1576   : > { %5505 = vmatprep.mubr.msk.bf16.mxu1 %vm6877_vm2, %v6876_v0  ;;  %5494 = vmatpush3.bf16.msra.mxu1 %v6060_v26 }
0x1577   : > { %5495 = vmatprep.subr.bf16.mxu1 %v6876_v0 }
0x157a   : > { %5496 = vmatpush3.bf16.msra.mxu1 %v6061_v27 }
0x157b   : > { %5497 = vmatprep.subr.bf16.mxu1 %v6876_v0 }
0x157e   : > { %5498 = vmatpush3.bf16.msra.mxu1 %v6062_v28 }
0x157f   : > { %5499 = vmatprep.subr.bf16.mxu1 %v6876_v0 }
0x1582   : > { %5500 = vmatpush3.bf16.msra.mxu1 %v6063_v29 }
0x1583   : > { %5501 = vmatprep.subr.bf16.mxu1 %v6876_v0 }
0x1586   : > { %5502 = vmatpush3.bf16.msra.mxu1 %v6064_v30 }
0x1587   : > { %5503 = vmatprep.subr.bf16.mxu1 %v6876_v0 }
0x158a   : > { %5504 = vmatpush3.bf16.msra.mxu1 %v6065_v35 }
0x158b   : > { %5533 = vmatprep.subr.bf16.mxu1 %v6876_v0 }
0x1635   : > { %v3101_v19 = vpop.f32.mrf.mxu1 }
0x1636   : > { %v3102_v20 = vadd.f32 %v5001_v18, %v3101_v19  ;;  %v7643_v18 = vsub.s32 0, %v3365_v5 }
0x1637   : > { %v5483_v21 = vpop.f32.mrf.mxu1 }
0x1638   : > { %v3107_v22 = vmax.f32 %v3102_v20, 0.0  ;;  %v3419_v21 = vunpack.c.0.s8 %v3418_v15  ;;  %v6082_v15 = vld [vmem:[#allocation17 + $0xb8] sm:$0xff]  }
0x1639   : > { %v3104_v23 = vpop.f32.mrf.mxu1 }
0x163a   : > { %v3108_v24 = vpack.c.bf16 %v3107_v22, %v3107_v22  ;;  %v7649_v26 = vsub.s32 %v3419_v21, %v3365_v5  ;;  %v5041_v21 = vld [vmem:[#allocation15 + $0x2] ss:$0 sm:$0xff] }
0x163b   : > { %v5484_v25 = vpop.f32.mrf.mxu1 }
0x163c   : > { %5490 = vmatmul.mubr.msk.bf16.vlgmr.msra.gmra.mxu0 %vm1419_vm3, %v3108_v24 }
0x163d   : > { %5513 = vmatprep.mubr.msk.bf16.mxu0 %vm6877_vm2, %v6876_v0  ;;  %5510 = vmatpush3.bf16.msra.mxu0 %v6066_v41 }
0x163e   : > { %5511 = vmatprep.subr.bf16.mxu0 %v6876_v0 }
0x1641   : > { %5512 = vmatpush3.bf16.msra.mxu0 %v6067_v50  ;;  %v6079_v50 = vld [vmem:[#allocation17 + $0x60] sm:$0xff]  }
0x1642   : > { %5517 = vmatprep.subr.bf16.mxu0 %v6876_v0 }
0x16fc   : > { %v3164_v33 = vpop.f32.mrf.mxu0 }
0x16fd   : > { %v3165_v34 = vadd.f32 %v5009_v31, %v3164_v33  ;;  %v6073_v31 = vld [vmem:[#allocation21] sm:$0xff]  }
0x16fe   : > { %v5491_v36 = vpop.f32.mrf.mxu0 }
0x16ff   : > { %v3170_v37 = vadd.f32 %v3165_v34, %v2985_v3  ;;  %v3362_v3 = vunpack.c.l.s4 %v6883_v2 }
0x1700   : > { %v3167_v38 = vpop.f32.mrf.mxu0 }
0x1701   : > { %v3193_v39 = vmax.f32 %v3170_v37, 0.0  ;;  %v3363_v4 = vunpack.c.0.s8 %v3362_v3 }
0x1702   : > { %v5492_v40 = vpop.f32.mrf.mxu0 }
0x1703   : > { %3195 = vst.msk [vmem:[#allocation2 + $0x8] sm:$0xf] %vm2078_vm8, %v3193_v39  ;;  %v7640_v8 = vsub.s32 %v3363_v4, %v3365_v5  ;;  %v6081_v4 = vld [vmem:[#allocation18 + $0x20] sm:$0xff]   ;;  %v5033_v5 = vld [vmem:[#allocation14 + $0x2] ss:$0 sm:$0xff] }
0x170a   : > { %v3199_v42 = vld [vmem:[#allocation2 + $0x9] sm:$0xf] }
0x170b   : > { %v3198_v43 = vld [vmem:[#allocation2 + $0x8] sm:$0xf]  ;;  %3205 = vrot.lane.b32.xlu0 %v3199_v42, %s6882_s10 }
0x170c   : > { %v3197_v44 = vld [vmem:[#allocation2 + $0x7] sm:$0xf]  ;;  %3201 = vrot.lane.b32.xlu1 %v3198_v43, %s6880_s5 }
0x170d   : > { %3414 = vst.msk [vmem:[#allocation2] sm:$0xff] %vm1419_vm3, %v6876_v0 }
0x177d   : > { %v3206_v45 = vpop.permute.xlu0 %3205 }
0x177e   : > { %v3202_v46 = vpop.permute.xlu1 %3201 }
0x177f   : > { %v3208_v47 = vsel %vm1419_vm3, %v3197_v44, %v3202_v46  ;;  %v6074_v44 = vld [vmem:[#allocation17 + $0x88] sm:$0xff]   ;;  %v6076_v46 = vld [vmem:[#allocation17 + $0x78] sm:$0xff]  }
0x1780   : > { %v3209_v48 = vsel %vm1445_vm6, %v3208_v47, %v3206_v45  ;;  %v6075_v45 = vld [vmem:[#allocation17 + $0x80] sm:$0xff]   ;;  %v6077_v47 = vld [vmem:[#allocation17 + $0x70] sm:$0xff]  }
0x1781   : > { %v3210_v49 = vpack.c.bf16 %v3209_v48, %v3209_v48  ;;  %v6078_v48 = vld [vmem:[#allocation17 + $0x68] sm:$0xff]  }
0x1783   : > { %5506 = vmatmul.mubr.msk.bf16.vlgmr.msra.gmra.mxu1 %vm1447_vm7, %v3210_v49  ;;  %v5025_v49 = vld [vmem:[#allocation20] ss:$0 sm:$0xff] }
0x1784   : > { %5545 = vmatprep.mubr.msk.bf16.mxu1 %vm6877_vm2, %v6876_v0  ;;  %5534 = vmatpush3.bf16.msra.mxu1 %v6074_v44 }
0x1785   : > { %5535 = vmatprep.subr.bf16.mxu1 %v6876_v0 }
0x1788   : > { %5536 = vmatpush3.bf16.msra.mxu1 %v6075_v45 }
0x1789   : > { %5537 = vmatprep.subr.bf16.mxu1 %v6876_v0 }
0x178c   : > { %5538 = vmatpush3.bf16.msra.mxu1 %v6076_v46 }
0x178d   : > { %5539 = vmatprep.subr.bf16.mxu1 %v6876_v0 }
0x1790   : > { %5540 = vmatpush3.bf16.msra.mxu1 %v6077_v47 }
0x1791   : > { %5541 = vmatprep.subr.bf16.mxu1 %v6876_v0 }
0x1794   : > { %5542 = vmatpush3.bf16.msra.mxu1 %v6078_v48 }
0x1795   : > { %5543 = vmatprep.subr.bf16.mxu1 %v6876_v0 }
0x1798   : > { %5544 = vmatpush3.bf16.msra.mxu1 %v6079_v50  ;;  %v6091_v50 = vld [vmem:[#allocation21 + $0x50] sm:$0xff]  }
0x1799   : > { %5573 = vmatprep.subr.bf16.mxu1 %v6876_v0 }
0x1843   : > { %v3290_v52 = vpop.f32.mrf.mxu1 }
0x1844   : > { %v3291_v53 = vadd.f32 %v5013_v51, %v3290_v52 }
0x1845   : > { %v5507_v54 = vpop.f32.mrf.mxu1 }
0x1846   : > { %v3296_v55 = vmax.f32 %v3291_v53, 0.0 }
0x1847   : > { %v3293_v56 = vpop.f32.mrf.mxu1 }
0x1848   : > { %v3297_v57 = vpack.c.bf16 %v3296_v55, %v3296_v55  ;;  %v6080_v56 = vld [vmem:[#allocation18 + $0x28] sm:$0xff]  }
0x1849   : > { %v5508_v58 = vpop.f32.mrf.mxu1 }
0x184a   : > { %5514 = vmatmul.mubr.msk.bf16.vlgmr.msra.gmra.mxu0 %vm1419_vm3, %v3297_v57 }
0x184b   : > { %5529 = vmatprep.mubr.msk.bf16.mxu0 %vm6877_vm2, %v6876_v0  ;;  %5518 = vmatpush3.bf16.msra.mxu0 %v6068_v59 }
0x184c   : > { %5519 = vmatprep.subr.bf16.mxu0 %v6876_v0 }
0x184f   : > { %5520 = vmatpush3.bf16.msra.mxu0 %v6069_v60 }
0x1850   : > { %5521 = vmatprep.subr.bf16.mxu0 %v6876_v0 }
0x1853   : > { %5522 = vmatpush3.bf16.msra.mxu0 %v6070_v61 }
0x1854   : > { %5523 = vmatprep.subr.bf16.mxu0 %v6876_v0 }
0x1857   : > { %5524 = vmatpush3.bf16.msra.mxu0 %v6071_v62 }
0x1858   : > { %5525 = vmatprep.subr.bf16.mxu0 %v6876_v0 }
0x185b   : > { %5526 = vmatpush3.bf16.msra.mxu0 %v6072_v63 }
0x185c   : > { %5527 = vmatprep.subr.bf16.mxu0 %v6876_v0 }
0x185f   : > { %5528 = vmatpush3.bf16.msra.mxu0 %v6073_v31 }
0x1860   : > { %5549 = vmatprep.subr.bf16.mxu0 %v6876_v0 }
0x190a   : > { %v3353_v7 = vpop.f32.mrf.mxu0 }
0x190b   : > { %v3354_v9 = vadd.f32 %v5021_v6, %v3353_v7 }
0x190c   : > { %v5515_v10 = vpop.f32.mrf.mxu0 }
0x190d   : > { %v3359_v11 = vadd.f32 %v3354_v9, %v3170_v37 }
0x190e   : > { %v3356_v12 = vpop.f32.mrf.mxu0 }
0x190f   : > { %v3367_v16 = vrot.slane %v3359_v11, %v7640_v8 }
0x1910   : > { %v5516_v17 = vpop.f32.mrf.mxu0 }
0x1911   : > { %v3368_v19 = vcombine.high %v3367_v16, %v3367_v16  ;;  %v3375_v20 = vrot.slane %v3367_v16, %v7640_v8  ;;  %v6083_v16 = vld [vmem:[#allocation17 + $0xb0] sm:$0xff]   ;;  %v6084_v17 = vld [vmem:[#allocation17 + $0xa8] sm:$0xff]  }
0x1913   : > { %v3382_v14 = vrot.slane %v3368_v19, %v7640_v8  ;;  %v3383_v22 = vcombine.high %v3375_v20, %v3375_v20  ;;  %v3388_v24 = vrot.slane %v3375_v20, %v7643_v18  ;;  %v6085_v19 = vld [vmem:[#allocation17 + $0xa0] sm:$0xff]   ;;  %v6086_v20 = vld [vmem:[#allocation17 + $0x98] sm:$0xff]  }
0x1915   : > { %v3384_v23 = vcombine.high %v3382_v14, %v3382_v14  ;;  %v3392_v25 = vrot.slane %v3382_v14, %v7643_v18  ;;  %v3396_v27 = vrot.slane %v3383_v22, %v7643_v18 }
0x1917   : > { %v3400_v28 = vrot.slane %v3384_v23, %v7643_v18  ;;  %v3415_v29 = vcombine.low %v3388_v24, %v3392_v25  ;;  %v6087_v23 = vld [vmem:[#allocation17 + $0x90] sm:$0xff]  }
0x1919   : > { %v3416_v30 = vcombine.low %v3396_v27, %v3400_v28  ;;  %v3423_v33 = vrot.slane %v3415_v29, %v7649_v26 }
0x191b   : > { %v3430_v34 = vrot.slane %v3416_v30, %v7649_v26  ;;  %v6088_v30 = vld [vmem:[#allocation18 + $0x38] sm:$0xff]  }
0x191d   : > { %v3431_v35 = vcombine.low %v3423_v33, %v3430_v34 }
0x191f   : > { %3433 = vst.msk [vmem:[#allocation2 + $0x8] sm:$0xff] %vm1419_vm3, %v3431_v35 }
0x1926   : > { %v3437_v36 = vld [vmem:[#allocation2 + $0x9] sm:$0xff] }
0x1927   : > { %v3436_v37 = vld [vmem:[#allocation2 + $0x8] sm:$0xff]  ;;  %3443 = vrot.lane.b32.xlu0 %v3437_v36, %s6882_s10  ;;  %3559 = vst.msk [vmem:[#allocation2 + $0x10] sm:$0xff] %vm1419_vm3, %v6876_v0 }
0x1928   : > { %v3435_v38 = vld [vmem:[#allocation2 + $0x7] sm:$0xff]  ;;  %3439 = vrot.lane.b32.xlu1 %v3436_v37, %s6880_s5 }
0x1929   : > { %3557 = vst.msk [vmem:[#allocation2] sm:$0xff] %vm1419_vm3, %v6876_v0 }
0x1999   : > { %v3444_v39 = vpop.permute.xlu0 %3443 }
0x199a   : > { %v3440_v40 = vpop.permute.xlu1 %3439 }
0x199b   : > { %v3446_v41 = vsel %vm1419_vm3, %v3435_v38, %v3440_v40  ;;  %v6089_v40 = vld [vmem:[#allocation18 + $0x30] sm:$0xff]  }
0x199c   : > { %v3447_v42 = vsel %vm1445_vm6, %v3446_v41, %v3444_v39  ;;  %v5045_v41 = vld [vmem:[#allocation14 + $0x3] ss:$0 sm:$0xff] }
0x199d   : > { %v3448_v43 = vpack.c.bf16 %v3447_v42, %v3447_v42 }
0x199f   : > { %5530 = vmatmul.mubr.msk.bf16.vlgmr.msra.gmra.mxu0 %vm1447_vm7, %v3448_v43 }
0x19a0   : > { %5553 = vmatprep.mubr.msk.bf16.mxu0 %vm6877_vm2, %v6876_v0  ;;  %5550 = vmatpush3.bf16.msra.mxu0 %v6080_v56 }
0x19a1   : > { %5551 = vmatprep.subr.bf16.mxu0 %v6876_v0 }
0x19a4   : > { %5552 = vmatpush3.bf16.msra.mxu0 %v6081_v4 }
0x19a5   : > { %5557 = vmatprep.subr.bf16.mxu0 %v6876_v0 }
0x1a5f   : > { %v3528_v51 = vpop.f32.mrf.mxu0 }
0x1a60   : > { %v3529_v52 = vadd.f32 %v5025_v49, %v3528_v51  ;;  %v6090_v49 = vld [vmem:[#allocation21 + $0x58] sm:$0xff]   ;;  %v6092_v51 = vld [vmem:[#allocation21 + $0x48] sm:$0xff]  }
0x1a61   : > { %v5531_v53 = vpop.f32.mrf.mxu0 }
0x1a62   : > { %v3556_v54 = vmax.f32 %v3529_v52, 0.0  ;;  %v6094_v53 = vld [vmem:[#allocation21 + $0x38] sm:$0xff]  }
0x1a63   : > { %v3531_v55 = vpop.f32.mrf.mxu0 }
0x1a64   : > { %3558 = vst.msk [vmem:[#allocation2 + $0x8] sm:$0xff] %vm1419_vm3, %v3556_v54  ;;  %v5053_v54 = vld [vmem:[#allocation15 + $0x3] ss:$0 sm:$0xff] }
0x1a65   : > { %v5532_v57 = vpop.f32.mrf.mxu0 }
0x1a6b   : > { %v3562_v58 = vld [vmem:[#allocation2 + $0xb] sm:$0xff] }
0x1a6c   : > { %v3561_v59 = vld [vmem:[#allocation2 + $0x8] sm:$0xff]  ;;  %3568 = vrot.lane.b32.xlu0 %v3562_v58, %s6882_s10  ;;  %3748 = vst.msk [vmem:[#allocation2 + $0x10] sm:$0xff] %vm1419_vm3, %v6876_v0 }
0x1a6d   : > { %v3560_v60 = vld [vmem:[#allocation2 + $0x5] sm:$0xff]  ;;  %3564 = vrot.lane.b32.xlu1 %v3561_v59, %s6880_s5 }
0x1a6e   : > { %3746 = vst.msk [vmem:[#allocation2] sm:$0xff] %vm1419_vm3, %v6876_v0 }
0x1ade   : > { %v3569_v61 = vpop.permute.xlu0 %3568 }
0x1adf   : > { %v3565_v62 = vpop.permute.xlu1 %3564 }
0x1ae0   : > { %v3571_v63 = vsel %vm1419_vm3, %v3560_v60, %v3565_v62 }
0x1ae1   : > { %v3572_v2 = vsel %vm1445_vm6, %v3571_v63, %v3569_v61 }
0x1ae2   : > { %v3573_v3 = vpack.c.bf16 %v3572_v2, %v3572_v2 }
0x1ae4   : > { %5546 = vmatmul.mubr.msk.bf16.vlgmr.msra.gmra.mxu1 %vm1447_vm7, %v3573_v3 }
0x1ae5   : > { %5577 = vmatprep.mubr.msk.bf16.mxu1 %vm6877_vm2, %v6876_v0  ;;  %5574 = vmatpush3.bf16.msra.mxu1 %v6088_v30 }
0x1ae6   : > { %5575 = vmatprep.subr.bf16.mxu1 %v6876_v0 }
0x1ae9   : > { %5576 = vmatpush3.bf16.msra.mxu1 %v6089_v40 }
0x1aea   : > { %5581 = vmatprep.subr.bf16.mxu1 %v6876_v0 }
0x1ba4   : > { %v3653_v6 = vpop.f32.mrf.mxu1 }
0x1ba5   : > { %v3654_v7 = vadd.f32 %v5033_v5, %v3653_v6 }
0x1ba6   : > { %v5547_v9 = vpop.f32.mrf.mxu1 }
0x1ba7   : > { %v3659_v10 = vmax.f32 %v3654_v7, 0.0 }
0x1ba8   : > { %v3656_v11 = vpop.f32.mrf.mxu1 }
0x1ba9   : > { %v3660_v12 = vpack.c.bf16 %v3659_v10, %v3659_v10 }
0x1baa   : > { %v5548_v13 = vpop.f32.mrf.mxu1 }
0x1bab   : > { %5554 = vmatmul.mubr.msk.bf16.vlgmr.msra.gmra.mxu0 %vm1419_vm3, %v3660_v12 }
0x1bac   : > { %5569 = vmatprep.mubr.msk.bf16.mxu0 %vm6877_vm2, %v6876_v0  ;;  %5558 = vmatpush3.bf16.msra.mxu0 %v6082_v15 }
0x1bad   : > { %5559 = vmatprep.subr.bf16.mxu0 %v6876_v0 }
0x1bb0   : > { %5560 = vmatpush3.bf16.msra.mxu0 %v6083_v16 }
0x1bb1   : > { %5561 = vmatprep.subr.bf16.mxu0 %v6876_v0 }
0x1bb4   : > { %5562 = vmatpush3.bf16.msra.mxu0 %v6084_v17 }
0x1bb5   : > { %5563 = vmatprep.subr.bf16.mxu0 %v6876_v0 }
0x1bb8   : > { %5564 = vmatpush3.bf16.msra.mxu0 %v6085_v19 }
0x1bb9   : > { %5565 = vmatprep.subr.bf16.mxu0 %v6876_v0 }
0x1bbc   : > { %5566 = vmatpush3.bf16.msra.mxu0 %v6086_v20 }
0x1bbd   : > { %5567 = vmatprep.subr.bf16.mxu0 %v6876_v0 }
0x1bc0   : > { %5568 = vmatpush3.bf16.msra.mxu0 %v6087_v23 }
0x1bc1   : > { %5597 = vmatprep.subr.bf16.mxu0 %v6876_v0 }
0x1c6b   : > { %v3716_v14 = vpop.f32.mrf.mxu0 }
0x1c6c   : > { %v3717_v22 = vadd.f32 %v5041_v21, %v3716_v14 }
0x1c6d   : > { %v5555_v24 = vpop.f32.mrf.mxu0 }
0x1c6e   : > { %v3722_v25 = vadd.f32 %v3717_v22, %v3529_v52  ;;  %v6093_v52 = vld [vmem:[#allocation21 + $0x40] sm:$0xff]  }
0x1c6f   : > { %v3719_v27 = vpop.f32.mrf.mxu0 }
0x1c70   : > { %v3745_v28 = vmax.f32 %v3722_v25, 0.0 }
0x1c71   : > { %v5556_v29 = vpop.f32.mrf.mxu0 }
0x1c72   : > { %3747 = vst.msk [vmem:[#allocation2 + $0x8] sm:$0xff] %vm1419_vm3, %v3745_v28 }
0x1c79   : > { %v3751_v31 = vld [vmem:[#allocation2 + $0x9] sm:$0xff] }
0x1c7a   : > { %v3750_v33 = vld [vmem:[#allocation2 + $0x8] sm:$0xff]  ;;  %3757 = vrot.lane.b32.xlu0 %v3751_v31, %s6882_s10 }
0x1c7b   : > { %v3749_v34 = vld [vmem:[#allocation2 + $0x7] sm:$0xff]  ;;  %3753 = vrot.lane.b32.xlu1 %v3750_v33, %s6880_s5  ;;  %v6095_v33 = vld [vmem:[#allocation21 + $0x30] sm:$0xff]  }
0x1c7c   : > { %4009 = vst.msk [vmem:[#allocation2] sm:$0xff] %vm1419_vm3, %v6876_v0 }
0x1cec   : > { %v3758_v35 = vpop.permute.xlu0 %3757 }
0x1ced   : > { %v3754_v36 = vpop.permute.xlu1 %3753 }
0x1cee   : > { %v3760_v37 = vsel %vm1419_vm3, %v3749_v34, %v3754_v36 }
0x1cef   : > { %v3761_v38 = vsel %vm1445_vm6, %v3760_v37, %v3758_v35 }
0x1cf0   : > { %v3762_v39 = vpack.c.bf16 %v3761_v38, %v3761_v38 }
0x1cf2   : > { %5570 = vmatmul.mubr.msk.bf16.vlgmr.msra.gmra.mxu0 %vm1447_vm7, %v3762_v39 }
0x1cf3   : > { %5609 = vmatprep.mubr.msk.bf16.mxu0 %vm6877_vm2, %v6876_v0 }
0x1db2   : > { %v3842_v42 = vpop.f32.mrf.mxu0 }
0x1db3   : > { %v3843_v43 = vadd.f32 %v5045_v41, %v3842_v42 }
0x1db4   : > { %v5571_v44 = vpop.f32.mrf.mxu0 }
0x1db5   : > { %v3848_v45 = vmax.f32 %v3843_v43, 0.0 }
0x1db6   : > { %v3845_v46 = vpop.f32.mrf.mxu0 }
0x1db7   : > { %v3849_v47 = vpack.c.bf16 %v3848_v45, %v3848_v45 }
0x1db8   : > { %v5572_v48 = vpop.f32.mrf.mxu0 }
0x1db9   : > { %5578 = vmatmul.mubr.msk.bf16.vlgmr.msra.gmra.mxu1 %vm1419_vm3, %v3849_v47 }
0x1dba   : > { %5593 = vmatprep.mubr.msk.bf16.mxu1 %vm6877_vm2, %v6876_v0  ;;  %5582 = vmatpush3.bf16.msra.mxu1 %v6090_v49 }
0x1dbb   : > { %5583 = vmatprep.subr.bf16.mxu1 %v6876_v0 }
0x1dbe   : > { %5584 = vmatpush3.bf16.msra.mxu1 %v6091_v50 }
0x1dbf   : > { %5585 = vmatprep.subr.bf16.mxu1 %v6876_v0 }
0x1dc2   : > { %5586 = vmatpush3.bf16.msra.mxu1 %v6092_v51  ;;  %v6096_v51 = vld [vmem:[#allocation9 + $0x28] sm:$0xff]  }
0x1dc3   : > { %5587 = vmatprep.subr.bf16.mxu1 %v6876_v0  ;;  %5598 = vmatpush3.bf16.msra.mxu0 %v6096_v51 }
0x1dc4   : > { %5599 = vmatprep.subr.bf16.mxu0 %v6876_v0 }
0x1dc6   : > { %5588 = vmatpush3.bf16.msra.mxu1 %v6093_v52  ;;  %v6097_v52 = vld [vmem:[#allocation9 + $0x20] sm:$0xff]  }
0x1dc7   : > { %5589 = vmatprep.subr.bf16.mxu1 %v6876_v0  ;;  %5600 = vmatpush3.bf16.msra.mxu0 %v6097_v52 }
0x1dc8   : > { %5601 = vmatprep.subr.bf16.mxu0 %v6876_v0 }
0x1dca   : > { %5590 = vmatpush3.bf16.msra.mxu1 %v6094_v53  ;;  %v6098_v53 = vld [vmem:[#allocation9 + $0x18] sm:$0xff]  }
0x1dcb   : > { %5591 = vmatprep.subr.bf16.mxu1 %v6876_v0  ;;  %5602 = vmatpush3.bf16.msra.mxu0 %v6098_v53 }
0x1dcc   : > { %5603 = vmatprep.subr.bf16.mxu0 %v6876_v0 }
0x1dce   : > { %5592 = vmatpush3.bf16.msra.mxu1 %v6095_v33 }
0x1dcf   : > { %5613 = vmatprep.subr.bf16.mxu1 %v6876_v0 }
0x1e79   : > { %v3905_v55 = vpop.f32.mrf.mxu1 }
0x1e7a   : > { %v3906_v56 = vadd.f32 %v5053_v54, %v3905_v55  ;;  %v6099_v54 = vld [vmem:[#allocation9 + $0x10] sm:$0xff]   ;;  %v6100_v55 = vld [vmem:[#allocation9 + $0x8] sm:$0xff]  }
0x1e7b   : > { %v5579_v57 = vpop.f32.mrf.mxu1  ;;  %5604 = vmatpush3.bf16.msra.mxu0 %v6099_v54 }
0x1e7c   : > { %v3911_v58 = vadd.f32 %v3906_v56, %v3722_v25  ;;  %5605 = vmatprep.subr.bf16.mxu0 %v6876_v0  ;;  %v5057_v56 = vld [vmem:[#allocation20 + $0x1] ss:$0 sm:$0xff] }
0x1e7d   : > { %v3908_v59 = vpop.f32.mrf.mxu1 }
0x1e7e   : > { %v3913_v60 = vcombine.high %v3911_v58, %v3911_v58  ;;  %v3920_v61 = vrot.slane %v3911_v58, %v7640_v8 }
0x1e7f   : > { %v5580_v62 = vpop.f32.mrf.mxu1  ;;  %5606 = vmatpush3.bf16.msra.mxu0 %v6100_v55 }
0x1e80   : > { %v3927_v63 = vrot.slane %v3913_v60, %v7640_v8  ;;  %v3928_v2 = vcombine.high %v3920_v61, %v3920_v61  ;;  %v3936_v3 = vrot.slane %v3920_v61, %v7640_v8  ;;  %5607 = vmatprep.subr.bf16.mxu0 %v6876_v0 }
0x1e82   : > { %v3929_v4 = vcombine.high %v3927_v63, %v3927_v63  ;;  %v3943_v5 = vrot.slane %v3927_v63, %v7640_v8  ;;  %v3950_v6 = vrot.slane %v3928_v2, %v7640_v8  ;;  %v3958_v7 = vcombine.high %v3936_v3, %v3936_v3  ;;  %v6101_v63 = vld [vmem:[#allocation9] sm:$0xff]  }
0x1e83   : > { %v3965_v13 = vrot.slane %v3936_v3, %v7643_v18  ;;  %5608 = vmatpush3.bf16.msra.mxu0 %v6101_v63 }
0x1e84   : > { %v3957_v9 = vrot.slane %v3929_v4, %v7640_v8  ;;  %v3959_v10 = vcombine.high %v3943_v5, %v3943_v5  ;;  %v3960_v11 = vcombine.high %v3950_v6, %v3950_v6  ;;  %v3969_v12 = vrot.slane %v3950_v6, %v7643_v18 }
0x1e85   : > { %v3973_v15 = vrot.slane %v3958_v7, %v7643_v18  ;;  %v3981_v19 = vrot.slane %v3943_v5, %v7643_v18 }
0x1e86   : > { %v3961_v16 = vcombine.high %v3957_v9, %v3957_v9  ;;  %v3977_v17 = vrot.slane %v3960_v11, %v7643_v18  ;;  %v3985_v20 = vrot.slane %v3957_v9, %v7643_v18  ;;  %v4010_v21 = vcombine.low %v3965_v13, %v3969_v12 }
0x1e87   : > { %v3989_v14 = vrot.slane %v3959_v10, %v7643_v18 }
0x1e88   : > { %v3993_v8 = vrot.slane %v3961_v16, %v7643_v18  ;;  %v4011_v22 = vcombine.low %v3973_v15, %v3977_v17  ;;  %v4027_v23 = vcombine.low %v3981_v19, %v3985_v20  ;;  %v4018_v24 = vrot.slane %v4010_v21, %v7649_v26 }
0x1e8a   : > { %v4025_v25 = vrot.slane %v4011_v22, %v7649_v26  ;;  %v4028_v27 = vcombine.low %v3989_v14, %v3993_v8  ;;  %v4035_v29 = vrot.slane %v4027_v23, %v7649_v26  ;;  %v6102_v22 = vld [vmem:[#allocation12 + $0x28] sm:$0xff]   ;;  %v6103_v23 = vld [vmem:[#allocation12 + $0x20] sm:$0xff]  }
0x1e8c   : > { %v4026_v28 = vcombine.low %v4018_v24, %v4025_v25  ;;  %v4042_v30 = vrot.slane %v4028_v27, %v7649_v26  ;;  %v6104_v24 = vld [vmem:[#allocation12 + $0x18] sm:$0xff]   ;;  %v6105_v25 = vld [vmem:[#allocation12 + $0x10] sm:$0xff]   ;;  %v6106_v27 = vld [vmem:[#allocation12 + $0x8] sm:$0xff]  }
0x1e8e   : > { %v4043_v31 = vcombine.low %v4035_v29, %v4042_v30  ;;  %4046 = vst.msk [vmem:[#allocation2 + $0x8] sm:$0xff] %vm1419_vm3, %v4026_v28  ;;  %v5065_v28 = vld [vmem:[#allocation8] ss:$0 sm:$0xff] }
0x1e90   : > { %4047 = vst.msk [vmem:[#allocation2 + $0x10] sm:$0xff] %vm1419_vm3, %v4043_v31 }
0x1e95   : > { %v4049_v18 = vld [vmem:[#allocation2 + $0x7] sm:$0xff] }
0x1e96   : > { %v4051_v34 = vld [vmem:[#allocation2 + $0x8] sm:$0xff]  ;;  %4175 = vst.msk [vmem:[#allocation2] sm:$0xff] %vm1419_vm3, %v6876_v0 }
0x1e97   : > { %v4053_v35 = vld [vmem:[#allocation2 + $0x9] sm:$0xff]  ;;  %v4054_v36 = vld [vmem:[#allocation2 + $0x11] sm:$0xff] }
0x1e98   : > { %v4052_v37 = vld [vmem:[#allocation2 + $0x10] sm:$0xff]  ;;  %4178 = vst.msk [vmem:[#allocation2 + $0x18] sm:$0xff] %vm1419_vm3, %v6876_v0  ;;  %v5962_v26 = vpack.i.bf16 %v4054_v36, %v4053_v35 }
0x1e99   : > { %v5957_v38 = vpack.i.bf16 %v4052_v37, %v4051_v34  ;;  %v4050_v45 = vld [vmem:[#allocation2 + $0xf] sm:$0xff]  ;;  %v6107_v37 = vld [vmem:[#allocation12] sm:$0xff]  }
0x1e9a   : > { %5963 = vrot.lane.b32.xlu0 %v5962_v26, %s6882_s10 }
0x1e9b   : > { %5958 = vrot.lane.b32.xlu1 %v5957_v38, %s6880_s5 }
0x1f0c   : > { %v5964_v39 = vpop.permute.xlu0 %5963 }
0x1f0d   : > { %v5959_v40 = vpop.permute.xlu1 %5958  ;;  %v5966_v41 = vunpack.i.h.bf16 %v5964_v39  ;;  %v5965_v42 = vunpack.i.l.bf16 %v5964_v39 }
0x1f0e   : > { %v5961_v43 = vunpack.i.h.bf16 %v5959_v40  ;;  %v5960_v44 = vunpack.i.l.bf16 %v5959_v40 }
0x1f10   : > { %v4071_v46 = vsel %vm1419_vm3, %v4049_v18, %v5960_v44  ;;  %v4072_v47 = vsel %vm1419_vm3, %v4050_v45, %v5961_v43 }
0x1f11   : > { %v4073_v48 = vsel %vm1445_vm6, %v4071_v46, %v5965_v42  ;;  %v4074_v49 = vsel %vm1445_vm6, %v4072_v47, %v5966_v41  ;;  %v2791_v42 = vsub.f32 %v7563_v32, %v7546_v1 }
0x1f12   : > { %v4075_v50 = vpack.c.bf16 %v4074_v49, %v4073_v48 }
0x1f13   : > { %v2792_v43 = vmul.f32 %v2791_v42, %v2791_v42 }
0x1f14   : > { %5594 = vmatmul.mubr.msk.bf16.vlgmr.msra.gmra.mxu1 %vm1447_vm7, %v4075_v50 }
0x1f15   : > { %5625 = vmatprep.mubr.msk.bf16.mxu1 %vm6877_vm2, %v6876_v0  ;;  %5614 = vmatpush3.bf16.msra.mxu1 %v6102_v22  ;;  %v2794_v44 = vsel %vm2793_vm14, %v2792_v43, 0.0 }
0x1f16   : > { %5615 = vmatprep.subr.bf16.mxu1 %v6876_v0 }
0x1f19   : > { %5616 = vmatpush3.bf16.msra.mxu1 %v6103_v23 }
0x1f1a   : > { %5617 = vmatprep.subr.bf16.mxu1 %v6876_v0 }
0x1f1d   : > { %5618 = vmatpush3.bf16.msra.mxu1 %v6104_v24 }
0x1f1e   : > { %5619 = vmatprep.subr.bf16.mxu1 %v6876_v0 }
0x1f21   : > { %5620 = vmatpush3.bf16.msra.mxu1 %v6105_v25 }
0x1f22   : > { %5621 = vmatprep.subr.bf16.mxu1 %v6876_v0 }
0x1f25   : > { %5622 = vmatpush3.bf16.msra.mxu1 %v6106_v27 }
0x1f26   : > { %5623 = vmatprep.subr.bf16.mxu1 %v6876_v0 }
0x1f29   : > { %5624 = vmatpush3.bf16.msra.mxu1 %v6107_v37 }
0x1fd4   : > { %v4155_v57 = vpop.f32.mrf.mxu1 }
0x1fd5   : > { %v4156_v58 = vadd.f32 %v5057_v56, %v4155_v57 }
0x1fd6   : > { %v5595_v59 = vpop.f32.mrf.mxu1 }
0x1fd7   : > { %4176 = vst.msk [vmem:[#allocation2 + $0x8] sm:$0xff] %vm1419_vm3, %v4156_v58 }
0x1fd8   : > { %v4158_v60 = vpop.f32.mrf.mxu1 }
0x1fd9   : > { %v4159_v61 = vadd.f32 %v5057_v56, %v4158_v60 }
0x1fda   : > { %v5596_v62 = vpop.f32.mrf.mxu1 }
0x1fdb   : > { %4177 = vst.msk [vmem:[#allocation2 + $0x10] sm:$0xff] %vm1419_vm3, %v4159_v61 }
0x1fde   : > { %v4179_v2 = vld [vmem:[#allocation2 + $0x7] sm:$0xff] }
0x1fdf   : > { %4307 = vst.msk [vmem:[#allocation2] sm:$0xff] %vm1419_vm3, %v6876_v0  ;;  %v4181_v3 = vld [vmem:[#allocation2 + $0x8] sm:$0xff] }
0x1fe2   : > { %v4183_v4 = vld [vmem:[#allocation2 + $0x9] sm:$0xff]  ;;  %v4184_v5 = vld [vmem:[#allocation2 + $0x11] sm:$0xff] }
0x1fe3   : > { %v4182_v6 = vld [vmem:[#allocation2 + $0x10] sm:$0xff]  ;;  %4310 = vst.msk [vmem:[#allocation2 + $0x18] sm:$0xff] %vm1419_vm3, %v6876_v0  ;;  %v5972_v7 = vpack.i.bf16 %v4184_v5, %v4183_v4 }
0x1fe4   : > { %v5967_v9 = vpack.i.bf16 %v4182_v6, %v4181_v3  ;;  %v4180_v17 = vld [vmem:[#allocation2 + $0xf] sm:$0xff]  ;;  %v5073_v3 = vld [vmem:[#allocation11] ss:$0 sm:$0xff] }
0x1fe5   : > { %5973 = vrot.lane.b32.xlu0 %v5972_v7, %s6882_s10 }
0x1fe6   : > { %5968 = vrot.lane.b32.xlu1 %v5967_v9, %s6880_s5 }
0x2057   : > { %v5974_v10 = vpop.permute.xlu0 %5973 }
0x2058   : > { %v5969_v11 = vpop.permute.xlu1 %5968  ;;  %v5976_v12 = vunpack.i.h.bf16 %v5974_v10  ;;  %v5975_v13 = vunpack.i.l.bf16 %v5974_v10 }
0x2059   : > { %v5971_v15 = vunpack.i.h.bf16 %v5969_v11  ;;  %v5970_v16 = vunpack.i.l.bf16 %v5969_v11 }
0x205b   : > { %v4201_v19 = vsel %vm1419_vm3, %v4179_v2, %v5970_v16  ;;  %v4202_v20 = vsel %vm1419_vm3, %v4180_v17, %v5971_v15 }
0x205c   : > { %v4203_v21 = vsel %vm1445_vm6, %v4201_v19, %v5975_v13  ;;  %v4204_v14 = vsel %vm1445_vm6, %v4202_v20, %v5976_v12 }
0x205d   : > { %v4205_v8 = vpack.c.bf16 %v4204_v14, %v4203_v21 }
0x205f   : > { %5610 = vmatmul.mubr.msk.bf16.vlgmr.msra.gmra.mxu0 %vm1447_vm7, %v4205_v8 }
0x211f   : > { %v4285_v29 = vpop.f32.mrf.mxu0 }
0x2120   : > { %v4286_v30 = vadd.f32 %v5065_v28, %v4285_v29 }
0x2121   : > { %v5611_v31 = vpop.f32.mrf.mxu0 }
0x2122   : > { %v4292_v33 = vmax.f32 %v4286_v30, 0.0 }
0x2123   : > { %v4288_v18 = vpop.f32.mrf.mxu0 }
0x2124   : > { %4308 = vst.msk [vmem:[#allocation2 + $0x8] sm:$0xff] %vm1419_vm3, %v4292_v33  ;;  %v4289_v34 = vadd.f32 %v5065_v28, %v4288_v18 }
0x2125   : > { %v5612_v35 = vpop.f32.mrf.mxu0 }
0x2126   : > { %v4293_v36 = vmax.f32 %v4289_v34, 0.0 }
0x2128   : > { %4309 = vst.msk [vmem:[#allocation2 + $0x10] sm:$0xff] %vm1419_vm3, %v4293_v36 }
0x212b   : > { %v4313_v26 = vld [vmem:[#allocation2 + $0x8] sm:$0xff] }
0x212c   : > { %v4311_v51 = vld [vmem:[#allocation2 + $0x7] sm:$0xff] }
0x212f   : > { %v4315_v38 = vld [vmem:[#allocation2 + $0x9] sm:$0xff]  ;;  %v4316_v39 = vld [vmem:[#allocation2 + $0x11] sm:$0xff] }
0x2130   : > { %v4314_v40 = vld [vmem:[#allocation2 + $0x10] sm:$0xff]  ;;  %v5982_v0 = vpack.i.bf16 %v4316_v39, %v4315_v38 }
0x2131   : > { %v5977_v41 = vpack.i.bf16 %v4314_v40, %v4313_v26  ;;  %v4312_v52 = vld [vmem:[#allocation2 + $0xf] sm:$0xff] }
0x2132   : > { %5983 = vrot.lane.b32.xlu0 %v5982_v0, %s6882_s10  ;;  %s6706_s10 = scalar_lea.vmem %s4479_s1, 128 }
0x2133   : > { %5978 = vrot.lane.b32.xlu1 %v5977_v41, %s6880_s5  ;;  %s7790_s5 = scalar_lea.hbm %s7039_s3, %s5082_s4  ;;  %p6707_p6 = scmp.ne.s32.totalorder %s4479_s1, %s6706_s10 }
0x2134   : > { %p6714_p13 = scmp.lt.s32.totalorder %s6712_s2, %s6706_s10 }
0x2135   : > { %p6708_p1 = pnand %p6707_p6, %p7922_p9 }
0x2136   : > { %p6715_p2 = por %p6714_p13, %p6713_p5 }
0x2137   : > { %p6709_p3 = pneg %p6708_p1 }
0x2139   : > { %p6716_p4 = pnand %p6715_p2, %p6709_p3 }
0x2157   : > { %2795 = vadd.xlane.f32.xlu1 %v2794_v44 }
0x21a4   : > { %v5984_v45 = vpop.permute.xlu0 %5983 }
0x21a5   : > { %v5979_v46 = vpop.permute.xlu1 %5978  ;;  %v5986_v47 = vunpack.i.h.bf16 %v5984_v45  ;;  %v5985_v48 = vunpack.i.l.bf16 %v5984_v45 }
0x21a6   : > { %v5981_v49 = vunpack.i.h.bf16 %v5979_v46  ;;  %v5980_v50 = vunpack.i.l.bf16 %v5979_v46 }
0x21a8   : > { %v4333_v53 = vsel %vm1419_vm3, %v4311_v51, %v5980_v50  ;;  %v4334_v54 = vsel %vm1419_vm3, %v4312_v52, %v5981_v49 }
0x21a9   : > { %v4335_v1 = vsel %vm1445_vm6, %v4333_v53, %v5985_v48  ;;  %v4336_v32 = vsel %vm1445_vm6, %v4334_v54, %v5986_v47 }
0x21aa   : > { %v4337_v55 = vpack.c.bf16 %v4336_v32, %v4335_v1 }
0x21ac   : > { %5626 = vmatmul.mubr.msk.bf16.vlgmr.msra.gmra.mxu1 %vm1447_vm7, %v4337_v55 }
0x21e0   : > { %v2796_v56 = vpop.xlane.xlu1 %2795 }
0x21e1   : > { %v2797_v57 = vrot.slane %v2796_v56, 4 }
0x21e3   : > { %v2798_v58 = vadd.f32 %v2797_v57, %v2796_v56 }
0x21e5   : > { %v2799_v59 = vrot.slane %v2798_v58, 2 }
0x21e7   : > { %v2800_v60 = vadd.f32 %v2799_v59, %v2798_v58 }
0x21e9   : > { %v2801_v61 = vrot.slane %v2800_v60, 1 }
0x21eb   : > { %v2802_v62 = vadd.f32 %v2801_v61, %v2800_v60 }
0x21ed   : > { %5629 = vpush %v2802_v62 }
0x221e   : > { %s5630_s6 = spop %5629 }
0x221f   : > { %v2804_v63 = vstv %s5630_s6 }
0x2220   : > { %v2806_v2 = vmul.f32 0.015625, %v2804_v63 }
0x2222   : > { %2808 = vst.msk [vmem:[%s1295_s22] sm:$0x1] %vm2807_vm15, %v2806_v2 }
0x226c   : > { %v4417_v4 = vpop.f32.mrf.mxu1 }
0x226d   : > { %v4418_v5 = vadd.f32 %v5073_v3, %v4417_v4 }
0x226e   : > { %v5627_v6 = vpop.f32.mrf.mxu1 }
0x226f   : > { %4424 = vxpose.xlu0.b32.start [1/2] (short) (narrow) %v4418_v5, 8 }
0x2270   : > { %v4420_v7 = vpop.f32.mrf.mxu1 }
0x2271   : > { %v4421_v9 = vadd.f32 %v5073_v3, %v4420_v7 }
0x2272   : > { %v5628_v10 = vpop.f32.mrf.mxu1 }
0x2273   : > { %4425 = vxpose.xlu0.b32.end [2/2] (short) (narrow) %v4421_v9, 8 }
0x22eb   : > { %v4440_v11 = vpop.trf.xlu0 }
0x22ec   : > { %4456 = vst.msk [vmem:[%s1272_s7] sm:$0xff] %vm1332_vm4, %v4440_v11 }
0x22ed   : > { %6719 = shalt.err (!%p6716_p4)
}
0x22ee   : > { %s6720_s28 = scalar_lea.hbm %s7790_s5, 128  ;;  %s6724_s6 = scalar_lea.hbm %s7039_s3, 256 }
0x22ef   : > { %p6721_p12 = scmp.ne.s32.totalorder %s7790_s5, %s6720_s28  ;;  %p6725_p0 = scmp.lt.s32.totalorder %s7790_s5, %s7039_s3 }
0x22f0   : > { %p6726_p10 = scmp.lt.s32.totalorder %s6724_s6, %s6720_s28 }
0x22f1   : > { %p6722_p7 = pnand %p6721_p12, %p7922_p9 }
0x22f2   : > { %p6727_p11 = por %p6726_p10, %p6725_p0 }
0x22f3   : > { %p6723_p8 = pneg %p6722_p7 }
0x22f5   : > { %p6728_p6 = pnand %p6727_p11, %p6723_p8 }
0x22f7   : > { %6731 = shalt.err (!%p6728_p6)
}
0x22f8   : > { %5723 = dma.vmem_to_hbm [thread:$0]  (%p7922_p9), %s4479_s1, 128, %s7790_s5, %s4458_s26  }
0x22f9 PF: > { %s7923_s22 = sld [smem:[#allocation75_spill]] }
0x22fa   : > { %s7924_s16 = sld [smem:[#allocation73_spill]] }
0x22fb   : > { %s7925_s11 = sld [smem:[#allocation78_spill]] }
0x22ff   : > { %p5845_p1 = scmp.ge.s32.totalorder %s7923_s22, 2 }
0x2300   : > { %s4496_s4 = sand.u32 1, %s7924_s16  }
0x2301   : > { %p7926_p3 = scmp.ne.s32.totalorder %s7925_s11, 0  ;;  %s4497_s7 = scalar_lea.sflag [#allocation5], %s4496_s4 }
0x2303   : > { %p5796_p5 = pnand %p5845_p1, %p7926_p3 }
0x2305   : > { %p5797_p13 = pneg %p5796_p5 }
0x2307   : > { %6797 = dma.done.wait (%p5797_p13), %s4497_s7, 128  }
0x2308   : > { %6799 = vsyncadd (%p5797_p13), %s4497_s7, 4294967168  ;;  %s7927_s26 = sld [smem:[#allocation76_spill]]  ;;  %s7930_s22 = smov %s6806_s23 }
0x2309   : > { %s7928_s10 = sld [smem:[#allocation74_spill]] }
0x230a   : > { %s7929_s0 = sld [smem:[#allocation77_spill]] }
0x230e   : > { %p86_p2 = scmp.ge.s32.totalorder %s7927_s26, 4  }
0x230f   : > { %s7931_s23 = smov %s7928_s10 }
0x2310   :  { %88 = sbr.rel (!%p86_p2) target bundleno = 69 (0x45), region = 351 }
0x2315   :  { %4515 = vsyncpa [#allocation4], 1 }
0x2316   :  { %4517 = vsyncpa [#allocation4 + $0x1], 1 }
0x2317   :  { %4518 = vsyncpa [#allocation7], 1 }
0x2318   :  { %4519 = vsyncpa [#allocation10], 1 }
0x2319   :  { %4520 = vsyncpa [#allocation13], 1 }
0x231a   :  { %4521 = vsyncpa [#allocation16], 1 }
0x231b   :  { %4522 = vsyncpa [#allocation19], 1 }
0x231c   :  { %4523 = vsyncpa [#allocation22], 1 }
0x231d   :  { %4524 = vsyncpa [#allocation25], 1 }
0x231e   :  { %4525 = vsyncpa [#allocation28], 1 }
0x231f   :  { %4526 = vsyncpa [#allocation31], 1 }
0x2320   :  { %4527 = vsyncpa [#allocation34], 1 }
0x2321   :  { %4528 = vsyncpa [#allocation37], 1 }
0x2322   :  { %4529 = vsyncpa [#allocation5], 1 }
0x2323   :  { %4531 = vsyncpa [#allocation5 + $0x1], 1 }

</bundles_post_ra>
